<compile_context>
chip_gen: v7x
topology: tpu7x:2x2x1
jax: 0.10.0
libtpu: 0.0.40
codegen_flags: <defaults>
</compile_context>

<pallas_src>
import functools

import jax
import jax.numpy as jnp
from jax.experimental import pallas as pl
from jax.experimental.pallas import tpu as pltpu

DILATIONS = (1, 2, 4, 8, 16)
PAD = max(DILATIONS)  # halo wide enough for every dilation


# -----------------------------------------------------------------------------
# Fused kernel: one batch image per grid step.
# -----------------------------------------------------------------------------
def _dblock_kernel(x_ref, w_ref, b_ref, o_ref, pad_ref, *, H, W, C):
    """x_ref  : (1, H, W, C)        f32  NHWC input block
       w_ref  : (5, 9*C, C)         bf16 im2col weights, resident in VMEM
       b_ref  : (5, 1, C)           f32  biases, resident in VMEM
       o_ref  : (1, H, W, C)        f32  NHWC output block
       pad_ref: (H+2P, W+2P, C)     f32  zero-haloed working buffer (scratch)"""
    Hp = H + 2 * PAD
    Wp = W + 2 * PAD

    # Zero only the halo frame; the interior is always overwritten below.
    # Re-done every step because scratch is uninitialised and per-core: with a
    # "parallel" grid a pl.program_id(0)==0 guard would skip cores > 0.
    pad_ref[0:PAD, :, :] = jnp.zeros((PAD, Wp, C), jnp.float32)
    pad_ref[PAD + H:Hp, :, :] = jnp.zeros((PAD, Wp, C), jnp.float32)
    pad_ref[PAD:PAD + H, 0:PAD, :] = jnp.zeros((H, PAD, C), jnp.float32)
    pad_ref[PAD:PAD + H, PAD + W:Wp, :] = jnp.zeros((H, PAD, C), jnp.float32)

    x = x_ref[0]                                    # (H, W, C) f32
    pad_ref[PAD:PAD + H, PAD:PAD + W, :] = x        # aligned interior write
    acc = x.reshape(H * W, C)                       # running x + sum(d_i), f32

    for li, d in enumerate(DILATIONS):
        # One load covering all three ky row-taps of this conv (leading-dim
        # slices are tile-aligned by construction -> no sublane shuffles).
        span = pad_ref[PAD - d:PAD + d + H, :, :]   # (H + 2d, Wp, C)

        # Build the (H*W, 9*C) im2col patch matrix. kx taps are static slices
        # of the loaded value (in-register shifts), not misaligned ref slices.
        taps = []
        for ky in range(3):
            rows = span[ky * d:ky * d + H]          # (H, Wp, C), free slice
            for kx in range(3):
                c0 = PAD + (kx - 1) * d
                taps.append(rows[:, c0:c0 + W, :])  # (H, W, C)
        patches = jnp.concatenate(taps, axis=-1)    # (H, W, 9*C)
        patches = patches.reshape(H * W, 9 * C).astype(jnp.bfloat16)

        # One MXU matmul per conv: (H*W, 9C) x (9C, C), f32 accumulation.
        y = jnp.dot(patches, w_ref[li], preferred_element_type=jnp.float32)
        y = jnp.maximum(y + b_ref[li], 0.0)         # bias + ReLU, (H*W, C) f32
        acc = acc + y
        # d_i is the input of the next conv (aligned interior write).
        pad_ref[PAD:PAD + H, PAD:PAD + W, :] = y.reshape(H, W, C)

    o_ref[0] = acc.reshape(H, W, C).astype(o_ref.dtype)   # lane-dense store


# -----------------------------------------------------------------------------
# Parameter preparation (once, outside the jitted forward): fold each PyTorch
# OIHW weight (Cout, Cin, 3, 3) into an im2col matrix (9*Cin, Cout) whose rows
# are ordered (ky, kx, ci) to match the kernel's patch layout.  O(C^2) only.
# -----------------------------------------------------------------------------
def prepare_params(params_oihw):
    ws, bs = [], []
    for w_oihw, b in params_oihw:
        c_out, c_in = w_oihw.shape[:2]
        w_mat = jnp.transpose(w_oihw, (2, 3, 1, 0)).reshape(9 * c_in, c_out)
        ws.append(w_mat.astype(jnp.bfloat16))
        bs.append(b.astype(jnp.float32)[None, :])
    return jnp.stack(ws), jnp.stack(bs)   # (5, 9C, C) bf16, (5, 1, C) f32


# -----------------------------------------------------------------------------
# NHWC forward (transpose-free core path).
# -----------------------------------------------------------------------------
@jax.jit
def dblock_forward_nhwc(x_nhwc, w_mat, b_mat):
    N, H, W, C = x_nhwc.shape
    kernel = functools.partial(_dblock_kernel, H=H, W=W, C=C)
    return pl.pallas_call(
        kernel,
        out_shape=jax.ShapeDtypeStruct((N, H, W, C), x_nhwc.dtype),
        grid=(N,),
        in_specs=[
            pl.BlockSpec((1, H, W, C), lambda n: (n, 0, 0, 0)),
            # Weights / bias: whole-array, single-buffered VMEM residents
            # (constant across the grid -> no per-step DMA, no double buffer).
            pl.BlockSpec(memory_space=pltpu.MemorySpace.VMEM),
            pl.BlockSpec(memory_space=pltpu.MemorySpace.VMEM),
        ],
        out_specs=pl.BlockSpec((1, H, W, C), lambda n: (n, 0, 0, 0)),
        scratch_shapes=[pltpu.VMEM((H + 2 * PAD, W + 2 * PAD, C), jnp.float32)],
        compiler_params=pltpu.CompilerParams(
            dimension_semantics=("parallel",),      # batch images across TCs
            vmem_limit_bytes=32 * 1024 * 1024,      # headroom if C/H/W scale up
        ),
    )(x_nhwc, w_mat, b_mat)


# -----------------------------------------------------------------------------
# NCHW adapter (PyTorch layout) — used only to compare against the reference.
# TODO(synk): in an NHWC pipeline these two transposes disappear entirely.
# -----------------------------------------------------------------------------
def dblock_more_dilate(x_nchw, w_mat, b_mat):
    x_nhwc = jnp.transpose(x_nchw, (0, 2, 3, 1))
    out = dblock_forward_nhwc(x_nhwc, w_mat, b_mat)
    return jnp.transpose(out, (0, 3, 1, 2))


# -----------------------------------------------------------------------------
# Pure-JAX reference (lax.conv_general_dilated, NCHW/OIHW like PyTorch).
# -----------------------------------------------------------------------------
def dblock_reference(x_nchw, params_oihw):
    cur = x_nchw
    out = x_nchw
    for (w_oihw, b), d in zip(params_oihw, DILATIONS):
        y = jax.lax.conv_general_dilated(
            cur, w_oihw,
            window_strides=(1, 1),
            padding=((d, d), (d, d)),
            rhs_dilation=(d, d),
            dimension_numbers=("NCHW", "OIHW", "NCHW"),
        )
        y = jax.nn.relu(y + b[None, :, None, None])
        out = out + y
        cur = y
    return out


# -----------------------------------------------------------------------------
# Deterministic init: Conv2d weights ~ U(-k, k), biases zeroed (as in __init__).
# -----------------------------------------------------------------------------
def init_params(key, channel):
    params = []
    bound = 1.0 / (channel * 9) ** 0.5
    for i in range(5):
        k = jax.random.fold_in(key, i)
        w_oihw = jax.random.uniform(
            k, (channel, channel, 3, 3), jnp.float32, -bound, bound
        )
        b = jnp.zeros((channel,), jnp.float32)
        params.append((w_oihw, b))
    return params


if __name__ == "__main__":
    key = jax.random.PRNGKey(0)
    # Small demo shape.  C=128 keeps the channel (lane) axis dense; D-LinkNet
    # applies this block at >=512 channels, so channels-last is the layout
    # that scales.
    N, C, H, W = 2, 128, 16, 16
    x = jax.random.normal(jax.random.fold_in(key, 100), (N, C, H, W), jnp.float32)
    params = init_params(key, C)
    w_mat, b_mat = prepare_params(params)   # once, outside the forward

    out = jax.block_until_ready(dblock_more_dilate(x, w_mat, b_mat))
    ref = jax.block_until_ready(dblock_reference(x, params))

    assert out.shape == (N, C, H, W), out.shape
    # bf16 MXU inputs (perf-review item 6): tolerance relaxed vs f32 reference.
    max_err = float(jnp.max(jnp.abs(out - ref)))
    assert max_err < 1e-1, max_err
    print("KERNEL_OK")
</pallas_src>

<mosaic_0001>
module attributes {stable_mosaic.version = 11 : i64} {
  func.func @_dblock_kernel(%arg0: i32, %arg1: memref<1x16x16x128xf32, #tpu.memory_space<vmem>>, %arg2: memref<5x1152x128xbf16, #tpu.memory_space<vmem>>, %arg3: memref<5x1x128xf32, #tpu.memory_space<vmem>>, %arg4: memref<1x16x16x128xf32, #tpu.memory_space<vmem>>, %arg5: memref<48x48x128xf32, #tpu.memory_space<vmem>>) attributes {dimension_semantics = [#tpu.dimension_semantics<parallel>], iteration_bounds = array<i64: 2>, scalar_prefetch = 0 : i64, scratch_operands = 1 : i64, tpu.core_type = #tpu.core_type<tc>, window_params = [{transform_indices = @transform_0, window_bounds = array<i64: 1, 16, 16, 128>}, {pipeline_mode = #tpu.pipeline_mode<synchronous>, transform_indices = @transform_1, window_bounds = array<i64: 5, 1152, 128>}, {pipeline_mode = #tpu.pipeline_mode<synchronous>, transform_indices = @transform_2, window_bounds = array<i64: 5, 1, 128>}, {transform_indices = @transform_3, window_bounds = array<i64: 1, 16, 16, 128>}]} {
    %cst = arith.constant 0.000000e+00 : f32
    %0 = vector.broadcast %cst : f32 to vector<16x48x128xf32>
    %c0 = arith.constant 0 : index
    %c0_0 = arith.constant 0 : index
    %c0_1 = arith.constant 0 : index
    %1 = vector.load %arg5[%c0, %c0_0, %c0_1] : memref<48x48x128xf32, #tpu.memory_space<vmem>>, vector<16x48x128xf32>
    tpu.vector_store %arg5[%c0, %c0_0, %c0_1], %0 {strides = array<i32>} : memref<48x48x128xf32, #tpu.memory_space<vmem>>, vector<16x48x128xf32>,
    %cst_2 = arith.constant 0.000000e+00 : f32
    %2 = vector.broadcast %cst_2 : f32 to vector<16x48x128xf32>
    %c32 = arith.constant 32 : index
    %c0_3 = arith.constant 0 : index
    %c0_4 = arith.constant 0 : index
    %3 = vector.load %arg5[%c32, %c0_3, %c0_4] : memref<48x48x128xf32, #tpu.memory_space<vmem>>, vector<16x48x128xf32>
    tpu.vector_store %arg5[%c32, %c0_3, %c0_4], %2 {strides = array<i32>} : memref<48x48x128xf32, #tpu.memory_space<vmem>>, vector<16x48x128xf32>,
    %cst_5 = arith.constant 0.000000e+00 : f32
    %4 = vector.broadcast %cst_5 : f32 to vector<16x16x128xf32>
    %c16 = arith.constant 16 : index
    %c0_6 = arith.constant 0 : index
    %c0_7 = arith.constant 0 : index
    %5 = vector.load %arg5[%c16, %c0_6, %c0_7] : memref<48x48x128xf32, #tpu.memory_space<vmem>>, vector<16x16x128xf32>
    tpu.vector_store %arg5[%c16, %c0_6, %c0_7], %4 {strides = array<i32>} : memref<48x48x128xf32, #tpu.memory_space<vmem>>, vector<16x16x128xf32>,
    %cst_8 = arith.constant 0.000000e+00 : f32
    %6 = vector.broadcast %cst_8 : f32 to vector<16x16x128xf32>
    %c16_9 = arith.constant 16 : index
    %c32_10 = arith.constant 32 : index
    %c0_11 = arith.constant 0 : index
    %7 = vector.load %arg5[%c16_9, %c32_10, %c0_11] : memref<48x48x128xf32, #tpu.memory_space<vmem>>, vector<16x16x128xf32>
    tpu.vector_store %arg5[%c16_9, %c32_10, %c0_11], %6 {strides = array<i32>} : memref<48x48x128xf32, #tpu.memory_space<vmem>>, vector<16x16x128xf32>,
    %c0_12 = arith.constant 0 : index
    %c0_13 = arith.constant 0 : index
    %c0_14 = arith.constant 0 : index
    %c0_15 = arith.constant 0 : index
    %8 = vector.load %arg1[%c0_12, %c0_13, %c0_14, %c0_15] : memref<1x16x16x128xf32, #tpu.memory_space<vmem>>, vector<1x16x16x128xf32>
    %9 = vector.shape_cast %8 : vector<1x16x16x128xf32> to vector<16x16x128xf32>
    %c16_16 = arith.constant 16 : index
    %c16_17 = arith.constant 16 : index
    %c0_18 = arith.constant 0 : index
    %10 = vector.load %arg5[%c16_16, %c16_17, %c0_18] : memref<48x48x128xf32, #tpu.memory_space<vmem>>, vector<16x16x128xf32>
    tpu.vector_store %arg5[%c16_16, %c16_17, %c0_18], %9 {strides = array<i32>} : memref<48x48x128xf32, #tpu.memory_space<vmem>>, vector<16x16x128xf32>,
    %11 = vector.shape_cast %9 : vector<16x16x128xf32> to vector<256x128xf32>
    %c15 = arith.constant 15 : index
    %c0_19 = arith.constant 0 : index
    %c0_20 = arith.constant 0 : index
    %12 = vector.load %arg5[%c15, %c0_19, %c0_20] : memref<48x48x128xf32, #tpu.memory_space<vmem>>, vector<18x48x128xf32>
    %13 = vector.extract_strided_slice %12 {offsets = [0, 0, 0], sizes = [16, 48, 128], strides = [1, 1, 1]} : vector<18x48x128xf32> to vector<16x48x128xf32>
    %14 = vector.extract_strided_slice %13 {offsets = [0, 15, 0], sizes = [16, 16, 128], strides = [1, 1, 1]} : vector<16x48x128xf32> to vector<16x16x128xf32>
    %15 = vector.extract_strided_slice %13 {offsets = [0, 16, 0], sizes = [16, 16, 128], strides = [1, 1, 1]} : vector<16x48x128xf32> to vector<16x16x128xf32>
    %16 = vector.extract_strided_slice %13 {offsets = [0, 17, 0], sizes = [16, 16, 128], strides = [1, 1, 1]} : vector<16x48x128xf32> to vector<16x16x128xf32>
    %17 = vector.extract_strided_slice %12 {offsets = [1, 0, 0], sizes = [16, 48, 128], strides = [1, 1, 1]} : vector<18x48x128xf32> to vector<16x48x128xf32>
    %18 = vector.extract_strided_slice %17 {offsets = [0, 15, 0], sizes = [16, 16, 128], strides = [1, 1, 1]} : vector<16x48x128xf32> to vector<16x16x128xf32>
    %19 = vector.extract_strided_slice %17 {offsets = [0, 16, 0], sizes = [16, 16, 128], strides = [1, 1, 1]} : vector<16x48x128xf32> to vector<16x16x128xf32>
    %20 = vector.extract_strided_slice %17 {offsets = [0, 17, 0], sizes = [16, 16, 128], strides = [1, 1, 1]} : vector<16x48x128xf32> to vector<16x16x128xf32>
    %21 = vector.extract_strided_slice %12 {offsets = [2, 0, 0], sizes = [16, 48, 128], strides = [1, 1, 1]} : vector<18x48x128xf32> to vector<16x48x128xf32>
    %22 = vector.extract_strided_slice %21 {offsets = [0, 15, 0], sizes = [16, 16, 128], strides = [1, 1, 1]} : vector<16x48x128xf32> to vector<16x16x128xf32>
    %23 = vector.extract_strided_slice %21 {offsets = [0, 16, 0], sizes = [16, 16, 128], strides = [1, 1, 1]} : vector<16x48x128xf32> to vector<16x16x128xf32>
    %24 = vector.extract_strided_slice %21 {offsets = [0, 17, 0], sizes = [16, 16, 128], strides = [1, 1, 1]} : vector<16x48x128xf32> to vector<16x16x128xf32>
    %25 = tpu.concatenate %14, %15, %16, %18, %19, %20, %22, %23, %24 in 2 : vector<16x16x128xf32>, vector<16x16x128xf32>, vector<16x16x128xf32>, vector<16x16x128xf32>, vector<16x16x128xf32>, vector<16x16x128xf32>, vector<16x16x128xf32>, vector<16x16x128xf32>, vector<16x16x128xf32> -> vector<16x16x1152xf32>
    %26 = vector.shape_cast %25 : vector<16x16x1152xf32> to vector<256x1152xf32>
    %27 = arith.truncf %26 : vector<256x1152xf32> to vector<256x1152xbf16>
    %c0_21 = arith.constant 0 : index
    %c0_22 = arith.constant 0 : index
    %c0_23 = arith.constant 0 : index
    %28 = vector.load %arg2[%c0_21, %c0_22, %c0_23] : memref<5x1152x128xbf16, #tpu.memory_space<vmem>>, vector<1x1152x128xbf16>
    %29 = vector.shape_cast %28 : vector<1x1152x128xbf16> to vector<1152x128xbf16>
    %cst_24 = arith.constant dense<0.000000e+00> : vector<256x128xf32>
    %30 = tpu.matmul %27, %29, %cst_24 {dimension_numbers = #tpu.dot_dimension_numbers<[1], [0], [0], [1], [0, 0, 1, 1], [], []>} : vector<256x1152xbf16>, vector<1152x128xbf16>, vector<256x128xf32> -> vector<256x128xf32>
    %c0_25 = arith.constant 0 : index
    %c0_26 = arith.constant 0 : index
    %c0_27 = arith.constant 0 : index
    %31 = vector.load %arg3[%c0_25, %c0_26, %c0_27] : memref<5x1x128xf32, #tpu.memory_space<vmem>>, vector<1x1x128xf32>
    %32 = vector.shape_cast %31 : vector<1x1x128xf32> to vector<1x128xf32>
    %33 = vector.broadcast %32 : vector<1x128xf32> to vector<256x128xf32>
    %34 = arith.addf %30, %33 : vector<256x128xf32>
    %cst_28 = arith.constant 0.000000e+00 : f32
    %35 = vector.broadcast %cst_28 : f32 to vector<256x128xf32>
    %36 = arith.maximumf %34, %35 : vector<256x128xf32>
    %37 = arith.addf %11, %36 : vector<256x128xf32>
    %38 = vector.shape_cast %36 : vector<256x128xf32> to vector<16x16x128xf32>
    %c16_29 = arith.constant 16 : index
    %c16_30 = arith.constant 16 : index
    %c0_31 = arith.constant 0 : index
    %39 = vector.load %arg5[%c16_29, %c16_30, %c0_31] : memref<48x48x128xf32, #tpu.memory_space<vmem>>, vector<16x16x128xf32>
    tpu.vector_store %arg5[%c16_29, %c16_30, %c0_31], %38 {strides = array<i32>} : memref<48x48x128xf32, #tpu.memory_space<vmem>>, vector<16x16x128xf32>,
    %c14 = arith.constant 14 : index
    %c0_32 = arith.constant 0 : index
    %c0_33 = arith.constant 0 : index
    %40 = vector.load %arg5[%c14, %c0_32, %c0_33] : memref<48x48x128xf32, #tpu.memory_space<vmem>>, vector<20x48x128xf32>
    %41 = vector.extract_strided_slice %40 {offsets = [0, 0, 0], sizes = [16, 48, 128], strides = [1, 1, 1]} : vector<20x48x128xf32> to vector<16x48x128xf32>
    %42 = vector.extract_strided_slice %41 {offsets = [0, 14, 0], sizes = [16, 16, 128], strides = [1, 1, 1]} : vector<16x48x128xf32> to vector<16x16x128xf32>
    %43 = vector.extract_strided_slice %41 {offsets = [0, 16, 0], sizes = [16, 16, 128], strides = [1, 1, 1]} : vector<16x48x128xf32> to vector<16x16x128xf32>
    %44 = vector.extract_strided_slice %41 {offsets = [0, 18, 0], sizes = [16, 16, 128], strides = [1, 1, 1]} : vector<16x48x128xf32> to vector<16x16x128xf32>
    %45 = vector.extract_strided_slice %40 {offsets = [2, 0, 0], sizes = [16, 48, 128], strides = [1, 1, 1]} : vector<20x48x128xf32> to vector<16x48x128xf32>
    %46 = vector.extract_strided_slice %45 {offsets = [0, 14, 0], sizes = [16, 16, 128], strides = [1, 1, 1]} : vector<16x48x128xf32> to vector<16x16x128xf32>
    %47 = vector.extract_strided_slice %45 {offsets = [0, 16, 0], sizes = [16, 16, 128], strides = [1, 1, 1]} : vector<16x48x128xf32> to vector<16x16x128xf32>
    %48 = vector.extract_strided_slice %45 {offsets = [0, 18, 0], sizes = [16, 16, 128], strides = [1, 1, 1]} : vector<16x48x128xf32> to vector<16x16x128xf32>
    %49 = vector.extract_strided_slice %40 {offsets = [4, 0, 0], sizes = [16, 48, 128], strides = [1, 1, 1]} : vector<20x48x128xf32> to vector<16x48x128xf32>
    %50 = vector.extract_strided_slice %49 {offsets = [0, 14, 0], sizes = [16, 16, 128], strides = [1, 1, 1]} : vector<16x48x128xf32> to vector<16x16x128xf32>
    %51 = vector.extract_strided_slice %49 {offsets = [0, 16, 0], sizes = [16, 16, 128], strides = [1, 1, 1]} : vector<16x48x128xf32> to vector<16x16x128xf32>
    %52 = vector.extract_strided_slice %49 {offsets = [0, 18, 0], sizes = [16, 16, 128], strides = [1, 1, 1]} : vector<16x48x128xf32> to vector<16x16x128xf32>
    %53 = tpu.concatenate %42, %43, %44, %46, %47, %48, %50, %51, %52 in 2 : vector<16x16x128xf32>, vector<16x16x128xf32>, vector<16x16x128xf32>, vector<16x16x128xf32>, vector<16x16x128xf32>, vector<16x16x128xf32>, vector<16x16x128xf32>, vector<16x16x128xf32>, vector<16x16x128xf32> -> vector<16x16x1152xf32>
    %54 = vector.shape_cast %53 : vector<16x16x1152xf32> to vector<256x1152xf32>
    %55 = arith.truncf %54 : vector<256x1152xf32> to vector<256x1152xbf16>
    %c1 = arith.constant 1 : index
    %c0_34 = arith.constant 0 : index
    %c0_35 = arith.constant 0 : index
    %56 = vector.load %arg2[%c1, %c0_34, %c0_35] : memref<5x1152x128xbf16, #tpu.memory_space<vmem>>, vector<1x1152x128xbf16>
    %57 = vector.shape_cast %56 : vector<1x1152x128xbf16> to vector<1152x128xbf16>
    %cst_36 = arith.constant dense<0.000000e+00> : vector<256x128xf32>
    %58 = tpu.matmul %55, %57, %cst_36 {dimension_numbers = #tpu.dot_dimension_numbers<[1], [0], [0], [1], [0, 0, 1, 1], [], []>} : vector<256x1152xbf16>, vector<1152x128xbf16>, vector<256x128xf32> -> vector<256x128xf32>
    %c1_37 = arith.constant 1 : index
    %c0_38 = arith.constant 0 : index
    %c0_39 = arith.constant 0 : index
    %59 = vector.load %arg3[%c1_37, %c0_38, %c0_39] : memref<5x1x128xf32, #tpu.memory_space<vmem>>, vector<1x1x128xf32>
    %60 = vector.shape_cast %59 : vector<1x1x128xf32> to vector<1x128xf32>
    %61 = vector.broadcast %60 : vector<1x128xf32> to vector<256x128xf32>
    %62 = arith.addf %58, %61 : vector<256x128xf32>
    %cst_40 = arith.constant 0.000000e+00 : f32
    %63 = vector.broadcast %cst_40 : f32 to vector<256x128xf32>
    %64 = arith.maximumf %62, %63 : vector<256x128xf32>
    %65 = arith.addf %37, %64 : vector<256x128xf32>
    %66 = vector.shape_cast %64 : vector<256x128xf32> to vector<16x16x128xf32>
    %c16_41 = arith.constant 16 : index
    %c16_42 = arith.constant 16 : index
    %c0_43 = arith.constant 0 : index
    %67 = vector.load %arg5[%c16_41, %c16_42, %c0_43] : memref<48x48x128xf32, #tpu.memory_space<vmem>>, vector<16x16x128xf32>
    tpu.vector_store %arg5[%c16_41, %c16_42, %c0_43], %66 {strides = array<i32>} : memref<48x48x128xf32, #tpu.memory_space<vmem>>, vector<16x16x128xf32>,
    %c12 = arith.constant 12 : index
    %c0_44 = arith.constant 0 : index
    %c0_45 = arith.constant 0 : index
    %68 = vector.load %arg5[%c12, %c0_44, %c0_45] : memref<48x48x128xf32, #tpu.memory_space<vmem>>, vector<24x48x128xf32>
    %69 = vector.extract_strided_slice %68 {offsets = [0, 0, 0], sizes = [16, 48, 128], strides = [1, 1, 1]} : vector<24x48x128xf32> to vector<16x48x128xf32>
    %70 = vector.extract_strided_slice %69 {offsets = [0, 12, 0], sizes = [16, 16, 128], strides = [1, 1, 1]} : vector<16x48x128xf32> to vector<16x16x128xf32>
    %71 = vector.extract_strided_slice %69 {offsets = [0, 16, 0], sizes = [16, 16, 128], strides = [1, 1, 1]} : vector<16x48x128xf32> to vector<16x16x128xf32>
    %72 = vector.extract_strided_slice %69 {offsets = [0, 20, 0], sizes = [16, 16, 128], strides = [1, 1, 1]} : vector<16x48x128xf32> to vector<16x16x128xf32>
    %73 = vector.extract_strided_slice %68 {offsets = [4, 0, 0], sizes = [16, 48, 128], strides = [1, 1, 1]} : vector<24x48x128xf32> to vector<16x48x128xf32>
    %74 = vector.extract_strided_slice %73 {offsets = [0, 12, 0], sizes = [16, 16, 128], strides = [1, 1, 1]} : vector<16x48x128xf32> to vector<16x16x128xf32>
    %75 = vector.extract_strided_slice %73 {offsets = [0, 16, 0], sizes = [16, 16, 128], strides = [1, 1, 1]} : vector<16x48x128xf32> to vector<16x16x128xf32>
    %76 = vector.extract_strided_slice %73 {offsets = [0, 20, 0], sizes = [16, 16, 128], strides = [1, 1, 1]} : vector<16x48x128xf32> to vector<16x16x128xf32>
    %77 = vector.extract_strided_slice %68 {offsets = [8, 0, 0], sizes = [16, 48, 128], strides = [1, 1, 1]} : vector<24x48x128xf32> to vector<16x48x128xf32>
    %78 = vector.extract_strided_slice %77 {offsets = [0, 12, 0], sizes = [16, 16, 128], strides = [1, 1, 1]} : vector<16x48x128xf32> to vector<16x16x128xf32>
    %79 = vector.extract_strided_slice %77 {offsets = [0, 16, 0], sizes = [16, 16, 128], strides = [1, 1, 1]} : vector<16x48x128xf32> to vector<16x16x128xf32>
    %80 = vector.extract_strided_slice %77 {offsets = [0, 20, 0], sizes = [16, 16, 128], strides = [1, 1, 1]} : vector<16x48x128xf32> to vector<16x16x128xf32>
    %81 = tpu.concatenate %70, %71, %72, %74, %75, %76, %78, %79, %80 in 2 : vector<16x16x128xf32>, vector<16x16x128xf32>, vector<16x16x128xf32>, vector<16x16x128xf32>, vector<16x16x128xf32>, vector<16x16x128xf32>, vector<16x16x128xf32>, vector<16x16x128xf32>, vector<16x16x128xf32> -> vector<16x16x1152xf32>
    %82 = vector.shape_cast %81 : vector<16x16x1152xf32> to vector<256x1152xf32>
    %83 = arith.truncf %82 : vector<256x1152xf32> to vector<256x1152xbf16>
    %c2 = arith.constant 2 : index
    %c0_46 = arith.constant 0 : index
    %c0_47 = arith.constant 0 : index
    %84 = vector.load %arg2[%c2, %c0_46, %c0_47] : memref<5x1152x128xbf16, #tpu.memory_space<vmem>>, vector<1x1152x128xbf16>
    %85 = vector.shape_cast %84 : vector<1x1152x128xbf16> to vector<1152x128xbf16>
    %cst_48 = arith.constant dense<0.000000e+00> : vector<256x128xf32>
    %86 = tpu.matmul %83, %85, %cst_48 {dimension_numbers = #tpu.dot_dimension_numbers<[1], [0], [0], [1], [0, 0, 1, 1], [], []>} : vector<256x1152xbf16>, vector<1152x128xbf16>, vector<256x128xf32> -> vector<256x128xf32>
    %c2_49 = arith.constant 2 : index
    %c0_50 = arith.constant 0 : index
    %c0_51 = arith.constant 0 : index
    %87 = vector.load %arg3[%c2_49, %c0_50, %c0_51] : memref<5x1x128xf32, #tpu.memory_space<vmem>>, vector<1x1x128xf32>
    %88 = vector.shape_cast %87 : vector<1x1x128xf32> to vector<1x128xf32>
    %89 = vector.broadcast %88 : vector<1x128xf32> to vector<256x128xf32>
    %90 = arith.addf %86, %89 : vector<256x128xf32>
    %cst_52 = arith.constant 0.000000e+00 : f32
    %91 = vector.broadcast %cst_52 : f32 to vector<256x128xf32>
    %92 = arith.maximumf %90, %91 : vector<256x128xf32>
    %93 = arith.addf %65, %92 : vector<256x128xf32>
    %94 = vector.shape_cast %92 : vector<256x128xf32> to vector<16x16x128xf32>
    %c16_53 = arith.constant 16 : index
    %c16_54 = arith.constant 16 : index
    %c0_55 = arith.constant 0 : index
    %95 = vector.load %arg5[%c16_53, %c16_54, %c0_55] : memref<48x48x128xf32, #tpu.memory_space<vmem>>, vector<16x16x128xf32>
    tpu.vector_store %arg5[%c16_53, %c16_54, %c0_55], %94 {strides = array<i32>} : memref<48x48x128xf32, #tpu.memory_space<vmem>>, vector<16x16x128xf32>,
    %c8 = arith.constant 8 : index
    %c0_56 = arith.constant 0 : index
    %c0_57 = arith.constant 0 : index
    %96 = vector.load %arg5[%c8, %c0_56, %c0_57] : memref<48x48x128xf32, #tpu.memory_space<vmem>>, vector<32x48x128xf32>
    %97 = vector.extract_strided_slice %96 {offsets = [0, 0, 0], sizes = [16, 48, 128], strides = [1, 1, 1]} : vector<32x48x128xf32> to vector<16x48x128xf32>
    %98 = vector.extract_strided_slice %97 {offsets = [0, 8, 0], sizes = [16, 16, 128], strides = [1, 1, 1]} : vector<16x48x128xf32> to vector<16x16x128xf32>
    %99 = vector.extract_strided_slice %97 {offsets = [0, 16, 0], sizes = [16, 16, 128], strides = [1, 1, 1]} : vector<16x48x128xf32> to vector<16x16x128xf32>
    %100 = vector.extract_strided_slice %97 {offsets = [0, 24, 0], sizes = [16, 16, 128], strides = [1, 1, 1]} : vector<16x48x128xf32> to vector<16x16x128xf32>
    %101 = vector.extract_strided_slice %96 {offsets = [8, 0, 0], sizes = [16, 48, 128], strides = [1, 1, 1]} : vector<32x48x128xf32> to vector<16x48x128xf32>
    %102 = vector.extract_strided_slice %101 {offsets = [0, 8, 0], sizes = [16, 16, 128], strides = [1, 1, 1]} : vector<16x48x128xf32> to vector<16x16x128xf32>
    %103 = vector.extract_strided_slice %101 {offsets = [0, 16, 0], sizes = [16, 16, 128], strides = [1, 1, 1]} : vector<16x48x128xf32> to vector<16x16x128xf32>
    %104 = vector.extract_strided_slice %101 {offsets = [0, 24, 0], sizes = [16, 16, 128], strides = [1, 1, 1]} : vector<16x48x128xf32> to vector<16x16x128xf32>
    %105 = vector.extract_strided_slice %96 {offsets = [16, 0, 0], sizes = [16, 48, 128], strides = [1, 1, 1]} : vector<32x48x128xf32> to vector<16x48x128xf32>
    %106 = vector.extract_strided_slice %105 {offsets = [0, 8, 0], sizes = [16, 16, 128], strides = [1, 1, 1]} : vector<16x48x128xf32> to vector<16x16x128xf32>
    %107 = vector.extract_strided_slice %105 {offsets = [0, 16, 0], sizes = [16, 16, 128], strides = [1, 1, 1]} : vector<16x48x128xf32> to vector<16x16x128xf32>
    %108 = vector.extract_strided_slice %105 {offsets = [0, 24, 0], sizes = [16, 16, 128], strides = [1, 1, 1]} : vector<16x48x128xf32> to vector<16x16x128xf32>
    %109 = tpu.concatenate %98, %99, %100, %102, %103, %104, %106, %107, %108 in 2 : vector<16x16x128xf32>, vector<16x16x128xf32>, vector<16x16x128xf32>, vector<16x16x128xf32>, vector<16x16x128xf32>, vector<16x16x128xf32>, vector<16x16x128xf32>, vector<16x16x128xf32>, vector<16x16x128xf32> -> vector<16x16x1152xf32>
    %110 = vector.shape_cast %109 : vector<16x16x1152xf32> to vector<256x1152xf32>
    %111 = arith.truncf %110 : vector<256x1152xf32> to vector<256x1152xbf16>
    %c3 = arith.constant 3 : index
    %c0_58 = arith.constant 0 : index
    %c0_59 = arith.constant 0 : index
    %112 = vector.load %arg2[%c3, %c0_58, %c0_59] : memref<5x1152x128xbf16, #tpu.memory_space<vmem>>, vector<1x1152x128xbf16>
    %113 = vector.shape_cast %112 : vector<1x1152x128xbf16> to vector<1152x128xbf16>
    %cst_60 = arith.constant dense<0.000000e+00> : vector<256x128xf32>
    %114 = tpu.matmul %111, %113, %cst_60 {dimension_numbers = #tpu.dot_dimension_numbers<[1], [0], [0], [1], [0, 0, 1, 1], [], []>} : vector<256x1152xbf16>, vector<1152x128xbf16>, vector<256x128xf32> -> vector<256x128xf32>
    %c3_61 = arith.constant 3 : index
    %c0_62 = arith.constant 0 : index
    %c0_63 = arith.constant 0 : index
    %115 = vector.load %arg3[%c3_61, %c0_62, %c0_63] : memref<5x1x128xf32, #tpu.memory_space<vmem>>, vector<1x1x128xf32>
    %116 = vector.shape_cast %115 : vector<1x1x128xf32> to vector<1x128xf32>
    %117 = vector.broadcast %116 : vector<1x128xf32> to vector<256x128xf32>
    %118 = arith.addf %114, %117 : vector<256x128xf32>
    %cst_64 = arith.constant 0.000000e+00 : f32
    %119 = vector.broadcast %cst_64 : f32 to vector<256x128xf32>
    %120 = arith.maximumf %118, %119 : vector<256x128xf32>
    %121 = arith.addf %93, %120 : vector<256x128xf32>
    %122 = vector.shape_cast %120 : vector<256x128xf32> to vector<16x16x128xf32>
    %c16_65 = arith.constant 16 : index
    %c16_66 = arith.constant 16 : index
    %c0_67 = arith.constant 0 : index
    %123 = vector.load %arg5[%c16_65, %c16_66, %c0_67] : memref<48x48x128xf32, #tpu.memory_space<vmem>>, vector<16x16x128xf32>
    tpu.vector_store %arg5[%c16_65, %c16_66, %c0_67], %122 {strides = array<i32>} : memref<48x48x128xf32, #tpu.memory_space<vmem>>, vector<16x16x128xf32>,
    %c0_68 = arith.constant 0 : index
    %c0_69 = arith.constant 0 : index
    %c0_70 = arith.constant 0 : index
    %124 = vector.load %arg5[%c0_68, %c0_69, %c0_70] : memref<48x48x128xf32, #tpu.memory_space<vmem>>, vector<48x48x128xf32>
    %125 = vector.extract_strided_slice %124 {offsets = [0, 0, 0], sizes = [16, 48, 128], strides = [1, 1, 1]} : vector<48x48x128xf32> to vector<16x48x128xf32>
    %126 = vector.extract_strided_slice %125 {offsets = [0, 0, 0], sizes = [16, 16, 128], strides = [1, 1, 1]} : vector<16x48x128xf32> to vector<16x16x128xf32>
    %127 = vector.extract_strided_slice %125 {offsets = [0, 16, 0], sizes = [16, 16, 128], strides = [1, 1, 1]} : vector<16x48x128xf32> to vector<16x16x128xf32>
    %128 = vector.extract_strided_slice %125 {offsets = [0, 32, 0], sizes = [16, 16, 128], strides = [1, 1, 1]} : vector<16x48x128xf32> to vector<16x16x128xf32>
    %129 = vector.extract_strided_slice %124 {offsets = [16, 0, 0], sizes = [16, 48, 128], strides = [1, 1, 1]} : vector<48x48x128xf32> to vector<16x48x128xf32>
    %130 = vector.extract_strided_slice %129 {offsets = [0, 0, 0], sizes = [16, 16, 128], strides = [1, 1, 1]} : vector<16x48x128xf32> to vector<16x16x128xf32>
    %131 = vector.extract_strided_slice %129 {offsets = [0, 16, 0], sizes = [16, 16, 128], strides = [1, 1, 1]} : vector<16x48x128xf32> to vector<16x16x128xf32>
    %132 = vector.extract_strided_slice %129 {offsets = [0, 32, 0], sizes = [16, 16, 128], strides = [1, 1, 1]} : vector<16x48x128xf32> to vector<16x16x128xf32>
    %133 = vector.extract_strided_slice %124 {offsets = [32, 0, 0], sizes = [16, 48, 128], strides = [1, 1, 1]} : vector<48x48x128xf32> to vector<16x48x128xf32>
    %134 = vector.extract_strided_slice %133 {offsets = [0, 0, 0], sizes = [16, 16, 128], strides = [1, 1, 1]} : vector<16x48x128xf32> to vector<16x16x128xf32>
    %135 = vector.extract_strided_slice %133 {offsets = [0, 16, 0], sizes = [16, 16, 128], strides = [1, 1, 1]} : vector<16x48x128xf32> to vector<16x16x128xf32>
    %136 = vector.extract_strided_slice %133 {offsets = [0, 32, 0], sizes = [16, 16, 128], strides = [1, 1, 1]} : vector<16x48x128xf32> to vector<16x16x128xf32>
    %137 = tpu.concatenate %126, %127, %128, %130, %131, %132, %134, %135, %136 in 2 : vector<16x16x128xf32>, vector<16x16x128xf32>, vector<16x16x128xf32>, vector<16x16x128xf32>, vector<16x16x128xf32>, vector<16x16x128xf32>, vector<16x16x128xf32>, vector<16x16x128xf32>, vector<16x16x128xf32> -> vector<16x16x1152xf32>
    %138 = vector.shape_cast %137 : vector<16x16x1152xf32> to vector<256x1152xf32>
    %139 = arith.truncf %138 : vector<256x1152xf32> to vector<256x1152xbf16>
    %c4 = arith.constant 4 : index
    %c0_71 = arith.constant 0 : index
    %c0_72 = arith.constant 0 : index
    %140 = vector.load %arg2[%c4, %c0_71, %c0_72] : memref<5x1152x128xbf16, #tpu.memory_space<vmem>>, vector<1x1152x128xbf16>
    %141 = vector.shape_cast %140 : vector<1x1152x128xbf16> to vector<1152x128xbf16>
    %cst_73 = arith.constant dense<0.000000e+00> : vector<256x128xf32>
    %142 = tpu.matmul %139, %141, %cst_73 {dimension_numbers = #tpu.dot_dimension_numbers<[1], [0], [0], [1], [0, 0, 1, 1], [], []>} : vector<256x1152xbf16>, vector<1152x128xbf16>, vector<256x128xf32> -> vector<256x128xf32>
    %c4_74 = arith.constant 4 : index
    %c0_75 = arith.constant 0 : index
    %c0_76 = arith.constant 0 : index
    %143 = vector.load %arg3[%c4_74, %c0_75, %c0_76] : memref<5x1x128xf32, #tpu.memory_space<vmem>>, vector<1x1x128xf32>
    %144 = vector.shape_cast %143 : vector<1x1x128xf32> to vector<1x128xf32>
    %145 = vector.broadcast %144 : vector<1x128xf32> to vector<256x128xf32>
    %146 = arith.addf %142, %145 : vector<256x128xf32>
    %cst_77 = arith.constant 0.000000e+00 : f32
    %147 = vector.broadcast %cst_77 : f32 to vector<256x128xf32>
    %148 = arith.maximumf %146, %147 : vector<256x128xf32>
    %149 = arith.addf %121, %148 : vector<256x128xf32>
    %150 = vector.shape_cast %148 : vector<256x128xf32> to vector<16x16x128xf32>
    %c16_78 = arith.constant 16 : index
    %c16_79 = arith.constant 16 : index
    %c0_80 = arith.constant 0 : index
    %151 = vector.load %arg5[%c16_78, %c16_79, %c0_80] : memref<48x48x128xf32, #tpu.memory_space<vmem>>, vector<16x16x128xf32>
    tpu.vector_store %arg5[%c16_78, %c16_79, %c0_80], %150 {strides = array<i32>} : memref<48x48x128xf32, #tpu.memory_space<vmem>>, vector<16x16x128xf32>,
    %152 = vector.shape_cast %149 : vector<256x128xf32> to vector<16x16x128xf32>
    %c0_81 = arith.constant 0 : index
    %c0_82 = arith.constant 0 : index
    %c0_83 = arith.constant 0 : index
    %c0_84 = arith.constant 0 : index
    %153 = vector.load %arg4[%c0_81, %c0_82, %c0_83, %c0_84] : memref<1x16x16x128xf32, #tpu.memory_space<vmem>>, vector<1x16x16x128xf32>
    %154 = vector.shape_cast %153 : vector<1x16x16x128xf32> to vector<16x16x128xf32>
    %155 = vector.shape_cast %152 : vector<16x16x128xf32> to vector<1x16x16x128xf32>
    tpu.vector_store %arg4[%c0_81, %c0_82, %c0_83, %c0_84], %155 {strides = array<i32>} : memref<1x16x16x128xf32, #tpu.memory_space<vmem>>, vector<1x16x16x128xf32>,
    return
  }
  func.func @transform_0(%arg0: i32) -> (i32, i32, i32, i32) {
    %c0_i32 = arith.constant 0 : i32
    %c0_i32_0 = arith.constant 0 : i32
    %c0_i32_1 = arith.constant 0 : i32
    %c0_i32_2 = arith.constant 0 : i32
    return %arg0, %c0_i32, %c0_i32_0, %c0_i32_1 : i32, i32, i32, i32
  }
  func.func @transform_1(%arg0: i32) -> (i32, i32, i32) {
    %c0_i32 = arith.constant 0 : i32
    %c0_i32_0 = arith.constant 0 : i32
    %c0_i32_1 = arith.constant 0 : i32
    %c0_i32_2 = arith.constant 0 : i32
    return %c0_i32, %c0_i32_0, %c0_i32_1 : i32, i32, i32
  }
  func.func @transform_2(%arg0: i32) -> (i32, i32, i32) {
    %c0_i32 = arith.constant 0 : i32
    %c0_i32_0 = arith.constant 0 : i32
    %c0_i32_1 = arith.constant 0 : i32
    %c0_i32_2 = arith.constant 0 : i32
    return %c0_i32, %c0_i32_0, %c0_i32_1 : i32, i32, i32
  }
  func.func @transform_3(%arg0: i32) -> (i32, i32, i32, i32) {
    %c0_i32 = arith.constant 0 : i32
    %c0_i32_0 = arith.constant 0 : i32
    %c0_i32_1 = arith.constant 0 : i32
    %c0_i32_2 = arith.constant 0 : i32
    return %arg0, %c0_i32, %c0_i32_0, %c0_i32_1 : i32, i32, i32, i32
  }
}

</mosaic_0001>

<bundles_post_ra>
// kernel: dblock_forward_nhwc.1
= control target key start
LH: loop header
LB: loop body
LE: loop exit
PB: predicated region body
PF: predicated region fallthrough
CT: control target
= control target key end

     0   :  { %8 = vsyncpa [#allocation4], 0  ;;  %s19584_s0 = inlined_call_operand.hbm [shape: f32[2,16,16,128], index: 0, kind: input, shape index: {}]   ;;  %s19585_s1 = inlined_call_operand.hbm [shape: bf16[5,1152,128], index: 1, kind: input, shape index: {}]   ;;  %s19586_s2 = inlined_call_operand.hbm [shape: f32[5,1,128], index: 2, kind: input, shape index: {}]   ;;  %s19587_s3 = inlined_call_operand.hbm [shape: f32[2,16,16,128], index: 3, kind: output, shape index: {}]  }
   0x1   :  { %10 = vsyncpa [#allocation4 + $0x1], 0 }
   0x2   :  { %11 = vsyncpa [#allocation7], 0 }
   0x3   :  { %12 = vsyncpa [#allocation5], 0 }
   0x4   :  { %14 = vsyncpa [#allocation5 + $0x1], 0  ;;  %s14631_s12 = smov 0   ;;  %s14633_s13 = smov 0  }
   0x5   :  { %s14635_s14 = smov 0   ;;  %s14637_s15 = smov 0  }
   0x6 LB: > { %s14652_s16 = sadd.s32 4294967295, %s14595_s15   ;;  %s10964_s17 = sadd.s32 4294967294, %s14595_s15   ;;  %s14595_s15 = sphi %s14637_s15, %s20127_s15   ;;  %s14591_s14 = sphi %s14635_s14, %s20126_s14   ;;  %s14587_s13 = sphi %s14633_s13, %s20125_s13   ;;  %s14583_s12 = sphi %s14631_s12, %s20124_s12  }
   0x7   : > { %p40_p0 = scmp.ne.s32.totalorder %s14587_s13, %s14583_s12  ;;  %p19588_p1 = scmp.eq.s32.totalorder %s14652_s16, 0 }
   0x8   : > { %p112_p3 = scmp.eq.s32.totalorder %s10964_s17, 1  ;;  %p10965_p5 = scmp.ge.s32.totalorder %s14595_s15, 1 }
   0x9   : > { %p14661_p4 = por %p19588_p1, %p40_p0  ;;  %p119_p7 = scmp.lt.s32.totalorder %s14595_s15, 3 }
   0xa   : > { %p14666_p6 = por %p112_p3, %p40_p0  ;;  %s14597_s21 = smov [#allocation6]  }
   0xb   : > { %s19715_s18 = scalar_select %p14661_p4, 1, 0 }
   0xc   : > { %s19716_s19 = scalar_select %p14666_p6, 1, 0 }
   0xd   : > { %p14671_p8 = pnand %p10965_p5, %p119_p7  ;;  %s131_s22 = sshll.u32 %s14597_s21, 4  ;;  %s14675_s22 = int_to_ptr.vmem [resolvable:$true] %s131_s22 }
   0xe   : > { %s14598_s24 = smov [#allocation8]   ;;  %s14439_s28 = scalar_lea.hbm %s19585_s1, 46080 }
   0xf   : > { %p13977_p9 = pneg %p14671_p8  ;;  %s144_s25 = sshll.u32 %s14598_s24, 4  ;;  %s14686_s25 = int_to_ptr.vmem [resolvable:$true] %s144_s25 }
  0x10   : > { %p14440_p12 = scmp.ne.s32.totalorder %s19585_s1, %s14439_s28  ;;  %p14446_p5 = scmp.lt.u32.totalorder %s14439_s28, %s19585_s1 }
  0x11   : > { %p14682_p11 = pnand %p13977_p9, %p19588_p1 }
  0x13   : > { %p14441_p13 = pneg %p14682_p11 }
  0x15   : > { %p14442_p0 = pnand %p14441_p13, %p14440_p12 }
  0x17   : > { %p14443_p3 = pneg %p14442_p0 }
  0x19   : > { %p14448_p7 = pnand %p14446_p5, %p14443_p3 }
  0x1b   : > { %14451 = shalt.err (!%p14448_p7)
}
  0x1c   : > { %s14452_s6 = scalar_lea.vmem %s14675_s22, 46080  ;;  %p14460_p2 = scmp.lt.s32.totalorder %s14675_s22, %s14675_s22 }
  0x1d   : > { %p14453_p9 = scmp.ne.s32.totalorder %s14675_s22, %s14452_s6  ;;  %p14461_p12 = scmp.lt.s32.totalorder %s14452_s6, %s14452_s6 }
  0x1f   : > { %p14455_p10 = pnand %p14453_p9, %p14441_p13  ;;  %p14462_p0 = por %p14461_p12, %p14460_p2 }
  0x21   : > { %p14456_p1 = pneg %p14455_p10 }
  0x23   : > { %p14463_p6 = pnand %p14462_p0, %p14456_p1 }
  0x25   : > { %14466 = shalt.err (!%p14463_p6)
}
  0x26   : > { %s14599_s7 = smov 64   ;;  %s14600_s8 = smov 4  }
  0x27   : > { %13980 = dma.hbm_to_vmem [thread:$0]  (!%p14682_p11), %s19585_s1, 46080, %s14675_s22, [#allocation7], %s14599_s7, %s14599_s7, %s14600_s8  }
  0x28   : > { %s14467_s21 = scalar_lea.hbm %s19586_s2, 80 }
  0x29   : > { %p14468_p2 = scmp.ne.s32.totalorder %s19586_s2, %s14467_s21  ;;  %p14474_p10 = scmp.lt.u32.totalorder %s14467_s21, %s19586_s2 }
  0x2b   : > { %p14470_p1 = pnand %p14468_p2, %p14441_p13 }
  0x2d   : > { %p14471_p6 = pneg %p14470_p1 }
  0x2f   : > { %p14476_p3 = pnand %p14474_p10, %p14471_p6 }
  0x31   : > { %14479 = shalt.err (!%p14476_p3)
}
  0x32   : > { %s14480_s22 = scalar_lea.vmem %s14686_s25, 80  ;;  %s14487_s29 = scalar_lea.vmem %s14686_s25, 96 }
  0x33   : > { %p14481_p5 = scmp.ne.s32.totalorder %s14686_s25, %s14480_s22  ;;  %p14488_p12 = scmp.lt.s32.totalorder %s14686_s25, %s14686_s25 }
  0x34   : > { %p14489_p0 = scmp.lt.s32.totalorder %s14487_s29, %s14480_s22 }
  0x35   : > { %p14483_p7 = pnand %p14481_p5, %p14441_p13 }
  0x36   : > { %p14490_p2 = por %p14489_p0, %p14488_p12 }
  0x37   : > { %p14484_p9 = pneg %p14483_p7 }
  0x39   : > { %p14491_p1 = pnand %p14490_p2, %p14484_p9 }
  0x3b   : > { %14494 = shalt.err (!%p14491_p1)
}
  0x3c   : > { %s14601_s30 = smov 16   ;;  %s14602_s4 = smov 1  }
  0x3d   : > { %13983 = dma.hbm_to_vmem [thread:$0]  (!%p14682_p11), %s19586_s2, 80, %s14686_s25, [#allocation7], %s14601_s30, %s14601_s30, %s14602_s4  }
  0x3e   : > { %s14742_s7 = sadd.s32 1, %s14595_s15   ;;  %s27_s9 = sadd.s32 1, %s14591_s14 }
  0x3f   : > { %s24_s8 = ssub.s32 %s14595_s15, %s14742_s7  ;;  %p34_p6 = scmp.ne.s32.totalorder %s14591_s14, %s14587_s13 }
  0x40   : > { %p25_p13 = scmp.eq.s32.totalorder %s24_s8, 0  ;;  %p35_p10 = scmp.eq.s32.totalorder %s14595_s15, 0 }
  0x41   : > { %p19719_p5 = scmp.eq.s32.totalorder %s14652_s16, 1  ;;  %p13994_p9 = scmp.lt.s32.totalorder %s14595_s15, 2 }
  0x42   : > { %s14751_s10 = scalar_select %p25_p13, %s14591_s14, %s27_s9  }
  0x43   : > { %p36_p3 = por %p35_p10, %p34_p6  ;;  %p14755_p7 = por %p19719_p5, %p34_p6 }
  0x44   : > { %s158_s23 = sand.u32 1, %s14591_s14   ;;  %s11347_s25 = sshll.u32 %s14595_s15, 12 }
  0x45   : > { %s19720_s11 = scalar_select %p14755_p7, 1, 0 }
  0x46   : > { %s10969_s17 = sshll.u32 %s158_s23, 8  ;;  %s14765_s26 = scalar_lea.hbm %s19584_s0, %s11347_s25 }
  0x47   : > { %s162_s27 = scalar_lea.vmem [#allocation3], %s10969_s17  ;;  %p14769_p11 = pnand %p13994_p9, %p36_p3 }
  0x48   : > { %s169_s28 = sshll.u32 %s162_s27, 4  ;;  %s14773_s29 = scalar_lea.sflag [#allocation4], %s158_s23  ;;  %s14767_s28 = int_to_ptr.vmem [resolvable:$true] %s169_s28 }
  0x49   : > { %s14495_s30 = scalar_lea.hbm %s14765_s26, 4096  ;;  %p14497_p0 = pneg %p14769_p11 }
  0x4a   : > { %p14496_p12 = scmp.ne.s32.totalorder %s14765_s26, %s14495_s30  ;;  %s14500_s6 = scalar_lea.hbm %s19584_s0, 8192 }
  0x4b   : > { %p14501_p13 = scmp.lt.u32.totalorder %s14765_s26, %s19584_s0  ;;  %p14502_p6 = scmp.lt.u32.totalorder %s14500_s6, %s14495_s30 }
  0x4c   : > { %p14498_p2 = pnand %p14497_p0, %p14496_p12  ;;  %p14504_p3 = scmp.lt.u32.totalorder %s14495_s30, %s14765_s26 }
  0x4d   : > { %p14503_p10 = por %p14502_p6, %p14501_p13 }
  0x4e   : > { %p14499_p1 = pneg %p14498_p2 }
  0x4f   : > { %p14505_p5 = por %p14504_p3, %p14503_p10 }
  0x51   : > { %p14506_p9 = pnand %p14505_p5, %p14499_p1 }
  0x53   : > { %14509 = shalt.err (!%p14506_p9)
}
  0x54   : > { %s14510_s23 = scalar_lea.vmem %s14767_s28, 4096  ;;  %s14603_s17 = smov [#allocation3]  }
  0x55   : > { %p14511_p12 = scmp.ne.s32.totalorder %s14767_s28, %s14510_s23  ;;  %s14515_s25 = sshll.u32 %s14603_s17, 4  ;;  %s14516_s25 = int_to_ptr.vmem [resolvable:$false] %s14515_s25 }
  0x56   : > { %s14517_s21 = scalar_lea.vmem %s14516_s25, 8192  ;;  %p14518_p4 = scmp.lt.s32.totalorder %s14767_s28, %s14516_s25 }
  0x57   : > { %p14513_p2 = pnand %p14511_p12, %p14497_p0  ;;  %p14519_p13 = scmp.lt.s32.totalorder %s14517_s21, %s14510_s23 }
  0x59   : > { %p14514_p7 = pneg %p14513_p2  ;;  %p14520_p6 = por %p14519_p13, %p14518_p4 }
  0x5b   : > { %p14521_p10 = pnand %p14520_p6, %p14514_p7 }
  0x5d   : > { %14524 = shalt.err (!%p14521_p10)
}
  0x5e   : > { %s14604_s24 = smov 128   ;;  %s14605_s27 = smov 8  }
  0x5f   : > { %13987 = dma.hbm_to_vmem [thread:$0]  (!%p14769_p11), %s14765_s26, 4096, %s14767_s28, %s14773_s29, %s14604_s24, %s14604_s24, %s14605_s27  }
  0x60   : > { %181 = sbr.rel (%p14671_p8) target bundleno = 2348 (0x92c), region = 32 }
  0x67   : > { %s14804_s30 = sand.u32 1, %s14587_s13   ;;  %p19722_p4 = scmp.ne.s32.totalorder %s19715_s18, 0 }
  0x68   : > { %s10973_s4 = sshll.u32 %s14804_s30, 8  ;;  %s184_s5 = scalar_lea.sflag [#allocation4], %s14804_s30 }
  0x69   : > { %s14810_s6 = scalar_lea.vmem [#allocation3], %s10973_s4 }
  0x6a   : > { %14570 = dma.done.wait (%p19722_p4), %s184_s5, 4096  }
  0x6b   : > { %14572 = vsyncadd (%p19722_p4), %s184_s5, 4294963200  ;;  %p19723_p7 = scmp.eq.s32.totalorder %s14652_s16, 0 }
  0x6d   : > { %14574 = dma.done.wait (%p19723_p7), [#allocation7], 46160   ;;  %p19724_p8 = pmov %p19723_p7 }
  0x6e   : > { %v19591_v0 = vmov 0.0   ;;  %v14042_v4 = vld [vmem:[#allocation6 + $0x40] sm:$0xff]   ;;  %v14044_v6 = vld [vmem:[#allocation6 + $0x48] sm:$0xff]   ;;  %v14046_v8 = vld [vmem:[#allocation6 + $0x50] sm:$0xff]   ;;  %vm646_vm0 = vcmask 1046528   ;;  %vm832_vm1 = vcmask 1040384  }
  0x6f   : > { %14576 = vsyncadd (%p19724_p8), [#allocation7], 4294921136  ;;  %v647_v1 = vrot.slane %v19591_v0, 1  ;;  %v14043_v5 = vld [vmem:[#allocation6] sm:$0xff]   ;;  %11349 = vmatprep.subr.bf16.mxu0 %v14042_v4  ;;  %13949 = vmatprep.subr.bf16.mxu1 %v14042_v4  ;;  %v14045_v7 = vld [vmem:[#allocation6 + $0x8] sm:$0xff]   ;;  %v14833_v20 = vrot.slane %v19591_v0, 7 }
  0x70   : > { %11350 = vmatpush3.bf16.msra.mxu0 %v14043_v5  ;;  %13957 = vmatpush3.bf16.msra.mxu1 %v14043_v5  ;;  %v14047_v9 = vld [vmem:[#allocation6 + $0x10] sm:$0xff]   ;;  %v14048_v10 = vld [vmem:[#allocation6 + $0x58] sm:$0xff]   ;;  %v14050_v12 = vld [vmem:[#allocation6 + $0x60] sm:$0xff]   ;;  %vm711_vm2 = vcmask 1045504   ;;  %vm3071_vm3 = vcmask 1041408   ;;  %vm2926_vm4 = vcmask 1043456  }
  0x71   : > { %v836_v2 = vrot.slane %v647_v1, 7  ;;  %11351 = vmatprep.subr.bf16.mxu0 %v14044_v6  ;;  %13950 = vmatprep.subr.bf16.mxu1 %v14044_v6  ;;  %v14049_v11 = vld [vmem:[#allocation6 + $0x18] sm:$0xff]   ;;  %v14051_v13 = vld [vmem:[#allocation6 + $0x20] sm:$0xff]   ;;  %v14052_v14 = vld [vmem:[#allocation6 + $0x68] sm:$0xff]   ;;  %v14864_v61 = vpack.c.bf16 %v14833_v20, %v14833_v20  ;;  %s19441_s18 = scalar_lea.vmem [#allocation9], %s10973_s4  ;;  %s11348_s20 = sshll.u32 %s14652_s16, 12 }
  0x72   : > { %v14825_v15 = vld [vmem:[%s14810_s6 + $0xb0] sm:$0xff]  ;;  %v14828_v16 = vld [vmem:[%s14810_s6 + $0xb8] sm:$0xff]  ;;  %v14053_v19 = vld [vmem:[#allocation6 + $0x28] sm:$0xff]   ;;  %s10872_s26 = sshll.u32 %s19441_s18, 4  ;;  %s19534_s29 = scalar_lea.hbm %s19587_s3, %s11348_s20  ;;  %s19536_s26 = int_to_ptr.vmem [resolvable:$true] %s10872_s26 }
  0x73   : > { %v14821_v3 = vpack.c.bf16 %v836_v2, %v836_v2  ;;  %v683_v17 = vrot.slane %v14825_v15, 1  ;;  %v684_v18 = vrot.slane %v14828_v16, 1  ;;  %v14054_v21 = vld [vmem:[#allocation6 + $0x70] sm:$0xff]   ;;  %v1014_v25 = vrot.slane %v14825_v15, 7  ;;  %v14843_v32 = vld [vmem:[%s14810_s6] sm:$0xff]  ;;  %v14846_v33 = vld [vmem:[%s14810_s6 + $0x8] sm:$0xff] }
  0x74   : > { %11352 = vmatpush3.bf16.msra.mxu0 %v14045_v7  ;;  %13958 = vmatpush3.bf16.msra.mxu1 %v14045_v7  ;;  %v1022_v27 = vrot.slane %v14828_v16, 7  ;;  %v14055_v30 = vld [vmem:[#allocation6 + $0x30] sm:$0xff]   ;;  %v14056_v34 = vld [vmem:[#allocation6 + $0x78] sm:$0xff]   ;;  %v650_v37 = vrot.slane %v14843_v32, 1  ;;  %v651_v38 = vrot.slane %v14846_v33, 1  ;;  %v501_v39 = vld [vmem:[%s14810_s6 + $0xc0] sm:$0xff] }
  0x75   : > { %19725 = vst [vmem:[#allocation13_spill] sm:$0xff] %v14821_v3  ;;  %1880 = vmatprep.mubr.bf16.mxu0 %v14821_v3  ;;  %11353 = vmatprep.subr.bf16.mxu0 %v14046_v8  ;;  %v685_v22 = vsel %vm646_vm0, %v683_v17, %v684_v18  ;;  %v1016_v23 = vrot.slane %v683_v17, 7  ;;  %v1024_v24 = vrot.slane %v684_v18, 7  ;;  %v1015_v35 = vsel %vm832_vm1, %v14833_v20, %v1014_v25  ;;  %v502_v40 = vld [vmem:[%s14810_s6 + $0xc8] sm:$0xff]  ;;  %v14057_v41 = vld [vmem:[#allocation6 + $0x38] sm:$0xff]   ;;  %v14058_v46 = vld [vmem:[#allocation6 + $0xc0] sm:$0xff]  }
  0x76   : > { %13951 = vmatprep.subr.bf16.mxu1 %v14046_v8  ;;  %v1017_v26 = vrot.slane %v685_v22, 7  ;;  %v1023_v36 = vsel %vm832_vm1, %v1014_v25, %v1022_v27  ;;  %v686_v42 = vrot.slane %v501_v39, 1  ;;  %v687_v43 = vrot.slane %v502_v40, 1  ;;  %v14059_v51 = vld [vmem:[#allocation6 + $0x140] sm:$0xff]   ;;  %19727 = vst [vmem:[#allocation15_spill] sm:$0xff] %v14864_v61  ;;  %v14062_v4 = vld [vmem:[#allocation6 + $0xc8] sm:$0xff]  }
  0x77   : > { %v843_v44 = vrot.slane %v14843_v32, 7  ;;  %v866_v45 = vrot.slane %v14846_v33, 7  ;;  %v652_v47 = vsel %vm646_vm0, %v650_v37, %v651_v38  ;;  %v845_v48 = vrot.slane %v650_v37, 7  ;;  %v14060_v58 = vld [vmem:[#allocation6 + $0x80] sm:$0xff]   ;;  %v14067_v17 = vld [vmem:[#allocation6 + $0x148] sm:$0xff]   ;;  %s10859_s16 = scalar_lea.sflag [#allocation5], %s14804_s30 }
  0x78   : > { %11354 = vmatpush3.bf16.msra.mxu0 %v14047_v9  ;;  %13959 = vmatpush3.bf16.msra.mxu1 %v14047_v9  ;;  %v1018_v28 = vsel %vm832_vm1, %v1016_v23, %v1017_v26  ;;  %v1025_v29 = vsel %vm832_vm1, %v1017_v26, %v1024_v24  ;;  %v868_v49 = vrot.slane %v651_v38, 7  ;;  %v1029_v50 = vrot.slane %v501_v39, 7  ;;  %v14061_v63 = vld [vmem:[#allocation6 + $0x100] sm:$0xff]   ;;  %v14064_v23 = vld [vmem:[#allocation6 + $0xd0] sm:$0xff]   ;;  %s14525_s8 = scalar_lea.vmem %s19536_s26, 4096  ;;  %p20121_p0 = scmp.ne.s32.totalorder %s19720_s11, 0 }
  0x79   : > { %11355 = vmatprep.subr.bf16.mxu0 %v14048_v10  ;;  %13952 = vmatprep.subr.bf16.mxu1 %v14048_v10  ;;  %v14840_v31 = vpack.c.bf16 %v1025_v29, %v1018_v28  ;;  %v846_v52 = vrot.slane %v652_v47, 7  ;;  %v688_v53 = vsel %vm646_vm0, %v686_v42, %v687_v43  ;;  %v1031_v54 = vrot.slane %v686_v42, 7  ;;  %v14879_v10 = vld [vmem:[%s14810_s6 + $0x10] sm:$0xff]  ;;  %v14069_v28 = vld [vmem:[#allocation6 + $0x108] sm:$0xff]   ;;  %p14526_p11 = scmp.ne.s32.totalorder %s19536_s26, %s14525_s8  ;;  %s14608_s9 = smov [#allocation9]  }
  0x7a   : > { %v1039_v55 = vrot.slane %v687_v43, 7  ;;  %v1032_v56 = vrot.slane %v688_v53, 7  ;;  %v1037_v57 = vrot.slane %v502_v40, 7  ;;  %v14866_v62 = vpack.c.bf16 %v1023_v36, %v1015_v35  ;;  %v14065_v40 = vld [vmem:[#allocation6 + $0x90] sm:$0xff]   ;;  %v14917_v53 = vld [vmem:[%s14810_s6 + $0xe0] sm:$0xff]  ;;  %s14529_s23 = sshll.u32 %s14608_s9, 4  ;;  %s14530_s23 = int_to_ptr.vmem [resolvable:$false] %s14529_s23 }
  0x7b   : > { %19726 = vst [vmem:[#allocation14_spill] sm:$0xff] %v14840_v31  ;;  %1976 = vmatprep.mubr.bf16.mxu1 %v14840_v31  ;;  %v847_v59 = vsel %vm832_vm1, %v845_v48, %v846_v52  ;;  %v869_v60 = vsel %vm832_vm1, %v846_v52, %v868_v49  ;;  %v844_v5 = vsel %vm832_vm1, %v14833_v20, %v843_v44  ;;  %v653_v18 = vrot.slane %v14879_v10, 1  ;;  %v14914_v52 = vld [vmem:[%s14810_s6 + $0x28] sm:$0xff]  ;;  %p14527_p1 = pnand %p14526_p11, %p20121_p0  ;;  %s14531_s17 = scalar_lea.vmem %s14530_s23, 8192 }
  0x7c   : > { %11356 = vmatpush3.bf16.msra.mxu0 %v14049_v11  ;;  %13960 = vmatpush3.bf16.msra.mxu1 %v14049_v11  ;;  %v1033_v1 = vsel %vm832_vm1, %v1031_v54, %v1032_v56  ;;  %v1040_v2 = vsel %vm832_vm1, %v1032_v56, %v1039_v55  ;;  %v867_v6 = vsel %vm832_vm1, %v843_v44, %v866_v45  ;;  %v14882_v11 = vld [vmem:[%s14810_s6 + $0x18] sm:$0xff]  ;;  %v852_v25 = vrot.slane %v14879_v10, 7  ;;  %p14532_p5 = scmp.lt.s32.totalorder %s19536_s26, %s14530_s23  ;;  %p14533_p9 = scmp.lt.s32.totalorder %s14531_s17, %s14525_s8 }
  0x7d   : > { %11357 = vmatprep.subr.bf16.mxu0 %v14050_v12  ;;  %13953 = vmatprep.subr.bf16.mxu1 %v14050_v12  ;;  %v14873_v7 = vpack.c.bf16 %v869_v60, %v847_v59  ;;  %v1030_v8 = vsel %vm832_vm1, %v14833_v20, %v1029_v50  ;;  %v1038_v9 = vsel %vm832_vm1, %v1029_v50, %v1037_v57  ;;  %v503_v12 = vld [vmem:[%s14810_s6 + $0xd0] sm:$0xff]  ;;  %v872_v26 = vrot.slane %v14882_v11, 7  ;;  %v14066_v44 = vld [vmem:[#allocation6 + $0xd8] sm:$0xff]   ;;  %p14528_p3 = pneg %p14527_p1 }
  0x7e   : > { %v689_v22 = vrot.slane %v503_v12, 1  ;;  %v1044_v27 = vrot.slane %v503_v12, 7  ;;  %v14898_v39 = vpack.c.bf16 %v867_v6, %v844_v5  ;;  %v14900_v43 = vpack.c.bf16 %v1038_v9, %v1030_v8  ;;  %v14068_v9 = vld [vmem:[#allocation6 + $0x98] sm:$0xff]   ;;  %p14534_p12 = por %p14533_p9, %p14532_p5 }
  0x7f   : > { %v853_v47 = vsel %vm832_vm1, %v14833_v20, %v852_v25  ;;  %v14920_v54 = vrot.slane %v19591_v0, 2  ;;  %v657_v57 = vrot.slane %v14914_v52, 1  ;;  %v692_v59 = vrot.slane %v14917_v53, 1 }
  0x80   : > { %11358 = vmatpush3.bf16.msra.mxu0 %v14051_v13  ;;  %13961 = vmatpush3.bf16.msra.mxu1 %v14051_v13  ;;  %v14063_v13 = vld [vmem:[#allocation6 + $0x88] sm:$0xff]   ;;  %v1046_v35 = vrot.slane %v689_v22, 7  ;;  %v873_v60 = vsel %vm832_vm1, %v852_v25, %v872_v26  ;;  %p14535_p2 = pnand %p14534_p12, %p14528_p3 }
  0x81   : > { %11359 = vmatprep.subr.bf16.mxu0 %v14052_v14  ;;  %13954 = vmatprep.subr.bf16.mxu1 %v14052_v14  ;;  %v14885_v14 = vpack.c.bf16 %v1040_v2, %v1033_v1  ;;  %v889_v6 = vrot.slane %v657_v57, 7  ;;  %v1061_v8 = vrot.slane %v692_v59, 7 }
  0x83   : > { %19728 = vst [vmem:[#allocation16_spill] sm:$0xff] %v14885_v14 }
  0x84   : > { %11360 = vmatpush3.bf16.msra.mxu0 %v14053_v19  ;;  %13962 = vmatpush3.bf16.msra.mxu1 %v14053_v19  ;;  %v654_v19 = vrot.slane %v14882_v11, 1 }
  0x85   : > { %11361 = vmatprep.subr.bf16.mxu0 %v14054_v21  ;;  %13955 = vmatprep.subr.bf16.mxu1 %v14054_v21  ;;  %v504_v21 = vld [vmem:[%s14810_s6 + $0xd8] sm:$0xff] }
  0x86   : > { %v690_v24 = vrot.slane %v504_v21, 1  ;;  %v655_v29 = vsel %vm646_vm0, %v653_v18, %v654_v19  ;;  %v1052_v42 = vrot.slane %v504_v21, 7  ;;  %v14070_v21 = vld [vmem:[#allocation6 + $0xe0] sm:$0xff]  }
  0x87   : > { %v855_v36 = vrot.slane %v655_v29, 7 }
  0x88   : > { %11362 = vmatpush3.bf16.msra.mxu0 %v14055_v30  ;;  %13963 = vmatpush3.bf16.msra.mxu1 %v14055_v30  ;;  %v854_v30 = vrot.slane %v653_v18, 7  ;;  %v691_v37 = vsel %vm646_vm0, %v689_v22, %v690_v24  ;;  %v1054_v38 = vrot.slane %v690_v24, 7  ;;  %v1053_v1 = vsel %vm832_vm1, %v1044_v27, %v1052_v42  ;;  %v14075_v18 = vld [vmem:[#allocation6 + $0x150] sm:$0xff]   ;;  %v14071_v24 = vld [vmem:[#allocation6 + $0xa0] sm:$0xff]   ;;  %v14961_v42 = vld [vmem:[%s14810_s6 + $0x38] sm:$0xff] }
  0x89   : > { %11363 = vmatprep.subr.bf16.mxu0 %v14056_v34  ;;  %13956 = vmatprep.subr.bf16.mxu1 %v14056_v34  ;;  %v874_v34 = vrot.slane %v654_v19, 7  ;;  %v14941_v19 = vpack.c.bf16 %v873_v60, %v853_v47  ;;  %v839_v47 = vrot.slane %v14920_v54, 7 }
  0x8a   : > { %v856_v45 = vsel %vm832_vm1, %v854_v30, %v855_v36 }
  0x8b   : > { %19730 = vst [vmem:[#allocation18_spill] sm:$0xff] %v14941_v19 }
  0x8c   : > { %11364 = vmatpush3.bf16.msra.mxu0 %v14057_v41  ;;  %13964 = vmatpush3.bf16.msra.mxu1 %v14057_v41  ;;  %v1047_v41 = vrot.slane %v691_v37, 7 }
  0x8d   : > { %11461 = vmatprep.subr.bf16.mxu1 %v14058_v46  ;;  %11573 = vmatprep.subr.bf16.mxu0 %v14059_v51  ;;  %v875_v46 = vsel %vm832_vm1, %v855_v36, %v874_v34  ;;  %v14911_v51 = vld [vmem:[%s14810_s6 + $0x20] sm:$0xff]  ;;  %v887_v34 = vrot.slane %v14914_v52, 7  ;;  %v14072_v36 = vld [vmem:[#allocation6 + $0xe8] sm:$0xff]  }
  0x8e   : > { %v14906_v48 = vpack.c.bf16 %v875_v46, %v856_v45  ;;  %v1048_v49 = vsel %vm832_vm1, %v1046_v35, %v1047_v41  ;;  %v1055_v50 = vsel %vm832_vm1, %v1047_v41, %v1054_v38  ;;  %v656_v56 = vrot.slane %v14911_v51, 1  ;;  %v14958_v41 = vld [vmem:[%s14810_s6 + $0x30] sm:$0xff] }
  0x8f   : > { %1881 = vmatmul.mubr.bf16.vlgmr.msra.gmra.mrb[0].mxu0 %v14864_v61  ;;  %1977 = vmatmul.mubr.bf16.vlgmr.msra.gmra.mrb[0].mxu1 %v14866_v62  ;;  %v14922_v55 = vpack.c.bf16 %v1055_v50, %v1048_v49  ;;  %v1059_v35 = vrot.slane %v14917_v53, 7  ;;  %v659_v45 = vrot.slane %v14958_v41, 1  ;;  %v660_v46 = vrot.slane %v14961_v42, 1 }
  0x90   : > { %11462 = vmatpush3.bf16.msra.mxu1 %v14060_v58  ;;  %11574 = vmatpush3.bf16.msra.mxu0 %v14061_v63  ;;  %v14927_v58 = vld [vmem:[%s14810_s6 + $0xe8] sm:$0xff]  ;;  %v1045_v63 = vsel %vm832_vm1, %v14833_v20, %v1044_v27  ;;  %v881_v5 = vrot.slane %v656_v56, 7  ;;  %v879_v27 = vrot.slane %v14911_v51, 7 }
  0x91   : > { %11463 = vmatprep.subr.bf16.mxu1 %v14062_v4  ;;  %1888 = vmatprep.mubr.bf16.mxu0 %v14873_v7  ;;  %19729 = vst [vmem:[#allocation17_spill] sm:$0xff] %v14922_v55  ;;  %v693_v2 = vrot.slane %v14927_v58, 1  ;;  %v658_v4 = vsel %vm646_vm0, %v656_v56, %v657_v57  ;;  %v1067_v38 = vrot.slane %v14927_v58, 7  ;;  %v1060_v56 = vsel %vm832_vm1, %v14833_v20, %v1059_v35  ;;  %v14080_v57 = vld [vmem:[#allocation6 + $0x158] sm:$0xff]  }
  0x92   : > { %1984 = vmatprep.mubr.bf16.mxu1 %v14885_v14  ;;  %11575 = vmatprep.subr.bf16.mxu0 %v14067_v17  ;;  %v882_v12 = vrot.slane %v658_v4, 7  ;;  %v880_v49 = vsel %vm832_vm1, %v14833_v20, %v879_v27  ;;  %v888_v50 = vsel %vm832_vm1, %v879_v27, %v887_v34  ;;  %v14081_v4 = vld [vmem:[#allocation6 + $0x118] sm:$0xff]   ;;  %v894_v34 = vrot.slane %v14958_v41, 7  ;;  %v14101_v14 = vld [vmem:[#allocation6 + $0x1e0] sm:$0xff]  }
  0x93   : > { %v1069_v17 = vrot.slane %v693_v2, 7  ;;  %v1068_v60 = vsel %vm832_vm1, %v1059_v35, %v1067_v38  ;;  %v902_v35 = vrot.slane %v14961_v42, 7 }
  0x94   : > { %11464 = vmatpush3.bf16.msra.mxu1 %v14063_v13  ;;  %11576 = vmatpush3.bf16.msra.mxu0 %v14069_v28  ;;  %v694_v13 = vsel %vm646_vm0, %v692_v59, %v693_v2  ;;  %v883_v25 = vsel %vm832_vm1, %v881_v5, %v882_v12  ;;  %v890_v26 = vsel %vm832_vm1, %v882_v12, %v889_v6  ;;  %v14077_v28 = vld [vmem:[#allocation6 + $0x110] sm:$0xff]   ;;  %v717_v59 = vrot.slane %v14843_v32, 2  ;;  %v14978_v5 = vld [vmem:[%s14810_s6 + $0x40] sm:$0xff]  ;;  %v14981_v6 = vld [vmem:[%s14810_s6 + $0x48] sm:$0xff] }
  0x95   : > { %11465 = vmatprep.subr.bf16.mxu1 %v14064_v23  ;;  %v1062_v22 = vrot.slane %v694_v13, 7  ;;  %v14943_v23 = vpack.c.bf16 %v1053_v1, %v1045_v63  ;;  %11577 = vmatprep.subr.bf16.mxu0 %v14075_v18  ;;  %v14952_v37 = vpack.c.bf16 %v890_v26, %v883_v25  ;;  %v661_v63 = vsel %vm646_vm0, %v659_v45, %v660_v46 }
  0x96   : > { %v896_v1 = vrot.slane %v659_v45, 7  ;;  %v904_v2 = vrot.slane %v660_v46, 7  ;;  %v897_v32 = vrot.slane %v661_v63, 7  ;;  %v663_v12 = vrot.slane %v14981_v6, 1  ;;  %v14083_v46 = vld [vmem:[#allocation6 + $0x120] sm:$0xff]  }
  0x97   : > { %1889 = vmatmul.mubr.bf16.gmra.mrb[4].mxu0 %v14898_v39  ;;  %1985 = vmatmul.mubr.bf16.gmra.mrb[4].mxu1 %v14900_v43  ;;  %v1063_v29 = vsel %vm832_vm1, %v1061_v8, %v1062_v22  ;;  %v1070_v30 = vsel %vm832_vm1, %v1062_v22, %v1069_v17  ;;  %v14074_v8 = vld [vmem:[#allocation6 + $0xf0] sm:$0xff]   ;;  %v718_v13 = vrot.slane %v14846_v33, 2  ;;  %v14082_v17 = vld [vmem:[#allocation6 + $0x160] sm:$0xff]   ;;  %v14987_v18 = vpack.c.bf16 %v888_v50, %v880_v49  ;;  %v14078_v33 = vld [vmem:[#allocation6 + $0xf8] sm:$0xff]  }
  0x98   : > { %11466 = vmatpush3.bf16.msra.mxu1 %v14065_v40  ;;  %1896 = vmatprep.mubr.bf16.mxu0 %v14906_v48  ;;  %v14955_v40 = vpack.c.bf16 %v1070_v30, %v1063_v29  ;;  %v14990_v22 = vld [vmem:[%s14810_s6 + $0x50] sm:$0xff]  ;;  %v14993_v25 = vpack.c.bf16 %v1068_v60, %v1060_v56  ;;  %v898_v26 = vsel %vm832_vm1, %v896_v1, %v897_v32  ;;  %v14999_v29 = vld [vmem:[%s14810_s6 + $0x58] sm:$0xff]  ;;  %v919_v45 = vrot.slane %v663_v12, 7 }
  0x99   : > { %11467 = vmatprep.subr.bf16.mxu1 %v14066_v44  ;;  %1992 = vmatprep.mubr.bf16.mxu1 %v14922_v55  ;;  %v14073_v44 = vld [vmem:[#allocation6 + $0xa8] sm:$0xff]   ;;  %19732 = vst [vmem:[#allocation20_spill] sm:$0xff] %v14987_v18  ;;  %v905_v27 = vsel %vm832_vm1, %v897_v32, %v904_v2  ;;  %v719_v49 = vsel %vm711_vm2, %v717_v59, %v718_v13  ;;  %v665_v50 = vrot.slane %v14990_v22, 1  ;;  %v666_v56 = vrot.slane %v14999_v29, 1  ;;  %v14079_v60 = vld [vmem:[#allocation6 + $0xb8] sm:$0xff]  }
  0x9a   : > { %11578 = vmatpush3.bf16.msra.mxu0 %v14077_v28  ;;  %19731 = vst [vmem:[#allocation19_spill] sm:$0xff] %v14955_v40  ;;  %19733 = vst [vmem:[#allocation21_spill] sm:$0xff] %v14993_v25  ;;  %v15001_v30 = vpack.c.bf16 %v905_v27, %v898_v26  ;;  %v895_v63 = vsel %vm832_vm1, %v14833_v20, %v894_v34  ;;  %v903_v1 = vsel %vm832_vm1, %v894_v34, %v902_v35 }
  0x9b   : > { %11579 = vmatprep.subr.bf16.mxu0 %v14080_v57  ;;  %v14084_v57 = vld [vmem:[#allocation6 + $0x168] sm:$0xff]   ;;  %v15017_v2 = vpack.c.bf16 %v839_v47, %v839_v47  ;;  %v849_v32 = vrot.slane %v719_v49, 7  ;;  %v667_v47 = vsel %vm646_vm0, %v665_v50, %v666_v56  ;;  %v15036_v27 = vpack.c.bf16 %v903_v1, %v895_v63  ;;  %v15047_v49 = vld [vmem:[%s14810_s6 + $0x70] sm:$0xff] }
  0x9c   : > { %11468 = vmatpush3.bf16.msra.mxu1 %v14068_v9  ;;  %v662_v9 = vrot.slane %v14978_v5, 1  ;;  %v14086_v63 = vld [vmem:[#allocation6 + $0x170] sm:$0xff]   ;;  %v932_v1 = vrot.slane %v14999_v29, 7  ;;  %v671_v3 = vrot.slane %v15047_v49, 1 }
  0x9d   : > { %11469 = vmatprep.subr.bf16.mxu1 %v14070_v21  ;;  %v14076_v21 = vld [vmem:[#allocation6 + $0xb0] sm:$0xff]   ;;  %19734 = vst [vmem:[#allocation22_spill] sm:$0xff] %v15017_v2  ;;  %19735 = vst [vmem:[#allocation23_spill] sm:$0xff] %v15036_v27 }
  0x9e   : > { %11580 = vmatpush3.bf16.msra.mxu0 %v14081_v4  ;;  %v664_v28 = vsel %vm646_vm0, %v662_v9, %v663_v12  ;;  %v15024_v12 = vld [vmem:[%s14810_s6 + $0x60] sm:$0xff] }
  0x9f   : > { %1897 = vmatmul.mubr.bf16.gmra.mrb[8].mxu0 %v14941_v19  ;;  %1993 = vmatmul.mubr.bf16.gmra.mrb[8].mxu1 %v14943_v23  ;;  %v912_v38 = vrot.slane %v664_v28, 7  ;;  %v917_v28 = vrot.slane %v14981_v6, 7  ;;  %v939_v0 = vrot.slane %v15024_v12, 7  ;;  %v14091_v4 = vld [vmem:[#allocation6 + $0x180] sm:$0xff]  }
  0xa0   : > { %11470 = vmatpush3.bf16.msra.mxu1 %v14071_v24  ;;  %1904 = vmatprep.mubr.bf16.mxu0 %v14952_v37  ;;  %v722_v24 = vrot.slane %v14879_v10, 2  ;;  %v723_v10 = vrot.slane %v14882_v11, 2  ;;  %v848_v11 = vrot.slane %v717_v59, 7 }
  0xa1   : > { %11471 = vmatprep.subr.bf16.mxu1 %v14072_v36  ;;  %2000 = vmatprep.mubr.bf16.mxu1 %v14955_v40  ;;  %v911_v36 = vrot.slane %v662_v9, 7 }
  0xa2   : > { %11581 = vmatprep.subr.bf16.mxu0 %v14082_v17  ;;  %v909_v17 = vrot.slane %v14978_v5, 7  ;;  %v15034_v26 = vrot.slane %v722_v24, 7  ;;  %v726_v34 = vsel %vm711_vm2, %v723_v10, %v14920_v54 }
  0xa3   : > { %v913_v59 = vsel %vm832_vm1, %v911_v36, %v912_v38  ;;  %11582 = vmatpush3.bf16.msra.mxu0 %v14083_v46  ;;  %v668_v36 = vrot.slane %v15024_v12, 1  ;;  %v934_v46 = vrot.slane %v666_v56, 7  ;;  %v850_v56 = vsel %vm832_vm1, %v848_v11, %v849_v32 }
  0xa4   : > { %11472 = vmatpush3.bf16.msra.mxu1 %v14073_v44  ;;  %v721_v44 = vsel %vm711_vm2, %v718_v13, %v14920_v54  ;;  %v15027_v13 = vld [vmem:[%s14810_s6 + $0x68] sm:$0xff]  ;;  %11583 = vmatprep.subr.bf16.mxu0 %v14084_v57  ;;  %v876_v57 = vrot.slane %v726_v34, 7 }
  0xa5   : > { %11473 = vmatprep.subr.bf16.mxu1 %v14074_v8  ;;  %v920_v8 = vsel %vm832_vm1, %v912_v38, %v919_v45  ;;  %v870_v9 = vrot.slane %v721_v44, 7  ;;  %v926_v38 = vrot.slane %v665_v50, 7  ;;  %v927_v45 = vrot.slane %v667_v47, 7  ;;  %v15050_v44 = vld [vmem:[%s14810_s6 + $0x78] sm:$0xff] }
  0xa6   : > { %v15042_v35 = vpack.c.bf16 %v920_v8, %v913_v59  ;;  %v14088_v59 = vld [vmem:[#allocation6 + $0x178] sm:$0xff]   ;;  %v14090_v8 = vld [vmem:[#allocation6 + $0x1c0] sm:$0xff]   ;;  %v910_v50 = vsel %vm832_vm1, %v14833_v20, %v909_v17  ;;  %v941_v34 = vrot.slane %v668_v36, 7  ;;  %v672_v40 = vrot.slane %v15050_v44, 1 }
  0xa7   : > { %1905 = vmatmul.mubr.bf16.gmra.mrb[12].mxu0 %v14987_v18  ;;  %2001 = vmatmul.mubr.bf16.gmra.mrb[12].mxu1 %v14993_v25  ;;  %v871_v47 = vsel %vm832_vm1, %v849_v32, %v870_v9  ;;  %v928_v61 = vsel %vm832_vm1, %v926_v38, %v927_v45  ;;  %v935_v11 = vsel %vm832_vm1, %v927_v45, %v934_v46  ;;  %v728_v32 = vrot.slane %v14914_v52, 2  ;;  %v14089_v9 = vld [vmem:[#allocation6 + $0x138] sm:$0xff]   ;;  %v14093_v38 = vld [vmem:[#allocation6 + $0x1c8] sm:$0xff]  }
  0xa8   : > { %11474 = vmatpush3.bf16.msra.mxu1 %v14076_v21  ;;  %1912 = vmatprep.mubr.bf16.mxu0 %v15001_v30  ;;  %v15032_v21 = vsel %vm711_vm2, %v722_v24, %v723_v10  ;;  %v669_v24 = vrot.slane %v15027_v13, 1  ;;  %v14094_v52 = vld [vmem:[#allocation6 + $0x188] sm:$0xff]   ;;  %v15075_v45 = vpack.c.bf16 %v935_v11, %v928_v61  ;;  %v947_v46 = vrot.slane %v15027_v13, 7 }
  0xa9   : > { %11475 = vmatprep.subr.bf16.mxu1 %v14078_v33  ;;  %2041 = vmatprep.mubr.bf16.mxu1 %v14898_v39  ;;  %v14085_v39 = vld [vmem:[#allocation6 + $0x128] sm:$0xff]   ;;  %v924_v33 = vrot.slane %v14990_v22, 7  ;;  %v858_v10 = vrot.slane %v15032_v21, 7  ;;  %v918_v21 = vsel %vm832_vm1, %v909_v17, %v917_v28  ;;  %v15073_v28 = vpack.c.bf16 %v871_v47, %v850_v56  ;;  %v15091_v56 = vld [vmem:[%s14810_s6 + $0x80] sm:$0xff] }
  0xaa   : > { %11584 = vmatpush3.bf16.msra.mxu0 %v14085_v39  ;;  %v670_v39 = vsel %vm646_vm0, %v668_v36, %v669_v24  ;;  %v15071_v17 = vpack.c.bf16 %v918_v21, %v910_v50  ;;  %v949_v36 = vrot.slane %v669_v24, 7  ;;  %v731_v24 = vsel %vm711_vm2, %v728_v32, %v14920_v54  ;;  %v15094_v47 = vld [vmem:[%s14810_s6 + $0x88] sm:$0xff]  ;;  %v15111_v21 = vld [vmem:[%s14810_s6 + $0x90] sm:$0xff] }
  0xab   : > { %11585 = vmatprep.subr.bf16.mxu0 %v14086_v63  ;;  %v15078_v63 = vld [vmem:[#allocation6 + $0x200] sm:$0xff]   ;;  %v877_v61 = vsel %vm832_vm1, %v858_v10, %v876_v57  ;;  %v673_v50 = vsel %vm646_vm0, %v671_v3, %v672_v40  ;;  %v732_v57 = vrot.slane %v14958_v41, 2 }
  0xac   : > { %11476 = vmatpush3.bf16.msra.mxu1 %v14079_v60  ;;  %v14087_v60 = vld [vmem:[#allocation6 + $0x130] sm:$0xff]   ;;  %19736 = vst [vmem:[#allocation24_spill] sm:$0xff] %v15071_v17  ;;  %v957_v41 = vrot.slane %v673_v50, 7 }
  0xad   : > { %11685 = vmatprep.subr.bf16.mxu1 %v14090_v8 }
  0xae   : > { %11586 = vmatpush3.bf16.msra.mxu0 %v14087_v60  ;;  %v933_v60 = vsel %vm832_vm1, %v924_v33, %v932_v1  ;;  %v14097_v1 = vld [vmem:[#allocation6 + $0x190] sm:$0xff]  }
  0xaf   : > { %1913 = vmatmul.mubr.bf16.gmra.mrb[16].mxu0 %v15036_v27  ;;  %2042 = vmatmul.mubr.bf16.vlgmr.msra.gmra.mrb[16].mxu1 %v15017_v2  ;;  %v727_v2 = vrot.slane %v14911_v51, 2  ;;  %v942_v51 = vrot.slane %v670_v39, 7  ;;  %v733_v39 = vrot.slane %v14961_v42, 2  ;;  %v15114_v42 = vld [vmem:[%s14810_s6 + $0x98] sm:$0xff] }
  0xb0   : > { %1920 = vmatprep.mubr.bf16.mxu0 %v15042_v35  ;;  %2049 = vmatprep.mubr.bf16.mxu1 %v14941_v19 }
  0xb1   : > { %11686 = vmatpush3.bf16.msra.mxu1 %v14091_v4  ;;  %11587 = vmatprep.subr.bf16.mxu0 %v14088_v59  ;;  %v925_v4 = vsel %vm832_vm1, %v14833_v20, %v924_v33  ;;  %v729_v8 = vsel %vm711_vm2, %v727_v2, %v728_v32  ;;  %v859_v59 = vsel %vm832_vm1, %v15034_v26, %v858_v10  ;;  %v14096_v33 = vld [vmem:[#allocation6 + $0x1d0] sm:$0xff]   ;;  %v884_v26 = vrot.slane %v727_v2, 7 }
  0xb2   : > { %11687 = vmatprep.subr.bf16.mxu1 %v14093_v38  ;;  %11588 = vmatpush3.bf16.msra.mxu0 %v14089_v9  ;;  %v956_v10 = vrot.slane %v671_v3, 7  ;;  %v943_v11 = vsel %vm832_vm1, %v941_v34, %v942_v51  ;;  %v950_v32 = vsel %vm832_vm1, %v942_v51, %v949_v36  ;;  %v885_v9 = vrot.slane %v729_v8, 7  ;;  %v14099_v34 = vld [vmem:[#allocation6 + $0x1d8] sm:$0xff]  }
  0xb3   : > { %v891_v38 = vrot.slane %v731_v24, 7  ;;  %v940_v2 = vsel %vm832_vm1, %v14833_v20, %v939_v0  ;;  %v948_v3 = vsel %vm832_vm1, %v939_v0, %v947_v46  ;;  %13709 = vmatprep.subr.bf16.mxu0 %v15078_v63  ;;  %v15117_v55 = vpack.c.bf16 %v877_v61, %v859_v59 }
  0xb4   : > { %v964_v51 = vrot.slane %v672_v40, 7  ;;  %v954_v36 = vrot.slane %v15047_v49, 7  ;;  %v15121_v8 = vpack.c.bf16 %v950_v32, %v943_v11  ;;  %v734_v0 = vsel %vm711_vm2, %v732_v57, %v733_v39 }
  0xb5   : > { %11688 = vmatpush3.bf16.msra.mxu1 %v14094_v52  ;;  %v15105_v52 = vpack.c.bf16 %v933_v60, %v925_v4  ;;  %v962_v4 = vrot.slane %v15050_v44, 7  ;;  %v14100_v60 = vld [vmem:[#allocation6 + $0x198] sm:$0xff]   ;;  %v674_v46 = vrot.slane %v15091_v56, 1  ;;  %v675_v24 = vrot.slane %v15094_v47, 1 }
  0xb6   : > { %11689 = vmatprep.subr.bf16.mxu1 %v14096_v33  ;;  %19738 = vst [vmem:[#allocation26_spill] sm:$0xff] %v15121_v8  ;;  %v15126_v50 = vpack.c.bf16 %v948_v3, %v940_v2  ;;  %v736_v40 = vsel %vm711_vm2, %v733_v39, %v14920_v54  ;;  %v737_v59 = vrot.slane %v14978_v5, 2  ;;  %v738_v61 = vrot.slane %v14981_v6, 2  ;;  %v14103_v39 = vld [vmem:[#allocation6 + $0x1a0] sm:$0xff]  }
  0xb7   : > { %1921 = vmatmul.mubr.bf16.gmra.mrb[20].mxu0 %v15071_v17  ;;  %2050 = vmatmul.mubr.bf16.gmra.mrb[20].mxu1 %v15073_v28  ;;  %19737 = vst [vmem:[#allocation25_spill] sm:$0xff] %v15105_v52  ;;  %v886_v33 = vsel %vm832_vm1, %v884_v26, %v885_v9  ;;  %v958_v11 = vsel %vm832_vm1, %v956_v10, %v957_v41  ;;  %v899_v32 = vrot.slane %v732_v57, 7  ;;  %v677_v2 = vrot.slane %v15111_v21, 1 }
  0xb8   : > { %1928 = vmatprep.mubr.bf16.mxu0 %v15075_v45  ;;  %2057 = vmatprep.mubr.bf16.mxu1 %v14987_v18  ;;  %19739 = vst [vmem:[#allocation27_spill] sm:$0xff] %v15126_v50  ;;  %v965_v31 = vsel %vm832_vm1, %v957_v41, %v964_v51  ;;  %v678_v3 = vrot.slane %v15114_v42, 1  ;;  %v955_v5 = vsel %vm832_vm1, %v14833_v20, %v954_v36  ;;  %v906_v6 = vrot.slane %v736_v40, 7  ;;  %v14104_v51 = vld [vmem:[#allocation6 + $0x1e8] sm:$0xff]  }
  0xb9   : > { %11690 = vmatpush3.bf16.msra.mxu1 %v14097_v1  ;;  %v892_v1 = vsel %vm832_vm1, %v885_v9, %v891_v38  ;;  %v676_v26 = vsel %vm646_vm0, %v674_v46, %v675_v24  ;;  %v971_v10 = vrot.slane %v674_v46, 7  ;;  %v963_v9 = vsel %vm832_vm1, %v954_v36, %v962_v4  ;;  %v15162_v4 = vld [vmem:[%s14810_s6 + $0xa0] sm:$0xff]  ;;  %v15165_v18 = vld [vmem:[%s14810_s6 + $0xa8] sm:$0xff] }
  0xba   : > { %11691 = vmatprep.subr.bf16.mxu1 %v14099_v34  ;;  %v900_v34 = vrot.slane %v734_v0, 7  ;;  %v15145_v57 = vpack.c.bf16 %v892_v1, %v886_v33  ;;  %v969_v38 = vrot.slane %v15091_v56, 7  ;;  %v15150_v41 = vsel %vm711_vm2, %v737_v59, %v738_v61 }
  0xbb   : > { %v979_v0 = vrot.slane %v675_v24, 7  ;;  %v977_v46 = vrot.slane %v15094_v47, 7  ;;  %v741_v40 = vsel %vm711_vm2, %v738_v61, %v14920_v54  ;;  %v914_v33 = vrot.slane %v737_v59, 7 }
  0xbc   : > { %v15158_v1 = vsel %vm646_vm0, %v677_v2, %v678_v3  ;;  %v742_v36 = vrot.slane %v14990_v22, 2  ;;  %v915_v24 = vrot.slane %v15150_v41, 7  ;;  %v901_v59 = vsel %vm832_vm1, %v899_v32, %v900_v34 }
  0xbd   : > { %11692 = vmatpush3.bf16.msra.mxu1 %v14100_v60  ;;  %v15152_v60 = vpack.c.bf16 %v965_v31, %v958_v11  ;;  %v14105_v31 = vld [vmem:[#allocation6 + $0x1a8] sm:$0xff]   ;;  %v15168_v11 = vrot.slane %v677_v2, 7  ;;  %v921_v22 = vrot.slane %v741_v40, 7  ;;  %v15174_v19 = vrot.slane %v678_v3, 7 }
  0xbe   : > { %11693 = vmatprep.subr.bf16.mxu1 %v14101_v14  ;;  %v743_v14 = vrot.slane %v14999_v29, 2  ;;  %v15177_v25 = vpack.c.bf16 %v963_v9, %v955_v5  ;;  %v15180_v41 = vrot.slane %v742_v36, 7  ;;  %v680_v61 = vrot.slane %v15162_v4, 1  ;;  %v14107_v29 = vld [vmem:[#allocation6 + $0x1b0] sm:$0xff]  }
  0xbf   : > { %1929 = vmatmul.mubr.bf16.gmra.mrb[24].mxu0 %v15105_v52  ;;  %2058 = vmatmul.mubr.bf16.gmra.mrb[24].mxu1 %v15117_v55  ;;  %19740 = vst [vmem:[#allocation28_spill] sm:$0xff] %v15152_v60  ;;  %v681_v5 = vrot.slane %v15165_v18, 1  ;;  %v970_v9 = vsel %vm832_vm1, %v14833_v20, %v969_v38  ;;  %v747_v40 = vrot.slane %v15024_v12, 2  ;;  %v14109_v12 = vld [vmem:[#allocation6 + $0x1b8] sm:$0xff]  }
  0xc0   : > { %1936 = vmatprep.mubr.bf16.mxu0 %v15121_v8  ;;  %2065 = vmatprep.mubr.bf16.mxu1 %v15036_v27  ;;  %v972_v27 = vrot.slane %v676_v26, 7  ;;  %v907_v26 = vsel %vm832_vm1, %v900_v34, %v906_v6  ;;  %19741 = vst [vmem:[#allocation29_spill] sm:$0xff] %v15177_v25  ;;  %v15188_v34 = vsel %vm711_vm2, %v742_v36, %v743_v14  ;;  %v14108_v6 = vld [vmem:[#allocation6 + $0x1f8] sm:$0xff]   ;;  %v748_v36 = vrot.slane %v15027_v13, 2 }
  0xc1   : > { %11694 = vmatpush3.bf16.msra.mxu1 %v14103_v39  ;;  %v14106_v39 = vld [vmem:[#allocation6 + $0x1f0] sm:$0xff]   ;;  %v15185_v32 = vpack.c.bf16 %v907_v26, %v901_v59  ;;  %v15192_v3 = vsel %vm711_vm2, %v743_v14, %v14920_v54  ;;  %v752_v59 = vrot.slane %v15047_v49, 2  ;;  %v753_v26 = vrot.slane %v15050_v44, 2 }
  0xc2   : > { %11695 = vmatprep.subr.bf16.mxu1 %v14104_v51  ;;  %v978_v51 = vsel %vm832_vm1, %v969_v38, %v977_v46  ;;  %v980_v14 = vsel %vm832_vm1, %v972_v27, %v979_v0  ;;  %v758_v38 = vrot.slane %v15094_v47, 2  ;;  %v763_v49 = vrot.slane %v15114_v42, 2 }
  0xc3   : > { %v15210_v13 = vpack.c.bf16 %v978_v51, %v970_v9  ;;  %v916_v0 = vsel %vm832_vm1, %v914_v33, %v915_v24  ;;  %v15225_v47 = vsel %vm711_vm2, %v748_v36, %v14920_v54  ;;  %v922_v46 = vsel %vm832_vm1, %v915_v24, %v921_v22 }
  0xc4   : > { %v15230_v9 = vsel %vm711_vm2, %v752_v59, %v753_v26  ;;  %v1009_v51 = vrot.slane %v681_v5, 7  ;;  %v15242_v22 = vsel %vm711_vm2, %v753_v26, %v14920_v54  ;;  %v15259_v26 = vpack.c.bf16 %v922_v46, %v916_v0 }
  0xc5   : > { %11696 = vmatpush3.bf16.msra.mxu1 %v14105_v31  ;;  %v973_v31 = vsel %vm832_vm1, %v971_v10, %v972_v27  ;;  %v15213_v10 = vsel %vm646_vm0, %v680_v61, %v681_v5  ;;  %v762_v27 = vrot.slane %v15111_v21, 2  ;;  %v15271_v24 = vsel %vm711_vm2, %v763_v49, %v14920_v54 }
  0xc6   : > { %11697 = vmatprep.subr.bf16.mxu1 %v14106_v39  ;;  %v15217_v44 = vpack.c.bf16 %v980_v14, %v973_v31  ;;  %v1001_v39 = vrot.slane %v680_v61, 7  ;;  %v15234_v31 = vrot.slane %v747_v40, 7  ;;  %v15254_v14 = vsel %vm711_vm2, %v758_v38, %v14920_v54 }
  0xc7   : > { %1937 = vmatmul.mubr.bf16.gmra.mrb[28].mxu0 %v15126_v50  ;;  %2066 = vmatmul.mubr.bf16.gmra.mrb[28].mxu1 %v15145_v57  ;;  %v767_v0 = vrot.slane %v15162_v4, 2  ;;  %v768_v46 = vrot.slane %v15165_v18, 2 }
  0xc8   : > { %1944 = vmatprep.mubr.bf16.mxu0 %v15152_v60  ;;  %2073 = vmatprep.mubr.bf16.mxu1 %v15071_v17  ;;  %v757_v17 = vrot.slane %v15091_v56, 2  ;;  %19742 = vst [vmem:[#allocation30_spill] sm:$0xff] %v15217_v44  ;;  %v15221_v56 = vsel %vm711_vm2, %v747_v40, %v748_v36  ;;  %v15244_v36 = vrot.slane %v752_v59, 7  ;;  %v19743_v59 = vrot.slane %v15158_v1, 7 }
  0xc9   : > { %11698 = vmatpush3.bf16.msra.mxu1 %v14107_v29  ;;  %v15323_v2 = vrot.slane %v767_v0, 7 }
  0xca   : > { %11699 = vmatprep.subr.bf16.mxu1 %v14108_v6  ;;  %v1002_v6 = vrot.slane %v15213_v10, 7  ;;  %v15250_v40 = vsel %vm711_vm2, %v757_v17, %v758_v38  ;;  %v988_v10 = vsel %vm832_vm1, %v15168_v11, %v19743_v59  ;;  %v19744_v5 = vmov %v19743_v59 }
  0xcb   : > { %v995_v61 = vsel %vm832_vm1, %v19744_v5, %v15174_v19  ;;  %v15274_v33 = vrot.slane %v757_v17, 7  ;;  %v15280_v59 = vrot.slane %v762_v27, 7  ;;  %v19746_v17 = vrot.slane %v14828_v16, 2 }
  0xcc   : > { %v19747_v38 = vrot.slane %v14825_v15, 2  ;;  %v14403_v15 = vld [vmem:[%s14810_s6 + $0xc8] sm:$0xff]  ;;  %v19750_v16 = vrot.slane %v15111_v21, 7  ;;  %v19751_v5 = vrot.slane %v15114_v42, 7  ;;  %v19754_v42 = vrot.slane %v15192_v3, 7  ;;  %v15351_v3 = vld [vmem:[%s14810_s6 + $0xf0] sm:$0xff] }
  0xcd   : > { %11700 = vmatpush3.bf16.msra.mxu1 %v14109_v12  ;;  %v15257_v12 = vsel %vm711_vm2, %v762_v27, %v763_v49  ;;  %v15283_v49 = vpack.c.bf16 %v995_v61, %v988_v10  ;;  %v19749_v27 = vmov %v19746_v17  ;;  %v15304_v61 = vsel %vm711_vm2, %v767_v0, %v768_v46  ;;  %v14404_v0 = vld [vmem:[%s14810_s6 + $0xd0] sm:$0xff] }
  0xce   : > { %v15291_v29 = vsel %vm711_vm2, %v19747_v38, %v19746_v17  ;;  %v19748_v8 = vmov %v19747_v38  ;;  %v15301_v19 = vsel %vm711_vm2, %v19749_v27, %v14920_v54  ;;  %v15308_v10 = vsel %vm711_vm2, %v768_v46, %v14920_v54  ;;  %v14402_v38 = vld [vmem:[%s14810_s6 + $0xc0] sm:$0xff] }
  0xcf   : > { %1945 = vmatmul.mubr.bf16.gmra.mrb[32].mxu0 %v15177_v25  ;;  %2074 = vmatmul.mubr.bf16.gmra.mrb[32].mxu1 %v15185_v32  ;;  %19745 = vst [vmem:[#allocation31_spill] sm:$0xff] %v15283_v49  ;;  %v15295_v11 = vrot.slane %v19748_v8, 7  ;;  %v777_v17 = vrot.slane %v14402_v38, 2  ;;  %v778_v8 = vrot.slane %v14403_v15, 2  ;;  %v985_v27 = vsel %vm832_vm1, %v14833_v20, %v19750_v16 }
  0xd0   : > { %1952 = vmatprep.mubr.bf16.mxu0 %v15217_v44  ;;  %2081 = vmatprep.mubr.bf16.mxu1 %v15105_v52  ;;  %v19752_v1 = vmov %v19750_v16  ;;  %v19753_v15 = vrot.slane %v15188_v34, 7  ;;  %v14405_v52 = vld [vmem:[%s14810_s6 + $0xd8] sm:$0xff] }
  0xd1   : > { %v993_v46 = vsel %vm832_vm1, %v19752_v1, %v19751_v5  ;;  %v782_v5 = vrot.slane %v14404_v0, 2  ;;  %v783_v38 = vrot.slane %v14405_v52, 2  ;;  %v15348_v34 = vsel %vm711_vm2, %v778_v8, %v14920_v54 }
  0xd2   : > { %v931_v16 = vsel %vm832_vm1, %v15180_v41, %v19753_v15  ;;  %v19755_v21 = vmov %v19753_v15  ;;  %v15344_v41 = vsel %vm711_vm2, %v777_v17, %v778_v8  ;;  %v787_v15 = vrot.slane %v14917_v53, 2 }
  0xd3   : > { %v937_v1 = vsel %vm832_vm1, %v19755_v21, %v19754_v42  ;;  %v788_v52 = vrot.slane %v14927_v58, 2  ;;  %v15360_v42 = vrot.slane %v777_v17, 7  ;;  %v15363_v21 = vld [vmem:[%s14810_s6 + $0xf8] sm:$0xff]  ;;  %v15368_v8 = vsel %vm711_vm2, %v782_v5, %v783_v38 }
  0xd4   : > { %v15372_v53 = vsel %vm711_vm2, %v783_v38, %v14920_v54  ;;  %v19756_v58 = vrot.slane %v15162_v4, 7  ;;  %v15418_v4 = vrot.slane %v787_v15, 7 }
  0xd5   : > { %v15390_v38 = vsel %vm711_vm2, %v788_v52, %v14920_v54 }
  0xd6   : > { %v19758_v17 = vmov %v19756_v58 }
  0xd7   : > { %1953 = vmatmul.mubr.bf16.gmra.mrb[36].mxu0 %v15210_v13  ;;  %2082 = vmatmul.mubr.bf16.gmra.mrb[36].mxu1 %v15259_v26 }
  0xd8   : > { %1960 = vmatprep.mubr.bf16.mxu0 %v15283_v49  ;;  %2089 = vmatprep.mubr.bf16.mxu1 %v15126_v50  ;;  %v1003_v49 = vsel %vm832_vm1, %v1001_v39, %v1002_v6  ;;  %v1010_v50 = vsel %vm832_vm1, %v1002_v6, %v1009_v51  ;;  %v15355_v39 = vpack.c.bf16 %v993_v46, %v985_v27  ;;  %v19757_v46 = vrot.slane %v15165_v18, 7 }
  0xd9   : > { %v15357_v6 = vpack.c.bf16 %v937_v1, %v931_v16  ;;  %v15365_v0 = vpack.c.bf16 %v1010_v50, %v1003_v49  ;;  %v1000_v27 = vsel %vm832_vm1, %v14833_v20, %v19756_v58  ;;  %v15386_v1 = vsel %vm711_vm2, %v787_v15, %v788_v52 }
  0xda   : > { %v1008_v16 = vsel %vm832_vm1, %v19758_v17, %v19757_v46  ;;  %v798_v51 = vrot.slane %v15351_v3, 2  ;;  %v799_v58 = vrot.slane %v15363_v21, 2  ;;  %v15396_v18 = vrot.slane %v782_v5, 7 }
  0xdb   : > { %v19759_v52 = vrot.slane %v15221_v56, 7  ;;  %v19760_v50 = vrot.slane %v15225_v47, 7  ;;  %v1082_v17 = vrot.slane %v15363_v21, 7  ;;  %v1065_v44 = vrot.slane %v15386_v1, 7  ;;  %v19790_v1 = vld [vmem:[#allocation31_spill] sm:$0xff] }
  0xdc   : > { %v15415_v46 = vsel %vm711_vm2, %v798_v51, %v799_v58  ;;  %v794_v56 = vrot.slane %v15351_v3, 1  ;;  %v19762_v15 = vrot.slane %v15230_v9, 7  ;;  %v19763_v47 = vrot.slane %v15242_v22, 7 }
  0xdd   : > { %v946_v49 = vsel %vm832_vm1, %v15234_v31, %v19759_v52  ;;  %v19761_v5 = vmov %v19759_v52  ;;  %v15422_v31 = vrot.slane %v798_v51, 7  ;;  %v15427_v52 = vpack.c.bf16 %v1008_v16, %v1000_v27 }
  0xde   : > { %v952_v60 = vsel %vm832_vm1, %v19761_v5, %v19760_v50  ;;  %v961_v51 = vsel %vm832_vm1, %v15244_v36, %v19762_v15  ;;  %v19764_v27 = vmov %v19762_v15  ;;  %v14098_v50 = vld [vmem:[#allocation6 + $0x210] sm:$0xff]   ;;  %v19766_v9 = vrot.slane %v15254_v14, 7 }
  0xdf   : > { %1961 = vmatmul.mubr.bf16.gmra.mrb[40].mxu0 %v15355_v39  ;;  %2090 = vmatmul.mubr.bf16.gmra.mrb[40].mxu1 %v15357_v6  ;;  %v15429_v5 = vpack.c.bf16 %v952_v60, %v946_v49  ;;  %v967_v60 = vsel %vm832_vm1, %v19764_v27, %v19763_v47  ;;  %v14095_v49 = vld [vmem:[#allocation6 + $0x208] sm:$0xff]   ;;  %v19769_v14 = vrot.slane %v15271_v24, 7  ;;  %v14110_v27 = vld [vmem:[#allocation6 + $0x220] sm:$0xff]   ;;  %v19771_v24 = vrot.slane %v15304_v61, 7 }
  0xe0   : > { %1968 = vmatprep.mubr.bf16.mxu0 %v15365_v0  ;;  %2097 = vmatprep.mubr.bf16.mxu1 %v15177_v25  ;;  %v1071_v25 = vrot.slane %v15390_v38, 7  ;;  %v15444_v16 = vpack.c.bf16 %v967_v60, %v961_v51  ;;  %v1076_v38 = vrot.slane %v794_v56, 7 }
  0xe7   : > { %1969 = vmatmul.mubr.bf16.gmra.mrb[44].mxu0 %v15427_v52  ;;  %2098 = vmatmul.mubr.bf16.gmra.mrb[44].mxu1 %v15429_v5 }
  0xe8   : > { %2105 = vmatprep.mubr.bf16.mxu1 %v15210_v13  ;;  %2202 = vmatprep.mubr.bf16.mxu0 %v15073_v28  ;;  %v19765_v28 = vrot.slane %v15250_v40, 7 }
  0xea   : > { %v976_v22 = vsel %vm832_vm1, %v15274_v33, %v19765_v28  ;;  %v19767_v36 = vmov %v19765_v28  ;;  %v19768_v33 = vrot.slane %v15257_v12, 7  ;;  %v1006_v12 = vsel %vm832_vm1, %v15323_v2, %v19771_v24 }
  0xeb   : > { %v982_v47 = vsel %vm832_vm1, %v19767_v36, %v19766_v9  ;;  %v14113_v36 = vld [vmem:[#allocation6 + $0x238] sm:$0xff]   ;;  %v19774_v2 = vrot.slane %v15291_v29, 7 }
  0xec   : > { %v991_v40 = vsel %vm832_vm1, %v15280_v59, %v19768_v33  ;;  %v19770_v15 = vmov %v19768_v33  ;;  %v19772_v59 = vrot.slane %v15308_v10, 7  ;;  %v19775_v10 = vrot.slane %v15301_v19, 7 }
  0xed   : > { %v997_v51 = vsel %vm832_vm1, %v19770_v15, %v19769_v14  ;;  %v1021_v61 = vsel %vm832_vm1, %v15295_v11, %v19774_v2  ;;  %v19777_v11 = vrot.slane %v15344_v41, 7  ;;  %v19778_v19 = vrot.slane %v15348_v34, 7 }
  0xee   : > { %v15475_v60 = vpack.c.bf16 %v997_v51, %v991_v40  ;;  %v19780_v51 = vld [vmem:[#allocation21_spill] sm:$0xff]  ;;  %v19782_v34 = vrot.slane %v15372_v53, 7  ;;  %v1072_v53 = vsel %vm832_vm1, %v1065_v44, %v1071_v25  ;;  %v19791_v25 = vld [vmem:[#allocation20_spill] sm:$0xff] }
  0xef   : > { %2106 = vmatmul.mubr.bf16.gmra.mrb[48].mxu1 %v15444_v16  ;;  %2203 = vmatmul.mubr.bf16.vlgmr.msra.gmra.mrb[48].mxu0 %v14873_v7  ;;  %v15460_v7 = vpack.c.bf16 %v982_v47, %v976_v22  ;;  %v14112_v22 = vld [vmem:[#allocation6 + $0x230] sm:$0xff]   ;;  %v19776_v47 = vmov %v19774_v2  ;;  %v1036_v29 = vsel %vm832_vm1, %v15360_v42, %v19777_v11  ;;  %v19779_v40 = vmov %v19777_v11 }
  0xf0   : > { %13710 = vmatpush3.bf16.msra.mxu0 %v15078_v63  ;;  %2113 = vmatprep.mubr.bf16.mxu1 %v15355_v39  ;;  %v14102_v63 = vld [vmem:[#allocation6 + $0x218] sm:$0xff]   ;;  %v1042_v14 = vsel %vm832_vm1, %v19779_v40, %v19778_v19  ;;  %v19789_v2 = vld [vmem:[#allocation18_spill] sm:$0xff] }
  0xf1   : > { %2210 = vmatprep.mubr.bf16.mxu0 %v15117_v55  ;;  %13711 = vmatprep.subr.bf16.mxu0 %v14095_v49  ;;  %v15520_v15 = vpack.c.bf16 %v1042_v14, %v1036_v29  ;;  %v14116_v19 = vld [vmem:[#allocation6 + $0x288] sm:$0xff]  }
  0xf2   : > { %v14117_v40 = vld [vmem:[#allocation6 + $0x248] sm:$0xff]  }
  0xf3   : > { %v19799_v14 = vld [vmem:[#allocation17_spill] sm:$0xff] }
  0xf4   : > { %13712 = vmatpush3.bf16.msra.mxu0 %v14095_v49  ;;  %v14111_v49 = vld [vmem:[#allocation6 + $0x228] sm:$0xff]  }
  0xf5   : > { %13713 = vmatprep.subr.bf16.mxu0 %v14098_v50 }
  0xf7   : > { %2114 = vmatmul.mubr.bf16.gmra.mrb[52].mxu1 %v15460_v7  ;;  %2211 = vmatmul.mubr.bf16.gmra.mrb[52].mxu0 %v14906_v48 }
  0xf8   : > { %2121 = vmatprep.mubr.bf16.mxu1 %v15427_v52  ;;  %2218 = vmatprep.mubr.bf16.mxu0 %v15145_v57 }
  0xf9   : > { %13714 = vmatpush3.bf16.msra.mxu0 %v14098_v50  ;;  %v19773_v50 = vmov %v19771_v24  ;;  %v19784_v24 = vrot.slane %v15351_v3, 7 }
  0xfa   : > { %13715 = vmatprep.subr.bf16.mxu0 %v14102_v63  ;;  %v1012_v28 = vsel %vm832_vm1, %v19773_v50, %v19772_v59 }
  0xfb   : > { %v15490_v9 = vpack.c.bf16 %v1012_v28, %v1006_v12  ;;  %v1075_v12 = vsel %vm832_vm1, %v14833_v20, %v19784_v24  ;;  %v19785_v59 = vmov %v19784_v24  ;;  %v1066_v20 = vsel %vm832_vm1, %v15418_v4, %v1065_v44  ;;  %v19792_v44 = vld [vmem:[#allocation23_spill] sm:$0xff]  ;;  %v14114_v4 = vld [vmem:[#allocation6 + $0x280] sm:$0xff]  }
  0xfc   : > { %v1083_v50 = vsel %vm832_vm1, %v19785_v59, %v1082_v17  ;;  %v15561_v17 = vpack.c.bf16 %v1072_v53, %v1066_v20  ;;  %11821 = vmatprep.subr.bf16.mxu1 %v14114_v4 }
  0xfd   : > { %13716 = vmatpush3.bf16.msra.mxu0 %v14102_v63  ;;  %v1027_v63 = vsel %vm832_vm1, %v19776_v47, %v19775_v10  ;;  %v19794_v10 = vld [vmem:[#allocation24_spill] sm:$0xff]  ;;  %v19796_v47 = vld [vmem:[#allocation25_spill] sm:$0xff] }
  0xfe   : > { %13717 = vmatprep.subr.bf16.mxu0 %v14110_v27  ;;  %v15505_v33 = vpack.c.bf16 %v1027_v63, %v1021_v61  ;;  %v14115_v61 = vld [vmem:[#allocation6 + $0x240] sm:$0xff]  }
  0xff   : > { %2122 = vmatmul.mubr.bf16.gmra.mrb[56].mxu1 %v15475_v60  ;;  %2219 = vmatmul.mubr.bf16.gmra.mrb[56].mxu0 %v14952_v37 }
 0x100   : > { %2129 = vmatprep.mubr.bf16.mxu1 %v14866_v62  ;;  %2226 = vmatprep.mubr.bf16.mxu0 %v15185_v32 }
 0x101   : > { %13718 = vmatpush3.bf16.msra.mxu0 %v14110_v27  ;;  %v19781_v27 = vrot.slane %v15368_v8, 7  ;;  %v19786_v8 = vld [vmem:[#allocation26_spill] sm:$0xff] }
 0x102   : > { %13719 = vmatprep.subr.bf16.mxu0 %v14111_v49 }
 0x103   : > { %v1051_v42 = vsel %vm832_vm1, %v15396_v18, %v19781_v27  ;;  %v19783_v41 = vmov %v19781_v27  ;;  %v15546_v18 = vpack.c.bf16 %v1083_v50, %v1075_v12  ;;  %v19800_v27 = vld [vmem:[#allocation27_spill] sm:$0xff] }
 0x105   : > { %13720 = vmatpush3.bf16.msra.mxu0 %v14111_v49  ;;  %v1057_v49 = vsel %vm832_vm1, %v19783_v41, %v19782_v34  ;;  %v19803_v41 = vld [vmem:[#allocation19_spill] sm:$0xff] }
 0x106   : > { %13721 = vmatprep.subr.bf16.mxu0 %v14112_v22  ;;  %v15544_v28 = vpack.c.bf16 %v1057_v49, %v1051_v42  ;;  %v19801_v42 = vrot.slane %v15415_v46, 7  ;;  %v19804_v49 = vld [vmem:[#allocation29_spill] sm:$0xff] }
 0x107   : > { %2130 = vmatmul.mubr.bf16.gmra.mrb[60].mxu1 %v15490_v9  ;;  %2227 = vmatmul.mubr.bf16.gmra.mrb[60].mxu0 %v15001_v30 }
 0x108   : > { %2137 = vmatprep.mubr.bf16.mxu1 %v14900_v43  ;;  %2234 = vmatprep.mubr.bf16.mxu0 %v15259_v26  ;;  %v1081_v3 = vsel %vm832_vm1, %v15422_v31, %v19801_v42 }
 0x109   : > { %13722 = vmatpush3.bf16.msra.mxu0 %v14112_v22  ;;  %v19787_v22 = vld [vmem:[#allocation28_spill] sm:$0xff] }
 0x10a   : > { %13723 = vmatprep.subr.bf16.mxu0 %v14113_v36 }
 0x10d   : > { %13724 = vmatpush3.bf16.msra.mxu0 %v14113_v36  ;;  %v19788_v36 = vld [vmem:[#allocation30_spill] sm:$0xff] }
 0x10f   : > { %2138 = vmatmul.mubr.bf16.gmra.mrb[64].mxu1 %v15505_v33  ;;  %2235 = vmatmul.mubr.bf16.gmra.mrb[64].mxu0 %v15042_v35 }
 0x110   : > { %2145 = vmatprep.mubr.bf16.mxu1 %v14943_v23  ;;  %2242 = vmatprep.mubr.bf16.mxu0 %v15357_v6 }
 0x117   : > { %2146 = vmatmul.mubr.bf16.gmra.mrb[68].mxu1 %v15520_v15  ;;  %2243 = vmatmul.mubr.bf16.gmra.mrb[68].mxu0 %v15075_v45 }
 0x118   : > { %2153 = vmatprep.mubr.bf16.mxu1 %v19780_v51  ;;  %2250 = vmatprep.mubr.bf16.mxu0 %v15429_v5 }
 0x11f   : > { %2154 = vmatmul.mubr.bf16.gmra.mrb[72].mxu1 %v15544_v28  ;;  %2251 = vmatmul.mubr.bf16.gmra.mrb[72].mxu0 %v19786_v8 }
 0x120   : > { %2161 = vmatprep.mubr.bf16.mxu1 %v15546_v18  ;;  %2258 = vmatprep.mubr.bf16.mxu0 %v15444_v16 }
 0x127   : > { %2162 = vmatmul.mubr.bf16.gmra.mrb[76].mxu1 %v15561_v17  ;;  %2259 = vmatmul.mubr.bf16.gmra.mrb[76].mxu0 %v19787_v22 }
 0x128   : > { %2266 = vmatprep.mubr.bf16.mxu0 %v15460_v7  ;;  %2363 = vmatprep.mubr.bf16.mxu1 %v14906_v48  ;;  %v802_v48 = vsel %vm711_vm2, %v799_v58, %v14920_v54  ;;  %v19797_v58 = vrot.slane %v15363_v21, 1 }
 0x12a   : > { %v796_v63 = vsel %vm646_vm0, %v794_v56, %v19797_v58  ;;  %v19798_v29 = vmov %v19797_v58  ;;  %v19802_v56 = vmov %v19801_v42 }
 0x12b   : > { %v1077_v11 = vrot.slane %v796_v63, 7 }
 0x12d   : > { %v1078_v24 = vsel %vm832_vm1, %v1076_v38, %v1077_v11  ;;  %v14119_v38 = vld [vmem:[#allocation6 + $0x250] sm:$0xff]  }
 0x12f   : > { %2267 = vmatmul.mubr.bf16.gmra.mrb[80].mxu0 %v19788_v36  ;;  %2364 = vmatmul.mubr.bf16.vlgmr.msra.gmra.mrb[80].mxu1 %v19789_v2 }
 0x130   : > { %2274 = vmatprep.mubr.bf16.mxu0 %v15475_v60  ;;  %2371 = vmatprep.mubr.bf16.mxu1 %v14952_v37  ;;  %v1086_v37 = vrot.slane %v802_v48, 7 }
 0x131   : > { %11822 = vmatpush3.bf16.msra.mxu1 %v14115_v61 }
 0x132   : > { %v1087_v21 = vsel %vm832_vm1, %v19802_v56, %v1086_v37  ;;  %11823 = vmatprep.subr.bf16.mxu1 %v14116_v19  ;;  %v14118_v37 = vld [vmem:[#allocation6 + $0x290] sm:$0xff]  }
 0x133   : > { %v15611_v34 = vpack.c.bf16 %v1087_v21, %v1081_v3 }
 0x135   : > { %11824 = vmatpush3.bf16.msra.mxu1 %v14117_v40 }
 0x136   : > { %11825 = vmatprep.subr.bf16.mxu1 %v14118_v37 }
 0x137   : > { %2275 = vmatmul.mubr.bf16.gmra.mrb[84].mxu0 %v19790_v1  ;;  %2372 = vmatmul.mubr.bf16.gmra.mrb[84].mxu1 %v19791_v25 }
 0x138   : > { %2282 = vmatprep.mubr.bf16.mxu0 %v15490_v9  ;;  %2379 = vmatprep.mubr.bf16.mxu1 %v15001_v30  ;;  %v19793_v30 = vld [vmem:[#allocation14_spill] sm:$0xff] }
 0x139   : > { %11826 = vmatpush3.bf16.msra.mxu1 %v14119_v38 }
 0x13f   : > { %2283 = vmatmul.mubr.bf16.gmra.mrb[88].mxu0 %v15365_v0  ;;  %2380 = vmatmul.mubr.bf16.gmra.mrb[88].mxu1 %v19792_v44 }
 0x140   : > { %2290 = vmatprep.mubr.bf16.mxu0 %v15505_v33  ;;  %2387 = vmatprep.mubr.bf16.mxu1 %v15042_v35  ;;  %v19795_v35 = vld [vmem:[#allocation16_spill] sm:$0xff] }
 0x147   : > { %2291 = vmatmul.mubr.bf16.gmra.mrb[92].mxu0 %v19793_v30  ;;  %2388 = vmatmul.mubr.bf16.gmra.mrb[92].mxu1 %v19794_v10 }
 0x148   : > { %2298 = vmatprep.mubr.bf16.mxu0 %v15520_v15  ;;  %2395 = vmatprep.mubr.bf16.mxu1 %v15075_v45  ;;  %v1084_v45 = vrot.slane %v19798_v29, 7 }
 0x14a   : > { %v1085_v31 = vsel %vm832_vm1, %v1077_v11, %v1084_v45 }
 0x14b   : > { %v15619_v50 = vpack.c.bf16 %v1085_v31, %v1078_v24 }
 0x14f   : > { %2299 = vmatmul.mubr.bf16.gmra.mrb[96].mxu0 %v19795_v35  ;;  %2396 = vmatmul.mubr.bf16.gmra.mrb[96].mxu1 %v19796_v47 }
 0x150   : > { %2306 = vmatprep.mubr.bf16.mxu0 %v15544_v28  ;;  %2403 = vmatprep.mubr.bf16.mxu1 %v19786_v8 }
 0x157   : > { %2307 = vmatmul.mubr.bf16.gmra.mrb[100].mxu0 %v19799_v14  ;;  %2404 = vmatmul.mubr.bf16.gmra.mrb[100].mxu1 %v19800_v27 }
 0x158   : > { %2314 = vmatprep.mubr.bf16.mxu0 %v15561_v17  ;;  %2411 = vmatprep.mubr.bf16.mxu1 %v19787_v22 }
 0x15f   : > { %2315 = vmatmul.mubr.bf16.gmra.mrb[104].mxu0 %v19803_v41  ;;  %2412 = vmatmul.mubr.bf16.gmra.mrb[104].mxu1 %v19804_v49 }
 0x160   : > { %2322 = vmatprep.mubr.bf16.mxu0 %v15611_v34  ;;  %2419 = vmatprep.mubr.bf16.mxu1 %v19788_v36 }
 0x162   : > { %v11365_v12 = vpop.f32.mrb[0].mxu0  ;;  %v11437_v46 = vpop.f32.mrb[0].mxu1 }
 0x163   : > { %v11366_v59 = vpop.f32.mrb[1].mxu0  ;;  %v11438_v8 = vpop.f32.mrb[1].mxu1 }
 0x164   : > { %v15621_v20 = vadd.f32 %v11366_v59, %v11365_v12  ;;  %v11368_v53 = vpop.f32.mrb[2].mxu0  ;;  %v15623_v22 = vadd.f32 %v11438_v8, %v11437_v46  ;;  %v11440_v2 = vpop.f32.mrb[2].mxu1 }
 0x165   : > { %v11369_v25 = vpop.f32.mrb[3].mxu0  ;;  %v11441_v44 = vpop.f32.mrb[3].mxu1 }
 0x166   : > { %v15625_v48 = vadd.f32 %v11369_v25, %v11368_v53  ;;  %v15627_v36 = vadd.f32 %v11441_v44, %v11440_v2 }
 0x167   : > { %2323 = vmatmul.mubr.bf16.gmra.mrb[108].mxu0 %v15619_v50  ;;  %2420 = vmatmul.mubr.bf16.gmra.mrb[108].mxu1 %v15210_v13 }
 0x168   : > { %2427 = vmatprep.mubr.bf16.mxu1 %v19790_v1  ;;  %13725 = vmatprep.mubr.bf16.mxu0 %v15117_v55 }
 0x16a   : > { %v11371_v4 = vpop.f32.mrb[4].mxu0  ;;  %v11443_v61 = vpop.f32.mrb[4].mxu1 }
 0x16b   : > { %v11372_v10 = vpop.f32.mrb[5].mxu0  ;;  %v11444_v47 = vpop.f32.mrb[5].mxu1 }
 0x16c   : > { %v15633_v58 = vadd.f32 %v11372_v10, %v11371_v4  ;;  %v11374_v63 = vpop.f32.mrb[6].mxu0  ;;  %v15635_v11 = vadd.f32 %v11444_v47, %v11443_v61  ;;  %v11446_v29 = vpop.f32.mrb[6].mxu1 }
 0x16d   : > { %v11375_v45 = vpop.f32.mrb[7].mxu0  ;;  %v11447_v19 = vpop.f32.mrb[7].mxu1 }
 0x16e   : > { %v15637_v40 = vadd.f32 %v11375_v45, %v11374_v63  ;;  %v15639_v13 = vadd.f32 %v11447_v19, %v11446_v29 }
 0x16f   : > { %2428 = vmatmul.mubr.bf16.gmra.mrb[112].mxu1 %v15355_v39  ;;  %13726 = vmatmul.mubr.bf16.vlgmr.msra.gmra.mrb[112].mxu0 %v15145_v57  ;;  %v14120_v57 = vld [vmem:[#allocation6 + $0x298] sm:$0xff]  }
 0x170   : > { %2435 = vmatprep.mubr.bf16.mxu1 %v15365_v0  ;;  %13729 = vmatprep.mubr.bf16.mxu0 %v15185_v32  ;;  %v14121_v0 = vld [vmem:[#allocation6 + $0x258] sm:$0xff]  }
 0x171   : > { %11827 = vmatprep.subr.bf16.mxu1 %v14120_v57 }
 0x172   : > { %v11377_v55 = vpop.f32.mrb[8].mxu0  ;;  %v11449_v1 = vpop.f32.mrb[8].mxu1  ;;  %11828 = vmatpush3.bf16.msra.mxu1 %v14121_v0 }
 0x173   : > { %v11378_v27 = vpop.f32.mrb[9].mxu0  ;;  %v11450_v42 = vpop.f32.mrb[9].mxu1 }
 0x174   : > { %v15645_v3 = vadd.f32 %v11378_v27, %v11377_v55  ;;  %v11380_v56 = vpop.f32.mrb[10].mxu0  ;;  %v15647_v21 = vadd.f32 %v11450_v42, %v11449_v1  ;;  %v11452_v49 = vpop.f32.mrb[10].mxu1  ;;  %v14122_v27 = vld [vmem:[#allocation6 + $0x2a0] sm:$0xff]  }
 0x175   : > { %v11381_v24 = vpop.f32.mrb[11].mxu0  ;;  %v11453_v31 = vpop.f32.mrb[11].mxu1  ;;  %v14123_v42 = vld [vmem:[#allocation6 + $0x260] sm:$0xff]   ;;  %11829 = vmatprep.subr.bf16.mxu1 %v14122_v27 }
 0x176   : > { %v15649_v12 = vadd.f32 %v11381_v24, %v11380_v56  ;;  %v15651_v39 = vadd.f32 %v11453_v31, %v11452_v49  ;;  %11830 = vmatpush3.bf16.msra.mxu1 %v14123_v42 }
 0x177   : > { %2436 = vmatmul.mubr.bf16.gmra.mrb[116].mxu1 %v15427_v52  ;;  %13730 = vmatmul.mubr.bf16.gmra.mrb[116].mxu0 %v15259_v26 }
 0x178   : > { %2443 = vmatprep.mubr.bf16.mxu1 %v19793_v30  ;;  %13733 = vmatprep.mubr.bf16.mxu0 %v15357_v6  ;;  %v15665_v30 = vld [vmem:[#allocation8] ss:$0 sm:$0xff] }
 0x179   : > { %v1883_v47 = vadd.f32 %v15621_v20, %v15665_v30  ;;  %v1891_v31 = vadd.f32 %v15633_v58, %v15665_v30 }
 0x17a   : > { %v11383_v32 = vpop.f32.mrb[12].mxu0  ;;  %v11455_v46 = vpop.f32.mrb[12].mxu1 }
 0x17b   : > { %v11384_v59 = vpop.f32.mrb[13].mxu0  ;;  %v11456_v8 = vpop.f32.mrb[13].mxu1 }
 0x17c   : > { %v15657_v53 = vadd.f32 %v11384_v59, %v11383_v32  ;;  %v11386_v2 = vpop.f32.mrb[14].mxu0  ;;  %v15659_v25 = vadd.f32 %v11456_v8, %v11455_v46  ;;  %v11458_v44 = vpop.f32.mrb[14].mxu1 }
 0x17d   : > { %v11387_v37 = vpop.f32.mrb[15].mxu0  ;;  %v11459_v52 = vpop.f32.mrb[15].mxu1 }
 0x17e   : > { %v15661_v38 = vadd.f32 %v11387_v37, %v11386_v2  ;;  %v15663_v26 = vadd.f32 %v11459_v52, %v11458_v44 }
 0x17f   : > { %2444 = vmatmul.mubr.bf16.gmra.mrb[120].mxu1 %v14866_v62  ;;  %13734 = vmatmul.mubr.bf16.gmra.mrb[120].mxu0 %v15429_v5  ;;  %v1886_v5 = vadd.f32 %v15625_v48, %v15665_v30 }
 0x180   : > { %2451 = vmatprep.mubr.bf16.mxu1 %v19795_v35  ;;  %13737 = vmatprep.mubr.bf16.mxu0 %v15444_v16 }
 0x182   : > { %v11389_v6 = vpop.f32.mrb[16].mxu0  ;;  %v11477_v4 = vpop.f32.mrb[16].mxu1 }
 0x183   : > { %v11390_v61 = vpop.f32.mrb[17].mxu0  ;;  %v11478_v10 = vpop.f32.mrb[17].mxu1 }
 0x184   : > { %v15673_v63 = vadd.f32 %v11390_v61, %v11389_v6  ;;  %v11479_v29 = vadd.f32 %v11478_v10, %v11477_v4  ;;  %v11392_v45 = vpop.f32.mrb[18].mxu0  ;;  %v11480_v19 = vpop.f32.mrb[18].mxu1 }
 0x185   : > { %v11393_v55 = vpop.f32.mrb[19].mxu0  ;;  %v11481_v62 = vpop.f32.mrb[19].mxu1 }
 0x186   : > { %v15677_v35 = vadd.f32 %v11479_v29, %v1883_v47  ;;  %v15679_v16 = vadd.f32 %v11393_v55, %v11392_v45  ;;  %v11482_v1 = vadd.f32 %v11481_v62, %v11480_v19  ;;  %v1902_v47 = vadd.f32 %v15649_v12, %v15665_v30  ;;  %v14124_v45 = vld [vmem:[#allocation6 + $0x2a8] sm:$0xff]  }
 0x187   : > { %2452 = vmatmul.mubr.bf16.gmra.mrb[124].mxu1 %v14900_v43  ;;  %13738 = vmatmul.mubr.bf16.gmra.mrb[124].mxu0 %v15460_v7  ;;  %v14125_v19 = vld [vmem:[#allocation6 + $0x268] sm:$0xff]  }
 0x188   : > { %v15683_v20 = vadd.f32 %v11482_v1, %v1886_v5  ;;  %2459 = vmatprep.mubr.bf16.mxu1 %v19799_v14  ;;  %13741 = vmatprep.mubr.bf16.mxu0 %v15475_v60  ;;  %v1894_v14 = vadd.f32 %v15637_v40, %v15665_v30  ;;  %v1899_v40 = vadd.f32 %v15645_v3, %v15665_v30 }
 0x189   : > { %11831 = vmatprep.subr.bf16.mxu1 %v14124_v45  ;;  %v1907_v1 = vadd.f32 %v15657_v53, %v15665_v30 }
 0x18a   : > { %v11395_v56 = vpop.f32.mrb[20].mxu0  ;;  %v11483_v48 = vpop.f32.mrb[20].mxu1  ;;  %11832 = vmatpush3.bf16.msra.mxu1 %v14125_v19 }
 0x18b   : > { %v11396_v49 = vpop.f32.mrb[21].mxu0  ;;  %v11484_v24 = vpop.f32.mrb[21].mxu1 }
 0x18c   : > { %v15689_v57 = vadd.f32 %v11396_v49, %v11395_v56  ;;  %v11485_v43 = vadd.f32 %v11484_v24, %v11483_v48  ;;  %v11398_v0 = vpop.f32.mrb[22].mxu0  ;;  %v11486_v7 = vpop.f32.mrb[22].mxu1 }
 0x18d   : > { %v11399_v32 = vpop.f32.mrb[23].mxu0  ;;  %v11487_v46 = vpop.f32.mrb[23].mxu1 }
 0x18e   : > { %v15693_v60 = vadd.f32 %v11485_v43, %v1891_v31  ;;  %v15695_v59 = vadd.f32 %v11399_v32, %v11398_v0  ;;  %v11488_v8 = vadd.f32 %v11487_v46, %v11486_v7  ;;  %v19805_v31 = vld [vmem:[#allocation13_spill] sm:$0xff] }
 0x18f   : > { %2460 = vmatmul.mubr.bf16.gmra.mrb[128].mxu1 %v14943_v23  ;;  %13742 = vmatmul.mubr.bf16.gmra.mrb[128].mxu0 %v15490_v9 }
 0x190   : > { %v15699_v58 = vadd.f32 %v11488_v8, %v1894_v14  ;;  %2467 = vmatprep.mubr.bf16.mxu1 %v19803_v41  ;;  %13745 = vmatprep.mubr.bf16.mxu0 %v15505_v33 }
 0x192   : > { %v11401_v2 = vpop.f32.mrb[24].mxu0  ;;  %v11489_v44 = vpop.f32.mrb[24].mxu1 }
 0x193   : > { %v11402_v37 = vpop.f32.mrb[25].mxu0  ;;  %v11490_v52 = vpop.f32.mrb[25].mxu1 }
 0x194   : > { %v15705_v6 = vadd.f32 %v11402_v37, %v11401_v2  ;;  %v11491_v4 = vadd.f32 %v11490_v52, %v11489_v44  ;;  %v11404_v61 = vpop.f32.mrb[26].mxu0  ;;  %v11492_v23 = vpop.f32.mrb[26].mxu1  ;;  %v1918_v44 = vadd.f32 %v15679_v16, %v15665_v30  ;;  %v1923_v16 = vadd.f32 %v15689_v57, %v15665_v30 }
 0x195   : > { %v11405_v10 = vpop.f32.mrb[27].mxu0  ;;  %v11493_v9 = vpop.f32.mrb[27].mxu1 }
 0x196   : > { %v15709_v41 = vadd.f32 %v11491_v4, %v1899_v40  ;;  %v15711_v33 = vadd.f32 %v11405_v10, %v11404_v61  ;;  %v11494_v29 = vadd.f32 %v11493_v9, %v11492_v23  ;;  %v14126_v40 = vld [vmem:[#allocation6 + $0x2b0] sm:$0xff]  }
 0x197   : > { %2468 = vmatmul.mubr.bf16.gmra.mrb[132].mxu1 %v19780_v51  ;;  %13746 = vmatmul.mubr.bf16.gmra.mrb[132].mxu0 %v15520_v15  ;;  %v14127_v4 = vld [vmem:[#allocation6 + $0x270] sm:$0xff]  }
 0x198   : > { %v15715_v3 = vadd.f32 %v11494_v29, %v1902_v47  ;;  %2475 = vmatprep.mubr.bf16.mxu1 %v15619_v50  ;;  %13749 = vmatprep.mubr.bf16.mxu0 %v15544_v28  ;;  %v1910_v50 = vadd.f32 %v15661_v38, %v15665_v30  ;;  %v1915_v38 = vadd.f32 %v15673_v63, %v15665_v30  ;;  %v19806_v61 = vld [vmem:[#allocation15_spill] sm:$0xff]  ;;  %v19807_v63 = vld [vmem:[#allocation22_spill] sm:$0xff] }
 0x199   : > { %11833 = vmatprep.subr.bf16.mxu1 %v14126_v40 }
 0x19a   : > { %v11407_v55 = vpop.f32.mrb[28].mxu0  ;;  %v11495_v12 = vpop.f32.mrb[28].mxu1  ;;  %11834 = vmatpush3.bf16.msra.mxu1 %v14127_v4  ;;  %v14130_v4 = vld [vmem:[#allocation6 + $0x2b8] sm:$0xff]  }
 0x19b   : > { %v11408_v62 = vpop.f32.mrb[29].mxu0  ;;  %v11496_v5 = vpop.f32.mrb[29].mxu1  ;;  %11835 = vmatprep.subr.bf16.mxu1 %v14130_v4 }
 0x19c   : > { %v15721_v27 = vadd.f32 %v11408_v62, %v11407_v55  ;;  %v11497_v51 = vadd.f32 %v11496_v5, %v11495_v12  ;;  %v11410_v42 = vpop.f32.mrb[30].mxu0  ;;  %v11498_v15 = vpop.f32.mrb[30].mxu1 }
 0x19d   : > { %v11411_v56 = vpop.f32.mrb[31].mxu0  ;;  %v11499_v48 = vpop.f32.mrb[31].mxu1 }
 0x19e   : > { %v15725_v28 = vadd.f32 %v11497_v51, %v1907_v1  ;;  %v15727_v49 = vadd.f32 %v11411_v56, %v11410_v42  ;;  %v11500_v24 = vadd.f32 %v11499_v48, %v11498_v15  ;;  %v1926_v1 = vadd.f32 %v15695_v59, %v15665_v30  ;;  %v14128_v56 = vld [vmem:[#allocation6 + $0x300] sm:$0xff]  }
 0x19f   : > { %2476 = vmatmul.mubr.bf16.gmra.mrb[136].mxu1 %v15546_v18  ;;  %13750 = vmatmul.mubr.bf16.gmra.mrb[136].mxu0 %v15561_v17  ;;  %v14129_v48 = vld [vmem:[#allocation6 + $0x2c0] sm:$0xff]   ;;  %v1931_v59 = vadd.f32 %v15705_v6, %v15665_v30  ;;  %v14134_v6 = vld [vmem:[#allocation6 + $0x310] sm:$0xff]  }
 0x1a0   : > { %v15731_v53 = vadd.f32 %v11500_v24, %v1910_v50  ;;  %2483 = vmatprep.mubr.bf16.mxu1 %v19805_v31  ;;  %13753 = vmatprep.mubr.bf16.mxu0 %v15611_v34  ;;  %v14132_v31 = vld [vmem:[#allocation6 + $0x308] sm:$0xff]  }
 0x1a1   : > { %11933 = vmatprep.subr.bf16.mxu0 %v14128_v56  ;;  %v19808_v56 = vmov 0.0  }
 0x1a2   : > { %v11413_v43 = vpop.f32.mrb[32].mxu0  ;;  %v11501_v0 = vpop.f32.mrb[32].mxu1  ;;  %11934 = vmatpush3.bf16.msra.mxu0 %v14129_v48  ;;  %v15779_v48 = vrot.slane %v19808_v56, 6 }
 0x1a3   : > { %v11414_v7 = vpop.f32.mrb[33].mxu0  ;;  %v11502_v32 = vpop.f32.mrb[33].mxu1  ;;  %11935 = vmatprep.subr.bf16.mxu0 %v14132_v31 }
 0x1a4   : > { %v15737_v46 = vadd.f32 %v11414_v7, %v11413_v43  ;;  %v11503_v14 = vadd.f32 %v11502_v32, %v11501_v0  ;;  %v11416_v8 = vpop.f32.mrb[34].mxu0  ;;  %v11504_v18 = vpop.f32.mrb[34].mxu1  ;;  %v14133_v7 = vld [vmem:[#allocation6 + $0x2c8] sm:$0xff]  }
 0x1a5   : > { %v11417_v2 = vpop.f32.mrb[35].mxu0  ;;  %v11505_v17 = vpop.f32.mrb[35].mxu1 }
 0x1a6   : > { %v15741_v37 = vadd.f32 %v11503_v14, %v1915_v38  ;;  %v15743_v34 = vadd.f32 %v11417_v2, %v11416_v8  ;;  %v11506_v52 = vadd.f32 %v11505_v17, %v11504_v18  ;;  %11936 = vmatpush3.bf16.msra.mxu0 %v14133_v7  ;;  %v1934_v17 = vadd.f32 %v15711_v33, %v15665_v30  ;;  %v14138_v7 = vld [vmem:[#allocation6 + $0x320] sm:$0xff]  }
 0x1a7   : > { %2484 = vmatmul.mubr.bf16.gmra.mrb[140].mxu1 %v19806_v61  ;;  %13754 = vmatmul.mubr.bf16.gmra.mrb[140].mxu0 %v19807_v63  ;;  %v14131_v61 = vld [vmem:[#allocation6 + $0x278] sm:$0xff]   ;;  %v14135_v63 = vld [vmem:[#allocation6 + $0x2d0] sm:$0xff]   ;;  %v1947_v4 = vadd.f32 %v15737_v46, %v15665_v30 }
 0x1a8   : > { %v15747_v23 = vadd.f32 %v11506_v52, %v1918_v44  ;;  %11937 = vmatprep.subr.bf16.mxu0 %v14134_v6  ;;  %11836 = vmatpush3.bf16.msra.mxu1 %v14131_v61  ;;  %v14144_v46 = vld [vmem:[#allocation6 + $0x330] sm:$0xff]  }
 0x1aa   : > { %v11419_v10 = vpop.f32.mrb[36].mxu0  ;;  %v11507_v9 = vpop.f32.mrb[36].mxu1  ;;  %11938 = vmatpush3.bf16.msra.mxu0 %v14135_v63 }
 0x1ab   : > { %v11420_v47 = vpop.f32.mrb[37].mxu0  ;;  %v11508_v29 = vpop.f32.mrb[37].mxu1 }
 0x1ac   : > { %v15751_v45 = vadd.f32 %v11420_v47, %v11419_v10  ;;  %v11509_v19 = vadd.f32 %v11508_v29, %v11507_v9  ;;  %v11422_v55 = vpop.f32.mrb[38].mxu0  ;;  %v11510_v12 = vpop.f32.mrb[38].mxu1  ;;  %v14136_v29 = vld [vmem:[#allocation6 + $0x318] sm:$0xff]  }
 0x1ad   : > { %v11423_v62 = vpop.f32.mrb[39].mxu0  ;;  %v11511_v5 = vpop.f32.mrb[39].mxu1  ;;  %11939 = vmatprep.subr.bf16.mxu0 %v14136_v29 }
 0x1ae   : > { %v15755_v51 = vadd.f32 %v11509_v19, %v1923_v16  ;;  %v15757_v42 = vadd.f32 %v11423_v62, %v11422_v55  ;;  %v11512_v15 = vadd.f32 %v11511_v5, %v11510_v12  ;;  %v14137_v19 = vld [vmem:[#allocation6 + $0x2d8] sm:$0xff]   ;;  %v3075_v55 = vrot.slane %v14920_v54, 6 }
 0x1af   : > { %v1939_v12 = vadd.f32 %v15721_v27, %v15665_v30  ;;  %11940 = vmatpush3.bf16.msra.mxu0 %v14137_v19  ;;  %v1942_v54 = vadd.f32 %v15727_v49, %v15665_v30 }
 0x1b0   : > { %v15759_v50 = vadd.f32 %v11512_v15, %v1926_v1  ;;  %v15781_v31 = vpack.c.bf16 %v3075_v55, %v3075_v55  ;;  %11941 = vmatprep.subr.bf16.mxu0 %v14138_v7 }
 0x1b2   : > { %v11425_v57 = vpop.f32.mrb[40].mxu0  ;;  %v11513_v24 = vpop.f32.mrb[40].mxu1  ;;  %19809 = vst [vmem:[#allocation21_spill] sm:$0xff] %v15781_v31  ;;  %4169 = vmatprep.mubr.bf16.mxu1 %v15781_v31 }
 0x1b3   : > { %v11426_v43 = vpop.f32.mrb[41].mxu0  ;;  %v11514_v0 = vpop.f32.mrb[41].mxu1 }
 0x1b4   : > { %v15763_v32 = vadd.f32 %v11426_v43, %v11425_v57  ;;  %v11515_v38 = vadd.f32 %v11514_v0, %v11513_v24  ;;  %v11428_v14 = vpop.f32.mrb[42].mxu0  ;;  %v11516_v8 = vpop.f32.mrb[42].mxu1 }
 0x1b5   : > { %v11429_v18 = vpop.f32.mrb[43].mxu0  ;;  %v11517_v2 = vpop.f32.mrb[43].mxu1 }
 0x1b6   : > { %v15767_v44 = vadd.f32 %v11515_v38, %v1931_v59  ;;  %v15769_v52 = vadd.f32 %v11429_v18, %v11428_v14  ;;  %v11518_v40 = vadd.f32 %v11517_v2, %v11516_v8  ;;  %v15792_v59 = vpack.c.bf16 %v15779_v48, %v15779_v48  ;;  %v14139_v38 = vld [vmem:[#allocation6 + $0x2e0] sm:$0xff]   ;;  %v14141_v18 = vld [vmem:[#allocation6 + $0x328] sm:$0xff]  }
 0x1b7   : > { %11942 = vmatpush3.bf16.msra.mxu0 %v14139_v38  ;;  %v14147_v38 = vld [vmem:[#allocation6 + $0x2f8] sm:$0xff]  }
 0x1b8   : > { %v15771_v10 = vadd.f32 %v11518_v40, %v1934_v17  ;;  %19810 = vst [vmem:[#allocation26_spill] sm:$0xff] %v15792_v59  ;;  %4170 = vmatmul.mubr.bf16.vlgmr.msra.gmra.mrb[144].mxu1 %v15792_v59  ;;  %v14143_v40 = vld [vmem:[#allocation6 + $0x2e8] sm:$0xff]   ;;  %11943 = vmatprep.subr.bf16.mxu0 %v14141_v18 }
 0x1b9   : > { %4177 = vmatprep.mubr.bf16.mxu1 %v15781_v31 }
 0x1ba   : > { %v11431_v9 = vpop.f32.mrb[44].mxu0  ;;  %v11519_v47 = vpop.f32.mrb[44].mxu1 }
 0x1bb   : > { %v11432_v16 = vpop.f32.mrb[45].mxu0  ;;  %v11520_v33 = vpop.f32.mrb[45].mxu1  ;;  %11944 = vmatpush3.bf16.msra.mxu0 %v14143_v40 }
 0x1bc   : > { %v15776_v62 = vadd.f32 %v11432_v16, %v11431_v9  ;;  %v11521_v5 = vadd.f32 %v11520_v33, %v11519_v47  ;;  %v11434_v1 = vpop.f32.mrb[46].mxu0  ;;  %v11522_v15 = vpop.f32.mrb[46].mxu1  ;;  %v1950_v47 = vadd.f32 %v15743_v34, %v15665_v30  ;;  %11945 = vmatprep.subr.bf16.mxu0 %v14144_v46  ;;  %v14142_v34 = vld [vmem:[#allocation6 + $0x340] sm:$0xff]  }
 0x1bd   : > { %v11435_v57 = vpop.f32.mrb[47].mxu0  ;;  %v11523_v24 = vpop.f32.mrb[47].mxu1 }
 0x1be   : > { %v15785_v43 = vadd.f32 %v11521_v5, %v1939_v12  ;;  %v15787_v27 = vadd.f32 %v11435_v57, %v11434_v1  ;;  %v11524_v0 = vadd.f32 %v11523_v24, %v11522_v15  ;;  %v14140_v5 = vld [vmem:[#allocation6 + $0x380] sm:$0xff]   ;;  %v14145_v1 = vld [vmem:[#allocation6 + $0x2f0] sm:$0xff]  }
 0x1bf   : > { %12045 = vmatprep.subr.bf16.mxu1 %v14140_v5  ;;  %11946 = vmatpush3.bf16.msra.mxu0 %v14145_v1 }
 0x1c0   : > { %v15794_v14 = vadd.f32 %v11524_v0, %v1942_v54  ;;  %4178 = vmatmul.mubr.bf16.gmra.mrb[148].mxu1 %v15792_v59  ;;  %v14161_v59 = vld [vmem:[#allocation6 + $0x3c0] sm:$0xff]  }
 0x1c1   : > { %12046 = vmatpush3.bf16.msra.mxu1 %v14142_v34 }
 0x1c2   : > { %v11525_v49 = vpop.f32.mrb[48].mxu1  ;;  %v11589_v8 = vpop.f32.mrb[48].mxu0 }
 0x1c3   : > { %v11526_v2 = vpop.f32.mrb[49].mxu1  ;;  %v11590_v17 = vpop.f32.mrb[49].mxu0 }
 0x1c4   : > { %v11527_v61 = vadd.f32 %v11526_v2, %v11525_v49  ;;  %v11591_v6 = vadd.f32 %v11590_v17, %v11589_v8  ;;  %v11528_v63 = vpop.f32.mrb[50].mxu1  ;;  %v11592_v9 = vpop.f32.mrb[50].mxu0  ;;  %v1955_v49 = vadd.f32 %v15751_v45, %v15665_v30  ;;  %v1958_v17 = vadd.f32 %v15757_v42, %v15665_v30 }
 0x1c5   : > { %v11529_v29 = vpop.f32.mrb[51].mxu1  ;;  %v11593_v16 = vpop.f32.mrb[51].mxu0  ;;  %v1963_v42 = vadd.f32 %v15763_v32, %v15665_v30 }
 0x1c6   : > { %v15802_v33 = vadd.f32 %v11527_v61, %v1947_v4  ;;  %v15805_v19 = vadd.f32 %v11591_v6, %v15677_v35  ;;  %v11530_v55 = vadd.f32 %v11529_v29, %v11528_v63  ;;  %v11594_v12 = vadd.f32 %v11593_v16, %v11592_v9  ;;  %v14146_v35 = vld [vmem:[#allocation6 + $0x338] sm:$0xff]  }
 0x1c7   : > { %11947 = vmatprep.subr.bf16.mxu0 %v14146_v35 }
 0x1c8   : > { %v15807_v15 = vadd.f32 %v11530_v55, %v1950_v47  ;;  %v15810_v57 = vadd.f32 %v11594_v12, %v15683_v20  ;;  %11948 = vmatpush3.bf16.msra.mxu0 %v14147_v38  ;;  %v14148_v38 = vld [vmem:[#allocation6 + $0x388] sm:$0xff]  }
 0x1c9   : > { %12047 = vmatprep.subr.bf16.mxu1 %v14148_v38 }
 0x1ca   : > { %v11531_v24 = vpop.f32.mrb[52].mxu1  ;;  %v11595_v54 = vpop.f32.mrb[52].mxu0 }
 0x1cb   : > { %v11532_v0 = vpop.f32.mrb[53].mxu1  ;;  %v11596_v7 = vpop.f32.mrb[53].mxu0 }
 0x1cc   : > { %v11533_v8 = vadd.f32 %v11532_v0, %v11531_v24  ;;  %v11597_v18 = vadd.f32 %v11596_v7, %v11595_v54  ;;  %v11534_v20 = vpop.f32.mrb[54].mxu1  ;;  %v11598_v2 = vpop.f32.mrb[54].mxu0 }
 0x1cd   : > { %v11535_v40 = vpop.f32.mrb[55].mxu1  ;;  %v11599_v4 = vpop.f32.mrb[55].mxu0 }
 0x1ce   : > { %v15817_v61 = vadd.f32 %v11533_v8, %v1955_v49  ;;  %v15820_v6 = vadd.f32 %v11597_v18, %v15693_v60  ;;  %v11536_v63 = vadd.f32 %v11535_v40, %v11534_v20  ;;  %v11600_v9 = vadd.f32 %v11599_v4, %v11598_v2  ;;  %v14149_v8 = vld [vmem:[#allocation6 + $0x348] sm:$0xff]  }
 0x1cf   : > { %v1966_v60 = vadd.f32 %v15769_v52, %v15665_v30  ;;  %12048 = vmatpush3.bf16.msra.mxu1 %v14149_v8 }
 0x1d0   : > { %v15822_v47 = vadd.f32 %v11536_v63, %v1958_v17  ;;  %v15825_v45 = vadd.f32 %v11600_v9, %v15699_v58  ;;  %v1971_v17 = vadd.f32 %v15776_v62, %v15665_v30  ;;  %v1974_v9 = vadd.f32 %v15787_v27, %v15665_v30 }
 0x1d1   : > { %v1979_v27 = vadd.f32 %v15623_v22, %v15665_v30 }
 0x1d2   : > { %v11537_v29 = vpop.f32.mrb[56].mxu1  ;;  %v11601_v16 = vpop.f32.mrb[56].mxu0 }
 0x1d3   : > { %v11538_v55 = vpop.f32.mrb[57].mxu1  ;;  %v11602_v12 = vpop.f32.mrb[57].mxu0 }
 0x1d4   : > { %v11539_v5 = vadd.f32 %v11538_v55, %v11537_v29  ;;  %v11603_v46 = vadd.f32 %v11602_v12, %v11601_v16  ;;  %v11540_v1 = vpop.f32.mrb[58].mxu1  ;;  %v11604_v34 = vpop.f32.mrb[58].mxu0 }
 0x1d5   : > { %v11541_v24 = vpop.f32.mrb[59].mxu1  ;;  %v11605_v54 = vpop.f32.mrb[59].mxu0 }
 0x1d6   : > { %v15831_v35 = vadd.f32 %v11539_v5, %v1963_v42  ;;  %v15834_v58 = vadd.f32 %v11603_v46, %v15709_v41  ;;  %v11542_v0 = vadd.f32 %v11541_v24, %v11540_v1  ;;  %v11606_v7 = vadd.f32 %v11605_v54, %v11604_v34 }
 0x1d8   : > { %v15836_v49 = vadd.f32 %v11542_v0, %v1966_v60  ;;  %v15839_v32 = vadd.f32 %v11606_v7, %v15715_v3 }
 0x1da   : > { %v11543_v18 = vpop.f32.mrb[60].mxu1  ;;  %v11607_v20 = vpop.f32.mrb[60].mxu0 }
 0x1db   : > { %v11544_v52 = vpop.f32.mrb[61].mxu1  ;;  %v11608_v2 = vpop.f32.mrb[61].mxu0 }
 0x1dc   : > { %v11545_v41 = vadd.f32 %v11544_v52, %v11543_v18  ;;  %v11609_v40 = vadd.f32 %v11608_v2, %v11607_v20  ;;  %v11546_v4 = vpop.f32.mrb[62].mxu1  ;;  %v11610_v63 = vpop.f32.mrb[62].mxu0  ;;  %v14150_v2 = vld [vmem:[#allocation6 + $0x390] sm:$0xff]  }
 0x1dd   : > { %v11547_v29 = vpop.f32.mrb[63].mxu1  ;;  %v11611_v3 = vpop.f32.mrb[63].mxu0  ;;  %12049 = vmatprep.subr.bf16.mxu1 %v14150_v2 }
 0x1de   : > { %v15845_v16 = vadd.f32 %v11545_v41, %v1971_v17  ;;  %v15848_v55 = vadd.f32 %v11609_v40, %v15725_v28  ;;  %v11548_v12 = vadd.f32 %v11547_v29, %v11546_v4  ;;  %v11612_v42 = vadd.f32 %v11611_v3, %v11610_v63  ;;  %v14151_v41 = vld [vmem:[#allocation6 + $0x350] sm:$0xff]  }
 0x1df   : > { %v1982_v28 = vadd.f32 %v15627_v36, %v15665_v30  ;;  %12050 = vmatpush3.bf16.msra.mxu1 %v14151_v41 }
 0x1e0   : > { %v15850_v5 = vadd.f32 %v11548_v12, %v1974_v9  ;;  %v15853_v62 = vadd.f32 %v11612_v42, %v15731_v53  ;;  %v1987_v9 = vadd.f32 %v15635_v11, %v15665_v30  ;;  %v1990_v42 = vadd.f32 %v15639_v13, %v15665_v30 }
 0x1e1   : > { %v1995_v13 = vadd.f32 %v15647_v21, %v15665_v30 }
 0x1e2   : > { %v11549_v46 = vpop.f32.mrb[64].mxu1  ;;  %v11613_v1 = vpop.f32.mrb[64].mxu0 }
 0x1e3   : > { %v11550_v34 = vpop.f32.mrb[65].mxu1  ;;  %v11614_v60 = vpop.f32.mrb[65].mxu0 }
 0x1e4   : > { %v11551_v24 = vadd.f32 %v11550_v34, %v11549_v46  ;;  %v11615_v54 = vadd.f32 %v11614_v60, %v11613_v1  ;;  %v11552_v0 = vpop.f32.mrb[66].mxu1  ;;  %v11616_v7 = vpop.f32.mrb[66].mxu0 }
 0x1e5   : > { %v11553_v38 = vpop.f32.mrb[67].mxu1  ;;  %v11617_v8 = vpop.f32.mrb[67].mxu0 }
 0x1e6   : > { %v15859_v18 = vadd.f32 %v11551_v24, %v1979_v27  ;;  %v15862_v53 = vadd.f32 %v11615_v54, %v15741_v37  ;;  %v11554_v20 = vadd.f32 %v11553_v38, %v11552_v0  ;;  %v11618_v52 = vadd.f32 %v11617_v8, %v11616_v7 }
 0x1e8   : > { %v15864_v17 = vadd.f32 %v11554_v20, %v1982_v28  ;;  %v15867_v22 = vadd.f32 %v11618_v52, %v15747_v23 }
 0x1ea   : > { %v11555_v40 = vpop.f32.mrb[68].mxu1  ;;  %v11619_v4 = vpop.f32.mrb[68].mxu0 }
 0x1eb   : > { %v11556_v36 = vpop.f32.mrb[69].mxu1  ;;  %v11620_v63 = vpop.f32.mrb[69].mxu0 }
 0x1ec   : > { %v11557_v37 = vadd.f32 %v11556_v36, %v11555_v40  ;;  %v11621_v29 = vadd.f32 %v11620_v63, %v11619_v4  ;;  %v11558_v3 = vpop.f32.mrb[70].mxu1  ;;  %v11622_v12 = vpop.f32.mrb[70].mxu0  ;;  %v14152_v63 = vld [vmem:[#allocation6 + $0x398] sm:$0xff]  }
 0x1ed   : > { %v11559_v46 = vpop.f32.mrb[71].mxu1  ;;  %v11623_v23 = vpop.f32.mrb[71].mxu0  ;;  %12051 = vmatprep.subr.bf16.mxu1 %v14152_v63 }
 0x1ee   : > { %v15873_v1 = vadd.f32 %v11557_v37, %v1987_v9  ;;  %v15876_v34 = vadd.f32 %v11621_v29, %v15755_v51  ;;  %v11560_v60 = vadd.f32 %v11559_v46, %v11558_v3  ;;  %v11624_v27 = vadd.f32 %v11623_v23, %v11622_v12  ;;  %v14153_v3 = vld [vmem:[#allocation6 + $0x358] sm:$0xff]  }
 0x1ef   : > { %v1998_v51 = vadd.f32 %v15651_v39, %v15665_v30  ;;  %12052 = vmatpush3.bf16.msra.mxu1 %v14153_v3 }
 0x1f0   : > { %v15878_v24 = vadd.f32 %v11560_v60, %v1990_v42  ;;  %v15881_v11 = vadd.f32 %v11624_v27, %v15759_v50  ;;  %v2003_v42 = vadd.f32 %v15659_v25, %v15665_v30  ;;  %v2006_v27 = vadd.f32 %v15663_v26, %v15665_v30 }
 0x1f2   : > { %v11561_v54 = vpop.f32.mrb[72].mxu1  ;;  %v11625_v0 = vpop.f32.mrb[72].mxu0 }
 0x1f3   : > { %v11562_v7 = vpop.f32.mrb[73].mxu1  ;;  %v11626_v28 = vpop.f32.mrb[73].mxu0 }
 0x1f4   : > { %v11563_v38 = vadd.f32 %v11562_v7, %v11561_v54  ;;  %v11627_v8 = vadd.f32 %v11626_v28, %v11625_v0  ;;  %v11564_v20 = vpop.f32.mrb[74].mxu1  ;;  %v11628_v52 = vpop.f32.mrb[74].mxu0 }
 0x1f5   : > { %v11565_v2 = vpop.f32.mrb[75].mxu1  ;;  %v11629_v41 = vpop.f32.mrb[75].mxu0 }
 0x1f6   : > { %v15887_v40 = vadd.f32 %v11563_v38, %v1995_v13  ;;  %v15890_v50 = vadd.f32 %v11627_v8, %v15767_v44  ;;  %v11566_v4 = vadd.f32 %v11565_v2, %v11564_v20  ;;  %v11630_v36 = vadd.f32 %v11629_v41, %v11628_v52 }
 0x1f8   : > { %v15892_v9 = vadd.f32 %v11566_v4, %v1998_v51  ;;  %v15895_v21 = vadd.f32 %v11630_v36, %v15771_v10 }
 0x1fa   : > { %v11567_v37 = vpop.f32.mrb[76].mxu1  ;;  %v11631_v29 = vpop.f32.mrb[76].mxu0 }
 0x1fb   : > { %v11568_v39 = vpop.f32.mrb[77].mxu1  ;;  %v11632_v12 = vpop.f32.mrb[77].mxu0 }
 0x1fc   : > { %v11569_v46 = vadd.f32 %v11568_v39, %v11567_v37  ;;  %v11633_v44 = vadd.f32 %v11632_v12, %v11631_v29  ;;  %v11570_v23 = vpop.f32.mrb[78].mxu1  ;;  %v11634_v60 = vpop.f32.mrb[78].mxu0  ;;  %v14154_v39 = vld [vmem:[#allocation6 + $0x3a0] sm:$0xff]  }
 0x1fd   : > { %v11571_v54 = vpop.f32.mrb[79].mxu1  ;;  %v11635_v10 = vpop.f32.mrb[79].mxu0  ;;  %12053 = vmatprep.subr.bf16.mxu1 %v14154_v39 }
 0x1fe   : > { %v15901_v0 = vadd.f32 %v11569_v46, %v2003_v42  ;;  %v15904_v7 = vadd.f32 %v11633_v44, %v15785_v43  ;;  %v11572_v28 = vadd.f32 %v11571_v54, %v11570_v23  ;;  %v11636_v13 = vadd.f32 %v11635_v10, %v11634_v60  ;;  %v14155_v54 = vld [vmem:[#allocation6 + $0x360] sm:$0xff]  }
 0x1ff   : > { %12054 = vmatpush3.bf16.msra.mxu1 %v14155_v54 }
 0x200   : > { %v15906_v38 = vadd.f32 %v11572_v28, %v2006_v27  ;;  %v15909_v25 = vadd.f32 %v11636_v13, %v15794_v14 }
 0x202   : > { %v11637_v8 = vpop.f32.mrb[80].mxu0  ;;  %v11701_v20 = vpop.f32.mrb[80].mxu1 }
 0x203   : > { %v11638_v52 = vpop.f32.mrb[81].mxu0  ;;  %v11702_v51 = vpop.f32.mrb[81].mxu1 }
 0x204   : > { %v11639_v2 = vadd.f32 %v11638_v52, %v11637_v8  ;;  %v11703_v26 = vadd.f32 %v11702_v51, %v11701_v20  ;;  %v11640_v30 = vpop.f32.mrb[82].mxu0  ;;  %v11704_v41 = vpop.f32.mrb[82].mxu1 }
 0x205   : > { %v11641_v4 = vpop.f32.mrb[83].mxu0  ;;  %v11705_v36 = vpop.f32.mrb[83].mxu1 }
 0x206   : > { %v15912_v43 = vadd.f32 %v11639_v2, %v15802_v33  ;;  %v11642_v63 = vadd.f32 %v11641_v4, %v11640_v30  ;;  %v11706_v37 = vadd.f32 %v11705_v36, %v11704_v41  ;;  %v15915_v29 = vadd.f32 %v11703_v26, %v15805_v19 }
 0x208   : > { %v15918_v14 = vadd.f32 %v11642_v63, %v15807_v15  ;;  %v15921_v3 = vadd.f32 %v11706_v37, %v15810_v57 }
 0x20a   : > { %v11643_v12 = vpop.f32.mrb[84].mxu0  ;;  %v11707_v42 = vpop.f32.mrb[84].mxu1 }
 0x20b   : > { %v11644_v46 = vpop.f32.mrb[85].mxu0  ;;  %v11708_v44 = vpop.f32.mrb[85].mxu1 }
 0x20c   : > { %v11645_v23 = vadd.f32 %v11644_v46, %v11643_v12  ;;  %v11709_v33 = vadd.f32 %v11708_v44, %v11707_v42  ;;  %v11646_v60 = vpop.f32.mrb[86].mxu0  ;;  %v11710_v27 = vpop.f32.mrb[86].mxu1  ;;  %v14156_v42 = vld [vmem:[#allocation6 + $0x3a8] sm:$0xff]  }
 0x20d   : > { %v11647_v10 = vpop.f32.mrb[87].mxu0  ;;  %v11711_v19 = vpop.f32.mrb[87].mxu1  ;;  %v14157_v46 = vld [vmem:[#allocation6 + $0x368] sm:$0xff]   ;;  %12055 = vmatprep.subr.bf16.mxu1 %v14156_v42 }
 0x20e   : > { %v15924_v28 = vadd.f32 %v11645_v23, %v15817_v61  ;;  %v11648_v15 = vadd.f32 %v11647_v10, %v11646_v60  ;;  %v11712_v13 = vadd.f32 %v11711_v19, %v11710_v27  ;;  %v15927_v57 = vadd.f32 %v11709_v33, %v15820_v6  ;;  %12056 = vmatpush3.bf16.msra.mxu1 %v14157_v46 }
 0x210   : > { %v15930_v8 = vadd.f32 %v11648_v15, %v15822_v47  ;;  %v15933_v20 = vadd.f32 %v11712_v13, %v15825_v45 }
 0x212   : > { %v11649_v52 = vpop.f32.mrb[88].mxu0  ;;  %v11713_v51 = vpop.f32.mrb[88].mxu1 }
 0x213   : > { %v11650_v2 = vpop.f32.mrb[89].mxu0  ;;  %v11714_v26 = vpop.f32.mrb[89].mxu1 }
 0x214   : > { %v11651_v30 = vadd.f32 %v11650_v2, %v11649_v52  ;;  %v11715_v41 = vadd.f32 %v11714_v26, %v11713_v51  ;;  %v11652_v61 = vpop.f32.mrb[90].mxu0  ;;  %v11716_v4 = vpop.f32.mrb[90].mxu1 }
 0x215   : > { %v11653_v36 = vpop.f32.mrb[91].mxu0  ;;  %v11717_v63 = vpop.f32.mrb[91].mxu1 }
 0x216   : > { %v15936_v6 = vadd.f32 %v11651_v30, %v15831_v35  ;;  %v11654_v37 = vadd.f32 %v11653_v36, %v11652_v61  ;;  %v11718_v39 = vadd.f32 %v11717_v63, %v11716_v4  ;;  %v15939_v47 = vadd.f32 %v11715_v41, %v15834_v58 }
 0x218   : > { %v15942_v45 = vadd.f32 %v11654_v37, %v15836_v49  ;;  %v15945_v12 = vadd.f32 %v11718_v39, %v15839_v32 }
 0x21a   : > { %v11655_v44 = vpop.f32.mrb[92].mxu0  ;;  %v11719_v23 = vpop.f32.mrb[92].mxu1 }
 0x21b   : > { %v11656_v33 = vpop.f32.mrb[93].mxu0  ;;  %v11720_v60 = vpop.f32.mrb[93].mxu1 }
 0x21c   : > { %v11657_v35 = vadd.f32 %v11656_v33, %v11655_v44  ;;  %v11721_v27 = vadd.f32 %v11720_v60, %v11719_v23  ;;  %v11658_v54 = vpop.f32.mrb[94].mxu0  ;;  %v11722_v10 = vpop.f32.mrb[94].mxu1  ;;  %v14158_v44 = vld [vmem:[#allocation6 + $0x3b0] sm:$0xff]  }
 0x21d   : > { %v11659_v58 = vpop.f32.mrb[95].mxu0  ;;  %v11723_v19 = vpop.f32.mrb[95].mxu1  ;;  %v14159_v23 = vld [vmem:[#allocation6 + $0x370] sm:$0xff]   ;;  %12057 = vmatprep.subr.bf16.mxu1 %v14158_v44 }
 0x21e   : > { %v15948_v49 = vadd.f32 %v11657_v35, %v15845_v16  ;;  %v11660_v15 = vadd.f32 %v11659_v58, %v11658_v54  ;;  %v11724_v32 = vadd.f32 %v11723_v19, %v11722_v10  ;;  %v15951_v13 = vadd.f32 %v11721_v27, %v15848_v55  ;;  %12058 = vmatpush3.bf16.msra.mxu1 %v14159_v23 }
 0x220   : > { %v15954_v52 = vadd.f32 %v11660_v15, %v15850_v5  ;;  %v15957_v51 = vadd.f32 %v11724_v32, %v15853_v62 }
 0x222   : > { %v11661_v2 = vpop.f32.mrb[96].mxu0  ;;  %v11725_v26 = vpop.f32.mrb[96].mxu1 }
 0x223   : > { %v11662_v30 = vpop.f32.mrb[97].mxu0  ;;  %v11726_v41 = vpop.f32.mrb[97].mxu1 }
 0x224   : > { %v11663_v61 = vadd.f32 %v11662_v30, %v11661_v2  ;;  %v11727_v4 = vadd.f32 %v11726_v41, %v11725_v26  ;;  %v11664_v36 = vpop.f32.mrb[98].mxu0  ;;  %v11728_v16 = vpop.f32.mrb[98].mxu1 }
 0x225   : > { %v11665_v63 = vpop.f32.mrb[99].mxu0  ;;  %v11729_v37 = vpop.f32.mrb[99].mxu1 }
 0x226   : > { %v15960_v39 = vadd.f32 %v11663_v61, %v15859_v18  ;;  %v11666_v55 = vadd.f32 %v11665_v63, %v11664_v36  ;;  %v11730_v42 = vadd.f32 %v11729_v37, %v11728_v16  ;;  %v15963_v5 = vadd.f32 %v11727_v4, %v15862_v53 }
 0x228   : > { %v15966_v62 = vadd.f32 %v11666_v55, %v15864_v17  ;;  %v15969_v46 = vadd.f32 %v11730_v42, %v15867_v22 }
 0x22a   : > { %v11667_v33 = vpop.f32.mrb[100].mxu0  ;;  %v11731_v60 = vpop.f32.mrb[100].mxu1 }
 0x22b   : > { %v11668_v35 = vpop.f32.mrb[101].mxu0  ;;  %v11732_v27 = vpop.f32.mrb[101].mxu1 }
 0x22c   : > { %v11669_v18 = vadd.f32 %v11668_v35, %v11667_v33  ;;  %v11733_v54 = vadd.f32 %v11732_v27, %v11731_v60  ;;  %v11670_v10 = vpop.f32.mrb[102].mxu0  ;;  %v11734_v58 = vpop.f32.mrb[102].mxu1  ;;  %v14162_v60 = vld [vmem:[#allocation6 + $0x3b8] sm:$0xff]  }
 0x22d   : > { %v11671_v53 = vpop.f32.mrb[103].mxu0  ;;  %v11735_v19 = vpop.f32.mrb[103].mxu1  ;;  %v14163_v35 = vld [vmem:[#allocation6 + $0x378] sm:$0xff]   ;;  %12059 = vmatprep.subr.bf16.mxu1 %v14162_v60 }
 0x22e   : > { %v15972_v17 = vadd.f32 %v11669_v18, %v15873_v1  ;;  %v11672_v15 = vadd.f32 %v11671_v53, %v11670_v10  ;;  %v11736_v22 = vadd.f32 %v11735_v19, %v11734_v58  ;;  %v15975_v32 = vadd.f32 %v11733_v54, %v15876_v34  ;;  %12060 = vmatpush3.bf16.msra.mxu1 %v14163_v35 }
 0x230   : > { %v15978_v2 = vadd.f32 %v11672_v15, %v15878_v24  ;;  %v15981_v26 = vadd.f32 %v11736_v22, %v15881_v11  ;;  %v14160_v11 = vld [vmem:[#allocation6 + $0x400] sm:$0xff]  }
 0x231   : > { %12157 = vmatprep.subr.bf16.mxu0 %v14160_v11 }
 0x232   : > { %v11673_v30 = vpop.f32.mrb[104].mxu0  ;;  %v11737_v41 = vpop.f32.mrb[104].mxu1 }
 0x233   : > { %v11674_v61 = vpop.f32.mrb[105].mxu0  ;;  %v11738_v4 = vpop.f32.mrb[105].mxu1 }
 0x234   : > { %v11675_v36 = vadd.f32 %v11674_v61, %v11673_v30  ;;  %v11739_v16 = vadd.f32 %v11738_v4, %v11737_v41  ;;  %v11676_v63 = vpop.f32.mrb[106].mxu0  ;;  %v11740_v1 = vpop.f32.mrb[106].mxu1  ;;  %v16008_v4 = vrot.slane %v19808_v56, 4 }
 0x235   : > { %v11677_v37 = vpop.f32.mrb[107].mxu0  ;;  %v11741_v55 = vpop.f32.mrb[107].mxu1 }
 0x236   : > { %v15984_v42 = vadd.f32 %v11675_v36, %v15887_v40  ;;  %v11678_v34 = vadd.f32 %v11677_v37, %v11676_v63  ;;  %v11742_v44 = vadd.f32 %v11741_v55, %v11740_v1  ;;  %v15987_v24 = vadd.f32 %v11739_v16, %v15890_v50 }
 0x237   : > { %v3078_v60 = vrot.slane %v16008_v4, 6 }
 0x238   : > { %v15990_v23 = vadd.f32 %v11678_v34, %v15892_v9  ;;  %v15993_v33 = vadd.f32 %v11742_v44, %v15895_v21 }
 0x23a   : > { %v11679_v27 = vpop.f32.mrb[108].mxu0  ;;  %v11743_v18 = vpop.f32.mrb[108].mxu1 }
 0x23b   : > { %v11680_v40 = vpop.f32.mrb[109].mxu0  ;;  %v11744_v54 = vpop.f32.mrb[109].mxu1 }
 0x23c   : > { %v11681_v10 = vadd.f32 %v11680_v40, %v11679_v27  ;;  %v11745_v58 = vadd.f32 %v11744_v54, %v11743_v18  ;;  %v11682_v50 = vpop.f32.mrb[110].mxu0  ;;  %v11746_v53 = vpop.f32.mrb[110].mxu1 }
 0x23d   : > { %v11683_v19 = vpop.f32.mrb[111].mxu0  ;;  %v11747_v15 = vpop.f32.mrb[111].mxu1 }
 0x23e   : > { %v15996_v9 = vadd.f32 %v11681_v10, %v15901_v0  ;;  %v11684_v21 = vadd.f32 %v11683_v19, %v11682_v50  ;;  %v11748_v22 = vadd.f32 %v11747_v15, %v11746_v53  ;;  %v15999_v30 = vadd.f32 %v11745_v58, %v15904_v7  ;;  %v14172_v10 = vld [vmem:[#allocation6 + $0x440] sm:$0xff]  }
 0x23f   : > { %v16034_v15 = vpack.c.bf16 %v3078_v60, %v3078_v60  ;;  %13757 = vmatprep.subr.bf16.mxu1 %v14172_v10 }
 0x240   : > { %v16002_v41 = vadd.f32 %v11684_v21, %v15906_v38  ;;  %v16005_v61 = vadd.f32 %v11748_v22, %v15909_v25 }
 0x241   : > { %19815 = vst [vmem:[#allocation20_spill] sm:$0xff] %v16034_v15 }
 0x242   : > { %v11749_v36 = vpop.f32.mrb[112].mxu1  ;;  %v13727_v16 = vpop.f32.mrb[112].mxu0 }
 0x243   : > { %v2535_v63 = vadd.f32 %v13727_v16, %v15927_v57  ;;  %v11750_v0 = vpop.f32.mrb[113].mxu1  ;;  %v2526_v1 = vpop.f32.mrb[113].mxu0 }
 0x244   : > { %v11751_v37 = vadd.f32 %v11750_v0, %v11749_v36  ;;  %v2527_v55 = vadd.f32 %v2526_v1, %v15915_v29  ;;  %v11752_v7 = vpop.f32.mrb[114].mxu1  ;;  %v13728_v34 = vpop.f32.mrb[114].mxu0 }
 0x245   : > { %v16012_v44 = vmax.f32 %v2535_v63, 0.0  ;;  %v2538_v38 = vadd.f32 %v13728_v34, %v15933_v20  ;;  %v11753_v25 = vpop.f32.mrb[115].mxu1  ;;  %v2529_v11 = vpop.f32.mrb[115].mxu0 }
 0x246   : > { %v16016_v35 = vmax.f32 %v2527_v55, 0.0  ;;  %v16018_v27 = vadd.f32 %v11753_v25, %v11752_v7  ;;  %v2530_v57 = vadd.f32 %v2529_v11, %v15921_v3  ;;  %v16022_v18 = vadd.f32 %v11751_v37, %v15912_v43 }
 0x247   : > { %19811 = vst [vmem:[#allocation28_spill] sm:$0xff] %v16012_v44  ;;  %v16024_v29 = vmax.f32 %v2538_v38, 0.0  ;;  %v3127_v40 = vrot.slane %v16012_v44, 6  ;;  %v2871_v22 = vrot.slane %v16012_v44, 2 }
 0x248   : > { %19812 = vst [vmem:[#allocation30_spill] sm:$0xff] %v16016_v35  ;;  %v16027_v54 = vmax.f32 %v2530_v57, 0.0  ;;  %v3082_v20 = vrot.slane %v16016_v35, 6  ;;  %v2868_v50 = vrot.slane %v16016_v35, 2 }
 0x249   : > { %19813 = vst [vmem:[#allocation18_spill] sm:$0xff] %v16024_v29  ;;  %v3150_v58 = vrot.slane %v16024_v29, 6  ;;  %v2872_v53 = vrot.slane %v16024_v29, 2  ;;  %v3128_v1 = vsel %vm3071_vm3, %v15779_v48, %v3127_v40 }
 0x24a   : > { %19814 = vst [vmem:[#allocation31_spill] sm:$0xff] %v16027_v54  ;;  %v11755_v3 = vpop.f32.mrb[116].mxu1  ;;  %v13731_v19 = vpop.f32.mrb[116].mxu0  ;;  %v3105_v43 = vrot.slane %v16027_v54, 6  ;;  %v2869_v21 = vrot.slane %v16027_v54, 2  ;;  %v3083_v0 = vsel %vm3071_vm3, %v15779_v48, %v3082_v20  ;;  %v3084_v56 = vrot.slane %v2868_v50, 6 }
 0x24b   : > { %v2551_v36 = vadd.f32 %v13731_v19, %v15951_v13  ;;  %v11756_v16 = vpop.f32.mrb[117].mxu1  ;;  %v2542_v63 = vpop.f32.mrb[117].mxu0  ;;  %v3151_v37 = vsel %vm3071_vm3, %v3127_v40, %v3150_v58  ;;  %v2873_v13 = vsel %vm711_vm2, %v2871_v22, %v2872_v53 }
 0x24c   : > { %v16044_v55 = vadd.f32 %v11756_v16, %v11755_v3  ;;  %v2543_v7 = vadd.f32 %v2542_v63, %v15939_v47  ;;  %v11758_v34 = vpop.f32.mrb[118].mxu1  ;;  %v13732_v38 = vpop.f32.mrb[118].mxu0  ;;  %v3106_v25 = vsel %vm3071_vm3, %v3082_v20, %v3105_v43  ;;  %v2870_v19 = vsel %vm711_vm2, %v2868_v50, %v2869_v21  ;;  %v14164_v16 = vld [vmem:[#allocation6 + $0x408] sm:$0xff]  }
 0x24d   : > { %v2554_v11 = vadd.f32 %v13732_v38, %v15957_v51  ;;  %v11759_v60 = vpop.f32.mrb[119].mxu1  ;;  %v2545_v57 = vpop.f32.mrb[119].mxu0  ;;  %v3495_v10 = vpack.c.bf16 %v3106_v25, %v3083_v0  ;;  %v3085_v3 = vrot.slane %v2870_v19, 6  ;;  %v16056_v20 = vpack.c.bf16 %v3151_v37, %v3128_v1 }
 0x24e   : > { %v16051_v40 = vmax.f32 %v2543_v7, 0.0  ;;  %v16053_v58 = vadd.f32 %v11759_v60, %v11758_v34  ;;  %v2546_v47 = vadd.f32 %v2545_v57, %v15945_v12  ;;  %v3107_v43 = vrot.slane %v2869_v21, 6  ;;  %v14166_v60 = vld [vmem:[#allocation6 + $0x410] sm:$0xff]  }
 0x24f   : > { %4330 = vmatprep.mubr.bf16.mxu0 %v3495_v10  ;;  %v3129_v51 = vrot.slane %v2871_v22, 6  ;;  %v3130_v63 = vrot.slane %v2873_v13, 6  ;;  %v2938_v0 = vrot.slane %v16027_v54, 4  ;;  %v3086_v50 = vsel %vm3071_vm3, %v3084_v56, %v3085_v3  ;;  %v14165_v22 = vld [vmem:[#allocation6 + $0x3c8] sm:$0xff]  }
 0x250   : > { %19816 = vst [vmem:[#allocation23_spill] sm:$0xff] %v16051_v40  ;;  %v16059_v38 = vmax.f32 %v2546_v47, 0.0  ;;  %4331 = vmatmul.mubr.bf16.vlgmr.msra.gmra.mrb[144].mxu0 %v16034_v15  ;;  %v3152_v7 = vrot.slane %v2872_v53, 6  ;;  %v3108_v12 = vsel %vm3071_vm3, %v3085_v3, %v3107_v43  ;;  %v2937_v21 = vrot.slane %v16016_v35, 4 }
 0x251   : > { %4338 = vmatprep.mubr.bf16.mxu0 %v16056_v20  ;;  %v3131_v34 = vsel %vm3071_vm3, %v3129_v51, %v3130_v63  ;;  %12158 = vmatpush3.bf16.msra.mxu0 %v14161_v59  ;;  %v16067_v25 = vpack.c.bf16 %v3108_v12, %v3086_v50  ;;  %v3091_v56 = vrot.slane %v16051_v40, 6  ;;  %v2874_v53 = vrot.slane %v16051_v40, 2 }
 0x252   : > { %19817 = vst [vmem:[#allocation14_spill] sm:$0xff] %v16059_v38  ;;  %v11761_v1 = vpop.f32.mrb[120].mxu1  ;;  %v13735_v37 = vpop.f32.mrb[120].mxu0  ;;  %v3153_v13 = vsel %vm3071_vm3, %v3130_v63, %v3152_v7  ;;  %12159 = vmatprep.subr.bf16.mxu0 %v14164_v16  ;;  %v16072_v57 = vmax.f32 %v2551_v36, 0.0  ;;  %v3111_v3 = vrot.slane %v16059_v38, 6  ;;  %v2875_v43 = vrot.slane %v16059_v38, 2 }
 0x253   : > { %v16075_v19 = vadd.f32 %v13735_v37, %v15975_v32  ;;  %v11762_v47 = vpop.f32.mrb[121].mxu1  ;;  %v2558_v59 = vpop.f32.mrb[121].mxu0  ;;  %4185 = vmatprep.mubr.bf16.mxu1 %v16067_v25  ;;  %v16083_v7 = vpack.c.bf16 %v3153_v13, %v3131_v34  ;;  %v2939_v36 = vsel %vm2926_vm4, %v2937_v21, %v2938_v0  ;;  %v16086_v32 = vmax.f32 %v2554_v11, 0.0 }
 0x254   : > { %19818 = vst [vmem:[#allocation24_spill] sm:$0xff] %v16072_v57  ;;  %v16080_v51 = vadd.f32 %v11762_v47, %v11761_v1  ;;  %v2559_v63 = vadd.f32 %v2558_v59, %v15963_v5  ;;  %v11764_v50 = vpop.f32.mrb[122].mxu1  ;;  %v13736_v16 = vpop.f32.mrb[122].mxu0  ;;  %4186 = vmatmul.mubr.bf16.gmra.mrb[152].mxu1 %v3495_v10  ;;  %v3112_v35 = vsel %vm3071_vm3, %v3091_v56, %v3111_v3  ;;  %v14167_v5 = vld [vmem:[#allocation6 + $0x3d0] sm:$0xff]   ;;  %v3093_v10 = vrot.slane %v2874_v53, 6 }
 0x255   : > { %19819 = vst [vmem:[#allocation16_spill] sm:$0xff] %v16086_v32  ;;  %v16089_v12 = vadd.f32 %v13736_v16, %v15981_v26  ;;  %v11765_v37 = vpop.f32.mrb[123].mxu1  ;;  %v2561_v54 = vpop.f32.mrb[123].mxu0  ;;  %v2876_v1 = vsel %vm711_vm2, %v2874_v53, %v2875_v43  ;;  %12160 = vmatpush3.bf16.msra.mxu0 %v14165_v22  ;;  %4193 = vmatprep.mubr.bf16.mxu1 %v16083_v7  ;;  %v14168_v26 = vld [vmem:[#allocation6 + $0x418] sm:$0xff]   ;;  %v3113_v3 = vrot.slane %v2875_v43, 6  ;;  %v3087_v16 = vrot.slane %v2937_v21, 6 }
 0x256   : > { %v16094_v34 = vadd.f32 %v11765_v37, %v11764_v50  ;;  %v2562_v13 = vadd.f32 %v2561_v54, %v15969_v46  ;;  %v3092_v11 = vsel %vm3071_vm3, %v15779_v48, %v3091_v56  ;;  %12161 = vmatprep.subr.bf16.mxu0 %v14166_v60  ;;  %v3094_v59 = vrot.slane %v2876_v1, 6  ;;  %v14169_v56 = vld [vmem:[#allocation6 + $0x3d8] sm:$0xff]  }
 0x257   : > { %v16099_v47 = vpack.c.bf16 %v3112_v35, %v3092_v11  ;;  %v2941_v22 = vsel %vm2926_vm4, %v2938_v0, %v16008_v4  ;;  %v3088_v50 = vrot.slane %v2939_v36, 6  ;;  %v3136_v0 = vrot.slane %v16072_v57, 6  ;;  %v14170_v36 = vld [vmem:[#allocation6 + $0x420] sm:$0xff]  }
 0x258   : > { %4339 = vmatmul.mubr.bf16.gmra.mrb[148].mxu0 %v16034_v15  ;;  %v3109_v37 = vrot.slane %v2941_v22, 6  ;;  %v3095_v46 = vsel %vm3071_vm3, %v3093_v10, %v3094_v59  ;;  %v3114_v54 = vsel %vm3071_vm3, %v3094_v59, %v3113_v3  ;;  %v2942_v21 = vrot.slane %v16012_v44, 4 }
 0x259   : > { %4346 = vmatprep.mubr.bf16.mxu0 %v16099_v47  ;;  %12162 = vmatpush3.bf16.msra.mxu0 %v14167_v5  ;;  %v3089_v60 = vsel %vm3071_vm3, %v3087_v16, %v3088_v50  ;;  %v2943_v1 = vrot.slane %v16024_v29, 4  ;;  %v16115_v59 = vpack.c.bf16 %v3114_v54, %v3095_v46  ;;  %v3156_v3 = vrot.slane %v16086_v32, 6 }
 0x25a   : > { %v11767_v35 = vpop.f32.mrb[124].mxu1  ;;  %v13739_v53 = vpop.f32.mrb[124].mxu0  ;;  %v3110_v43 = vsel %vm3071_vm3, %v3088_v50, %v3109_v37  ;;  %12163 = vmatprep.subr.bf16.mxu0 %v14168_v26  ;;  %v2438_v26 = vadd.f32 %v16044_v55, %v15924_v28  ;;  %v2441_v29 = vadd.f32 %v16053_v58, %v15930_v8  ;;  %v3137_v55 = vsel %vm3071_vm3, %v15779_v48, %v3136_v0  ;;  %v14173_v58 = vld [vmem:[#allocation6 + $0x428] sm:$0xff]  }
 0x25b   : > { %v16113_v11 = vadd.f32 %v13739_v53, %v15999_v30  ;;  %v11768_v10 = vpop.f32.mrb[125].mxu1  ;;  %v2574_v5 = vpop.f32.mrb[125].mxu0  ;;  %v16125_v30 = vmax.f32 %v2559_v63, 0.0  ;;  %v16131_v53 = vpack.c.bf16 %v3110_v43, %v3089_v60  ;;  %v2433_v60 = vadd.f32 %v16018_v27, %v15918_v14 }
 0x25c   : > { %v11769_v22 = vadd.f32 %v11768_v10, %v11767_v35  ;;  %v16119_v16 = vadd.f32 %v2574_v5, %v15987_v24  ;;  %v11770_v50 = vpop.f32.mrb[126].mxu1  ;;  %v13740_v37 = vpop.f32.mrb[126].mxu0  ;;  %4194 = vmatmul.mubr.bf16.gmra.mrb[156].mxu1 %v16056_v20  ;;  %v3157_v24 = vsel %vm3071_vm3, %v3136_v0, %v3156_v3  ;;  %v14171_v10 = vld [vmem:[#allocation6 + $0x3e0] sm:$0xff]   ;;  %v16141_v20 = vmax.f32 %v2562_v13, 0.0  ;;  %v14174_v3 = vld [vmem:[#allocation6 + $0x3e8] sm:$0xff]  }
 0x25d   : > { %19820 = vst [vmem:[#allocation25_spill] sm:$0xff] %v16125_v30  ;;  %v16129_v46 = vadd.f32 %v13740_v37, %v16005_v61  ;;  %v11771_v54 = vpop.f32.mrb[127].mxu1  ;;  %v2577_v35 = vpop.f32.mrb[127].mxu0  ;;  %12164 = vmatpush3.bf16.msra.mxu0 %v14169_v56  ;;  %4201 = vmatprep.mubr.bf16.mxu1 %v16115_v59  ;;  %v2877_v61 = vrot.slane %v16072_v57, 2  ;;  %v16143_v63 = vpack.c.bf16 %v3157_v24, %v3137_v55  ;;  %v2878_v56 = vrot.slane %v16086_v32, 2 }
 0x25e   : > { %v11772_v28 = vadd.f32 %v11771_v54, %v11770_v50  ;;  %v16136_v8 = vadd.f32 %v2577_v35, %v15993_v33  ;;  %12165 = vmatprep.subr.bf16.mxu0 %v14170_v36  ;;  %19821 = vst [vmem:[#allocation17_spill] sm:$0xff] %v16141_v20  ;;  %v2944_v33 = vsel %vm2926_vm4, %v2942_v21, %v2943_v1  ;;  %v3132_v36 = vrot.slane %v2942_v21, 6  ;;  %v14175_v50 = vld [vmem:[#allocation6 + $0x430] sm:$0xff]  }
 0x25f   : > { %v2946_v43 = vsel %vm2926_vm4, %v2943_v1, %v16008_v4  ;;  %v2879_v0 = vsel %vm711_vm2, %v2877_v61, %v2878_v56  ;;  %v3158_v13 = vrot.slane %v2878_v56, 6  ;;  %v3133_v5 = vrot.slane %v2944_v33, 6 }
 0x260   : > { %4347 = vmatmul.mubr.bf16.gmra.mrb[152].mxu0 %v16131_v53  ;;  %v3138_v14 = vrot.slane %v2877_v61, 6  ;;  %v3139_v27 = vrot.slane %v2879_v0, 6  ;;  %v3154_v35 = vrot.slane %v2946_v43, 6  ;;  %v3163_v24 = vrot.slane %v16125_v30, 6 }
 0x261   : > { %4354 = vmatprep.mubr.bf16.mxu0 %v16143_v63  ;;  %12166 = vmatpush3.bf16.msra.mxu0 %v14171_v10  ;;  %v3134_v15 = vsel %vm3071_vm3, %v3132_v36, %v3133_v5  ;;  %v3171_v21 = vrot.slane %v16141_v20, 6  ;;  %v2454_v10 = vadd.f32 %v11769_v22, %v15948_v49  ;;  %v14176_v22 = vld [vmem:[#allocation6 + $0x3f0] sm:$0xff]  }
 0x262   : > { %v11773_v37 = vpop.f32.mrb[128].mxu1  ;;  %v13743_v54 = vpop.f32.mrb[128].mxu0  ;;  %12167 = vmatprep.subr.bf16.mxu0 %v14173_v58  ;;  %v3140_v0 = vsel %vm3071_vm3, %v3138_v14, %v3139_v27  ;;  %v3155_v49 = vsel %vm3071_vm3, %v3133_v5, %v3154_v35  ;;  %v2446_v5 = vadd.f32 %v16080_v51, %v15936_v6  ;;  %v2449_v35 = vadd.f32 %v16094_v34, %v15942_v45  ;;  %v14178_v6 = vld [vmem:[#allocation6 + $0x3f8] sm:$0xff]  }
 0x263   : > { %v16155_v55 = vadd.f32 %v13743_v54, %v2438_v26  ;;  %v11774_v1 = vpop.f32.mrb[129].mxu1  ;;  %v2590_v44 = vpop.f32.mrb[129].mxu0  ;;  %v3159_v26 = vsel %vm3071_vm3, %v3139_v27, %v3158_v13  ;;  %v16178_v14 = vpack.c.bf16 %v3155_v49, %v3134_v15  ;;  %v14177_v13 = vld [vmem:[#allocation6 + $0x438] sm:$0xff]   ;;  %v3172_v27 = vsel %vm3071_vm3, %v3163_v24, %v3171_v21 }
 0x264   : > { %v16160_v56 = vadd.f32 %v11774_v1, %v11773_v37  ;;  %v16163_v33 = vadd.f32 %v2590_v44, %v16022_v18  ;;  %v11776_v61 = vpop.f32.mrb[130].mxu1  ;;  %v13744_v43 = vpop.f32.mrb[130].mxu0  ;;  %4202 = vmatmul.mubr.bf16.gmra.mrb[160].mxu1 %v16099_v47  ;;  %v16170_v36 = vpack.c.bf16 %v3159_v26, %v3140_v0  ;;  %v2948_v44 = vrot.slane %v16059_v38, 4 }
 0x265   : > { %v16168_v58 = vadd.f32 %v13744_v43, %v2441_v29  ;;  %v11777_v54 = vpop.f32.mrb[131].mxu1  ;;  %v2593_v31 = vpop.f32.mrb[131].mxu0  ;;  %12168 = vmatpush3.bf16.msra.mxu0 %v14174_v3  ;;  %v3164_v29 = vsel %vm3071_vm3, %v15779_v48, %v3163_v24  ;;  %v16187_v3 = vmax.f32 %v16075_v19, 0.0  ;;  %v2457_v15 = vadd.f32 %v11772_v28, %v15954_v52 }
 0x266   : > { %v16174_v18 = vadd.f32 %v11777_v54, %v11776_v61  ;;  %v16176_v37 = vadd.f32 %v2593_v31, %v2433_v60  ;;  %12169 = vmatprep.subr.bf16.mxu0 %v14175_v50  ;;  %4209 = vmatprep.mubr.bf16.mxu1 %v16170_v36  ;;  %v16190_v31 = vpack.c.bf16 %v3172_v27, %v3164_v29  ;;  %v2880_v60 = vrot.slane %v16125_v30, 2 }
 0x267   : > { %19822 = vst [vmem:[#allocation27_spill] sm:$0xff] %v16187_v3  ;;  %v2881_v50 = vrot.slane %v16141_v20, 2  ;;  %v2947_v24 = vrot.slane %v16051_v40, 4  ;;  %v16199_v19 = vmax.f32 %v16089_v12, 0.0  ;;  %v2951_v52 = vsel %vm2926_vm4, %v2948_v44, %v16008_v4 }
 0x268   : > { %4355 = vmatmul.mubr.bf16.gmra.mrb[156].mxu0 %v16178_v14  ;;  %v3165_v21 = vrot.slane %v2880_v60, 6  ;;  %v3178_v29 = vrot.slane %v16187_v3, 6 }
 0x269   : > { %12170 = vmatpush3.bf16.msra.mxu0 %v14176_v22  ;;  %19823 = vst [vmem:[#allocation19_spill] sm:$0xff] %v16199_v19  ;;  %4362 = vmatprep.mubr.bf16.mxu0 %v16190_v31  ;;  %v2882_v34 = vsel %vm711_vm2, %v2880_v60, %v2881_v50  ;;  %v3173_v43 = vrot.slane %v2881_v50, 6  ;;  %v2949_v0 = vsel %vm2926_vm4, %v2947_v24, %v2948_v44  ;;  %v3115_v60 = vrot.slane %v2951_v52, 6 }
 0x26a   : > { %v11779_v51 = vpop.f32.mrb[132].mxu1  ;;  %v13747_v1 = vpop.f32.mrb[132].mxu0  ;;  %12171 = vmatprep.subr.bf16.mxu0 %v14177_v13  ;;  %v3166_v22 = vrot.slane %v2882_v34, 6  ;;  %v3097_v38 = vrot.slane %v2949_v0, 6  ;;  %v3186_v34 = vrot.slane %v16199_v19, 6  ;;  %v2462_v52 = vadd.f32 %v16160_v56, %v15960_v39 }
 0x26b   : > { %v16204_v28 = vadd.f32 %v13747_v1, %v2454_v10  ;;  %v11780_v61 = vpop.f32.mrb[133].mxu1  ;;  %v2606_v45 = vpop.f32.mrb[133].mxu0  ;;  %v3096_v1 = vrot.slane %v2947_v24, 6  ;;  %v2465_v56 = vadd.f32 %v16174_v18, %v15966_v62 }
 0x26c   : > { %v11781_v12 = vadd.f32 %v11780_v61, %v11779_v51  ;;  %v16208_v26 = vadd.f32 %v2606_v45, %v2446_v5  ;;  %v11782_v54 = vpop.f32.mrb[134].mxu1  ;;  %v13748_v49 = vpop.f32.mrb[134].mxu0  ;;  %4210 = vmatmul.mubr.bf16.gmra.mrb[164].mxu1 %v16143_v63  ;;  %v3167_v44 = vsel %vm3071_vm3, %v3165_v21, %v3166_v22  ;;  %v3174_v5 = vsel %vm3071_vm3, %v3166_v22, %v3173_v43 }
 0x26d   : > { %v16212_v13 = vadd.f32 %v13748_v49, %v2457_v15  ;;  %v11783_v10 = vpop.f32.mrb[135].mxu1  ;;  %v2609_v27 = vpop.f32.mrb[135].mxu0  ;;  %12172 = vmatpush3.bf16.msra.mxu0 %v14178_v6  ;;  %v16216_v51 = vpack.c.bf16 %v3174_v5, %v3167_v44  ;;  %v3098_v45 = vsel %vm3071_vm3, %v3096_v1, %v3097_v38  ;;  %v3116_v15 = vsel %vm3071_vm3, %v3097_v38, %v3115_v60 }
 0x26e   : > { %v11784_v50 = vadd.f32 %v11783_v10, %v11782_v54  ;;  %v16218_v61 = vadd.f32 %v2609_v27, %v2449_v35  ;;  %v2470_v24 = vadd.f32 %v11781_v12, %v15972_v17  ;;  %v16225_v6 = vpack.c.bf16 %v3116_v15, %v3098_v45 }
 0x26f   : > { %4217 = vmatprep.mubr.bf16.mxu1 %v16216_v51  ;;  %v3179_v21 = vsel %vm3071_vm3, %v15779_v48, %v3178_v29  ;;  %v3187_v35 = vsel %vm3071_vm3, %v3178_v29, %v3186_v34  ;;  %v2883_v54 = vrot.slane %v16187_v3, 2  ;;  %v2884_v17 = vrot.slane %v16199_v19, 2 }
 0x270   : > { %v2473_v38 = vadd.f32 %v11784_v50, %v15978_v2  ;;  %v2953_v12 = vrot.slane %v16086_v32, 4  ;;  %4363 = vmatmul.mubr.bf16.gmra.mrb[160].mxu0 %v16225_v6  ;;  %v16237_v49 = vpack.c.bf16 %v3187_v35, %v3179_v21  ;;  %v16244_v29 = vmax.f32 %v16119_v16, 0.0 }
 0x271   : > { %v2885_v44 = vsel %vm711_vm2, %v2883_v54, %v2884_v17  ;;  %v3180_v50 = vrot.slane %v2883_v54, 6  ;;  %v3188_v15 = vrot.slane %v2884_v17, 6  ;;  %v16254_v16 = vmax.f32 %v16136_v8, 0.0 }
 0x272   : > { %v11785_v43 = vpop.f32.mrb[136].mxu1  ;;  %v13751_v0 = vpop.f32.mrb[136].mxu0  ;;  %19824 = vst [vmem:[#allocation29_spill] sm:$0xff] %v16244_v29  ;;  %4370 = vmatprep.mubr.bf16.mxu0 %v16237_v49  ;;  %v3181_v45 = vrot.slane %v2885_v44, 6  ;;  %v2952_v21 = vrot.slane %v16072_v57, 4 }
 0x273   : > { %v16239_v22 = vadd.f32 %v13751_v0, %v2470_v24  ;;  %v11786_v10 = vpop.f32.mrb[137].mxu1  ;;  %v2622_v39 = vpop.f32.mrb[137].mxu0  ;;  %19825 = vst [vmem:[#allocation13_spill] sm:$0xff] %v16254_v16 }
 0x274   : > { %v11787_v2 = vadd.f32 %v11786_v10, %v11785_v43  ;;  %v16246_v27 = vadd.f32 %v2622_v39, %v2462_v52  ;;  %v11788_v1 = vpop.f32.mrb[138].mxu1  ;;  %v13752_v60 = vpop.f32.mrb[138].mxu0  ;;  %4218 = vmatmul.mubr.bf16.gmra.mrb[168].mxu1 %v16190_v31  ;;  %v3182_v52 = vsel %vm3071_vm3, %v3180_v50, %v3181_v45  ;;  %v3189_v35 = vsel %vm3071_vm3, %v3181_v45, %v3188_v15 }
 0x275   : > { %v16251_v5 = vadd.f32 %v13752_v60, %v2473_v38  ;;  %v11789_v62 = vpop.f32.mrb[139].mxu1  ;;  %v2625_v18 = vpop.f32.mrb[139].mxu0  ;;  %v2956_v43 = vsel %vm2926_vm4, %v2953_v12, %v16008_v4  ;;  %v2958_v38 = vrot.slane %v16141_v20, 4  ;;  %v16265_v54 = vpack.c.bf16 %v3189_v35, %v3182_v52 }
 0x276   : > { %v11790_v34 = vadd.f32 %v11789_v62, %v11788_v1  ;;  %v16256_v24 = vadd.f32 %v2625_v18, %v2465_v56  ;;  %v2954_v8 = vsel %vm2926_vm4, %v2952_v21, %v2953_v12  ;;  %v3141_v17 = vrot.slane %v2952_v21, 6 }
 0x277   : > { %v3142_v10 = vrot.slane %v2954_v8, 6  ;;  %v3160_v39 = vrot.slane %v2956_v43, 6  ;;  %v3193_v56 = vrot.slane %v16244_v29, 6  ;;  %v16270_v1 = vmax.f32 %v16129_v46, 0.0  ;;  %4225 = vmatprep.mubr.bf16.mxu1 %v16265_v54 }
 0x278   : > { %v3201_v60 = vrot.slane %v16254_v16, 6  ;;  %v2478_v45 = vadd.f32 %v11787_v2, %v15984_v42  ;;  %v2886_v15 = vrot.slane %v16244_v29, 2  ;;  %v2887_v52 = vrot.slane %v16254_v16, 2 }
 0x279   : > { %19826 = vst [vmem:[#allocation15_spill] sm:$0xff] %v16270_v1  ;;  %v3143_v12 = vsel %vm3071_vm3, %v3141_v17, %v3142_v10  ;;  %v3161_v62 = vsel %vm3071_vm3, %v3142_v10, %v3160_v39  ;;  %v3194_v18 = vsel %vm3071_vm3, %v15779_v48, %v3193_v56  ;;  %v16287_v17 = vmax.f32 %v16113_v11, 0.0 }
 0x27a   : > { %v11791_v44 = vpop.f32.mrb[140].mxu1  ;;  %v13755_v50 = vpop.f32.mrb[140].mxu0  ;;  %v16281_v35 = vpack.c.bf16 %v3161_v62, %v3143_v12  ;;  %v3202_v43 = vsel %vm3071_vm3, %v3193_v56, %v3201_v60  ;;  %v2888_v39 = vsel %vm711_vm2, %v2886_v15, %v2887_v52  ;;  %v3203_v20 = vrot.slane %v2887_v52, 6 }
 0x27b   : > { %v11792_v21 = vpop.f32.mrb[141].mxu1  ;;  %v2638_v46 = vpop.f32.mrb[141].mxu0  ;;  %19827 = vst [vmem:[#allocation22_spill] sm:$0xff] %v16287_v17  ;;  %v16289_v10 = vpack.c.bf16 %v3202_v43, %v3194_v18  ;;  %v3195_v60 = vrot.slane %v2886_v15, 6  ;;  %v2481_v11 = vadd.f32 %v11790_v34, %v15990_v23  ;;  %v2957_v18 = vrot.slane %v16125_v30, 4 }
 0x27c   : > { %v11793_v8 = vadd.f32 %v11792_v21, %v11791_v44  ;;  %v16284_v0 = vadd.f32 %v2638_v46, %v2478_v45  ;;  %v11794_v42 = vpop.f32.mrb[142].mxu1  ;;  %v13756_v2 = vpop.f32.mrb[142].mxu0  ;;  %4226 = vmatmul.mubr.bf16.gmra.mrb[172].mxu1 %v16237_v49  ;;  %4371 = vmatmul.mubr.bf16.gmra.mrb[164].mxu0 %v16281_v35  ;;  %v3196_v44 = vrot.slane %v2888_v39, 6  ;;  %v2961_v21 = vsel %vm2926_vm4, %v2958_v38, %v16008_v4 }
 0x27d   : > { %19828 = vst [vmem:[#allocation32_spill] sm:$0xff] %v16289_v10  ;;  %v11795_v32 = vpop.f32.mrb[143].mxu1  ;;  %v2641_v12 = vpop.f32.mrb[143].mxu0  ;;  %4378 = vmatprep.mubr.bf16.mxu0 %v16289_v10  ;;  %v3208_v23 = vrot.slane %v16287_v17, 6  ;;  %v16407_v30 = vmax.f32 %v16212_v13, 0.0 }
 0x27e   : > { %v2486_v56 = vadd.f32 %v11793_v8, %v15996_v9  ;;  %v11796_v45 = vadd.f32 %v11795_v32, %v11794_v42  ;;  %v3197_v52 = vsel %vm3071_vm3, %v3195_v60, %v3196_v44  ;;  %v3204_v9 = vsel %vm3071_vm3, %v3196_v44, %v3203_v20 }
 0x27f   : > { %v16306_v32 = vpack.c.bf16 %v3204_v9, %v3197_v52  ;;  %v16308_v43 = vadd.f32 %v2641_v12, %v2481_v11  ;;  %v2959_v8 = vsel %vm2926_vm4, %v2957_v18, %v2958_v38  ;;  %v3168_v42 = vrot.slane %v2957_v18, 6  ;;  %19843 = vst [vmem:[#allocation43_spill] sm:$0xff] %v16407_v30 }
 0x280   : > { %v16301_v46 = vadd.f32 %v13755_v50, %v2486_v56  ;;  %v2489_v15 = vadd.f32 %v11796_v45, %v16002_v41  ;;  %v3169_v39 = vrot.slane %v2959_v8, 6  ;;  %v3175_v50 = vrot.slane %v2961_v21, 6 }
 0x281   : > { %v16315_v56 = vmax.f32 %v16163_v33, 0.0  ;;  %v16318_v20 = vmax.f32 %v16176_v37, 0.0  ;;  %4233 = vmatprep.mubr.bf16.mxu1 %v16306_v32  ;;  %v3216_v41 = vrot.slane %v16270_v1, 6  ;;  %v2889_v12 = vrot.slane %v16287_v17, 2 }
 0x282   : > { %v16312_v34 = vadd.f32 %v13756_v2, %v2489_v15  ;;  %v2968_v38 = vrot.slane %v16254_v16, 4  ;;  %v3170_v2 = vsel %vm3071_vm3, %v3168_v42, %v3169_v39  ;;  %v3176_v60 = vsel %vm3071_vm3, %v3169_v39, %v3175_v50 }
 0x283   : > { %19829 = vst [vmem:[#allocation33_spill] sm:$0xff] %v16315_v56  ;;  %19830 = vst [vmem:[#allocation34_spill] sm:$0xff] %v16318_v20  ;;  %v2890_v44 = vrot.slane %v16270_v1, 2  ;;  %v16327_v45 = vpack.c.bf16 %v3176_v60, %v3170_v2  ;;  %v3209_v33 = vsel %vm3071_vm3, %v15779_v48, %v3208_v23  ;;  %v3217_v37 = vsel %vm3071_vm3, %v3208_v23, %v3216_v41 }
 0x284   : > { %4234 = vmatmul.mubr.bf16.gmra.mrb[176].mxu1 %v16289_v10  ;;  %v3210_v11 = vrot.slane %v2889_v12, 6  ;;  %v16333_v18 = vpack.c.bf16 %v3217_v37, %v3209_v33  ;;  %v2962_v9 = vrot.slane %v16187_v3, 4  ;;  %v19832_v8 = vrot.slane %v16199_v19, 4 }
 0x285   : > { %v2891_v21 = vsel %vm711_vm2, %v2889_v12, %v2890_v44  ;;  %v3218_v52 = vrot.slane %v2890_v44, 6  ;;  %4379 = vmatmul.mubr.bf16.gmra.mrb[168].mxu0 %v16327_v45  ;;  %v3223_v23 = vrot.slane %v16315_v56, 6  ;;  %v3231_v39 = vrot.slane %v16318_v20, 6 }
 0x286   : > { %19831 = vst [vmem:[#allocation35_spill] sm:$0xff] %v16333_v18  ;;  %v3211_v15 = vrot.slane %v2891_v21, 6  ;;  %v2966_v42 = vsel %vm2926_vm4, %v19832_v8, %v16008_v4  ;;  %v16345_v50 = vmax.f32 %v16155_v55, 0.0  ;;  %4386 = vmatprep.mubr.bf16.mxu0 %v16333_v18  ;;  %v19834_v41 = vmov %v19832_v8 }
 0x287   : > { %v2964_v12 = vsel %vm2926_vm4, %v2962_v9, %v19834_v41  ;;  %v3190_v2 = vrot.slane %v2966_v42, 6  ;;  %v2892_v60 = vrot.slane %v16315_v56, 2  ;;  %v3183_v37 = vrot.slane %v2962_v9, 6 }
 0x288   : > { %19833 = vst [vmem:[#allocation36_spill] sm:$0xff] %v16345_v50  ;;  %v3212_v44 = vsel %vm3071_vm3, %v3210_v11, %v3211_v15  ;;  %v3219_v33 = vsel %vm3071_vm3, %v3211_v15, %v3218_v52  ;;  %v3184_v21 = vrot.slane %v2964_v12, 6  ;;  %v16355_v8 = vmax.f32 %v16168_v58, 0.0 }
 0x289   : > { %v16357_v55 = vpack.c.bf16 %v3219_v33, %v3212_v44  ;;  %v3232_v62 = vsel %vm3071_vm3, %v3223_v23, %v3231_v39  ;;  %v2893_v16 = vrot.slane %v16318_v20, 2  ;;  %v3224_v11 = vsel %vm3071_vm3, %v15779_v48, %v3223_v23 }
 0x28a   : > { %19835 = vst [vmem:[#allocation37_spill] sm:$0xff] %v16355_v8  ;;  %v3185_v41 = vsel %vm3071_vm3, %v3183_v37, %v3184_v21  ;;  %v3191_v42 = vsel %vm3071_vm3, %v3184_v21, %v3190_v2  ;;  %v2967_v52 = vrot.slane %v16244_v29, 4  ;;  %v3225_v9 = vrot.slane %v2892_v60, 6 }
 0x28b   : > { %19836 = vst [vmem:[#allocation38_spill] sm:$0xff] %v16357_v55  ;;  %4241 = vmatprep.mubr.bf16.mxu1 %v16357_v55  ;;  %v2894_v58 = vsel %vm711_vm2, %v2892_v60, %v2893_v16  ;;  %v3233_v15 = vrot.slane %v2893_v16, 6  ;;  %v2971_v39 = vsel %vm2926_vm4, %v2968_v38, %v16008_v4  ;;  %v16370_v12 = vpack.c.bf16 %v3191_v42, %v3185_v41 }
 0x28c   : > { %v16372_v44 = vpack.c.bf16 %v3232_v62, %v3224_v11  ;;  %4242 = vmatmul.mubr.bf16.gmra.mrb[180].mxu1 %v16333_v18  ;;  %v3226_v2 = vrot.slane %v2894_v58, 6  ;;  %v2969_v23 = vsel %vm2926_vm4, %v2967_v52, %v2968_v38  ;;  %v3198_v33 = vrot.slane %v2967_v52, 6 }
 0x28d   : > { %v3199_v37 = vrot.slane %v2969_v23, 6  ;;  %v3205_v21 = vrot.slane %v2971_v39, 6  ;;  %v2895_v29 = vrot.slane %v16345_v50, 2  ;;  %4387 = vmatmul.mubr.bf16.gmra.mrb[172].mxu0 %v16370_v12  ;;  %v3246_v41 = vrot.slane %v16355_v8, 6 }
 0x28e   : > { %19837 = vst [vmem:[#allocation39_spill] sm:$0xff] %v16372_v44  ;;  %v3227_v16 = vsel %vm3071_vm3, %v3225_v9, %v3226_v2  ;;  %v3234_v60 = vsel %vm3071_vm3, %v3226_v2, %v3233_v15  ;;  %v2896_v62 = vrot.slane %v16355_v8, 2  ;;  %v16383_v42 = vmax.f32 %v16208_v26, 0.0  ;;  %4394 = vmatprep.mubr.bf16.mxu0 %v16372_v44 }
 0x28f   : > { %v16386_v38 = vmax.f32 %v16218_v61, 0.0  ;;  %v16389_v11 = vpack.c.bf16 %v3234_v60, %v3227_v16  ;;  %v3200_v52 = vsel %vm3071_vm3, %v3198_v33, %v3199_v37  ;;  %v3238_v58 = vrot.slane %v16345_v50, 6 }
 0x290   : > { %19838 = vst [vmem:[#allocation40_spill] sm:$0xff] %v16383_v42  ;;  %v2897_v9 = vsel %vm711_vm2, %v2895_v29, %v2896_v62  ;;  %v2972_v15 = vrot.slane %v16287_v17, 4  ;;  %v3206_v26 = vsel %vm3071_vm3, %v3199_v37, %v3205_v21  ;;  %v3240_v39 = vrot.slane %v2895_v29, 6 }
 0x291   : > { %19839 = vst [vmem:[#allocation41_spill] sm:$0xff] %v16386_v38  ;;  %19840 = vst [vmem:[#allocation42_spill] sm:$0xff] %v16389_v11  ;;  %4249 = vmatprep.mubr.bf16.mxu1 %v16389_v11  ;;  %v3241_v2 = vrot.slane %v2897_v9, 6  ;;  %v3248_v61 = vrot.slane %v2896_v62, 6  ;;  %v3247_v23 = vsel %vm3071_vm3, %v3238_v58, %v3246_v41  ;;  %v19841_v16 = vrot.slane %v16270_v1, 4 }
 0x292   : > { %v2978_v17 = vrot.slane %v16318_v20, 4  ;;  %v16411_v21 = vpack.c.bf16 %v3206_v26, %v3200_v52  ;;  %v3239_v41 = vsel %vm3071_vm3, %v15779_v48, %v3238_v58  ;;  %v2898_v9 = vrot.slane %v16383_v42, 2 }
 0x293   : > { %v2974_v60 = vsel %vm2926_vm4, %v2972_v15, %v19841_v16  ;;  %v19842_v33 = vmov %v19841_v16  ;;  %v3242_v29 = vsel %vm3071_vm3, %v3240_v39, %v3241_v2  ;;  %v3249_v37 = vsel %vm3071_vm3, %v3241_v2, %v3248_v61 }
 0x294   : > { %v2976_v19 = vsel %vm2926_vm4, %v19842_v33, %v16008_v4  ;;  %4250 = vmatmul.mubr.bf16.gmra.mrb[184].mxu1 %v16372_v44  ;;  %v16416_v62 = vpack.c.bf16 %v3249_v37, %v3242_v29  ;;  %v16419_v16 = vpack.c.bf16 %v3247_v23, %v3239_v41  ;;  %v3214_v33 = vrot.slane %v2974_v60, 6  ;;  %v16433_v60 = vpop.f32.mrb[144].mxu1 }
 0x295   : > { %v3220_v13 = vrot.slane %v2976_v19, 6  ;;  %v2899_v20 = vrot.slane %v16386_v38, 2  ;;  %v2983_v39 = vrot.slane %v16355_v8, 4  ;;  %v16424_v52 = vmax.f32 %v16204_v28, 0.0  ;;  %4395 = vmatmul.mubr.bf16.gmra.mrb[176].mxu0 %v16411_v21  ;;  %v16438_v8 = vpop.f32.mrb[145].mxu1 }
 0x296   : > { %19844 = vst [vmem:[#allocation44_spill] sm:$0xff] %v16416_v62  ;;  %19845 = vst [vmem:[#allocation45_spill] sm:$0xff] %v16419_v16  ;;  %4257 = vmatprep.mubr.bf16.mxu1 %v16416_v62  ;;  %v3261_v58 = vrot.slane %v16386_v38, 6  ;;  %v2977_v26 = vrot.slane %v16315_v56, 4  ;;  %4402 = vmatprep.mubr.bf16.mxu0 %v16419_v16  ;;  %v3213_v2 = vrot.slane %v2972_v15, 6  ;;  %v3253_v19 = vrot.slane %v16383_v42, 6 }
 0x297   : > { %v2900_v61 = vsel %vm711_vm2, %v2898_v9, %v2899_v20  ;;  %v3263_v23 = vrot.slane %v2899_v20, 6  ;;  %v3255_v28 = vrot.slane %v2898_v9, 6  ;;  %v2981_v41 = vsel %vm2926_vm4, %v2978_v17, %v16008_v4  ;;  %v16446_v40 = vpop.f32.mrb[146].mxu1 }
 0x298   : > { %v3256_v29 = vrot.slane %v2900_v61, 6  ;;  %v2979_v37 = vsel %vm2926_vm4, %v2977_v26, %v2978_v17  ;;  %v16441_v1 = vmax.f32 %v16246_v27, 0.0  ;;  %v3215_v15 = vsel %vm3071_vm3, %v3213_v2, %v3214_v33  ;;  %v16452_v56 = vpop.f32.mrb[147].mxu1 }
 0x299   : > { %v3221_v3 = vsel %vm3071_vm3, %v3214_v33, %v3220_v13  ;;  %v2902_v20 = vrot.slane %v16407_v30, 2  ;;  %v3262_v9 = vsel %vm3071_vm3, %v3253_v19, %v3261_v58  ;;  %v2901_v17 = vrot.slane %v16424_v52, 2 }
 0x29a   : > { %v3257_v61 = vsel %vm3071_vm3, %v3255_v28, %v3256_v29  ;;  %v3264_v57 = vsel %vm3071_vm3, %v3256_v29, %v3263_v23  ;;  %v16455_v27 = vmax.f32 %v16256_v24, 0.0  ;;  %v3229_v33 = vrot.slane %v2979_v37, 6 }
 0x29b   : > { %v16457_v2 = vpack.c.bf16 %v3264_v57, %v3257_v61  ;;  %v3235_v13 = vrot.slane %v2981_v41, 6  ;;  %v16459_v62 = vpack.c.bf16 %v3221_v3, %v3215_v15  ;;  %v3254_v58 = vsel %vm3071_vm3, %v15779_v48, %v3253_v19 }
 0x29c   : > { %19846 = vst [vmem:[#allocation46_spill] sm:$0xff] %v16455_v27  ;;  %4258 = vmatmul.mubr.bf16.gmra.mrb[188].mxu1 %v16419_v16  ;;  %v2903_v23 = vsel %vm711_vm2, %v2901_v17, %v2902_v20  ;;  %v3278_v28 = vrot.slane %v2902_v20, 6  ;;  %v16465_v29 = vpack.c.bf16 %v3262_v9, %v3254_v58  ;;  %v3228_v24 = vrot.slane %v2977_v26, 6  ;;  %v16477_v9 = vpop.f32.mrb[148].mxu1 }
 0x29d   : > { %19847 = vst [vmem:[#allocation47_spill] sm:$0xff] %v16457_v2  ;;  %4265 = vmatprep.mubr.bf16.mxu1 %v16457_v2  ;;  %v3271_v44 = vrot.slane %v2903_v23, 6  ;;  %4403 = vmatmul.mubr.bf16.gmra.mrb[180].mxu0 %v16459_v62  ;;  %v3268_v57 = vrot.slane %v16424_v52, 6  ;;  %v3276_v3 = vrot.slane %v16407_v30, 6  ;;  %v3270_v37 = vrot.slane %v2901_v17, 6 }
 0x29e   : > { %19848 = vst [vmem:[#allocation48_spill] sm:$0xff] %v16465_v29  ;;  %v2982_v19 = vrot.slane %v16345_v50, 4  ;;  %4410 = vmatprep.mubr.bf16.mxu0 %v16465_v29  ;;  %v3230_v41 = vsel %vm3071_vm3, %v3228_v24, %v3229_v33  ;;  %v3236_v15 = vsel %vm3071_vm3, %v3229_v33, %v3235_v13  ;;  %v2904_v20 = vrot.slane %v16441_v1, 2  ;;  %v11844_v50 = vpop.f32.mrb[149].mxu1 }
 0x29f   : > { %v2905_v26 = vrot.slane %v16455_v27, 2  ;;  %v3272_v61 = vsel %vm3071_vm3, %v3270_v37, %v3271_v44  ;;  %v3279_v58 = vsel %vm3071_vm3, %v3271_v44, %v3278_v28  ;;  %v2986_v23 = vsel %vm2926_vm4, %v2983_v39, %v16008_v4  ;;  %v16485_v2 = vpop.f32.mrb[150].mxu1 }
 0x2a0   : > { %v2984_v17 = vsel %vm2926_vm4, %v2982_v19, %v2983_v39  ;;  %v16488_v33 = vmax.f32 %v16239_v22, 0.0  ;;  %v16491_v13 = vmax.f32 %v16251_v5, 0.0  ;;  %v3277_v37 = vsel %vm3071_vm3, %v3268_v57, %v3276_v3  ;;  %v16494_v16 = vpop.f32.mrb[151].mxu1 }
 0x2a1   : > { %v2906_v24 = vsel %vm711_vm2, %v2904_v20, %v2905_v26  ;;  %v16496_v44 = vpack.c.bf16 %v3236_v15, %v3230_v41  ;;  %v16498_v28 = vpack.c.bf16 %v3279_v58, %v3272_v61  ;;  %v3244_v39 = vrot.slane %v2984_v17, 6 }
 0x2a2   : > { %19849 = vst [vmem:[#allocation49_spill] sm:$0xff] %v16491_v13  ;;  %v3250_v11 = vrot.slane %v2986_v23, 6  ;;  %v3269_v18 = vsel %vm3071_vm3, %v15779_v48, %v3268_v57  ;;  %v3291_v22 = vrot.slane %v16455_v27, 6  ;;  %v3286_v55 = vrot.slane %v2906_v24, 6 }
 0x2a3   : > { %19850 = vst [vmem:[#allocation50_spill] sm:$0xff] %v16498_v28  ;;  %v3293_v5 = vrot.slane %v2905_v26, 6  ;;  %v16504_v10 = vpack.c.bf16 %v3277_v37, %v3269_v18  ;;  %v3243_v3 = vrot.slane %v2982_v19, 6  ;;  %v2988_v41 = vrot.slane %v16386_v38, 4 }
 0x2a4   : > { %4266 = vmatmul.mubr.bf16.gmra.mrb[192].mxu1 %v16465_v29  ;;  %v3283_v15 = vrot.slane %v16441_v1, 6  ;;  %v3285_v61 = vrot.slane %v2904_v20, 6  ;;  %v2908_v57 = vrot.slane %v16491_v13, 2  ;;  %v3251_v26 = vsel %vm3071_vm3, %v3244_v39, %v3250_v11 }
 0x2a5   : > { %4273 = vmatprep.mubr.bf16.mxu1 %v16498_v28  ;;  %4411 = vmatmul.mubr.bf16.gmra.mrb[184].mxu0 %v16496_v44  ;;  %v3245_v58 = vsel %vm3071_vm3, %v3243_v3, %v3244_v39  ;;  %v2907_v18 = vrot.slane %v16488_v33, 2  ;;  %v3294_v23 = vsel %vm3071_vm3, %v3286_v55, %v3293_v5  ;;  %v2987_v24 = vrot.slane %v16383_v42, 4 }
 0x2a6   : > { %4418 = vmatprep.mubr.bf16.mxu0 %v16504_v10  ;;  %v3292_v17 = vsel %vm3071_vm3, %v3283_v15, %v3291_v22  ;;  %v3287_v19 = vsel %vm3071_vm3, %v3285_v61, %v3286_v55  ;;  %v2993_v20 = vrot.slane %v16407_v30, 4  ;;  %v16521_v37 = vmax.f32 %v16301_v46, 0.0 }
 0x2a7   : > { %v2909_v38 = vsel %vm711_vm2, %v2907_v18, %v2908_v57  ;;  %v16525_v3 = vmax.f32 %v16312_v34, 0.0  ;;  %v3284_v11 = vsel %vm3071_vm3, %v15779_v48, %v3283_v15  ;;  %v2989_v39 = vsel %vm2926_vm4, %v2987_v24, %v2988_v41 }
 0x2a8   : > { %v2991_v55 = vsel %vm2926_vm4, %v2988_v41, %v16008_v4  ;;  %v16532_v22 = vpack.c.bf16 %v3251_v26, %v3245_v58  ;;  %v16534_v5 = vpack.c.bf16 %v3292_v17, %v3284_v11  ;;  %v16536_v61 = vpack.c.bf16 %v3294_v23, %v3287_v19 }
 0x2a9   : > { %v3298_v46 = vrot.slane %v16488_v33, 6  ;;  %v3306_v34 = vrot.slane %v16491_v13, 6  ;;  %v3301_v30 = vrot.slane %v2909_v38, 6  ;;  %v3308_v42 = vrot.slane %v2908_v57, 6 }
 0x2aa   : > { %v3258_v15 = vrot.slane %v2987_v24, 6  ;;  %v3259_v28 = vrot.slane %v2989_v39, 6  ;;  %v3265_v29 = vrot.slane %v2991_v55, 6  ;;  %v2992_v41 = vrot.slane %v16424_v52, 4 }
 0x2ab   : > { %v3300_v58 = vrot.slane %v2907_v18, 6  ;;  %v2996_v26 = vsel %vm2926_vm4, %v2993_v20, %v16008_v4  ;;  %v3328_v17 = vrot.slane %v16521_v37, 6  ;;  %v3336_v19 = vrot.slane %v16525_v3, 6 }
 0x2ac   : > { %4274 = vmatmul.mubr.bf16.gmra.mrb[196].mxu1 %v16504_v10  ;;  %v2994_v38 = vsel %vm2926_vm4, %v2992_v41, %v2993_v20  ;;  %v16552_v57 = vadd.f32 %v16438_v8, %v16433_v60  ;;  %v16556_v23 = vadd.f32 %v16452_v56, %v16446_v40  ;;  %v16559_v18 = vadd.f32 %v11844_v50, %v16477_v9 }
 0x2ad   : > { %4281 = vmatprep.mubr.bf16.mxu1 %v16536_v61  ;;  %4419 = vmatmul.mubr.bf16.gmra.mrb[188].mxu0 %v16532_v22  ;;  %v3302_v24 = vsel %vm3071_vm3, %v3300_v58, %v3301_v30  ;;  %v3309_v11 = vsel %vm3071_vm3, %v3301_v30, %v3308_v42  ;;  %v3329_v39 = vsel %vm3071_vm3, %v15779_v48, %v3328_v17  ;;  %v16567_v55 = vmax.f32 %v16308_v43, 0.0 }
 0x2ae   : > { %4426 = vmatprep.mubr.bf16.mxu0 %v16534_v5  ;;  %v3337_v20 = vsel %vm3071_vm3, %v3328_v17, %v3336_v19  ;;  %v3260_v8 = vsel %vm3071_vm3, %v3258_v15, %v3259_v28  ;;  %v3266_v40 = vsel %vm3071_vm3, %v3259_v28, %v3265_v29  ;;  %v3307_v50 = vsel %vm3071_vm3, %v3298_v46, %v3306_v34 }
 0x2af   : > { %19851 = vst [vmem:[#allocation51_spill] sm:$0xff] %v16567_v55  ;;  %v16571_v56 = vpack.c.bf16 %v3337_v20, %v3329_v39  ;;  %v3274_v60 = vrot.slane %v2994_v38, 6  ;;  %v3280_v9 = vrot.slane %v2996_v26, 6  ;;  %v16575_v30 = vmax.f32 %v16284_v0, 0.0 }
 0x2b0   : > { %v16577_v42 = vpack.c.bf16 %v3309_v11, %v3302_v24  ;;  %v16581_v58 = vadd.f32 %v16494_v16, %v16485_v2  ;;  %v16583_v43 = vpack.c.bf16 %v3266_v40, %v3260_v8  ;;  %v3299_v29 = vsel %vm3071_vm3, %v15779_v48, %v3298_v46 }
 0x2b1   : > { %v3273_v28 = vrot.slane %v2992_v41, 6  ;;  %v2998_v34 = vrot.slane %v16455_v27, 4  ;;  %v16589_v15 = vpack.c.bf16 %v3307_v50, %v3299_v29  ;;  %v3321_v0 = vrot.slane %v16567_v55, 6 }
 0x2b2   : > { %v3281_v2 = vsel %vm3071_vm3, %v3274_v60, %v3280_v9  ;;  %v3313_v46 = vrot.slane %v16575_v30, 6  ;;  %v3014_v41 = vrot.slane %v16521_v37, 2  ;;  %v3015_v26 = vrot.slane %v16525_v3, 2 }
 0x2b3   : > { %v3275_v16 = vsel %vm3071_vm3, %v3273_v28, %v3274_v60  ;;  %v2997_v17 = vrot.slane %v16441_v1, 4  ;;  %v3024_v19 = vrot.slane %v16521_v37, 4  ;;  %v3025_v38 = vrot.slane %v16525_v3, 4 }
 0x2b4   : > { %4282 = vmatmul.mubr.bf16.gmra.mrb[200].mxu1 %v16534_v5  ;;  %v16603_v24 = vpack.c.bf16 %v3281_v2, %v3275_v16  ;;  %v3322_v11 = vsel %vm3071_vm3, %v3313_v46, %v3321_v0  ;;  %v3001_v39 = vsel %vm2926_vm4, %v2998_v34, %v16008_v4  ;;  %v3016_v20 = vsel %vm711_vm2, %v3014_v41, %v3015_v26 }
 0x2b5   : > { %4289 = vmatprep.mubr.bf16.mxu1 %v16577_v42  ;;  %4427 = vmatmul.mubr.bf16.gmra.mrb[192].mxu0 %v16583_v43  ;;  %v2999_v8 = vsel %vm2926_vm4, %v2997_v17, %v2998_v34  ;;  %v3330_v40 = vrot.slane %v3014_v41, 6  ;;  %v3331_v50 = vrot.slane %v3016_v20, 6  ;;  %v3338_v60 = vrot.slane %v3015_v26, 6 }
 0x2b6   : > { %4434 = vmatprep.mubr.bf16.mxu0 %v16589_v15  ;;  %v3314_v9 = vsel %vm3071_vm3, %v15779_v48, %v3313_v46  ;;  %v3026_v29 = vsel %vm2926_vm4, %v3024_v19, %v3025_v38  ;;  %v3028_v28 = vsel %vm2926_vm4, %v3025_v38, %v16008_v4  ;;  %v3333_v16 = vrot.slane %v3024_v19, 6 }
 0x2b7   : > { %v3332_v0 = vsel %vm3071_vm3, %v3330_v40, %v3331_v50  ;;  %v3339_v2 = vsel %vm3071_vm3, %v3331_v50, %v3338_v60  ;;  %v3334_v27 = vrot.slane %v3026_v29, 6  ;;  %v3340_v34 = vrot.slane %v3028_v28, 6 }
 0x2b8   : > { %v16618_v41 = vpack.c.bf16 %v3322_v11, %v3314_v9  ;;  %v3289_v26 = vrot.slane %v2999_v8, 6  ;;  %v3295_v48 = vrot.slane %v3001_v39, 6  ;;  %v16621_v46 = vpack.c.bf16 %v3339_v2, %v3332_v0  ;;  %v14179_v9 = vld [vmem:[#allocation6 + $0x448] sm:$0xff]  }
 0x2b9   : > { %v3003_v20 = vrot.slane %v16491_v13, 4  ;;  %v3335_v19 = vsel %vm3071_vm3, %v3333_v16, %v3334_v27  ;;  %v3341_v38 = vsel %vm3071_vm3, %v3334_v27, %v3340_v34  ;;  %v3288_v40 = vrot.slane %v2997_v17, 6  ;;  %v14406_v27 = vld [vmem:[#allocation6 + $0x440] sm:$0xff]   ;;  %v14180_v16 = vld [vmem:[#allocation6 + $0x450] sm:$0xff]  }
 0x2ba   : > { %v16628_v50 = vpack.c.bf16 %v3341_v38, %v3335_v19  ;;  %v3002_v11 = vrot.slane %v16488_v33, 4  ;;  %v3296_v39 = vsel %vm3071_vm3, %v3289_v26, %v3295_v48  ;;  %v14183_v48 = vld [vmem:[#allocation6 + $0x468] sm:$0xff]   ;;  %v14187_v19 = vld [vmem:[#allocation6 + $0x480] sm:$0xff]  }
 0x2bb   : > { %v3006_v60 = vsel %vm2926_vm4, %v3003_v20, %v16008_v4  ;;  %v19860_v38 = vld [vmem:[#allocation48_spill] sm:$0xff] }
 0x2bc   : > { %4290 = vmatmul.mubr.bf16.gmra.mrb[204].mxu1 %v16589_v15  ;;  %v3004_v8 = vsel %vm2926_vm4, %v3002_v11, %v3003_v20  ;;  %v3310_v28 = vrot.slane %v3006_v60, 6  ;;  %v3303_v0 = vrot.slane %v3002_v11, 6  ;;  %v14185_v20 = vld [vmem:[#allocation6 + $0x478] sm:$0xff]   ;;  %v3020_v11 = vrot.slane %v16567_v55, 4  ;;  %v14189_v60 = vld [vmem:[#allocation6 + $0x488] sm:$0xff]  }
 0x2bd   : > { %4491 = vmatprep.mubr.bf16.mxu1 %v16131_v53  ;;  %4435 = vmatmul.mubr.bf16.gmra.mrb[196].mxu0 %v16603_v24  ;;  %v3290_v53 = vsel %vm3071_vm3, %v3288_v40, %v3289_v26  ;;  %v3304_v17 = vrot.slane %v3004_v8, 6  ;;  %v19861_v40 = vld [vmem:[#allocation50_spill] sm:$0xff] }
 0x2be   : > { %4442 = vmatprep.mubr.bf16.mxu0 %v16618_v41  ;;  %v16636_v29 = vpack.c.bf16 %v3296_v39, %v3290_v53  ;;  %v3012_v53 = vrot.slane %v16567_v55, 2  ;;  %v3019_v39 = vrot.slane %v16575_v30, 4  ;;  %v14188_v8 = vld [vmem:[#allocation6 + $0x4c8] sm:$0xff]  }
 0x2bf   : > { %v3305_v2 = vsel %vm3071_vm3, %v3303_v0, %v3304_v17  ;;  %v3311_v34 = vsel %vm3071_vm3, %v3304_v17, %v3310_v28  ;;  %v3023_v28 = vsel %vm2926_vm4, %v3020_v11, %v16008_v4 }
 0x2c0   : > { %v16644_v26 = vpack.c.bf16 %v3311_v34, %v3305_v2  ;;  %v3021_v17 = vsel %vm2926_vm4, %v3019_v39, %v3020_v11 }
 0x2c4   : > { %4492 = vmatmul.mubr.bf16.vlgmr.msra.gmra.mrb[208].mxu1 %v16067_v25  ;;  %v14181_v25 = vld [vmem:[#allocation6 + $0x458] sm:$0xff]  }
 0x2c5   : > { %4499 = vmatprep.mubr.bf16.mxu1 %v16178_v14  ;;  %13758 = vmatpush3.bf16.msra.mxu1 %v14406_v27  ;;  %v14182_v14 = vld [vmem:[#allocation6 + $0x460] sm:$0xff]  }
 0x2c6   : > { %4443 = vmatmul.mubr.bf16.gmra.mrb[200].mxu0 %v16636_v29  ;;  %13759 = vmatprep.subr.bf16.mxu1 %v14179_v9  ;;  %v16694_v27 = vld [vmem:[#allocation8 + $0x1] ss:$0 sm:$0xff] }
 0x2c7   : > { %4450 = vmatprep.mubr.bf16.mxu0 %v16571_v56  ;;  %v4172_v2 = vadd.f32 %v16552_v57, %v16694_v27  ;;  %v3318_v57 = vrot.slane %v3019_v39, 6 }
 0x2c9   : > { %13760 = vmatpush3.bf16.msra.mxu1 %v14179_v9  ;;  %v3011_v9 = vrot.slane %v16575_v30, 2 }
 0x2ca   : > { %13761 = vmatprep.subr.bf16.mxu1 %v14180_v16 }
 0x2cc   : > { %4500 = vmatmul.mubr.bf16.gmra.mrb[212].mxu1 %v16083_v7  ;;  %v14184_v7 = vld [vmem:[#allocation6 + $0x470] sm:$0xff]  }
 0x2cd   : > { %4507 = vmatprep.mubr.bf16.mxu1 %v16225_v6  ;;  %13762 = vmatpush3.bf16.msra.mxu1 %v14180_v16 }
 0x2ce   : > { %4451 = vmatmul.mubr.bf16.gmra.mrb[204].mxu0 %v16644_v26  ;;  %13763 = vmatprep.subr.bf16.mxu1 %v14181_v25 }
 0x2cf   : > { %4652 = vmatprep.mubr.bf16.mxu0 %v16115_v59 }
 0x2d1   : > { %13764 = vmatpush3.bf16.msra.mxu1 %v14181_v25 }
 0x2d2   : > { %13765 = vmatprep.subr.bf16.mxu1 %v14182_v14 }
 0x2d4   : > { %4508 = vmatmul.mubr.bf16.gmra.mrb[216].mxu1 %v16115_v59  ;;  %v19853_v59 = vld [vmem:[#allocation38_spill] sm:$0xff] }
 0x2d5   : > { %4515 = vmatprep.mubr.bf16.mxu1 %v16281_v35  ;;  %13766 = vmatpush3.bf16.msra.mxu1 %v14182_v14  ;;  %v3319_v14 = vrot.slane %v3021_v17, 6 }
 0x2d6   : > { %4653 = vmatmul.mubr.bf16.vlgmr.msra.gmra.mrb[208].mxu0 %v16099_v47  ;;  %13767 = vmatprep.subr.bf16.mxu1 %v14183_v48  ;;  %v19852_v47 = vld [vmem:[#allocation32_spill] sm:$0xff] }
 0x2d7   : > { %4660 = vmatprep.mubr.bf16.mxu0 %v16170_v36 }
 0x2d9   : > { %13768 = vmatpush3.bf16.msra.mxu1 %v14183_v48  ;;  %v3325_v48 = vrot.slane %v3023_v28, 6 }
 0x2da   : > { %13769 = vmatprep.subr.bf16.mxu1 %v14184_v7 }
 0x2dc   : > { %4516 = vmatmul.mubr.bf16.gmra.mrb[220].mxu1 %v16170_v36  ;;  %v19855_v36 = vld [vmem:[#allocation42_spill] sm:$0xff] }
 0x2dd   : > { %4523 = vmatprep.mubr.bf16.mxu1 %v16327_v45  ;;  %13770 = vmatpush3.bf16.msra.mxu1 %v14184_v7  ;;  %v4175_v7 = vadd.f32 %v16556_v23, %v16694_v27  ;;  %v3320_v23 = vsel %vm3071_vm3, %v3318_v57, %v3319_v14 }
 0x2de   : > { %4661 = vmatmul.mubr.bf16.gmra.mrb[212].mxu0 %v16143_v63  ;;  %13771 = vmatprep.subr.bf16.mxu1 %v14185_v20  ;;  %v19854_v63 = vld [vmem:[#allocation35_spill] sm:$0xff] }
 0x2df   : > { %4668 = vmatprep.mubr.bf16.mxu0 %v16216_v51 }
 0x2e1   : > { %13772 = vmatpush3.bf16.msra.mxu1 %v14185_v20 }
 0x2e4   : > { %4524 = vmatmul.mubr.bf16.gmra.mrb[224].mxu1 %v16216_v51  ;;  %v19857_v51 = vld [vmem:[#allocation44_spill] sm:$0xff] }
 0x2e5   : > { %4531 = vmatprep.mubr.bf16.mxu1 %v16370_v12 }
 0x2e6   : > { %4669 = vmatmul.mubr.bf16.gmra.mrb[216].mxu0 %v16190_v31  ;;  %v19856_v31 = vld [vmem:[#allocation39_spill] sm:$0xff] }
 0x2e7   : > { %4676 = vmatprep.mubr.bf16.mxu0 %v16265_v54 }
 0x2ec   : > { %4532 = vmatmul.mubr.bf16.gmra.mrb[228].mxu1 %v16265_v54  ;;  %v19859_v54 = vld [vmem:[#allocation47_spill] sm:$0xff] }
 0x2ed   : > { %4539 = vmatprep.mubr.bf16.mxu1 %v16411_v21 }
 0x2ee   : > { %4677 = vmatmul.mubr.bf16.gmra.mrb[220].mxu0 %v16237_v49  ;;  %v19858_v49 = vld [vmem:[#allocation45_spill] sm:$0xff] }
 0x2ef   : > { %4684 = vmatprep.mubr.bf16.mxu0 %v16306_v32 }
 0x2f4   : > { %4540 = vmatmul.mubr.bf16.gmra.mrb[232].mxu1 %v16306_v32  ;;  %v14186_v32 = vld [vmem:[#allocation6 + $0x4c0] sm:$0xff]  }
 0x2f5   : > { %4547 = vmatprep.mubr.bf16.mxu1 %v16459_v62  ;;  %12293 = vmatprep.subr.bf16.mxu0 %v14186_v32 }
 0x2f6   : > { %4685 = vmatmul.mubr.bf16.gmra.mrb[224].mxu0 %v19852_v47 }
 0x2f7   : > { %4692 = vmatprep.mubr.bf16.mxu0 %v19853_v59  ;;  %12294 = vmatpush3.bf16.msra.mxu0 %v14187_v19 }
 0x2f8   : > { %12295 = vmatprep.subr.bf16.mxu0 %v14188_v8 }
 0x2fb   : > { %12296 = vmatpush3.bf16.msra.mxu0 %v14189_v60  ;;  %v4180_v60 = vadd.f32 %v16559_v18, %v16694_v27 }
 0x2fc   : > { %4548 = vmatmul.mubr.bf16.gmra.mrb[236].mxu1 %v19853_v59 }
 0x2fd   : > { %4555 = vmatprep.mubr.bf16.mxu1 %v16496_v44 }
 0x2fe   : > { %4693 = vmatmul.mubr.bf16.gmra.mrb[228].mxu0 %v19854_v63 }
 0x2ff   : > { %4700 = vmatprep.mubr.bf16.mxu0 %v19855_v36 }
 0x304   : > { %4556 = vmatmul.mubr.bf16.gmra.mrb[240].mxu1 %v19855_v36  ;;  %v3323_v36 = vrot.slane %v3012_v53, 6 }
 0x305   : > { %4563 = vmatprep.mubr.bf16.mxu1 %v16532_v22 }
 0x306   : > { %4701 = vmatmul.mubr.bf16.gmra.mrb[232].mxu0 %v19856_v31 }
 0x307   : > { %4708 = vmatprep.mubr.bf16.mxu0 %v19857_v51 }
 0x30c   : > { %4564 = vmatmul.mubr.bf16.gmra.mrb[244].mxu1 %v19857_v51 }
 0x30d   : > { %4571 = vmatprep.mubr.bf16.mxu1 %v16583_v43 }
 0x30e   : > { %4709 = vmatmul.mubr.bf16.gmra.mrb[236].mxu0 %v19858_v49  ;;  %v3315_v49 = vrot.slane %v3011_v9, 6 }
 0x30f   : > { %4716 = vmatprep.mubr.bf16.mxu0 %v19859_v54 }
 0x314   : > { %4572 = vmatmul.mubr.bf16.gmra.mrb[248].mxu1 %v19859_v54  ;;  %v3326_v54 = vsel %vm3071_vm3, %v3319_v14, %v3325_v48 }
 0x315   : > { %4579 = vmatprep.mubr.bf16.mxu1 %v16603_v24  ;;  %v16716_v8 = vpack.c.bf16 %v3326_v54, %v3320_v23 }
 0x316   : > { %4717 = vmatmul.mubr.bf16.gmra.mrb[240].mxu0 %v19860_v38 }
 0x317   : > { %4724 = vmatprep.mubr.bf16.mxu0 %v19861_v40 }
 0x31c   : > { %4580 = vmatmul.mubr.bf16.gmra.mrb[252].mxu1 %v19861_v40 }
 0x31d   : > { %4587 = vmatprep.mubr.bf16.mxu1 %v16636_v29 }
 0x31e   : > { %4725 = vmatmul.mubr.bf16.gmra.mrb[244].mxu0 %v16504_v10  ;;  %v3013_v10 = vsel %vm711_vm2, %v3011_v9, %v3012_v53 }
 0x31f   : > { %4732 = vmatprep.mubr.bf16.mxu0 %v16536_v61  ;;  %v3316_v47 = vrot.slane %v3013_v10, 6  ;;  %v14190_v10 = vld [vmem:[#allocation6 + $0x4d0] sm:$0xff]  }
 0x320   : > { %12297 = vmatprep.subr.bf16.mxu0 %v14190_v10 }
 0x321   : > { %v3324_v40 = vsel %vm3071_vm3, %v3316_v47, %v3323_v36 }
 0x323   : > { %v11949_v16 = vpop.f32.mrb[144].mxu0 }
 0x324   : > { %v11950_v0 = vpop.f32.mrb[145].mxu0  ;;  %4588 = vmatmul.mubr.bf16.gmra.mrb[0].mxu1 %v16536_v61 }
 0x325   : > { %v11951_v34 = vadd.f32 %v11950_v0, %v11949_v16  ;;  %v11952_v25 = vpop.f32.mrb[146].mxu0  ;;  %4595 = vmatprep.mubr.bf16.mxu1 %v16644_v26  ;;  %v14191_v0 = vld [vmem:[#allocation6 + $0x490] sm:$0xff]  }
 0x326   : > { %v11953_v20 = vpop.f32.mrb[147].mxu0  ;;  %4733 = vmatmul.mubr.bf16.gmra.mrb[248].mxu0 %v16534_v5  ;;  %v3317_v5 = vsel %vm3071_vm3, %v3315_v49, %v3316_v47 }
 0x327   : > { %v16707_v59 = vadd.f32 %v11951_v34, %v4172_v2  ;;  %v11954_v63 = vadd.f32 %v11953_v20, %v11952_v25  ;;  %4740 = vmatprep.mubr.bf16.mxu0 %v16577_v42  ;;  %v11849_v61 = vpop.f32.mrb[152].mxu1  ;;  %v3541_v28 = vpack.c.bf16 %v3324_v40, %v3317_v5  ;;  %v4183_v2 = vadd.f32 %v16581_v58, %v16694_v27 }
 0x328   : > { %v11850_v51 = vpop.f32.mrb[153].mxu1  ;;  %12298 = vmatpush3.bf16.msra.mxu0 %v14191_v0 }
 0x329   : > { %v16710_v31 = vadd.f32 %v11954_v63, %v4175_v7  ;;  %v11851_v32 = vadd.f32 %v11850_v51, %v11849_v61  ;;  %v11852_v19 = vpop.f32.mrb[154].mxu1 }
 0x32a   : > { %v11853_v38 = vpop.f32.mrb[155].mxu1 }
 0x32b   : > { %v11955_v11 = vpop.f32.mrb[148].mxu0  ;;  %v11854_v53 = vadd.f32 %v11853_v38, %v11852_v19  ;;  %v4188_v58 = vadd.f32 %v11851_v32, %v16694_v27 }
 0x32c   : > { %v11956_v39 = vpop.f32.mrb[149].mxu0  ;;  %4596 = vmatmul.mubr.bf16.gmra.mrb[4].mxu1 %v16577_v42 }
 0x32d   : > { %v11957_v9 = vadd.f32 %v11956_v39, %v11955_v11  ;;  %v11958_v17 = vpop.f32.mrb[150].mxu0  ;;  %4603 = vmatprep.mubr.bf16.mxu1 %v16716_v8  ;;  %v4191_v51 = vadd.f32 %v11854_v53, %v16694_v27 }
 0x32e   : > { %v11959_v16 = vpop.f32.mrb[151].mxu0  ;;  %4741 = vmatmul.mubr.bf16.gmra.mrb[252].mxu0 %v16589_v15 }
 0x32f   : > { %v16725_v34 = vadd.f32 %v11957_v9, %v4180_v60  ;;  %v11960_v25 = vadd.f32 %v11959_v16, %v11958_v17  ;;  %4748 = vmatprep.mubr.bf16.mxu0 %v3541_v28  ;;  %v11855_v18 = vpop.f32.mrb[156].mxu1  ;;  %v14193_v16 = vld [vmem:[#allocation6 + $0x498] sm:$0xff]  }
 0x330   : > { %v11856_v14 = vpop.f32.mrb[157].mxu1 }
 0x331   : > { %v16727_v42 = vadd.f32 %v11960_v25, %v4183_v2  ;;  %v11857_v48 = vadd.f32 %v11856_v14, %v11855_v18  ;;  %v11858_v7 = vpop.f32.mrb[158].mxu1  ;;  %v19862_v18 = vld [vmem:[#allocation21_spill] sm:$0xff] }
 0x332   : > { %v11859_v20 = vpop.f32.mrb[159].mxu1 }
 0x333   : > { %v11961_v47 = vpop.f32.mrb[152].mxu0  ;;  %v11860_v63 = vadd.f32 %v11859_v20, %v11858_v7  ;;  %v4196_v9 = vadd.f32 %v11857_v48, %v16694_v27 }
 0x334   : > { %v11962_v36 = vpop.f32.mrb[153].mxu0  ;;  %4604 = vmatmul.mubr.bf16.gmra.mrb[8].mxu1 %v3541_v28  ;;  %v14192_v28 = vld [vmem:[#allocation6 + $0x4d8] sm:$0xff]  }
 0x335   : > { %v11963_v15 = vadd.f32 %v11962_v36, %v11961_v47  ;;  %v11964_v57 = vpop.f32.mrb[154].mxu0  ;;  %4611 = vmatprep.mubr.bf16.mxu1 %v16628_v50  ;;  %v4199_v10 = vadd.f32 %v11860_v63, %v16694_v27  ;;  %12299 = vmatprep.subr.bf16.mxu0 %v14192_v28 }
 0x336   : > { %v11965_v61 = vpop.f32.mrb[155].mxu0  ;;  %4749 = vmatmul.mubr.bf16.gmra.mrb[0].mxu0 %v16618_v41 }
 0x337   : > { %v16733_v49 = vadd.f32 %v11963_v15, %v4188_v58  ;;  %v11966_v23 = vadd.f32 %v11965_v61, %v11964_v57  ;;  %4756 = vmatprep.mubr.bf16.mxu0 %v16621_v46  ;;  %v11861_v54 = vpop.f32.mrb[160].mxu1  ;;  %12300 = vmatpush3.bf16.msra.mxu0 %v14193_v16 }
 0x338   : > { %v11862_v38 = vpop.f32.mrb[161].mxu1 }
 0x339   : > { %v16736_v19 = vadd.f32 %v11966_v23, %v4191_v51  ;;  %v11863_v32 = vadd.f32 %v11862_v38, %v11861_v54  ;;  %v11864_v5 = vpop.f32.mrb[162].mxu1 }
 0x33a   : > { %v11865_v40 = vpop.f32.mrb[163].mxu1 }
 0x33b   : > { %v11967_v11 = vpop.f32.mrb[156].mxu0  ;;  %v11866_v39 = vadd.f32 %v11865_v40, %v11864_v5  ;;  %v4204_v36 = vadd.f32 %v11863_v32, %v16694_v27  ;;  %v14194_v32 = vld [vmem:[#allocation6 + $0x4e0] sm:$0xff]  }
 0x33c   : > { %v11968_v60 = vpop.f32.mrb[157].mxu0  ;;  %4612 = vmatmul.mubr.bf16.gmra.mrb[12].mxu1 %v16621_v46  ;;  %12301 = vmatprep.subr.bf16.mxu0 %v14194_v32 }
 0x33d   : > { %v11969_v41 = vadd.f32 %v11968_v60, %v11967_v11  ;;  %v11970_v53 = vpop.f32.mrb[158].mxu0  ;;  %13773 = vmatprep.mubr.bf16.mxu1 %v16225_v6  ;;  %v4207_v23 = vadd.f32 %v11866_v39, %v16694_v27  ;;  %v14195_v60 = vld [vmem:[#allocation6 + $0x4a0] sm:$0xff]  }
 0x33e   : > { %v11971_v17 = vpop.f32.mrb[159].mxu0  ;;  %4757 = vmatmul.mubr.bf16.gmra.mrb[4].mxu0 %v16571_v56  ;;  %v19863_v56 = vld [vmem:[#allocation26_spill] sm:$0xff] }
 0x33f   : > { %v16743_v0 = vadd.f32 %v11969_v41, %v4196_v9  ;;  %v11972_v2 = vadd.f32 %v11971_v17, %v11970_v53  ;;  %v11867_v25 = vpop.f32.mrb[164].mxu1  ;;  %4764 = vmatprep.mubr.bf16.mxu0 %v19862_v18  ;;  %12302 = vmatpush3.bf16.msra.mxu0 %v14195_v60 }
 0x340   : > { %v11868_v46 = vpop.f32.mrb[165].mxu1 }
 0x341   : > { %v16746_v14 = vadd.f32 %v11972_v2, %v4199_v10  ;;  %v11869_v48 = vadd.f32 %v11868_v46, %v11867_v25  ;;  %v11870_v6 = vpop.f32.mrb[166].mxu1 }
 0x342   : > { %v11871_v7 = vpop.f32.mrb[167].mxu1 }
 0x343   : > { %v11872_v20 = vadd.f32 %v11871_v7, %v11870_v6  ;;  %v11973_v47 = vpop.f32.mrb[160].mxu0  ;;  %v4212_v16 = vadd.f32 %v11869_v48, %v16694_v27 }
 0x344   : > { %13774 = vmatmul.mubr.bf16.vlgmr.msra.gmra.mrb[16].mxu1 %v16281_v35  ;;  %v11974_v63 = vpop.f32.mrb[161].mxu0 }
 0x345   : > { %13777 = vmatprep.mubr.bf16.mxu1 %v16327_v45  ;;  %v11975_v58 = vadd.f32 %v11974_v63, %v11973_v47  ;;  %v11976_v15 = vpop.f32.mrb[162].mxu0 }
 0x346   : > { %4765 = vmatmul.mubr.bf16.gmra.mrb[8].mxu0 %v19863_v56  ;;  %v11977_v61 = vpop.f32.mrb[163].mxu0 }
 0x347   : > { %v11873_v57 = vpop.f32.mrb[168].mxu1  ;;  %4772 = vmatprep.mubr.bf16.mxu0 %v19862_v18  ;;  %v16754_v54 = vadd.f32 %v11975_v58, %v4204_v36  ;;  %v11978_v35 = vadd.f32 %v11977_v61, %v11976_v15 }
 0x348   : > { %v11874_v51 = vpop.f32.mrb[169].mxu1 }
 0x349   : > { %v11875_v38 = vadd.f32 %v11874_v51, %v11873_v57  ;;  %v11876_v5 = vpop.f32.mrb[170].mxu1  ;;  %v16756_v40 = vadd.f32 %v11978_v35, %v4207_v23 }
 0x34a   : > { %v11877_v45 = vpop.f32.mrb[171].mxu1 }
 0x34b   : > { %v11878_v11 = vadd.f32 %v11877_v45, %v11876_v5  ;;  %v4220_v57 = vadd.f32 %v11875_v38, %v16694_v27  ;;  %v14196_v5 = vld [vmem:[#allocation6 + $0x4e8] sm:$0xff]  }
 0x34c   : > { %13778 = vmatmul.mubr.bf16.gmra.mrb[20].mxu1 %v16370_v12  ;;  %v14197_v45 = vld [vmem:[#allocation6 + $0x4a8] sm:$0xff]   ;;  %12303 = vmatprep.subr.bf16.mxu0 %v14196_v5 }
 0x34d   : > { %13781 = vmatprep.mubr.bf16.mxu1 %v16411_v21  ;;  %v4215_v21 = vadd.f32 %v11872_v20, %v16694_v27  ;;  %12304 = vmatpush3.bf16.msra.mxu0 %v14197_v45 }
 0x34e   : > { %4773 = vmatmul.mubr.bf16.gmra.mrb[12].mxu0 %v19863_v56 }
 0x34f   : > { %v11879_v9 = vpop.f32.mrb[172].mxu1  ;;  %v11979_v39 = vpop.f32.mrb[164].mxu0 }
 0x350   : > { %v11880_v41 = vpop.f32.mrb[173].mxu1  ;;  %v11980_v53 = vpop.f32.mrb[165].mxu0 }
 0x351   : > { %v11881_v17 = vadd.f32 %v11880_v41, %v11879_v9  ;;  %v11882_v28 = vpop.f32.mrb[174].mxu1  ;;  %v11981_v10 = vadd.f32 %v11980_v53, %v11979_v39  ;;  %v11982_v2 = vpop.f32.mrb[166].mxu0 }
 0x352   : > { %v11883_v25 = vpop.f32.mrb[175].mxu1  ;;  %v11983_v12 = vpop.f32.mrb[167].mxu0 }
 0x353   : > { %v11884_v18 = vadd.f32 %v11883_v25, %v11882_v28  ;;  %v16763_v46 = vadd.f32 %v11981_v10, %v4212_v16  ;;  %v11984_v6 = vadd.f32 %v11983_v12, %v11982_v2 }
 0x354   : > { %13782 = vmatmul.mubr.bf16.gmra.mrb[24].mxu1 %v16459_v62  ;;  %v4223_v62 = vadd.f32 %v11878_v11, %v16694_v27  ;;  %v4228_v11 = vadd.f32 %v11881_v17, %v16694_v27 }
 0x355   : > { %13785 = vmatprep.mubr.bf16.mxu1 %v16496_v44  ;;  %v16767_v7 = vadd.f32 %v11984_v6, %v4215_v21 }
 0x357   : > { %v11885_v47 = vpop.f32.mrb[176].mxu1 }
 0x358   : > { %v11886_v56 = vpop.f32.mrb[177].mxu1  ;;  %v11985_v63 = vpop.f32.mrb[168].mxu0 }
 0x359   : > { %v11887_v48 = vadd.f32 %v11886_v56, %v11885_v47  ;;  %v11888_v36 = vpop.f32.mrb[178].mxu1  ;;  %v11986_v58 = vpop.f32.mrb[169].mxu0 }
 0x35a   : > { %v11889_v15 = vpop.f32.mrb[179].mxu1  ;;  %v11987_v61 = vadd.f32 %v11986_v58, %v11985_v63  ;;  %v11988_v20 = vpop.f32.mrb[170].mxu0 }
 0x35b   : > { %v11890_v51 = vadd.f32 %v11889_v15, %v11888_v36  ;;  %v11989_v23 = vpop.f32.mrb[171].mxu0  ;;  %v4236_v15 = vadd.f32 %v11887_v48, %v16694_v27 }
 0x35c   : > { %13786 = vmatmul.mubr.bf16.gmra.mrb[28].mxu1 %v16532_v22  ;;  %v16772_v44 = vadd.f32 %v11987_v61, %v4220_v57  ;;  %v11990_v35 = vadd.f32 %v11989_v23, %v11988_v20 }
 0x35d   : > { %13789 = vmatprep.mubr.bf16.mxu1 %v16583_v43  ;;  %v4231_v43 = vadd.f32 %v11884_v18, %v16694_v27  ;;  %v4239_v20 = vadd.f32 %v11890_v51, %v16694_v27 }
 0x35e   : > { %v16775_v32 = vadd.f32 %v11990_v35, %v4223_v62  ;;  %v14198_v62 = vld [vmem:[#allocation6 + $0x4f0] sm:$0xff]  }
 0x35f   : > { %v11891_v60 = vpop.f32.mrb[180].mxu1  ;;  %v14199_v35 = vld [vmem:[#allocation6 + $0x4b0] sm:$0xff]   ;;  %12305 = vmatprep.subr.bf16.mxu0 %v14198_v62  ;;  %v14200_v62 = vld [vmem:[#allocation6 + $0x4f8] sm:$0xff]  }
 0x360   : > { %v11892_v38 = vpop.f32.mrb[181].mxu1  ;;  %v11991_v9 = vpop.f32.mrb[172].mxu0  ;;  %12306 = vmatpush3.bf16.msra.mxu0 %v14199_v35  ;;  %v14201_v35 = vld [vmem:[#allocation6 + $0x4b8] sm:$0xff]  }
 0x361   : > { %v11893_v39 = vadd.f32 %v11892_v38, %v11891_v60  ;;  %v11894_v41 = vpop.f32.mrb[182].mxu1  ;;  %v11992_v53 = vpop.f32.mrb[173].mxu0  ;;  %12307 = vmatprep.subr.bf16.mxu0 %v14200_v62  ;;  %v14202_v62 = vld [vmem:[#allocation6 + $0x540] sm:$0xff]  }
 0x362   : > { %v11895_v22 = vpop.f32.mrb[183].mxu1  ;;  %v11993_v28 = vadd.f32 %v11992_v53, %v11991_v9  ;;  %v11994_v16 = vpop.f32.mrb[174].mxu0  ;;  %12405 = vmatprep.subr.bf16.mxu1 %v14202_v62 }
 0x363   : > { %v11896_v10 = vadd.f32 %v11895_v22, %v11894_v41  ;;  %v11995_v2 = vpop.f32.mrb[175].mxu0  ;;  %v4244_v51 = vadd.f32 %v11893_v39, %v16694_v27 }
 0x364   : > { %13790 = vmatmul.mubr.bf16.gmra.mrb[32].mxu1 %v16603_v24  ;;  %v16780_v25 = vadd.f32 %v11993_v28, %v4228_v11  ;;  %v11996_v12 = vadd.f32 %v11995_v2, %v11994_v16  ;;  %12308 = vmatpush3.bf16.msra.mxu0 %v14201_v35  ;;  %v14203_v35 = vld [vmem:[#allocation6 + $0x500] sm:$0xff]  }
 0x365   : > { %13793 = vmatprep.mubr.bf16.mxu1 %v16636_v29  ;;  %12406 = vmatpush3.bf16.msra.mxu1 %v14203_v35 }
 0x366   : > { %v16783_v21 = vadd.f32 %v11996_v12, %v4231_v43  ;;  %v19864_v43 = vld [vmem:[#allocation20_spill] sm:$0xff] }
 0x367   : > { %v11897_v6 = vpop.f32.mrb[184].mxu1 }
 0x368   : > { %v11898_v47 = vpop.f32.mrb[185].mxu1  ;;  %v11997_v56 = vpop.f32.mrb[176].mxu0 }
 0x369   : > { %v11899_v63 = vadd.f32 %v11898_v47, %v11897_v6  ;;  %v11900_v17 = vpop.f32.mrb[186].mxu1  ;;  %v11998_v36 = vpop.f32.mrb[177].mxu0 }
 0x36a   : > { %v11901_v58 = vpop.f32.mrb[187].mxu1  ;;  %v11999_v57 = vadd.f32 %v11998_v36, %v11997_v56  ;;  %v12000_v24 = vpop.f32.mrb[178].mxu0 }
 0x36b   : > { %v11902_v61 = vadd.f32 %v11901_v58, %v11900_v17  ;;  %v12001_v18 = vpop.f32.mrb[179].mxu0 }
 0x36c   : > { %13794 = vmatmul.mubr.bf16.gmra.mrb[36].mxu1 %v16644_v26  ;;  %v16788_v29 = vadd.f32 %v11999_v57, %v4236_v15  ;;  %v12002_v23 = vadd.f32 %v12001_v18, %v12000_v24  ;;  %v4252_v15 = vadd.f32 %v11899_v63, %v16694_v27 }
 0x36d   : > { %13797 = vmatprep.mubr.bf16.mxu1 %v16716_v8  ;;  %v4247_v8 = vadd.f32 %v11896_v10, %v16694_v27  ;;  %v4255_v18 = vadd.f32 %v11902_v61, %v16694_v27 }
 0x36e   : > { %v16791_v5 = vadd.f32 %v12002_v23, %v4239_v20 }
 0x36f   : > { %v11903_v45 = vpop.f32.mrb[188].mxu1 }
 0x370   : > { %v11904_v48 = vpop.f32.mrb[189].mxu1  ;;  %v12003_v60 = vpop.f32.mrb[180].mxu0 }
 0x371   : > { %v11905_v38 = vadd.f32 %v11904_v48, %v11903_v45  ;;  %v11906_v9 = vpop.f32.mrb[190].mxu1  ;;  %v12004_v41 = vpop.f32.mrb[181].mxu0 }
 0x372   : > { %v11907_v26 = vpop.f32.mrb[191].mxu1  ;;  %v12005_v53 = vadd.f32 %v12004_v41, %v12003_v60  ;;  %v12006_v22 = vpop.f32.mrb[182].mxu0 }
 0x373   : > { %v11908_v11 = vadd.f32 %v11907_v26, %v11906_v9  ;;  %v12007_v28 = vpop.f32.mrb[183].mxu0 }
 0x374   : > { %13798 = vmatmul.mubr.bf16.gmra.mrb[40].mxu1 %v16628_v50  ;;  %v16796_v16 = vadd.f32 %v12005_v53, %v4244_v51  ;;  %v12008_v2 = vadd.f32 %v12007_v28, %v12006_v22  ;;  %v4260_v53 = vadd.f32 %v11905_v38, %v16694_v27 }
 0x375   : > { %13801 = vmatprep.mubr.bf16.mxu1 %v19864_v43 }
 0x376   : > { %v16799_v12 = vadd.f32 %v12008_v2, %v4247_v8  ;;  %v4263_v2 = vadd.f32 %v11908_v11, %v16694_v27  ;;  %v5305_v11 = vrot.slane %v16008_v4, 4 }
 0x377   : > { %v11909_v6 = vpop.f32.mrb[192].mxu1 }
 0x378   : > { %v11910_v47 = vpop.f32.mrb[193].mxu1  ;;  %v12009_v56 = vpop.f32.mrb[184].mxu0 }
 0x379   : > { %v11911_v17 = vadd.f32 %v11910_v47, %v11909_v6  ;;  %v11912_v39 = vpop.f32.mrb[194].mxu1  ;;  %v12010_v36 = vpop.f32.mrb[185].mxu0 }
 0x37a   : > { %v11913_v58 = vpop.f32.mrb[195].mxu1  ;;  %v12011_v57 = vadd.f32 %v12010_v36, %v12009_v56  ;;  %v12012_v50 = vpop.f32.mrb[186].mxu0 }
 0x37b   : > { %v11914_v24 = vadd.f32 %v11913_v58, %v11912_v39  ;;  %v12013_v10 = vpop.f32.mrb[187].mxu0  ;;  %v4268_v38 = vadd.f32 %v11911_v17, %v16694_v27  ;;  %v14204_v17 = vld [vmem:[#allocation6 + $0x5c0] sm:$0xff]  }
 0x37c   : > { %13802 = vmatmul.mubr.bf16.gmra.mrb[44].mxu1 %v19864_v43  ;;  %v16804_v20 = vadd.f32 %v12011_v57, %v4252_v15  ;;  %v12014_v23 = vadd.f32 %v12013_v10, %v12012_v50  ;;  %12517 = vmatprep.subr.bf16.mxu0 %v14204_v17  ;;  %v14211_v17 = vld [vmem:[#allocation6 + $0x518] sm:$0xff]  }
 0x37e   : > { %v16806_v45 = vadd.f32 %v12014_v23, %v4255_v18 }
 0x37f   : > { %v11915_v48 = vpop.f32.mrb[196].mxu1 }
 0x380   : > { %v11916_v60 = vpop.f32.mrb[197].mxu1  ;;  %v12015_v63 = vpop.f32.mrb[188].mxu0 }
 0x381   : > { %v11917_v9 = vadd.f32 %v11916_v60, %v11915_v48  ;;  %v11918_v41 = vpop.f32.mrb[198].mxu1  ;;  %v12016_v26 = vpop.f32.mrb[189].mxu0  ;;  %v16822_v60 = vpack.c.bf16 %v16008_v4, %v16008_v4 }
 0x382   : > { %v11919_v51 = vpop.f32.mrb[199].mxu1  ;;  %v12017_v22 = vadd.f32 %v12016_v26, %v12015_v63  ;;  %v12018_v61 = vpop.f32.mrb[190].mxu0  ;;  %v4271_v63 = vadd.f32 %v11914_v24, %v16694_v27 }
 0x383   : > { %v11920_v28 = vadd.f32 %v11919_v51, %v11918_v41  ;;  %v12019_v8 = vpop.f32.mrb[191].mxu0  ;;  %19865 = vst [vmem:[#allocation32_spill] sm:$0xff] %v16822_v60  ;;  %v16827_v51 = vpack.c.bf16 %v5305_v11, %v5305_v11  ;;  %v14209_v11 = vld [vmem:[#allocation6 + $0x510] sm:$0xff]  }
 0x384   : > { %v16810_v43 = vadd.f32 %v12017_v22, %v4260_v53  ;;  %v12020_v6 = vadd.f32 %v12019_v8, %v12018_v61  ;;  %v14205_v53 = vld [vmem:[#allocation6 + $0x548] sm:$0xff]   ;;  %v14206_v22 = vld [vmem:[#allocation6 + $0x580] sm:$0xff]  }
 0x385   : > { %19866 = vst [vmem:[#allocation38_spill] sm:$0xff] %v16827_v51  ;;  %v14207_v61 = vld [vmem:[#allocation6 + $0x508] sm:$0xff]   ;;  %6328 = vmatprep.mubr.bf16.mxu0 %v16827_v51  ;;  %12407 = vmatprep.subr.bf16.mxu1 %v14205_v53  ;;  %v4279_v35 = vadd.f32 %v11920_v28, %v16694_v27 }
 0x386   : > { %v16812_v47 = vadd.f32 %v12020_v6, %v4263_v2  ;;  %6329 = vmatmul.mubr.bf16.vlgmr.msra.gmra.mrb[16].mxu0 %v16822_v60  ;;  %12408 = vmatpush3.bf16.msra.mxu1 %v14207_v61 }
 0x387   : > { %v11921_v56 = vpop.f32.mrb[200].mxu1  ;;  %12518 = vmatpush3.bf16.msra.mxu0 %v14206_v22  ;;  %6336 = vmatprep.mubr.bf16.mxu0 %v16827_v51 }
 0x388   : > { %v11922_v39 = vpop.f32.mrb[201].mxu1  ;;  %v12021_v36 = vpop.f32.mrb[192].mxu0 }
 0x389   : > { %v16814_v58 = vadd.f32 %v11922_v39, %v11921_v56  ;;  %v11924_v15 = vpop.f32.mrb[202].mxu1  ;;  %v12022_v57 = vpop.f32.mrb[193].mxu0 }
 0x38a   : > { %v11925_v50 = vpop.f32.mrb[203].mxu1  ;;  %v12023_v10 = vadd.f32 %v12022_v57, %v12021_v36  ;;  %v12024_v18 = vpop.f32.mrb[194].mxu0  ;;  %v4276_v57 = vadd.f32 %v11917_v9, %v16694_v27 }
 0x38b   : > { %v16817_v23 = vadd.f32 %v11925_v50, %v11924_v15  ;;  %v12025_v48 = vpop.f32.mrb[195].mxu0 }
 0x38c   : > { %v16825_v41 = vadd.f32 %v12023_v10, %v4268_v38  ;;  %v12026_v26 = vadd.f32 %v12025_v48, %v12024_v18  ;;  %v14208_v18 = vld [vmem:[#allocation6 + $0x550] sm:$0xff]  }
 0x38d   : > { %12409 = vmatprep.subr.bf16.mxu1 %v14208_v18  ;;  %v14213_v18 = vld [vmem:[#allocation6 + $0x520] sm:$0xff]  }
 0x38e   : > { %v16829_v8 = vadd.f32 %v12026_v26, %v4271_v63  ;;  %v14210_v26 = vld [vmem:[#allocation6 + $0x558] sm:$0xff]   ;;  %12410 = vmatpush3.bf16.msra.mxu1 %v14209_v11  ;;  %6337 = vmatmul.mubr.bf16.gmra.mrb[20].mxu0 %v16822_v60 }
 0x38f   : > { %v11927_v2 = vpop.f32.mrb[204].mxu1  ;;  %12411 = vmatprep.subr.bf16.mxu1 %v14210_v26  ;;  %6344 = vmatprep.mubr.bf16.mxu0 %v16827_v51 }
 0x390   : > { %v11928_v6 = vpop.f32.mrb[205].mxu1  ;;  %v12027_v24 = vpop.f32.mrb[196].mxu0 }
 0x391   : > { %v16833_v56 = vadd.f32 %v11928_v6, %v11927_v2  ;;  %v11930_v39 = vpop.f32.mrb[206].mxu1  ;;  %v12028_v36 = vpop.f32.mrb[197].mxu0 }
 0x392   : > { %v11931_v15 = vpop.f32.mrb[207].mxu1  ;;  %v12029_v50 = vadd.f32 %v12028_v36, %v12027_v24  ;;  %v12030_v38 = vpop.f32.mrb[198].mxu0  ;;  %12412 = vmatpush3.bf16.msra.mxu1 %v14211_v17  ;;  %v14214_v17 = vld [vmem:[#allocation6 + $0x5c8] sm:$0xff]  }
 0x393   : > { %v16837_v10 = vadd.f32 %v11931_v15, %v11930_v39  ;;  %v12031_v62 = vpop.f32.mrb[199].mxu0  ;;  %v4284_v39 = vadd.f32 %v16814_v58, %v16694_v27  ;;  %v14215_v58 = vld [vmem:[#allocation6 + $0x568] sm:$0xff]   ;;  %12519 = vmatprep.subr.bf16.mxu0 %v14214_v17 }
 0x394   : > { %v16840_v48 = vadd.f32 %v12029_v50, %v4276_v57  ;;  %v12032_v63 = vadd.f32 %v12031_v62, %v12030_v38  ;;  %v14212_v38 = vld [vmem:[#allocation6 + $0x560] sm:$0xff]   ;;  %v4287_v62 = vadd.f32 %v16817_v23, %v16694_v27 }
 0x395   : > { %12413 = vmatprep.subr.bf16.mxu1 %v14212_v38 }
 0x396   : > { %v16842_v53 = vadd.f32 %v12032_v63, %v4279_v35  ;;  %12414 = vmatpush3.bf16.msra.mxu1 %v14213_v18  ;;  %6345 = vmatmul.mubr.bf16.gmra.mrb[24].mxu0 %v16822_v60  ;;  %v14218_v18 = vld [vmem:[#allocation6 + $0x570] sm:$0xff]  }
 0x397   : > { %v12061_v22 = vpop.f32.mrb[208].mxu1  ;;  %12415 = vmatprep.subr.bf16.mxu1 %v14215_v58  ;;  %6352 = vmatprep.mubr.bf16.mxu0 %v16827_v51 }
 0x398   : > { %v12062_v9 = vpop.f32.mrb[209].mxu1 }
 0x399   : > { %v12033_v61 = vpop.f32.mrb[200].mxu0  ;;  %v12063_v2 = vadd.f32 %v12062_v9, %v12061_v22  ;;  %v12064_v6 = vpop.f32.mrb[210].mxu1  ;;  %v14216_v22 = vld [vmem:[#allocation6 + $0x588] sm:$0xff]  }
 0x39a   : > { %v12034_v28 = vpop.f32.mrb[201].mxu0  ;;  %v12065_v24 = vpop.f32.mrb[211].mxu1  ;;  %12520 = vmatpush3.bf16.msra.mxu0 %v14216_v22 }
 0x39b   : > { %v12035_v36 = vadd.f32 %v12034_v28, %v12033_v61  ;;  %v12036_v15 = vpop.f32.mrb[202].mxu0  ;;  %v16849_v57 = vadd.f32 %v12063_v2, %v16707_v59  ;;  %v12066_v50 = vadd.f32 %v12065_v24, %v12064_v6  ;;  %v14217_v61 = vld [vmem:[#allocation6 + $0x528] sm:$0xff]  }
 0x39c   : > { %v12037_v11 = vpop.f32.mrb[203].mxu0  ;;  %12416 = vmatpush3.bf16.msra.mxu1 %v14217_v61 }
 0x39d   : > { %v16853_v35 = vadd.f32 %v12035_v36, %v4284_v39  ;;  %v12038_v63 = vadd.f32 %v12037_v11, %v12036_v15  ;;  %v4497_v26 = vadd.f32 %v12066_v50, %v16710_v31  ;;  %v4292_v39 = vadd.f32 %v16833_v56, %v16694_v27  ;;  %v14219_v11 = vld [vmem:[#allocation6 + $0x530] sm:$0xff]   ;;  %12417 = vmatprep.subr.bf16.mxu1 %v14218_v18 }
 0x39e   : > { %6353 = vmatmul.mubr.bf16.gmra.mrb[28].mxu0 %v16822_v60 }
 0x39f   : > { %v16856_v9 = vadd.f32 %v12038_v63, %v4287_v62  ;;  %v12067_v59 = vpop.f32.mrb[212].mxu1  ;;  %v4295_v63 = vadd.f32 %v16837_v10, %v16694_v27 }
 0x3a0   : > { %v12068_v2 = vpop.f32.mrb[213].mxu1  ;;  %12418 = vmatpush3.bf16.msra.mxu1 %v14219_v11  ;;  %v14222_v11 = vld [vmem:[#allocation6 + $0x5d0] sm:$0xff]  }
 0x3a1   : > { %v12039_v23 = vpop.f32.mrb[204].mxu0  ;;  %v12069_v6 = vadd.f32 %v12068_v2, %v12067_v59  ;;  %v12070_v28 = vpop.f32.mrb[214].mxu1  ;;  %v14220_v59 = vld [vmem:[#allocation6 + $0x578] sm:$0xff]   ;;  %12521 = vmatprep.subr.bf16.mxu0 %v14222_v11 }
 0x3a2   : > { %v12040_v31 = vpop.f32.mrb[205].mxu0  ;;  %v12071_v24 = vpop.f32.mrb[215].mxu1  ;;  %v14221_v2 = vld [vmem:[#allocation6 + $0x538] sm:$0xff]   ;;  %12419 = vmatprep.subr.bf16.mxu1 %v14220_v59 }
 0x3a3   : > { %v12041_v36 = vadd.f32 %v12040_v31, %v12039_v23  ;;  %v12042_v15 = vpop.f32.mrb[206].mxu0  ;;  %v4502_v50 = vadd.f32 %v12069_v6, %v16725_v34  ;;  %v12072_v38 = vadd.f32 %v12071_v24, %v12070_v28 }
 0x3a4   : > { %v12043_v62 = vpop.f32.mrb[207].mxu0  ;;  %12420 = vmatpush3.bf16.msra.mxu1 %v14221_v2 }
 0x3a5   : > { %v16865_v17 = vadd.f32 %v12041_v36, %v4292_v39  ;;  %v12044_v58 = vadd.f32 %v12043_v62, %v12042_v15  ;;  %v4505_v22 = vadd.f32 %v12072_v38, %v16727_v42  ;;  %v14223_v62 = vld [vmem:[#allocation6 + $0x590] sm:$0xff]  }
 0x3a6   : > { %12522 = vmatpush3.bf16.msra.mxu0 %v14223_v62 }
 0x3a7   : > { %v16868_v56 = vadd.f32 %v12044_v58, %v4295_v63  ;;  %v12073_v61 = vpop.f32.mrb[216].mxu1 }
 0x3a8   : > { %v12074_v34 = vpop.f32.mrb[217].mxu1 }
 0x3a9   : > { %v12173_v23 = vpop.f32.mrb[208].mxu0  ;;  %v12075_v6 = vadd.f32 %v12074_v34, %v12073_v61  ;;  %v12076_v28 = vpop.f32.mrb[218].mxu1 }
 0x3aa   : > { %v12174_v27 = vpop.f32.mrb[209].mxu0  ;;  %v12077_v10 = vpop.f32.mrb[219].mxu1 }
 0x3ab   : > { %v12175_v31 = vadd.f32 %v12174_v27, %v12173_v23  ;;  %v12176_v24 = vpop.f32.mrb[210].mxu0  ;;  %v4510_v42 = vadd.f32 %v12075_v6, %v16733_v49  ;;  %v12078_v39 = vadd.f32 %v12077_v10, %v12076_v28 }
 0x3ac   : > { %v12177_v36 = vpop.f32.mrb[211].mxu0 }
 0x3ad   : > { %v12178_v15 = vadd.f32 %v12177_v36, %v12176_v24  ;;  %v4513_v38 = vadd.f32 %v12078_v39, %v16736_v19  ;;  %v16874_v18 = vadd.f32 %v12175_v31, %v16849_v57 }
 0x3af   : > { %v12079_v63 = vpop.f32.mrb[220].mxu1  ;;  %v16876_v58 = vadd.f32 %v12178_v15, %v4497_v26 }
 0x3b0   : > { %v12080_v59 = vpop.f32.mrb[221].mxu1 }
 0x3b1   : > { %v12179_v61 = vpop.f32.mrb[212].mxu0  ;;  %v12081_v2 = vadd.f32 %v12080_v59, %v12079_v63  ;;  %v12082_v34 = vpop.f32.mrb[222].mxu1 }
 0x3b2   : > { %v12180_v49 = vpop.f32.mrb[213].mxu0  ;;  %v12083_v23 = vpop.f32.mrb[223].mxu1 }
 0x3b3   : > { %v12181_v6 = vadd.f32 %v12180_v49, %v12179_v61  ;;  %v12182_v28 = vpop.f32.mrb[214].mxu0  ;;  %v4518_v19 = vadd.f32 %v12081_v2, %v16743_v0  ;;  %v12084_v27 = vadd.f32 %v12083_v23, %v12082_v34 }
 0x3b4   : > { %v12183_v57 = vpop.f32.mrb[215].mxu0 }
 0x3b5   : > { %v12184_v10 = vadd.f32 %v12183_v57, %v12182_v28  ;;  %v4521_v31 = vadd.f32 %v12084_v27, %v16746_v14  ;;  %v16880_v24 = vadd.f32 %v12181_v6, %v4502_v50  ;;  %v14224_v6 = vld [vmem:[#allocation6 + $0x5d8] sm:$0xff]  }
 0x3b6   : > { %12523 = vmatprep.subr.bf16.mxu0 %v14224_v6 }
 0x3b7   : > { %v12085_v26 = vpop.f32.mrb[224].mxu1  ;;  %v16882_v39 = vadd.f32 %v12184_v10, %v4505_v22  ;;  %v14225_v22 = vld [vmem:[#allocation6 + $0x598] sm:$0xff]  }
 0x3b8   : > { %v12086_v36 = vpop.f32.mrb[225].mxu1  ;;  %12524 = vmatpush3.bf16.msra.mxu0 %v14225_v22 }
 0x3b9   : > { %v12185_v15 = vpop.f32.mrb[216].mxu0  ;;  %v12087_v11 = vadd.f32 %v12086_v36, %v12085_v26  ;;  %v12088_v62 = vpop.f32.mrb[226].mxu1 }
 0x3ba   : > { %v12186_v63 = vpop.f32.mrb[217].mxu0  ;;  %v12089_v59 = vpop.f32.mrb[227].mxu1 }
 0x3bb   : > { %v12187_v61 = vadd.f32 %v12186_v63, %v12185_v15  ;;  %v12188_v49 = vpop.f32.mrb[218].mxu0  ;;  %v4526_v0 = vadd.f32 %v12087_v11, %v16754_v54  ;;  %v12090_v2 = vadd.f32 %v12089_v59, %v12088_v62 }
 0x3bc   : > { %v12189_v34 = vpop.f32.mrb[219].mxu0 }
 0x3bd   : > { %v12190_v23 = vadd.f32 %v12189_v34, %v12188_v49  ;;  %v4529_v14 = vadd.f32 %v12090_v2, %v16756_v40  ;;  %v16886_v50 = vadd.f32 %v12187_v61, %v4510_v42 }
 0x3bf   : > { %v12091_v28 = vpop.f32.mrb[228].mxu1  ;;  %v16888_v27 = vadd.f32 %v12190_v23, %v4513_v38 }
 0x3c0   : > { %v12092_v57 = vpop.f32.mrb[229].mxu1 }
 0x3c1   : > { %v12191_v10 = vpop.f32.mrb[220].mxu0  ;;  %v12093_v26 = vadd.f32 %v12092_v57, %v12091_v28  ;;  %v12094_v36 = vpop.f32.mrb[230].mxu1 }
 0x3c2   : > { %v12192_v15 = vpop.f32.mrb[221].mxu0  ;;  %v12095_v54 = vpop.f32.mrb[231].mxu1 }
 0x3c3   : > { %v12193_v11 = vadd.f32 %v12192_v15, %v12191_v10  ;;  %v12194_v62 = vpop.f32.mrb[222].mxu0  ;;  %v4534_v63 = vadd.f32 %v12093_v26, %v16763_v46  ;;  %v12096_v40 = vadd.f32 %v12095_v54, %v12094_v36 }
 0x3c4   : > { %v12195_v42 = vpop.f32.mrb[223].mxu0 }
 0x3c5   : > { %v12196_v59 = vadd.f32 %v12195_v42, %v12194_v62  ;;  %v4537_v61 = vadd.f32 %v12096_v40, %v16767_v7  ;;  %v16892_v49 = vadd.f32 %v12193_v11, %v4518_v19  ;;  %v14226_v11 = vld [vmem:[#allocation6 + $0x5e0] sm:$0xff]  }
 0x3c6   : > { %12525 = vmatprep.subr.bf16.mxu0 %v14226_v11 }
 0x3c7   : > { %v12097_v38 = vpop.f32.mrb[232].mxu1  ;;  %v16894_v2 = vadd.f32 %v12196_v59, %v4521_v31  ;;  %v14227_v31 = vld [vmem:[#allocation6 + $0x5a0] sm:$0xff]  }
 0x3c8   : > { %v12098_v34 = vpop.f32.mrb[233].mxu1  ;;  %12526 = vmatpush3.bf16.msra.mxu0 %v14227_v31 }
 0x3c9   : > { %v12197_v23 = vpop.f32.mrb[224].mxu0  ;;  %v12099_v6 = vadd.f32 %v12098_v34, %v12097_v38  ;;  %v12100_v22 = vpop.f32.mrb[234].mxu1 }
 0x3ca   : > { %v12198_v28 = vpop.f32.mrb[225].mxu0  ;;  %v12101_v57 = vpop.f32.mrb[235].mxu1 }
 0x3cb   : > { %v12199_v10 = vadd.f32 %v12198_v28, %v12197_v23  ;;  %v12200_v15 = vpop.f32.mrb[226].mxu0  ;;  %v4542_v46 = vadd.f32 %v12099_v6, %v16772_v44  ;;  %v12102_v26 = vadd.f32 %v12101_v57, %v12100_v22 }
 0x3cc   : > { %v12201_v36 = vpop.f32.mrb[227].mxu0 }
 0x3cd   : > { %v12202_v54 = vadd.f32 %v12201_v36, %v12200_v15  ;;  %v4545_v7 = vadd.f32 %v12102_v26, %v16775_v32  ;;  %v16898_v19 = vadd.f32 %v12199_v10, %v4526_v0 }
 0x3cf   : > { %v12103_v62 = vpop.f32.mrb[236].mxu1  ;;  %v16900_v40 = vadd.f32 %v12202_v54, %v4529_v14 }
 0x3d0   : > { %v12104_v42 = vpop.f32.mrb[237].mxu1 }
 0x3d1   : > { %v12203_v59 = vpop.f32.mrb[228].mxu0  ;;  %v12105_v38 = vadd.f32 %v12104_v42, %v12103_v62  ;;  %v12106_v34 = vpop.f32.mrb[238].mxu1 }
 0x3d2   : > { %v12204_v23 = vpop.f32.mrb[229].mxu0  ;;  %v12107_v44 = vpop.f32.mrb[239].mxu1 }
 0x3d3   : > { %v12205_v6 = vadd.f32 %v12204_v23, %v12203_v59  ;;  %v12206_v22 = vpop.f32.mrb[230].mxu0  ;;  %v4550_v28 = vadd.f32 %v12105_v38, %v16780_v25  ;;  %v12108_v32 = vadd.f32 %v12107_v44, %v12106_v34 }
 0x3d4   : > { %v12207_v0 = vpop.f32.mrb[231].mxu0 }
 0x3d5   : > { %v12208_v57 = vadd.f32 %v12207_v0, %v12206_v22  ;;  %v4553_v10 = vadd.f32 %v12108_v32, %v16783_v21  ;;  %v16904_v15 = vadd.f32 %v12205_v6, %v4534_v63  ;;  %v14228_v6 = vld [vmem:[#allocation6 + $0x5e8] sm:$0xff]  }
 0x3d6   : > { %12527 = vmatprep.subr.bf16.mxu0 %v14228_v6 }
 0x3d7   : > { %v12109_v14 = vpop.f32.mrb[240].mxu1  ;;  %v16906_v26 = vadd.f32 %v12208_v57, %v4537_v61  ;;  %v14229_v61 = vld [vmem:[#allocation6 + $0x5a8] sm:$0xff]  }
 0x3d8   : > { %v12110_v36 = vpop.f32.mrb[241].mxu1  ;;  %12528 = vmatpush3.bf16.msra.mxu0 %v14229_v61 }
 0x3d9   : > { %v12209_v54 = vpop.f32.mrb[232].mxu0  ;;  %v12111_v11 = vadd.f32 %v12110_v36, %v12109_v14  ;;  %v12112_v31 = vpop.f32.mrb[242].mxu1 }
 0x3da   : > { %v12210_v62 = vpop.f32.mrb[233].mxu0  ;;  %v12113_v42 = vpop.f32.mrb[243].mxu1 }
 0x3db   : > { %v12211_v59 = vadd.f32 %v12210_v62, %v12209_v54  ;;  %v12212_v23 = vpop.f32.mrb[234].mxu0  ;;  %v4558_v25 = vadd.f32 %v12111_v11, %v16788_v29  ;;  %v12114_v38 = vadd.f32 %v12113_v42, %v12112_v31 }
 0x3dc   : > { %v12213_v34 = vpop.f32.mrb[235].mxu0 }
 0x3dd   : > { %v12214_v44 = vadd.f32 %v12213_v34, %v12212_v23  ;;  %v4561_v21 = vadd.f32 %v12114_v38, %v16791_v5  ;;  %v16910_v63 = vadd.f32 %v12211_v59, %v4542_v46 }
 0x3df   : > { %v12115_v22 = vpop.f32.mrb[244].mxu1  ;;  %v16912_v32 = vadd.f32 %v12214_v44, %v4545_v7 }
 0x3e0   : > { %v12116_v0 = vpop.f32.mrb[245].mxu1 }
 0x3e1   : > { %v12215_v57 = vpop.f32.mrb[236].mxu0  ;;  %v12117_v14 = vadd.f32 %v12116_v0, %v12115_v22  ;;  %v12118_v36 = vpop.f32.mrb[246].mxu1 }
 0x3e2   : > { %v12216_v54 = vpop.f32.mrb[237].mxu0  ;;  %v12119_v29 = vpop.f32.mrb[247].mxu1 }
 0x3e3   : > { %v12217_v11 = vadd.f32 %v12216_v54, %v12215_v57  ;;  %v12218_v31 = vpop.f32.mrb[238].mxu0  ;;  %v4566_v62 = vadd.f32 %v12117_v14, %v16796_v16  ;;  %v12120_v5 = vadd.f32 %v12119_v29, %v12118_v36 }
 0x3e4   : > { %v12219_v46 = vpop.f32.mrb[239].mxu0 }
 0x3e5   : > { %v12220_v42 = vadd.f32 %v12219_v46, %v12218_v31  ;;  %v4569_v59 = vadd.f32 %v12120_v5, %v16799_v12  ;;  %v16916_v23 = vadd.f32 %v12217_v11, %v4550_v28  ;;  %v14230_v11 = vld [vmem:[#allocation6 + $0x5f0] sm:$0xff]  }
 0x3e6   : > { %12529 = vmatprep.subr.bf16.mxu0 %v14230_v11 }
 0x3e7   : > { %v12121_v7 = vpop.f32.mrb[248].mxu1  ;;  %v16918_v38 = vadd.f32 %v12220_v42, %v4553_v10  ;;  %v14231_v10 = vld [vmem:[#allocation6 + $0x5b0] sm:$0xff]  }
 0x3e8   : > { %v12122_v34 = vpop.f32.mrb[249].mxu1  ;;  %12530 = vmatpush3.bf16.msra.mxu0 %v14231_v10 }
 0x3e9   : > { %v12221_v44 = vpop.f32.mrb[240].mxu0  ;;  %v12123_v6 = vadd.f32 %v12122_v34, %v12121_v7  ;;  %v12124_v61 = vpop.f32.mrb[250].mxu1 }
 0x3ea   : > { %v12222_v22 = vpop.f32.mrb[241].mxu0  ;;  %v12125_v0 = vpop.f32.mrb[251].mxu1 }
 0x3eb   : > { %v12223_v57 = vadd.f32 %v12222_v22, %v12221_v44  ;;  %v12224_v54 = vpop.f32.mrb[242].mxu0  ;;  %v4574_v16 = vadd.f32 %v12123_v6, %v16804_v20  ;;  %v12126_v14 = vadd.f32 %v12125_v0, %v12124_v61 }
 0x3ec   : > { %v12225_v36 = vpop.f32.mrb[243].mxu0 }
 0x3ed   : > { %v12226_v29 = vadd.f32 %v12225_v36, %v12224_v54  ;;  %v4577_v12 = vadd.f32 %v12126_v14, %v16806_v45  ;;  %v16922_v28 = vadd.f32 %v12223_v57, %v4558_v25 }
 0x3ef   : > { %v12127_v31 = vpop.f32.mrb[252].mxu1  ;;  %v16924_v5 = vadd.f32 %v12226_v29, %v4561_v21 }
 0x3f0   : > { %v12128_v46 = vpop.f32.mrb[253].mxu1 }
 0x3f1   : > { %v12227_v42 = vpop.f32.mrb[244].mxu0  ;;  %v12129_v7 = vadd.f32 %v12128_v46, %v12127_v31  ;;  %v12130_v34 = vpop.f32.mrb[254].mxu1 }
 0x3f2   : > { %v12228_v44 = vpop.f32.mrb[245].mxu0  ;;  %v12131_v20 = vpop.f32.mrb[255].mxu1 }
 0x3f3   : > { %v12229_v6 = vadd.f32 %v12228_v44, %v12227_v42  ;;  %v12230_v61 = vpop.f32.mrb[246].mxu0  ;;  %v4582_v22 = vadd.f32 %v12129_v7, %v16810_v43  ;;  %v12132_v45 = vadd.f32 %v12131_v20, %v12130_v34 }
 0x3f4   : > { %v12231_v25 = vpop.f32.mrb[247].mxu0 }
 0x3f5   : > { %v12232_v0 = vadd.f32 %v12231_v25, %v12230_v61  ;;  %v4585_v57 = vadd.f32 %v12132_v45, %v16812_v47  ;;  %v16928_v54 = vadd.f32 %v12229_v6, %v4566_v62  ;;  %v14232_v6 = vld [vmem:[#allocation6 + $0x5f8] sm:$0xff]  }
 0x3f6   : > { %12531 = vmatprep.subr.bf16.mxu0 %v14232_v6 }
 0x3f7   : > { %v12133_v21 = vpop.f32.mrb[0].mxu1  ;;  %v16930_v14 = vadd.f32 %v12232_v0, %v4569_v59  ;;  %v14233_v59 = vld [vmem:[#allocation6 + $0x5b8] sm:$0xff]  }
 0x3f8   : > { %v12134_v36 = vpop.f32.mrb[1].mxu1  ;;  %12532 = vmatpush3.bf16.msra.mxu0 %v14233_v59 }
 0x3f9   : > { %v12233_v29 = vpop.f32.mrb[248].mxu0  ;;  %v12135_v11 = vadd.f32 %v12134_v36, %v12133_v21  ;;  %v12136_v10 = vpop.f32.mrb[2].mxu1 }
 0x3fa   : > { %v12234_v31 = vpop.f32.mrb[249].mxu0  ;;  %v12137_v46 = vpop.f32.mrb[3].mxu1 }
 0x3fb   : > { %v12235_v42 = vadd.f32 %v12234_v31, %v12233_v29  ;;  %v12236_v44 = vpop.f32.mrb[250].mxu0  ;;  %v4590_v43 = vadd.f32 %v12135_v11, %v16825_v41  ;;  %v12138_v7 = vadd.f32 %v12137_v46, %v12136_v10 }
 0x3fc   : > { %v12237_v34 = vpop.f32.mrb[251].mxu0 }
 0x3fd   : > { %v12238_v20 = vadd.f32 %v12237_v34, %v12236_v44  ;;  %v4593_v47 = vadd.f32 %v12138_v7, %v16829_v8  ;;  %v16934_v62 = vadd.f32 %v12235_v42, %v4574_v16 }
 0x3ff   : > { %v12139_v61 = vpop.f32.mrb[4].mxu1  ;;  %v16936_v45 = vadd.f32 %v12238_v20, %v4577_v12  ;;  %v14234_v12 = vld [vmem:[#allocation6 + $0x640] sm:$0xff]  }
 0x400   : > { %v12140_v25 = vpop.f32.mrb[5].mxu1  ;;  %12629 = vmatprep.subr.bf16.mxu1 %v14234_v12 }
 0x401   : > { %v12239_v0 = vpop.f32.mrb[252].mxu0  ;;  %v12141_v21 = vadd.f32 %v12140_v25, %v12139_v61  ;;  %v12142_v36 = vpop.f32.mrb[6].mxu1 }
 0x402   : > { %v12240_v29 = vpop.f32.mrb[253].mxu0  ;;  %v12143_v41 = vpop.f32.mrb[7].mxu1 }
 0x403   : > { %v12241_v11 = vadd.f32 %v12240_v29, %v12239_v0  ;;  %v12242_v10 = vpop.f32.mrb[254].mxu0  ;;  %v4598_v31 = vadd.f32 %v12141_v21, %v16840_v48  ;;  %v12144_v8 = vadd.f32 %v12143_v41, %v12142_v36 }
 0x404   : > { %v12243_v16 = vpop.f32.mrb[255].mxu0 }
 0x405   : > { %v12244_v46 = vadd.f32 %v12243_v16, %v12242_v10  ;;  %v4601_v42 = vadd.f32 %v12144_v8, %v16842_v53  ;;  %v16940_v44 = vadd.f32 %v12241_v11, %v4582_v22  ;;  %v16952_v11 = vld [vmem:[#allocation6 + $0x680] sm:$0xff]  }
 0x406   : > { %19867 = vst [vmem:[#allocation35_spill] sm:$0xff] %v16952_v11  ;;  %13805 = vmatprep.subr.bf16.mxu0 %v16952_v11  ;;  %v14237_v11 = vld [vmem:[#allocation6 + $0x648] sm:$0xff]  }
 0x407   : > { %v12145_v7 = vpop.f32.mrb[8].mxu1  ;;  %v16942_v34 = vadd.f32 %v12244_v46, %v4585_v57 }
 0x408   : > { %v12146_v20 = vpop.f32.mrb[9].mxu1 }
 0x409   : > { %v12245_v6 = vpop.f32.mrb[0].mxu0  ;;  %v12147_v59 = vadd.f32 %v12146_v20, %v12145_v7  ;;  %v12148_v61 = vpop.f32.mrb[10].mxu1 }
 0x40a   : > { %v12246_v25 = vpop.f32.mrb[1].mxu0  ;;  %v12149_v0 = vpop.f32.mrb[11].mxu1 }
 0x40b   : > { %v12247_v29 = vadd.f32 %v12246_v25, %v12245_v6  ;;  %v12248_v48 = vpop.f32.mrb[2].mxu0  ;;  %v16945_v21 = vadd.f32 %v12147_v59, %v16853_v35  ;;  %v12150_v36 = vadd.f32 %v12149_v0, %v12148_v61 }
 0x40c   : > { %v12249_v53 = vpop.f32.mrb[3].mxu0 }
 0x40d   : > { %v12250_v22 = vadd.f32 %v12249_v53, %v12248_v48  ;;  %v16948_v41 = vadd.f32 %v12150_v36, %v16856_v9  ;;  %v16950_v57 = vadd.f32 %v12247_v29, %v4590_v43 }
 0x40f   : > { %v12151_v10 = vpop.f32.mrb[12].mxu1  ;;  %v16954_v8 = vadd.f32 %v12250_v22, %v4593_v47 }
 0x410   : > { %v12152_v16 = vpop.f32.mrb[13].mxu1 }
 0x411   : > { %19868 = vst [vmem:[#allocation42_spill] sm:$0xff] %v16954_v8  ;;  %v12251_v46 = vpop.f32.mrb[4].mxu0  ;;  %v12153_v12 = vadd.f32 %v12152_v16, %v12151_v10  ;;  %v12154_v35 = vpop.f32.mrb[14].mxu1 }
 0x412   : > { %v12252_v7 = vpop.f32.mrb[5].mxu0  ;;  %v12155_v20 = vpop.f32.mrb[15].mxu1 }
 0x413   : > { %v12253_v6 = vadd.f32 %v12252_v7, %v12251_v46  ;;  %v12254_v59 = vpop.f32.mrb[6].mxu0  ;;  %v16958_v9 = vadd.f32 %v12153_v12, %v16865_v17  ;;  %v12156_v43 = vadd.f32 %v12155_v20, %v12154_v35 }
 0x414   : > { %v12255_v61 = vpop.f32.mrb[7].mxu0 }
 0x415   : > { %v12256_v25 = vadd.f32 %v12255_v61, %v12254_v59  ;;  %v16961_v0 = vadd.f32 %v12156_v43, %v16868_v56  ;;  %v16963_v47 = vadd.f32 %v12253_v6, %v4598_v31 }
 0x417   : > { %v13775_v29 = vpop.f32.mrb[16].mxu1  ;;  %v16965_v48 = vadd.f32 %v12256_v25, %v4601_v42 }
 0x418   : > { %v16968_v36 = vadd.f32 %v13775_v29, %v16880_v24  ;;  %v4815_v53 = vpop.f32.mrb[17].mxu1 }
 0x419   : > { %19869 = vst [vmem:[#allocation39_spill] sm:$0xff] %v16965_v48  ;;  %v12257_v22 = vpop.f32.mrb[8].mxu0  ;;  %v16971_v10 = vadd.f32 %v4815_v53, %v16874_v18  ;;  %v13776_v17 = vpop.f32.mrb[18].mxu1 }
 0x41a   : > { %19870 = vst [vmem:[#allocation44_spill] sm:$0xff] %v16968_v36  ;;  %v12258_v16 = vpop.f32.mrb[9].mxu0  ;;  %v19670_v46 = vmax.f32 %v16968_v36, 0.0  ;;  %v16975_v56 = vadd.f32 %v13776_v17, %v16882_v39  ;;  %v4818_v31 = vpop.f32.mrb[19].mxu1 }
 0x41b   : > { %19871 = vst [vmem:[#allocation45_spill] sm:$0xff] %v16971_v10  ;;  %v16977_v12 = vadd.f32 %v12258_v16, %v12257_v22  ;;  %v12260_v42 = vpop.f32.mrb[10].mxu0  ;;  %v19669_v35 = vmax.f32 %v16971_v10, 0.0  ;;  %v16981_v24 = vadd.f32 %v4818_v31, %v16876_v58 }
 0x41c   : > { %19872 = vst [vmem:[#allocation47_spill] sm:$0xff] %v16975_v56  ;;  %v12261_v7 = vpop.f32.mrb[11].mxu0  ;;  %v5182_v18 = vrot.slane %v19670_v46, 4  ;;  %v19668_v20 = vmax.f32 %v16975_v56, 0.0  ;;  %v14235_v56 = vld [vmem:[#allocation6 + $0x600] sm:$0xff]  }
 0x41d   : > { %19873 = vst [vmem:[#allocation48_spill] sm:$0xff] %v16981_v24  ;;  %v16986_v6 = vadd.f32 %v12261_v7, %v12260_v42  ;;  %v5179_v39 = vrot.slane %v19669_v35, 4  ;;  %v19667_v59 = vmax.f32 %v16981_v24, 0.0 }
 0x41e   : > { %v5183_v43 = vrot.slane %v19668_v20, 4  ;;  %v5336_v25 = vsel %vm2926_vm4, %v16008_v4, %v5182_v18 }
 0x41f   : > { %v5180_v58 = vrot.slane %v19667_v59, 4  ;;  %v13779_v61 = vpop.f32.mrb[20].mxu1  ;;  %v5309_v22 = vsel %vm2926_vm4, %v16008_v4, %v5179_v39 }
 0x420   : > { %v16998_v29 = vadd.f32 %v13779_v61, %v16892_v49  ;;  %v4831_v53 = vpop.f32.mrb[21].mxu1  ;;  %v5184_v17 = vsel %vm2926_vm4, %v5182_v18, %v5183_v43  ;;  %v5352_v16 = vsel %vm2926_vm4, %v5183_v43, %v16008_v4 }
 0x421   : > { %v12263_v31 = vpop.f32.mrb[12].mxu0  ;;  %v17006_v42 = vadd.f32 %v4831_v53, %v16886_v50  ;;  %v13780_v7 = vpop.f32.mrb[22].mxu1  ;;  %v5181_v59 = vsel %vm2926_vm4, %v5179_v39, %v5180_v58  ;;  %v5325_v49 = vsel %vm2926_vm4, %v5180_v58, %v16008_v4  ;;  %v5338_v61 = vrot.slane %v5184_v17, 4 }
 0x422   : > { %19874 = vst [vmem:[#allocation50_spill] sm:$0xff] %v16998_v29  ;;  %v12264_v20 = vpop.f32.mrb[13].mxu0  ;;  %v17013_v46 = vadd.f32 %v13780_v7, %v16894_v2  ;;  %v4834_v55 = vpop.f32.mrb[23].mxu1  ;;  %v5311_v13 = vrot.slane %v5181_v59, 4  ;;  %v5642_v24 = vpack.c.bf16 %v5181_v59, %v5309_v22  ;;  %v17021_v51 = vpack.c.bf16 %v5325_v49, %v5181_v59 }
 0x423   : > { %19875 = vst [vmem:[#allocation21_spill] sm:$0xff] %v17006_v42  ;;  %v17015_v10 = vadd.f32 %v12264_v20, %v12263_v31  ;;  %v12266_v50 = vpop.f32.mrb[14].mxu0  ;;  %v19680_v53 = vmax.f32 %v17006_v42, 0.0  ;;  %v17019_v36 = vadd.f32 %v4834_v55, %v16888_v27  ;;  %v17024_v2 = vpack.c.bf16 %v5184_v17, %v5336_v25  ;;  %v14238_v25 = vld [vmem:[#allocation6 + $0x608] sm:$0xff]  }
 0x424   : > { %19876 = vst [vmem:[#allocation26_spill] sm:$0xff] %v17013_v46  ;;  %v12267_v8 = vpop.f32.mrb[15].mxu0  ;;  %v19682_v35 = vmax.f32 %v17013_v46, 0.0  ;;  %6489 = vmatprep.mubr.bf16.mxu1 %v5642_v24  ;;  %v5310_v7 = vrot.slane %v5179_v39, 4  ;;  %v5349_v22 = vrot.slane %v5183_v43, 4  ;;  %v5337_v55 = vrot.slane %v5182_v18, 4 }
 0x425   : > { %19877 = vst [vmem:[#allocation20_spill] sm:$0xff] %v17019_v36  ;;  %v17026_v48 = vadd.f32 %v12267_v8, %v12266_v50  ;;  %v5185_v20 = vrot.slane %v19680_v53, 4  ;;  %v19681_v31 = vmax.f32 %v17019_v36, 0.0  ;;  %6490 = vmatmul.mubr.bf16.vlgmr.msra.gmra.mrb[48].mxu1 %v16822_v60  ;;  %v17032_v27 = vpack.c.bf16 %v5352_v16, %v5184_v17  ;;  %v14239_v18 = vld [vmem:[#allocation6 + $0x650] sm:$0xff]  }
 0x426   : > { %6497 = vmatprep.mubr.bf16.mxu1 %v17024_v2  ;;  %v5312_v59 = vsel %vm2926_vm4, %v5310_v7, %v5311_v13  ;;  %12630 = vmatpush3.bf16.msra.mxu1 %v14235_v56  ;;  %v19878_v39 = vmax.f32 %v16998_v29, 0.0  ;;  %v5322_v50 = vrot.slane %v5180_v58, 4  ;;  %v5339_v53 = vsel %vm2926_vm4, %v5337_v55, %v5338_v61 }
 0x427   : > { %v5186_v43 = vrot.slane %v19681_v31, 4  ;;  %v13783_v49 = vpop.f32.mrb[24].mxu1  ;;  %12631 = vmatprep.subr.bf16.mxu1 %v14237_v11  ;;  %v17045_v17 = vrot.slane %v19682_v35, 4  ;;  %v5350_v7 = vsel %vm2926_vm4, %v5338_v61, %v5349_v22  ;;  %v5364_v22 = vrot.slane %v5185_v20, 4 }
 0x428   : > { %v17038_v8 = vrot.slane %v19878_v39, 4  ;;  %v17048_v56 = vadd.f32 %v13783_v49, %v16904_v15  ;;  %v4847_v16 = vpop.f32.mrb[25].mxu1  ;;  %v5363_v39 = vsel %vm2926_vm4, %v16008_v4, %v5185_v20  ;;  %v5323_v31 = vsel %vm2926_vm4, %v5311_v13, %v5322_v50 }
 0x429   : > { %v17055_v58 = vadd.f32 %v4847_v16, %v16898_v19  ;;  %v13784_v11 = vpop.f32.mrb[26].mxu1  ;;  %v17057_v55 = vpack.c.bf16 %v5350_v7, %v5339_v53  ;;  %v5187_v35 = vsel %vm2926_vm4, %v5185_v20, %v5186_v43  ;;  %v17060_v36 = vpack.c.bf16 %v5323_v31, %v5312_v59  ;;  %v14240_v31 = vld [vmem:[#allocation6 + $0x610] sm:$0xff]   ;;  %v14241_v59 = vld [vmem:[#allocation6 + $0x658] sm:$0xff]  }
 0x42a   : > { %19879 = vst [vmem:[#allocation52_spill] sm:$0xff] %v17048_v56  ;;  %v17063_v15 = vadd.f32 %v13784_v11, %v16906_v26  ;;  %v4850_v49 = vpop.f32.mrb[27].mxu1  ;;  %v5365_v61 = vrot.slane %v5187_v35, 4  ;;  %12632 = vmatpush3.bf16.msra.mxu1 %v14238_v25  ;;  %v5379_v19 = vsel %vm2926_vm4, %v5186_v43, %v16008_v4  ;;  %v17071_v53 = vpack.c.bf16 %v5187_v35, %v5363_v39  ;;  %v14243_v25 = vld [vmem:[#allocation6 + $0x660] sm:$0xff]  }
 0x42b   : > { %19880 = vst [vmem:[#allocation53_spill] sm:$0xff] %v17055_v58  ;;  %19881 = vst [vmem:[#allocation54_spill] sm:$0xff] %v17057_v55  ;;  %v19686_v46 = vmax.f32 %v17055_v58, 0.0  ;;  %v17067_v13 = vadd.f32 %v4850_v49, %v16900_v40  ;;  %12633 = vmatprep.subr.bf16.mxu1 %v14239_v18  ;;  %6360 = vmatprep.mubr.bf16.mxu0 %v17060_v36  ;;  %v17074_v26 = vpack.c.bf16 %v5379_v19, %v5187_v35  ;;  %v19888_v58 = vld [vmem:[#allocation36_spill] sm:$0xff] }
 0x42c   : > { %19882 = vst [vmem:[#allocation55_spill] sm:$0xff] %v17063_v15  ;;  %6361 = vmatmul.mubr.bf16.gmra.mrb[32].mxu0 %v5642_v24  ;;  %v5366_v40 = vsel %vm2926_vm4, %v5364_v22, %v5365_v61  ;;  %v5376_v18 = vrot.slane %v5186_v43, 4  ;;  %v5190_v35 = vsel %vm2926_vm4, %v17038_v8, %v17045_v17  ;;  %v5390_v39 = vsel %vm2926_vm4, %v16008_v4, %v17038_v8  ;;  %v14242_v43 = vld [vmem:[#allocation6 + $0x618] sm:$0xff]  }
 0x42d   : > { %19883 = vst [vmem:[#allocation56_spill] sm:$0xff] %v17067_v13  ;;  %v19685_v20 = vmax.f32 %v17067_v13, 0.0  ;;  %6498 = vmatmul.mubr.bf16.gmra.mrb[52].mxu1 %v16822_v60  ;;  %6368 = vmatprep.mubr.bf16.mxu0 %v17057_v55  ;;  %v17088_v24 = vrot.slane %v19686_v46, 4  ;;  %v5392_v11 = vrot.slane %v5190_v35, 4  ;;  %v17104_v46 = vpack.c.bf16 %v5190_v35, %v5390_v39  ;;  %v14407_v39 = vld [vmem:[%s14810_s6 + $0x90] sm:$0xff] }
 0x42e   : > { %6505 = vmatprep.mubr.bf16.mxu1 %v17071_v53  ;;  %12634 = vmatpush3.bf16.msra.mxu1 %v14240_v31  ;;  %v5377_v19 = vsel %vm2926_vm4, %v5365_v61, %v5376_v18  ;;  %v5403_v42 = vrot.slane %v17045_v17, 4 }
 0x42f   : > { %v17092_v16 = vrot.slane %v19685_v20, 4  ;;  %v13787_v7 = vpop.f32.mrb[28].mxu1  ;;  %v5406_v20 = vsel %vm2926_vm4, %v17045_v17, %v16008_v4  ;;  %12635 = vmatprep.subr.bf16.mxu1 %v14241_v59  ;;  %v17109_v13 = vpack.c.bf16 %v5377_v19, %v5366_v40  ;;  %v2703_v59 = vadd.f32 %v14407_v39, %v19888_v58  ;;  %v14244_v58 = vld [vmem:[#allocation6 + $0x620] sm:$0xff]   ;;  %v14409_v39 = vld [vmem:[%s14810_s6 + $0xb0] sm:$0xff] }
 0x430   : > { %v17098_v49 = vadd.f32 %v13787_v7, %v16916_v23  ;;  %v4863_v22 = vpop.f32.mrb[29].mxu1  ;;  %v17111_v23 = vpack.c.bf16 %v5406_v20, %v5190_v35  ;;  %v5391_v7 = vrot.slane %v17038_v8, 4  ;;  %v14408_v8 = vld [vmem:[%s14810_s6 + $0x80] sm:$0xff]  ;;  %v19891_v17 = vmax.f32 %v17063_v15, 0.0 }
 0x431   : > { %v17107_v50 = vadd.f32 %v4863_v22, %v16910_v63  ;;  %v13788_v31 = vpop.f32.mrb[30].mxu1  ;;  %19886 = vst [vmem:[#allocation59_spill] sm:$0xff] %v17109_v13  ;;  %v5193_v63 = vsel %vm2926_vm4, %v17088_v24, %v17092_v16  ;;  %v19890_v35 = vld [vmem:[#allocation33_spill] sm:$0xff]  ;;  %v17139_v20 = vadd.f32 %v14409_v39, %v16424_v52  ;;  %v14411_v52 = vld [vmem:[%s14810_s6 + $0xd0] sm:$0xff] }
 0x432   : > { %19884 = vst [vmem:[#allocation57_spill] sm:$0xff] %v17098_v49  ;;  %v17115_v61 = vadd.f32 %v13788_v31, %v16918_v38  ;;  %v4866_v18 = vpop.f32.mrb[31].mxu1  ;;  %v17129_v38 = vadd.f32 %v14408_v8, %v19890_v35  ;;  %v5393_v22 = vsel %vm2926_vm4, %v5391_v7, %v5392_v11  ;;  %12636 = vmatpush3.bf16.msra.mxu1 %v14242_v43  ;;  %v17134_v19 = vrot.slane %v19891_v17, 4  ;;  %v14246_v8 = vld [vmem:[#allocation6 + $0x668] sm:$0xff]  }
 0x433   : > { %19885 = vst [vmem:[#allocation58_spill] sm:$0xff] %v17107_v50  ;;  %v17125_v40 = vadd.f32 %v4866_v18, %v16912_v32  ;;  %v5404_v31 = vsel %vm2926_vm4, %v5392_v11, %v5403_v42  ;;  %v14410_v32 = vld [vmem:[%s14810_s6 + $0xa0] sm:$0xff]  ;;  %12637 = vmatprep.subr.bf16.mxu1 %v14243_v25  ;;  %v19893_v7 = vmax.f32 %v17048_v56, 0.0  ;;  %v17156_v11 = vadd.f32 %v14411_v52, %v16488_v33  ;;  %v14247_v52 = vld [vmem:[#allocation6 + $0x628] sm:$0xff]  }
 0x434   : > { %19887 = vst [vmem:[#allocation60_spill] sm:$0xff] %v17115_v61  ;;  %v19892_v18 = vld [vmem:[#allocation40_spill] sm:$0xff]  ;;  %6369 = vmatmul.mubr.bf16.gmra.mrb[36].mxu0 %v17024_v2  ;;  %v17152_v42 = vpack.c.bf16 %v5404_v31, %v5393_v22  ;;  %v5314_v2 = vsel %vm2926_vm4, %v16008_v4, %v17088_v24  ;;  %v5316_v25 = vrot.slane %v5193_v63, 4  ;;  %v5329_v22 = vsel %vm2926_vm4, %v17092_v16, %v16008_v4 }
 0x435   : > { %19889 = vst [vmem:[#allocation36_spill] sm:$0xff] %v17125_v40  ;;  %v17143_v29 = vadd.f32 %v14410_v32, %v19892_v18  ;;  %v17147_v43 = vrot.slane %v19893_v7, 4  ;;  %v19693_v35 = vmax.f32 %v17125_v40, 0.0  ;;  %6506 = vmatmul.mubr.bf16.gmra.mrb[56].mxu1 %v16822_v60  ;;  %6376 = vmatprep.mubr.bf16.mxu0 %v17109_v13  ;;  %v19894_v31 = vmax.f32 %v17107_v50, 0.0  ;;  %v14248_v40 = vld [vmem:[#allocation6 + $0x670] sm:$0xff]  }
 0x436   : > { %6513 = vmatprep.mubr.bf16.mxu1 %v17104_v46  ;;  %v17175_v18 = vpack.c.bf16 %v5193_v63, %v5314_v2  ;;  %v17177_v7 = vpack.c.bf16 %v5329_v22, %v5193_v63  ;;  %12638 = vmatpush3.bf16.msra.mxu1 %v14244_v58  ;;  %v5315_v56 = vrot.slane %v17088_v24, 4  ;;  %v5356_v24 = vsel %vm2926_vm4, %v17134_v19, %v16008_v4 }
 0x437   : > { %v17169_v39 = vrot.slane %v19894_v31, 4  ;;  %v17173_v33 = vrot.slane %v19693_v35, 4  ;;  %v13791_v32 = vpop.f32.mrb[32].mxu1  ;;  %v5326_v31 = vrot.slane %v17092_v16, 4  ;;  %v5196_v35 = vsel %vm2926_vm4, %v17147_v43, %v17134_v19  ;;  %12639 = vmatprep.subr.bf16.mxu1 %v14246_v8 }
 0x438   : > { %v17180_v17 = vadd.f32 %v13791_v32, %v16928_v54  ;;  %v4879_v15 = vpop.f32.mrb[33].mxu1  ;;  %v5341_v54 = vsel %vm2926_vm4, %v16008_v4, %v17147_v43  ;;  %v5343_v58 = vrot.slane %v5196_v35, 4 }
 0x439   : > { %v17188_v2 = vadd.f32 %v4879_v15, %v16922_v28  ;;  %v13792_v63 = vpop.f32.mrb[34].mxu1  ;;  %v5317_v28 = vsel %vm2926_vm4, %v5315_v56, %v5316_v25  ;;  %v5327_v15 = vsel %vm2926_vm4, %v5316_v25, %v5326_v31  ;;  %v17208_v55 = vpack.c.bf16 %v5196_v35, %v5341_v54  ;;  %v14412_v56 = vld [vmem:[%s14810_s6 + $0xc0] sm:$0xff]  ;;  %v14413_v31 = vld [vmem:[%s14810_s6 + $0xf0] sm:$0xff] }
 0x43a   : > { %v4960_v16 = vmax.f32 %v17180_v17, 0.0  ;;  %v17198_v8 = vadd.f32 %v13792_v63, %v16930_v14  ;;  %v4882_v22 = vpop.f32.mrb[35].mxu1  ;;  %v17206_v13 = vpack.c.bf16 %v5327_v15, %v5317_v28  ;;  %12640 = vmatpush3.bf16.msra.mxu1 %v14247_v52  ;;  %v14249_v17 = vld [vmem:[#allocation6 + $0x630] sm:$0xff]   ;;  %v17212_v63 = vpack.c.bf16 %v5356_v24, %v5196_v35  ;;  %v14414_v35 = vld [vmem:[%s14810_s6 + $0xe0] sm:$0xff] }
 0x43b   : > { %v4958_v32 = vmax.f32 %v17188_v2, 0.0  ;;  %v17204_v50 = vadd.f32 %v4882_v22, %v16924_v5  ;;  %v17216_v25 = vadd.f32 %v14412_v56, %v16441_v1  ;;  %v17220_v5 = vadd.f32 %v14413_v31, %v16521_v37  ;;  %12641 = vmatprep.subr.bf16.mxu1 %v14248_v40  ;;  %v14250_v2 = vld [vmem:[#allocation6 + $0x678] sm:$0xff]  }
 0x43c   : > { %19895 = vst [vmem:[#allocation33_spill] sm:$0xff] %v17198_v8  ;;  %v17210_v14 = vadd.f32 %v4960_v16, %v2703_v59  ;;  %6377 = vmatmul.mubr.bf16.gmra.mrb[40].mxu0 %v17071_v53  ;;  %v5342_v59 = vrot.slane %v17147_v43, 4  ;;  %v17230_v52 = vadd.f32 %v14414_v35, %v16575_v30  ;;  %v14415_v1 = vld [vmem:[%s14810_s6 + $0xf8] sm:$0xff]  ;;  %v19899_v40 = vmax.f32 %v17115_v61, 0.0 }
 0x43d   : > { %19896 = vst [vmem:[#allocation40_spill] sm:$0xff] %v17204_v50  ;;  %v17223_v54 = vadd.f32 %v4958_v32, %v17129_v38  ;;  %6514 = vmatmul.mubr.bf16.gmra.mrb[60].mxu1 %v16822_v60  ;;  %v17234_v24 = vadd.f32 %v14415_v1, %v16525_v3  ;;  %6384 = vmatprep.mubr.bf16.mxu0 %v17152_v42  ;;  %v5353_v53 = vrot.slane %v17134_v19, 4  ;;  %v14251_v56 = vld [vmem:[#allocation6 + $0x638] sm:$0xff]  }
 0x43e   : > { %19897 = vst [vmem:[#allocation61_spill] sm:$0xff] %v17210_v14  ;;  %v17239_v38 = vrot.slane %v19899_v40, 4  ;;  %6521 = vmatprep.mubr.bf16.mxu1 %v17175_v18  ;;  %v5199_v30 = vsel %vm2926_vm4, %v17169_v39, %v17173_v33  ;;  %v5344_v28 = vsel %vm2926_vm4, %v5342_v59, %v5343_v58  ;;  %v5368_v15 = vsel %vm2926_vm4, %v16008_v4, %v17169_v39 }
 0x43f   : > { %19898 = vst [vmem:[#allocation62_spill] sm:$0xff] %v17223_v54  ;;  %v13795_v22 = vpop.f32.mrb[36].mxu1  ;;  %12642 = vmatpush3.bf16.msra.mxu1 %v14249_v17  ;;  %v5354_v35 = vsel %vm2926_vm4, %v5343_v58, %v5353_v53  ;;  %v5370_v1 = vrot.slane %v5199_v30, 4  ;;  %v5383_v40 = vsel %vm2926_vm4, %v17173_v33, %v16008_v4  ;;  %v17261_v37 = vpack.c.bf16 %v5199_v30, %v5368_v15 }
 0x440   : > { %v4904_v31 = vadd.f32 %v13795_v22, %v16940_v44  ;;  %v4895_v19 = vpop.f32.mrb[37].mxu1  ;;  %12643 = vmatprep.subr.bf16.mxu1 %v14250_v2  ;;  %v17259_v43 = vpack.c.bf16 %v5354_v35, %v5344_v28  ;;  %v17263_v17 = vpack.c.bf16 %v5383_v40, %v5199_v30  ;;  %v17270_v53 = vadd.f32 %v17015_v10, %v16958_v9 }
 0x441   : > { %v4896_v3 = vadd.f32 %v4895_v19, %v16934_v62  ;;  %v13796_v59 = vpop.f32.mrb[38].mxu1  ;;  %v17274_v2 = vadd.f32 %v16977_v12, %v16945_v21  ;;  %v17281_v30 = vadd.f32 %v17026_v48, %v16961_v0  ;;  %v19902_v28 = vmax.f32 %v17098_v49, 0.0 }
 0x442   : > { %v4964_v54 = vmax.f32 %v4904_v31, 0.0  ;;  %v17266_v44 = vadd.f32 %v13796_v59, %v16942_v34  ;;  %v4898_v58 = vpop.f32.mrb[39].mxu1  ;;  %v5369_v34 = vrot.slane %v17169_v39, 4  ;;  %v17286_v9 = vrot.slane %v4960_v16, 4 }
 0x443   : > { %v4962_v62 = vmax.f32 %v4896_v3, 0.0  ;;  %v17277_v22 = vadd.f32 %v4898_v58, %v16936_v45  ;;  %12644 = vmatpush3.bf16.msra.mxu1 %v14251_v56  ;;  %v5200_v15 = vrot.slane %v19902_v28, 4  ;;  %v5380_v21 = vrot.slane %v17173_v33, 4 }
 0x444   : > { %19900 = vst [vmem:[#allocation63_spill] sm:$0xff] %v17266_v44  ;;  %v17289_v10 = vadd.f32 %v4964_v54, %v17139_v20  ;;  %v17292_v12 = vrot.slane %v4958_v32, 4  ;;  %v19904_v45 = vmax.f32 %v17198_v8, 0.0  ;;  %6385 = vmatmul.mubr.bf16.gmra.mrb[44].mxu0 %v17104_v46  ;;  %v5371_v48 = vsel %vm2926_vm4, %v5369_v34, %v5370_v1 }
 0x445   : > { %19901 = vst [vmem:[#allocation64_spill] sm:$0xff] %v17277_v22  ;;  %v17299_v0 = vadd.f32 %v4962_v62, %v17143_v29  ;;  %6522 = vmatmul.mubr.bf16.gmra.mrb[64].mxu1 %v17021_v51  ;;  %v19906_v20 = vmax.f32 %v17204_v50, 0.0  ;;  %v17308_v33 = vrot.slane %v4964_v54, 4  ;;  %6392 = vmatprep.mubr.bf16.mxu0 %v17206_v13  ;;  %v5381_v16 = vsel %vm2926_vm4, %v5370_v1, %v5380_v21 }
 0x446   : > { %19903 = vst [vmem:[#allocation65_spill] sm:$0xff] %v17289_v10  ;;  %v17296_v3 = vrot.slane %v19904_v45, 4  ;;  %6529 = vmatprep.mubr.bf16.mxu1 %v17208_v55  ;;  %v4770_v29 = vadd.f32 %v16986_v6, %v16948_v41  ;;  %v19699_v46 = vmax.f32 %v17266_v44, 0.0  ;;  %v19698_v32 = vmax.f32 %v17277_v22, 0.0  ;;  %v19907_v45 = vld [vmem:[#allocation39_spill] sm:$0xff] }
 0x447   : > { %19905 = vst [vmem:[#allocation66_spill] sm:$0xff] %v17299_v0  ;;  %v17306_v39 = vrot.slane %v19906_v20, 4  ;;  %v13799_v56 = vpop.f32.mrb[40].mxu1  ;;  %v17317_v31 = vpack.c.bf16 %v5381_v16, %v5371_v48  ;;  %v5202_v54 = vsel %vm2926_vm4, %v5200_v15, %v17239_v38  ;;  %v5395_v40 = vsel %vm2926_vm4, %v16008_v4, %v5200_v15 }
 0x448   : > { %v4920_v19 = vadd.f32 %v13799_v56, %v16963_v47  ;;  %v4911_v35 = vpop.f32.mrb[41].mxu1  ;;  %v5397_v1 = vrot.slane %v5202_v54, 4  ;;  %v5410_v41 = vsel %vm2926_vm4, %v17239_v38, %v16008_v4  ;;  %v17328_v58 = vpack.c.bf16 %v5202_v54, %v5395_v40 }
 0x449   : > { %v4912_v6 = vadd.f32 %v4911_v35, %v16950_v57  ;;  %v13800_v59 = vpop.f32.mrb[42].mxu1  ;;  %v17330_v34 = vpack.c.bf16 %v5410_v41, %v5202_v54  ;;  %v5396_v28 = vrot.slane %v5200_v15, 4  ;;  %v5407_v20 = vrot.slane %v17239_v38, 4  ;;  %v19909_v35 = vld [vmem:[#allocation42_spill] sm:$0xff] }
 0x44a   : > { %v4968_v21 = vmax.f32 %v4920_v19, 0.0  ;;  %v17333_v47 = vadd.f32 %v13800_v59, %v19907_v45  ;;  %v4914_v48 = vpop.f32.mrb[43].mxu1  ;;  %v5205_v16 = vsel %vm2926_vm4, %v17292_v12, %v17306_v39  ;;  %v17339_v56 = vrot.slane %v4962_v62, 4 }
 0x44b   : > { %v4966_v57 = vmax.f32 %v4912_v6, 0.0  ;;  %v17342_v40 = vadd.f32 %v4914_v48, %v19909_v35  ;;  %v5398_v54 = vsel %vm2926_vm4, %v5396_v28, %v5397_v1  ;;  %v17347_v15 = vrot.slane %v19699_v46, 4 }
 0x44c   : > { %19908 = vst [vmem:[#allocation39_spill] sm:$0xff] %v17333_v47  ;;  %v17350_v19 = vadd.f32 %v4968_v21, %v17156_v11  ;;  %v19700_v38 = vmax.f32 %v17333_v47, 0.0  ;;  %v5408_v41 = vsel %vm2926_vm4, %v5397_v1, %v5407_v20  ;;  %v17356_v62 = vrot.slane %v19698_v32, 4  ;;  %6393 = vmatmul.mubr.bf16.gmra.mrb[48].mxu0 %v17175_v18 }
 0x44d   : > { %19910 = vst [vmem:[#allocation42_spill] sm:$0xff] %v17342_v40  ;;  %v17359_v6 = vadd.f32 %v4966_v57, %v17216_v25  ;;  %6530 = vmatmul.mubr.bf16.gmra.mrb[68].mxu1 %v17032_v27  ;;  %v17363_v59 = vpack.c.bf16 %v5408_v41, %v5398_v54  ;;  %v5412_v11 = vsel %vm2926_vm4, %v16008_v4, %v17292_v12  ;;  %v17368_v28 = vrot.slane %v4968_v21, 4 }
 0x44e   : > { %19911 = vst [vmem:[#allocation67_spill] sm:$0xff] %v17350_v19  ;;  %v17370_v1 = vrot.slane %v4966_v57, 4  ;;  %6400 = vmatprep.mubr.bf16.mxu0 %v17259_v43  ;;  %6537 = vmatprep.mubr.bf16.mxu1 %v17261_v37  ;;  %v5414_v25 = vrot.slane %v5205_v16, 4  ;;  %v5419_v45 = vsel %vm2926_vm4, %v17306_v39, %v16008_v4  ;;  %v17379_v48 = vrot.slane %v19700_v38, 4 }
 0x44f   : > { %19912 = vst [vmem:[#allocation68_spill] sm:$0xff] %v17359_v6  ;;  %v13803_v35 = vpop.f32.mrb[44].mxu1  ;;  %v17382_v21 = vpack.c.bf16 %v5205_v16, %v5412_v11  ;;  %v17384_v57 = vpack.c.bf16 %v5419_v45, %v5205_v16  ;;  %v5413_v32 = vrot.slane %v17292_v12, 4  ;;  %v5416_v46 = vrot.slane %v17306_v39, 4 }
 0x450   : > { %v4936_v54 = vadd.f32 %v13803_v35, %v17270_v53  ;;  %v4927_v41 = vpop.f32.mrb[45].mxu1  ;;  %v5208_v6 = vsel %vm2926_vm4, %v17286_v9, %v17296_v3  ;;  %v5421_v11 = vsel %vm2926_vm4, %v16008_v4, %v17286_v9  ;;  %v5428_v53 = vsel %vm2926_vm4, %v17296_v3, %v16008_v4 }
 0x451   : > { %v4928_v38 = vadd.f32 %v4927_v41, %v17274_v2  ;;  %v13804_v19 = vpop.f32.mrb[46].mxu1  ;;  %v5423_v16 = vrot.slane %v5208_v6, 4  ;;  %v5415_v35 = vsel %vm2926_vm4, %v5413_v32, %v5414_v25  ;;  %v5417_v20 = vsel %vm2926_vm4, %v5414_v25, %v5416_v46 }
 0x452   : > { %v4972_v45 = vmax.f32 %v4936_v54, 0.0  ;;  %v4939_v12 = vadd.f32 %v13804_v19, %v17281_v30  ;;  %v4930_v39 = vpop.f32.mrb[47].mxu1  ;;  %v17404_v41 = vpack.c.bf16 %v5417_v20, %v5415_v35  ;;  %v17406_v0 = vpack.c.bf16 %v5208_v6, %v5421_v11 }
 0x453   : > { %v4970_v47 = vmax.f32 %v4928_v38, 0.0  ;;  %v17402_v2 = vadd.f32 %v4930_v39, %v4770_v29  ;;  %v19914_v22 = vmax.f32 %v17342_v40, 0.0  ;;  %v17415_v19 = vpack.c.bf16 %v5428_v53, %v5208_v6 }
 0x454   : > { %v17413_v54 = vadd.f32 %v4972_v45, %v17220_v5  ;;  %v4973_v30 = vmax.f32 %v4939_v12, 0.0  ;;  %v17417_v32 = vrot.slane %v4972_v45, 4  ;;  %6401 = vmatmul.mubr.bf16.gmra.mrb[52].mxu0 %v17208_v55  ;;  %v5211_v6 = vsel %vm2926_vm4, %v17339_v56, %v17356_v62 }
 0x455   : > { %19913 = vst [vmem:[#allocation69_spill] sm:$0xff] %v17402_v2  ;;  %v17410_v10 = vrot.slane %v19914_v22, 4  ;;  %v17420_v46 = vadd.f32 %v4970_v47, %v17230_v52  ;;  %v19703_v29 = vmax.f32 %v17402_v2, 0.0  ;;  %6538 = vmatmul.mubr.bf16.gmra.mrb[72].mxu1 %v17074_v26  ;;  %v5422_v22 = vrot.slane %v17286_v9, 4  ;;  %6408 = vmatprep.mubr.bf16.mxu0 %v17317_v31 }
 0x456   : > { %19915 = vst [vmem:[#allocation70_spill] sm:$0xff] %v17413_v54  ;;  %v17426_v38 = vrot.slane %v4970_v47, 4  ;;  %v17429_v5 = vadd.f32 %v4973_v30, %v17234_v24  ;;  %6545 = vmatprep.mubr.bf16.mxu1 %v17328_v58  ;;  %v5425_v52 = vrot.slane %v17296_v3, 4  ;;  %v17437_v25 = vrot.slane %v4973_v30, 4 }
 0x457   : > { %19916 = vst [vmem:[#allocation71_spill] sm:$0xff] %v17420_v46  ;;  %v17441_v9 = vrot.slane %v19703_v29, 4  ;;  %v5424_v47 = vsel %vm2926_vm4, %v5422_v22, %v5423_v16  ;;  %v5430_v24 = vsel %vm2926_vm4, %v16008_v4, %v17339_v56  ;;  %v5432_v11 = vrot.slane %v5211_v6, 4 }
 0x458   : > { %19917 = vst [vmem:[#allocation72_spill] sm:$0xff] %v17429_v5  ;;  %v5426_v20 = vsel %vm2926_vm4, %v5423_v16, %v5425_v52  ;;  %v5437_v3 = vsel %vm2926_vm4, %v17356_v62, %v16008_v4  ;;  %v17451_v53 = vpack.c.bf16 %v5211_v6, %v5430_v24  ;;  %v5431_v39 = vrot.slane %v17339_v56, 4 }
 0x459   : > { %v17453_v45 = vpack.c.bf16 %v5426_v20, %v5424_v47  ;;  %v17455_v12 = vpack.c.bf16 %v5437_v3, %v5211_v6  ;;  %v5434_v35 = vrot.slane %v17356_v62, 4  ;;  %v5214_v30 = vsel %vm2926_vm4, %v17308_v33, %v17347_v15  ;;  %v12309_v50 = vpop.f32.mrb[16].mxu0 }
 0x45a   : > { %v5439_v16 = vsel %vm2926_vm4, %v16008_v4, %v17308_v33  ;;  %v5446_v22 = vsel %vm2926_vm4, %v17347_v15, %v16008_v4  ;;  %v5440_v52 = vrot.slane %v17308_v33, 4  ;;  %v5433_v6 = vsel %vm2926_vm4, %v5431_v39, %v5432_v11  ;;  %v12310_v61 = vpop.f32.mrb[17].mxu0 }
 0x45b   : > { %v5435_v56 = vsel %vm2926_vm4, %v5432_v11, %v5434_v35  ;;  %v5441_v47 = vrot.slane %v5214_v30, 4  ;;  %v17471_v62 = vpack.c.bf16 %v5214_v30, %v5439_v16  ;;  %v17475_v20 = vpack.c.bf16 %v5446_v22, %v5214_v30 }
 0x45c   : > { %v17473_v24 = vpack.c.bf16 %v5435_v56, %v5433_v6  ;;  %v5443_v3 = vrot.slane %v17347_v15, 4  ;;  %v5225_v29 = vsel %vm2926_vm4, %v17370_v1, %v17410_v10  ;;  %6409 = vmatmul.mubr.bf16.gmra.mrb[56].mxu0 %v17261_v37  ;;  %v5448_v11 = vsel %vm2926_vm4, %v16008_v4, %v17370_v1 }
 0x45d   : > { %6546 = vmatmul.mubr.bf16.gmra.mrb[76].mxu1 %v17111_v23  ;;  %v5442_v33 = vsel %vm2926_vm4, %v5440_v52, %v5441_v47  ;;  %v5450_v39 = vrot.slane %v5225_v29, 4  ;;  %v5228_v35 = vsel %vm2926_vm4, %v17368_v28, %v17379_v48  ;;  %6416 = vmatprep.mubr.bf16.mxu0 %v17363_v59  ;;  %v17493_v30 = vpack.c.bf16 %v5225_v29, %v5448_v11 }
 0x45e   : > { %6553 = vmatprep.mubr.bf16.mxu1 %v17382_v21  ;;  %v5444_v15 = vsel %vm2926_vm4, %v5441_v47, %v5443_v3  ;;  %v5457_v16 = vsel %vm2926_vm4, %v16008_v4, %v17368_v28  ;;  %v5459_v22 = vrot.slane %v5228_v35, 4  ;;  %v5231_v56 = vsel %vm2926_vm4, %v17426_v38, %v17441_v9 }
 0x45f   : > { %v17498_v52 = vpack.c.bf16 %v5444_v15, %v5442_v33  ;;  %v17500_v6 = vpack.c.bf16 %v5228_v35, %v5457_v16  ;;  %v5466_v5 = vsel %vm2926_vm4, %v16008_v4, %v17426_v38  ;;  %v5468_v47 = vrot.slane %v5231_v56, 4 }
 0x460   : > { %v17508_v3 = vpack.c.bf16 %v5231_v56, %v5466_v5  ;;  %v5234_v11 = vsel %vm2926_vm4, %v17417_v32, %v17437_v25  ;;  %v5475_v33 = vsel %vm2926_vm4, %v16008_v4, %v17417_v32  ;;  %v5449_v46 = vrot.slane %v17370_v1, 4 }
 0x461   : > { %v5477_v15 = vrot.slane %v5234_v11, 4  ;;  %v17516_v16 = vpack.c.bf16 %v5234_v11, %v5475_v33  ;;  %v5452_v2 = vrot.slane %v17410_v10, 4  ;;  %v5455_v5 = vsel %vm2926_vm4, %v17410_v10, %v16008_v4 }
 0x462   : > { %v5458_v54 = vrot.slane %v17368_v28, 4  ;;  %v5461_v40 = vrot.slane %v17379_v48, 4  ;;  %v5464_v44 = vsel %vm2926_vm4, %v17379_v48, %v16008_v4  ;;  %v5451_v33 = vsel %vm2926_vm4, %v5449_v46, %v5450_v39 }
 0x463   : > { %v5453_v14 = vsel %vm2926_vm4, %v5450_v39, %v5452_v2  ;;  %v17530_v1 = vpack.c.bf16 %v5455_v5, %v5225_v29  ;;  %v17532_v8 = vpack.c.bf16 %v5464_v44, %v5228_v35  ;;  %v5467_v60 = vrot.slane %v17426_v38, 4  ;;  %v12312_v2 = vpop.f32.mrb[18].mxu0 }
 0x464   : > { %v17534_v49 = vpack.c.bf16 %v5453_v14, %v5451_v33  ;;  %v5460_v10 = vsel %vm2926_vm4, %v5458_v54, %v5459_v22  ;;  %v5462_v28 = vsel %vm2926_vm4, %v5459_v22, %v5461_v40  ;;  %6417 = vmatmul.mubr.bf16.gmra.mrb[60].mxu0 %v17328_v58  ;;  %v17541_v48 = vadd.f32 %v12310_v61, %v12309_v50  ;;  %v12313_v40 = vpop.f32.mrb[19].mxu0 }
 0x465   : > { %6554 = vmatmul.mubr.bf16.gmra.mrb[80].mxu1 %v17177_v7  ;;  %v17543_v46 = vpack.c.bf16 %v5462_v28, %v5460_v10  ;;  %v5470_v44 = vrot.slane %v17441_v9, 4  ;;  %v5473_v14 = vsel %vm2926_vm4, %v17441_v9, %v16008_v4  ;;  %6424 = vmatprep.mubr.bf16.mxu0 %v17404_v41  ;;  %v5469_v54 = vsel %vm2926_vm4, %v5467_v60, %v5468_v47 }
 0x466   : > { %6561 = vmatprep.mubr.bf16.mxu1 %v17406_v0  ;;  %v17552_v29 = vpack.c.bf16 %v5473_v14, %v5231_v56  ;;  %v5476_v50 = vrot.slane %v17417_v32, 4  ;;  %v5479_v61 = vrot.slane %v17437_v25, 4  ;;  %v17556_v38 = vadd.f32 %v12313_v40, %v12312_v2  ;;  %v12315_v32 = vpop.f32.mrb[20].mxu0 }
 0x467   : > { %v5471_v39 = vsel %vm2926_vm4, %v5468_v47, %v5470_v44  ;;  %v5482_v9 = vsel %vm2926_vm4, %v17437_v25, %v16008_v4  ;;  %v12316_v33 = vpop.f32.mrb[21].mxu0 }
 0x468   : > { %v17562_v35 = vpack.c.bf16 %v5471_v39, %v5469_v54  ;;  %v5478_v22 = vsel %vm2926_vm4, %v5476_v50, %v5477_v15  ;;  %v5480_v60 = vsel %vm2926_vm4, %v5477_v15, %v5479_v61  ;;  %v17566_v56 = vpack.c.bf16 %v5482_v9, %v5234_v11  ;;  %v12318_v10 = vpop.f32.mrb[22].mxu0 }
 0x469   : > { %v17568_v5 = vpack.c.bf16 %v5480_v60, %v5478_v22  ;;  %v17572_v47 = vadd.f32 %v12316_v33, %v12315_v32  ;;  %v12319_v4 = vpop.f32.mrb[23].mxu0  ;;  %v14245_v22 = vld [vmem:[#allocation6 + $0x688] sm:$0xff]   ;;  %v19918_v60 = vld [vmem:[#allocation35_spill] sm:$0xff] }
 0x46a   : > { %v17576_v25 = vadd.f32 %v12319_v4, %v12318_v10  ;;  %v12321_v11 = vpop.f32.mrb[24].mxu0  ;;  %v14252_v32 = vld [vmem:[#allocation6 + $0x690] sm:$0xff]   ;;  %v14253_v33 = vld [vmem:[#allocation6 + $0x698] sm:$0xff]  }
 0x46b   : > { %v12322_v15 = vpop.f32.mrb[25].mxu0  ;;  %v19919_v10 = vld [vmem:[#allocation54_spill] sm:$0xff] }
 0x46c   : > { %6425 = vmatmul.mubr.bf16.gmra.mrb[64].mxu0 %v17382_v21  ;;  %v17580_v28 = vadd.f32 %v12322_v15, %v12321_v11  ;;  %v12324_v2 = vpop.f32.mrb[26].mxu0  ;;  %v14256_v4 = vld [vmem:[#allocation6 + $0x6b0] sm:$0xff]   ;;  %v14259_v11 = vld [vmem:[#allocation6 + $0x6c0] sm:$0xff]  }
 0x46d   : > { %6562 = vmatmul.mubr.bf16.gmra.mrb[84].mxu1 %v17212_v63  ;;  %6432 = vmatprep.mubr.bf16.mxu0 %v17453_v45  ;;  %v12325_v44 = vpop.f32.mrb[27].mxu0 }
 0x46e   : > { %6569 = vmatprep.mubr.bf16.mxu1 %v17451_v53  ;;  %v17584_v14 = vadd.f32 %v12325_v44, %v12324_v2 }
 0x471   : > { %v12327_v40 = vpop.f32.mrb[28].mxu0 }
 0x472   : > { %v12328_v54 = vpop.f32.mrb[29].mxu0 }
 0x473   : > { %v17588_v50 = vadd.f32 %v12328_v54, %v12327_v40  ;;  %v12330_v61 = vpop.f32.mrb[30].mxu0 }
 0x474   : > { %6433 = vmatmul.mubr.bf16.gmra.mrb[68].mxu0 %v17406_v0  ;;  %v12331_v39 = vpop.f32.mrb[31].mxu0 }
 0x475   : > { %6570 = vmatmul.mubr.bf16.gmra.mrb[88].mxu1 %v17263_v17  ;;  %6440 = vmatprep.mubr.bf16.mxu0 %v17473_v24  ;;  %v17592_v9 = vadd.f32 %v12331_v39, %v12330_v61 }
 0x476   : > { %6577 = vmatprep.mubr.bf16.mxu1 %v17471_v62 }
 0x47c   : > { %6441 = vmatmul.mubr.bf16.gmra.mrb[72].mxu0 %v17451_v53 }
 0x47d   : > { %6578 = vmatmul.mubr.bf16.gmra.mrb[92].mxu1 %v17330_v34  ;;  %6448 = vmatprep.mubr.bf16.mxu0 %v17498_v52 }
 0x47e   : > { %6585 = vmatprep.mubr.bf16.mxu1 %v17493_v30 }
 0x484   : > { %6449 = vmatmul.mubr.bf16.gmra.mrb[76].mxu0 %v17471_v62 }
 0x485   : > { %6586 = vmatmul.mubr.bf16.gmra.mrb[96].mxu1 %v17384_v57  ;;  %6650 = vmatprep.mubr.bf16.mxu0 %v17021_v51  ;;  %v14254_v51 = vld [vmem:[#allocation6 + $0x6a0] sm:$0xff]  }
 0x486   : > { %6593 = vmatprep.mubr.bf16.mxu1 %v17500_v6 }
 0x48c   : > { %6651 = vmatmul.mubr.bf16.vlgmr.msra.gmra.mrb[80].mxu0 %v17060_v36  ;;  %v14255_v36 = vld [vmem:[#allocation6 + $0x6a8] sm:$0xff]  }
 0x48d   : > { %6594 = vmatmul.mubr.bf16.gmra.mrb[100].mxu1 %v17415_v19  ;;  %6658 = vmatprep.mubr.bf16.mxu0 %v17032_v27  ;;  %v19920_v27 = vld [vmem:[#allocation59_spill] sm:$0xff] }
 0x48e   : > { %13806 = vmatpush3.bf16.msra.mxu0 %v19918_v60  ;;  %6601 = vmatprep.mubr.bf16.mxu1 %v17508_v3 }
 0x48f   : > { %13807 = vmatprep.subr.bf16.mxu0 %v14245_v22 }
 0x492   : > { %13808 = vmatpush3.bf16.msra.mxu0 %v14245_v22 }
 0x493   : > { %13809 = vmatprep.subr.bf16.mxu0 %v14252_v32 }
 0x494   : > { %6659 = vmatmul.mubr.bf16.gmra.mrb[84].mxu0 %v19919_v10  ;;  %v19922_v10 = vld [vmem:[#allocation32_spill] sm:$0xff] }
 0x495   : > { %6602 = vmatmul.mubr.bf16.gmra.mrb[104].mxu1 %v17455_v12  ;;  %6666 = vmatprep.mubr.bf16.mxu0 %v17074_v26  ;;  %v14257_v26 = vld [vmem:[#allocation6 + $0x6b8] sm:$0xff]  }
 0x496   : > { %6609 = vmatprep.mubr.bf16.mxu1 %v17516_v16  ;;  %13810 = vmatpush3.bf16.msra.mxu0 %v14252_v32 }
 0x497   : > { %13811 = vmatprep.subr.bf16.mxu0 %v14253_v33 }
 0x49a   : > { %13812 = vmatpush3.bf16.msra.mxu0 %v14253_v33 }
 0x49b   : > { %13813 = vmatprep.subr.bf16.mxu0 %v14254_v51 }
 0x49c   : > { %6667 = vmatmul.mubr.bf16.gmra.mrb[88].mxu0 %v19920_v27 }
 0x49d   : > { %6610 = vmatmul.mubr.bf16.gmra.mrb[108].mxu1 %v17475_v20  ;;  %6674 = vmatprep.mubr.bf16.mxu0 %v17111_v23  ;;  %v14258_v23 = vld [vmem:[#allocation6 + $0x700] sm:$0xff]  }
 0x49e   : > { %6811 = vmatprep.mubr.bf16.mxu1 %v17206_v13  ;;  %13814 = vmatpush3.bf16.msra.mxu0 %v14254_v51 }
 0x49f   : > { %13815 = vmatprep.subr.bf16.mxu0 %v14255_v36  ;;  %12765 = vmatprep.subr.bf16.mxu1 %v14258_v23 }
 0x4a2   : > { %13816 = vmatpush3.bf16.msra.mxu0 %v14255_v36 }
 0x4a3   : > { %13817 = vmatprep.subr.bf16.mxu0 %v14256_v4 }
 0x4a4   : > { %6675 = vmatmul.mubr.bf16.gmra.mrb[92].mxu0 %v17152_v42  ;;  %v14262_v42 = vld [vmem:[#allocation6 + $0x710] sm:$0xff]  }
 0x4a5   : > { %6812 = vmatmul.mubr.bf16.vlgmr.msra.gmra.mrb[112].mxu1 %v17175_v18  ;;  %6682 = vmatprep.mubr.bf16.mxu0 %v17177_v7  ;;  %v14263_v18 = vld [vmem:[#allocation6 + $0x6d0] sm:$0xff]  }
 0x4a6   : > { %6819 = vmatprep.mubr.bf16.mxu1 %v17259_v43  ;;  %13818 = vmatpush3.bf16.msra.mxu0 %v14256_v4 }
 0x4a7   : > { %13819 = vmatprep.subr.bf16.mxu0 %v14257_v26  ;;  %12766 = vmatpush3.bf16.msra.mxu1 %v14259_v11 }
 0x4aa   : > { %13820 = vmatpush3.bf16.msra.mxu0 %v14257_v26 }
 0x4ac   : > { %6683 = vmatmul.mubr.bf16.gmra.mrb[96].mxu0 %v17206_v13  ;;  %v14261_v13 = vld [vmem:[#allocation6 + $0x6c8] sm:$0xff]  }
 0x4ad   : > { %6820 = vmatmul.mubr.bf16.gmra.mrb[116].mxu1 %v17208_v55  ;;  %6690 = vmatprep.mubr.bf16.mxu0 %v17212_v63  ;;  %v14260_v55 = vld [vmem:[#allocation6 + $0x708] sm:$0xff]  }
 0x4ae   : > { %6827 = vmatprep.mubr.bf16.mxu1 %v17317_v31  ;;  %12767 = vmatprep.subr.bf16.mxu1 %v14260_v55 }
 0x4af   : > { %12768 = vmatpush3.bf16.msra.mxu1 %v14261_v13 }
 0x4b0   : > { %12769 = vmatprep.subr.bf16.mxu1 %v14262_v42 }
 0x4b3   : > { %12770 = vmatpush3.bf16.msra.mxu1 %v14263_v18 }
 0x4b4   : > { %6691 = vmatmul.mubr.bf16.gmra.mrb[100].mxu0 %v17259_v43  ;;  %v14265_v43 = vld [vmem:[#allocation6 + $0x6d8] sm:$0xff]  }
 0x4b5   : > { %6828 = vmatmul.mubr.bf16.gmra.mrb[120].mxu1 %v17261_v37  ;;  %6698 = vmatprep.mubr.bf16.mxu0 %v17263_v17  ;;  %v14264_v37 = vld [vmem:[#allocation6 + $0x718] sm:$0xff]  }
 0x4b6   : > { %6835 = vmatprep.mubr.bf16.mxu1 %v17363_v59  ;;  %12771 = vmatprep.subr.bf16.mxu1 %v14264_v37 }
 0x4b7   : > { %12772 = vmatpush3.bf16.msra.mxu1 %v14265_v43  ;;  %v14270_v43 = vld [vmem:[#allocation6 + $0x730] sm:$0xff]  }
 0x4bc   : > { %6699 = vmatmul.mubr.bf16.gmra.mrb[104].mxu0 %v17317_v31  ;;  %v14267_v31 = vld [vmem:[#allocation6 + $0x6e0] sm:$0xff]  }
 0x4bd   : > { %6836 = vmatmul.mubr.bf16.gmra.mrb[124].mxu1 %v17328_v58  ;;  %6706 = vmatprep.mubr.bf16.mxu0 %v17330_v34  ;;  %v17655_v58 = vld [vmem:[#allocation8 + $0x2] ss:$0 sm:$0xff] }
 0x4be   : > { %6843 = vmatprep.mubr.bf16.mxu1 %v17404_v41  ;;  %v6339_v44 = vadd.f32 %v17572_v47, %v17655_v58  ;;  %v6342_v22 = vadd.f32 %v17576_v25, %v17655_v58  ;;  %v6347_v25 = vadd.f32 %v17580_v28, %v17655_v58 }
 0x4c4   : > { %6707 = vmatmul.mubr.bf16.gmra.mrb[108].mxu0 %v17363_v59 }
 0x4c5   : > { %6844 = vmatmul.mubr.bf16.gmra.mrb[128].mxu1 %v17382_v21  ;;  %6714 = vmatprep.mubr.bf16.mxu0 %v17384_v57  ;;  %v6331_v21 = vadd.f32 %v17541_v48, %v17655_v58  ;;  %v14269_v48 = vld [vmem:[#allocation6 + $0x6e8] sm:$0xff]  }
 0x4c6   : > { %6851 = vmatprep.mubr.bf16.mxu1 %v17453_v45 }
 0x4cc   : > { %6715 = vmatmul.mubr.bf16.gmra.mrb[112].mxu0 %v17404_v41 }
 0x4cd   : > { %6852 = vmatmul.mubr.bf16.gmra.mrb[132].mxu1 %v17406_v0  ;;  %6722 = vmatprep.mubr.bf16.mxu0 %v17415_v19  ;;  %v14266_v0 = vld [vmem:[#allocation6 + $0x720] sm:$0xff]  }
 0x4ce   : > { %6859 = vmatprep.mubr.bf16.mxu1 %v17473_v24  ;;  %12773 = vmatprep.subr.bf16.mxu1 %v14266_v0  ;;  %v14271_v0 = vld [vmem:[#allocation6 + $0x6f0] sm:$0xff]  }
 0x4cf   : > { %12774 = vmatpush3.bf16.msra.mxu1 %v14267_v31 }
 0x4d4   : > { %6723 = vmatmul.mubr.bf16.gmra.mrb[116].mxu0 %v17453_v45 }
 0x4d5   : > { %6860 = vmatmul.mubr.bf16.gmra.mrb[136].mxu1 %v17451_v53  ;;  %6730 = vmatprep.mubr.bf16.mxu0 %v17455_v12 }
 0x4d6   : > { %6867 = vmatprep.mubr.bf16.mxu1 %v17498_v52 }
 0x4dc   : > { %6731 = vmatmul.mubr.bf16.gmra.mrb[120].mxu0 %v17473_v24 }
 0x4dd   : > { %6868 = vmatmul.mubr.bf16.gmra.mrb[140].mxu1 %v17471_v62  ;;  %6738 = vmatprep.mubr.bf16.mxu0 %v17475_v20  ;;  %v6334_v62 = vadd.f32 %v17556_v38, %v17655_v58 }
 0x4de   : > { %6875 = vmatprep.mubr.bf16.mxu1 %v17534_v49 }
 0x4e4   : > { %6739 = vmatmul.mubr.bf16.gmra.mrb[124].mxu0 %v17498_v52 }
 0x4e5   : > { %6876 = vmatmul.mubr.bf16.gmra.mrb[144].mxu1 %v17493_v30  ;;  %6746 = vmatprep.mubr.bf16.mxu0 %v17530_v1 }
 0x4e6   : > { %6883 = vmatprep.mubr.bf16.mxu1 %v17543_v46 }
 0x4ec   : > { %6747 = vmatmul.mubr.bf16.gmra.mrb[128].mxu0 %v17534_v49 }
 0x4ed   : > { %6884 = vmatmul.mubr.bf16.gmra.mrb[148].mxu1 %v17500_v6  ;;  %6754 = vmatprep.mubr.bf16.mxu0 %v17532_v8  ;;  %v19921_v6 = vld [vmem:[#allocation38_spill] sm:$0xff] }
 0x4ee   : > { %6891 = vmatprep.mubr.bf16.mxu1 %v17562_v35 }
 0x4f4   : > { %6755 = vmatmul.mubr.bf16.gmra.mrb[132].mxu0 %v17543_v46 }
 0x4f5   : > { %6892 = vmatmul.mubr.bf16.gmra.mrb[152].mxu1 %v17508_v3  ;;  %6762 = vmatprep.mubr.bf16.mxu0 %v17552_v29  ;;  %v14268_v3 = vld [vmem:[#allocation6 + $0x728] sm:$0xff]  }
 0x4f6   : > { %6899 = vmatprep.mubr.bf16.mxu1 %v17568_v5  ;;  %12775 = vmatprep.subr.bf16.mxu1 %v14268_v3 }
 0x4f7   : > { %12776 = vmatpush3.bf16.msra.mxu1 %v14269_v48 }
 0x4f8   : > { %v12421_v49 = vpop.f32.mrb[48].mxu1  ;;  %12777 = vmatprep.subr.bf16.mxu1 %v14270_v43 }
 0x4f9   : > { %v12422_v59 = vpop.f32.mrb[49].mxu1 }
 0x4fa   : > { %v12423_v41 = vadd.f32 %v12422_v59, %v12421_v49  ;;  %v12424_v53 = vpop.f32.mrb[50].mxu1 }
 0x4fb   : > { %v12425_v45 = vpop.f32.mrb[51].mxu1  ;;  %12778 = vmatpush3.bf16.msra.mxu1 %v14271_v0 }
 0x4fc   : > { %v17661_v24 = vadd.f32 %v12423_v41, %v6331_v21  ;;  %v12426_v30 = vadd.f32 %v12425_v45, %v12424_v53  ;;  %6763 = vmatmul.mubr.bf16.gmra.mrb[136].mxu0 %v17562_v35  ;;  %v6355_v21 = vadd.f32 %v17588_v50, %v17655_v58 }
 0x4fd   : > { %6900 = vmatmul.mubr.bf16.gmra.mrb[156].mxu1 %v17516_v16  ;;  %6770 = vmatprep.mubr.bf16.mxu0 %v17566_v56 }
 0x4fe   : > { %v17666_v52 = vadd.f32 %v12426_v30, %v6334_v62  ;;  %6907 = vmatprep.mubr.bf16.mxu1 %v19921_v6  ;;  %v6358_v30 = vadd.f32 %v17592_v9, %v17655_v58 }
 0x4ff   : > { %v12333_v46 = vpop.f32.mrb[32].mxu0 }
 0x500   : > { %v12427_v15 = vpop.f32.mrb[52].mxu1  ;;  %v12334_v2 = vpop.f32.mrb[33].mxu0 }
 0x501   : > { %v12428_v38 = vpop.f32.mrb[53].mxu1  ;;  %v17671_v35 = vadd.f32 %v12334_v2, %v12333_v46  ;;  %v12336_v16 = vpop.f32.mrb[34].mxu0 }
 0x502   : > { %v12429_v40 = vadd.f32 %v12428_v38, %v12427_v15  ;;  %v12430_v54 = vpop.f32.mrb[54].mxu1  ;;  %v12337_v61 = vpop.f32.mrb[35].mxu0 }
 0x503   : > { %v12431_v39 = vpop.f32.mrb[55].mxu1  ;;  %v17675_v60 = vadd.f32 %v12337_v61, %v12336_v16  ;;  %v6363_v9 = vadd.f32 %v17671_v35, %v17655_v58 }
 0x504   : > { %v17677_v32 = vadd.f32 %v12429_v40, %v6339_v44  ;;  %v12432_v33 = vadd.f32 %v12431_v39, %v12430_v54  ;;  %6771 = vmatmul.mubr.bf16.gmra.mrb[140].mxu0 %v17568_v5 }
 0x505   : > { %6908 = vmatmul.mubr.bf16.gmra.mrb[160].mxu1 %v19922_v10  ;;  %13821 = vmatprep.mubr.bf16.mxu0 %v17177_v7  ;;  %v6350_v7 = vadd.f32 %v17584_v14, %v17655_v58 }
 0x506   : > { %v17682_v47 = vadd.f32 %v12432_v33, %v6342_v22  ;;  %6915 = vmatprep.mubr.bf16.mxu1 %v19921_v6 }
 0x507   : > { %v12339_v51 = vpop.f32.mrb[36].mxu0 }
 0x508   : > { %v12433_v36 = vpop.f32.mrb[56].mxu1  ;;  %v12340_v27 = vpop.f32.mrb[37].mxu0 }
 0x509   : > { %v12434_v4 = vpop.f32.mrb[57].mxu1  ;;  %v17687_v26 = vadd.f32 %v12340_v27, %v12339_v51  ;;  %v12342_v23 = vpop.f32.mrb[38].mxu0  ;;  %v14272_v51 = vld [vmem:[#allocation6 + $0x738] sm:$0xff]  }
 0x50a   : > { %v12435_v11 = vadd.f32 %v12434_v4, %v12433_v36  ;;  %v12436_v5 = vpop.f32.mrb[58].mxu1  ;;  %v12343_v55 = vpop.f32.mrb[39].mxu0  ;;  %v14273_v36 = vld [vmem:[#allocation6 + $0x6f8] sm:$0xff]   ;;  %12779 = vmatprep.subr.bf16.mxu1 %v14272_v51 }
 0x50b   : > { %v12437_v13 = vpop.f32.mrb[59].mxu1  ;;  %v17691_v42 = vadd.f32 %v12343_v55, %v12342_v23  ;;  %12780 = vmatpush3.bf16.msra.mxu1 %v14273_v36  ;;  %v6371_v23 = vadd.f32 %v17687_v26, %v17655_v58 }
 0x50c   : > { %v17693_v18 = vadd.f32 %v12435_v11, %v6347_v25  ;;  %v12438_v37 = vadd.f32 %v12437_v13, %v12436_v5  ;;  %13822 = vmatmul.mubr.bf16.vlgmr.msra.gmra.mrb[144].mxu0 %v17212_v63 }
 0x50d   : > { %6916 = vmatmul.mubr.bf16.gmra.mrb[164].mxu1 %v19922_v10  ;;  %13825 = vmatprep.mubr.bf16.mxu0 %v17263_v17 }
 0x50e   : > { %v17698_v28 = vadd.f32 %v12438_v37, %v6350_v7  ;;  %6923 = vmatprep.mubr.bf16.mxu1 %v19921_v6  ;;  %v6374_v7 = vadd.f32 %v17691_v42, %v17655_v58 }
 0x50f   : > { %v12345_v31 = vpop.f32.mrb[40].mxu0 }
 0x510   : > { %v12439_v49 = vpop.f32.mrb[60].mxu1  ;;  %v12346_v14 = vpop.f32.mrb[41].mxu0 }
 0x511   : > { %v12440_v59 = vpop.f32.mrb[61].mxu1  ;;  %v12347_v63 = vadd.f32 %v12346_v14, %v12345_v31  ;;  %v12348_v41 = vpop.f32.mrb[42].mxu0 }
 0x512   : > { %v12441_v53 = vadd.f32 %v12440_v59, %v12439_v49  ;;  %v12442_v45 = vpop.f32.mrb[62].mxu1  ;;  %v12349_v17 = vpop.f32.mrb[43].mxu0 }
 0x513   : > { %v12443_v62 = vpop.f32.mrb[63].mxu1  ;;  %v17705_v3 = vadd.f32 %v12349_v17, %v12348_v41  ;;  %v6379_v42 = vadd.f32 %v12347_v63, %v17655_v58 }
 0x514   : > { %v17707_v48 = vadd.f32 %v12441_v53, %v6355_v21  ;;  %v12444_v46 = vadd.f32 %v12443_v62, %v12442_v45  ;;  %13826 = vmatmul.mubr.bf16.gmra.mrb[148].mxu0 %v17330_v34  ;;  %v19713_v21 = vmov 0.0|0.0  }
 0x515   : > { %6924 = vmatmul.mubr.bf16.gmra.mrb[168].mxu1 %v19922_v10  ;;  %13829 = vmatprep.mubr.bf16.mxu0 %v17384_v57  ;;  %v6366_v57 = vadd.f32 %v17675_v60, %v17655_v58  ;;  %v6382_v62 = vadd.f32 %v17705_v3, %v17655_v58 }
 0x516   : > { %v17712_v50 = vadd.f32 %v12444_v46, %v6358_v30  ;;  %6931 = vmatprep.mubr.bf16.mxu1 %v19921_v6 }
 0x517   : > { %v12351_v15 = vpop.f32.mrb[44].mxu0 }
 0x518   : > { %v12445_v2 = vpop.f32.mrb[64].mxu1  ;;  %v12352_v38 = vpop.f32.mrb[45].mxu0 }
 0x519   : > { %v12446_v44 = vpop.f32.mrb[65].mxu1  ;;  %v17717_v16 = vadd.f32 %v12352_v38, %v12351_v15  ;;  %v12354_v40 = vpop.f32.mrb[46].mxu0  ;;  %v14275_v38 = vld [vmem:[#allocation6 + $0x7c0] sm:$0xff]  }
 0x51a   : > { %v12447_v54 = vadd.f32 %v12446_v44, %v12445_v2  ;;  %v12448_v34 = vpop.f32.mrb[66].mxu1  ;;  %v12355_v61 = vpop.f32.mrb[47].mxu0  ;;  %v14274_v2 = vld [vmem:[#allocation6 + $0x800] sm:$0xff]  }
 0x51b   : > { %v12449_v39 = vpop.f32.mrb[67].mxu1  ;;  %v17721_v22 = vadd.f32 %v12355_v61, %v12354_v40  ;;  %12989 = vmatprep.subr.bf16.mxu1 %v14274_v2  ;;  %v6387_v3 = vadd.f32 %v17717_v16, %v17655_v58 }
 0x51c   : > { %v17723_v6 = vadd.f32 %v12447_v54, %v6363_v9  ;;  %v12450_v33 = vadd.f32 %v12449_v39, %v12448_v34  ;;  %13830 = vmatmul.mubr.bf16.gmra.mrb[152].mxu0 %v17415_v19 }
 0x51d   : > { %6932 = vmatmul.mubr.bf16.gmra.mrb[172].mxu1 %v19922_v10  ;;  %13833 = vmatprep.mubr.bf16.mxu0 %v17455_v12 }
 0x51e   : > { %v17728_v35 = vadd.f32 %v12450_v33, %v6366_v57  ;;  %8039 = vmatprep.mubr.bf16.mxu1 %v19713_v21  ;;  %v6390_v33 = vadd.f32 %v17721_v22, %v17655_v58 }
 0x51f   : > { %v12357_v27 = vpop.f32.mrb[48].mxu0 }
 0x520   : > { %v12451_v4 = vpop.f32.mrb[68].mxu1  ;;  %v12358_v25 = vpop.f32.mrb[49].mxu0 }
 0x521   : > { %v12452_v60 = vpop.f32.mrb[69].mxu1  ;;  %v17732_v11 = vadd.f32 %v12358_v25, %v12357_v27  ;;  %v12360_v19 = vpop.f32.mrb[50].mxu0 }
 0x522   : > { %v12453_v5 = vadd.f32 %v12452_v60, %v12451_v4  ;;  %v12454_v55 = vpop.f32.mrb[70].mxu1  ;;  %v12361_v13 = vpop.f32.mrb[51].mxu0 }
 0x523   : > { %v12455_v12 = vpop.f32.mrb[71].mxu1  ;;  %v17736_v37 = vadd.f32 %v12361_v13, %v12360_v19  ;;  %v6395_v19 = vadd.f32 %v17732_v11, %v17655_v58 }
 0x524   : > { %v17738_v43 = vadd.f32 %v12453_v5, %v6371_v23  ;;  %v12456_v0 = vadd.f32 %v12455_v12, %v12454_v55  ;;  %13834 = vmatmul.mubr.bf16.gmra.mrb[156].mxu0 %v17475_v20 }
 0x525   : > { %13837 = vmatprep.mubr.bf16.mxu0 %v17530_v1  ;;  %8040 = vmatmul.mubr.bf16.vlgmr.msra.gmra.mrb[176].mxu1 %v19713_v21 }
 0x526   : > { %v17742_v26 = vadd.f32 %v12456_v0, %v6374_v7  ;;  %8047 = vmatprep.mubr.bf16.mxu1 %v19713_v21  ;;  %12990 = vmatpush3.bf16.msra.mxu1 %v14275_v38  ;;  %v6398_v7 = vadd.f32 %v17736_v37, %v17655_v58 }
 0x527   : > { %v12363_v31 = vpop.f32.mrb[52].mxu0 }
 0x528   : > { %v12457_v49 = vpop.f32.mrb[72].mxu1  ;;  %v12364_v14 = vpop.f32.mrb[53].mxu0 }
 0x529   : > { %v12458_v59 = vpop.f32.mrb[73].mxu1  ;;  %v17746_v41 = vadd.f32 %v12364_v14, %v12363_v31  ;;  %v12366_v53 = vpop.f32.mrb[54].mxu0  ;;  %v14276_v14 = vld [vmem:[#allocation6 + $0x808] sm:$0xff]  }
 0x52a   : > { %v12459_v45 = vadd.f32 %v12458_v59, %v12457_v49  ;;  %v12460_v17 = vpop.f32.mrb[74].mxu1  ;;  %v12367_v20 = vpop.f32.mrb[55].mxu0  ;;  %v14277_v59 = vld [vmem:[#allocation6 + $0x7c8] sm:$0xff]   ;;  %12991 = vmatprep.subr.bf16.mxu1 %v14276_v14 }
 0x52b   : > { %v12461_v1 = vpop.f32.mrb[75].mxu1  ;;  %v17752_v30 = vadd.f32 %v12367_v20, %v12366_v53  ;;  %12992 = vmatpush3.bf16.msra.mxu1 %v14277_v59  ;;  %v6403_v37 = vadd.f32 %v17746_v41, %v17655_v58 }
 0x52c   : > { %v17754_v46 = vadd.f32 %v12459_v45, %v6379_v42  ;;  %v12462_v15 = vadd.f32 %v12461_v1, %v12460_v17  ;;  %13838 = vmatmul.mubr.bf16.gmra.mrb[160].mxu0 %v17532_v8 }
 0x52d   : > { %13841 = vmatprep.mubr.bf16.mxu0 %v17552_v29  ;;  %8048 = vmatmul.mubr.bf16.gmra.mrb[180].mxu1 %v19713_v21 }
 0x52e   : > { %v17758_v63 = vadd.f32 %v12462_v15, %v6382_v62  ;;  %8055 = vmatprep.mubr.bf16.mxu1 %v19713_v21 }
 0x52f   : > { %v12369_v44 = vpop.f32.mrb[56].mxu0 }
 0x530   : > { %v12463_v9 = vpop.f32.mrb[76].mxu1  ;;  %v12370_v40 = vpop.f32.mrb[57].mxu0 }
 0x531   : > { %v12464_v54 = vpop.f32.mrb[77].mxu1  ;;  %v17762_v34 = vadd.f32 %v12370_v40, %v12369_v44  ;;  %v12372_v61 = vpop.f32.mrb[58].mxu0  ;;  %v6406_v44 = vadd.f32 %v17752_v30, %v17655_v58 }
 0x532   : > { %v12465_v39 = vadd.f32 %v12464_v54, %v12463_v9  ;;  %v12466_v8 = vpop.f32.mrb[78].mxu1  ;;  %v12373_v29 = vpop.f32.mrb[59].mxu0 }
 0x533   : > { %v12467_v57 = vpop.f32.mrb[79].mxu1  ;;  %v17768_v51 = vadd.f32 %v12373_v29, %v12372_v61 }
 0x534   : > { %v17770_v36 = vadd.f32 %v12465_v39, %v6387_v3  ;;  %v12468_v27 = vadd.f32 %v12467_v57, %v12466_v8  ;;  %13842 = vmatmul.mubr.bf16.gmra.mrb[164].mxu0 %v17566_v56  ;;  %v14278_v39 = vld [vmem:[#allocation6 + $0x780] sm:$0xff]   ;;  %v6411_v57 = vadd.f32 %v17762_v34, %v17655_v58 }
 0x535   : > { %13845 = vmatprep.mubr.bf16.mxu0 %v19922_v10  ;;  %8056 = vmatmul.mubr.bf16.gmra.mrb[184].mxu1 %v19713_v21 }
 0x536   : > { %v17773_v16 = vadd.f32 %v12468_v27, %v6390_v33  ;;  %8063 = vmatprep.mubr.bf16.mxu1 %v19713_v21  ;;  %12877 = vmatprep.subr.bf16.mxu0 %v14278_v39  ;;  %v14287_v39 = vld [vmem:[#allocation6 + $0x758] sm:$0xff]  }
 0x537   : > { %v12375_v4 = vpop.f32.mrb[60].mxu0 }
 0x538   : > { %v12469_v25 = vpop.f32.mrb[80].mxu1  ;;  %v12376_v60 = vpop.f32.mrb[61].mxu0 }
 0x539   : > { %v12470_v23 = vpop.f32.mrb[81].mxu1  ;;  %v17778_v5 = vadd.f32 %v12376_v60, %v12375_v4  ;;  %v12378_v22 = vpop.f32.mrb[62].mxu0  ;;  %v6414_v60 = vadd.f32 %v17768_v51, %v17655_v58 }
 0x53a   : > { %v12471_v55 = vadd.f32 %v12470_v23, %v12469_v25  ;;  %v12472_v13 = vpop.f32.mrb[82].mxu1  ;;  %v12379_v12 = vpop.f32.mrb[63].mxu0 }
 0x53b   : > { %v12473_v56 = vpop.f32.mrb[83].mxu1  ;;  %v17784_v0 = vadd.f32 %v12379_v12, %v12378_v22  ;;  %v14279_v22 = vld [vmem:[#allocation6 + $0x740] sm:$0xff]   ;;  %v14281_v12 = vld [vmem:[#allocation6 + $0x7d0] sm:$0xff]   ;;  %v6419_v51 = vadd.f32 %v17778_v5, %v17655_v58 }
 0x53c   : > { %v17786_v31 = vadd.f32 %v12471_v55, %v6395_v19  ;;  %v12474_v49 = vadd.f32 %v12473_v56, %v12472_v13  ;;  %13846 = vmatmul.mubr.bf16.gmra.mrb[168].mxu0 %v19922_v10  ;;  %v14280_v13 = vld [vmem:[#allocation6 + $0x810] sm:$0xff]   ;;  %v14282_v56 = vld [vmem:[#allocation6 + $0x788] sm:$0xff]  }
 0x53d   : > { %13849 = vmatprep.mubr.bf16.mxu0 %v19922_v10  ;;  %8064 = vmatmul.mubr.bf16.gmra.mrb[188].mxu1 %v19713_v21 }
 0x53e   : > { %v17789_v11 = vadd.f32 %v12474_v49, %v6398_v7  ;;  %8071 = vmatprep.mubr.bf16.mxu1 %v19713_v21  ;;  %12878 = vmatpush3.bf16.msra.mxu0 %v14279_v22  ;;  %v14283_v7 = vld [vmem:[#allocation6 + $0x748] sm:$0xff]  }
 0x53f   : > { %v12381_v42 = vpop.f32.mrb[64].mxu0  ;;  %12993 = vmatprep.subr.bf16.mxu1 %v14280_v13  ;;  %12879 = vmatprep.subr.bf16.mxu0 %v14282_v56  ;;  %v14288_v56 = vld [vmem:[#allocation6 + $0x7a0] sm:$0xff]  }
 0x540   : > { %v12475_v53 = vpop.f32.mrb[84].mxu1  ;;  %v12382_v45 = vpop.f32.mrb[65].mxu0  ;;  %12994 = vmatpush3.bf16.msra.mxu1 %v14281_v12 }
 0x541   : > { %v12476_v17 = vpop.f32.mrb[85].mxu1  ;;  %v17794_v20 = vadd.f32 %v12382_v45, %v12381_v42  ;;  %v12384_v1 = vpop.f32.mrb[66].mxu0 }
 0x542   : > { %v12477_v62 = vadd.f32 %v12476_v17, %v12475_v53  ;;  %v12478_v15 = vpop.f32.mrb[86].mxu1  ;;  %v12385_v2 = vpop.f32.mrb[67].mxu0  ;;  %12880 = vmatpush3.bf16.msra.mxu0 %v14283_v7  ;;  %v14289_v7 = vld [vmem:[#allocation6 + $0x760] sm:$0xff]  }
 0x543   : > { %v12479_v38 = vpop.f32.mrb[87].mxu1  ;;  %v17800_v9 = vadd.f32 %v12385_v2, %v12384_v1 }
 0x544   : > { %v17802_v40 = vadd.f32 %v12477_v62, %v6403_v37  ;;  %v12480_v54 = vadd.f32 %v12479_v38, %v12478_v15  ;;  %13850 = vmatmul.mubr.bf16.gmra.mrb[172].mxu0 %v19922_v10  ;;  %v6422_v15 = vadd.f32 %v17784_v0, %v17655_v58  ;;  %v6427_v0 = vadd.f32 %v17794_v20, %v17655_v58 }
 0x545   : > { %8072 = vmatmul.mubr.bf16.gmra.mrb[192].mxu1 %v19713_v21  ;;  %v6430_v22 = vadd.f32 %v17800_v9, %v17655_v58 }
 0x546   : > { %v17805_v41 = vadd.f32 %v12480_v54, %v6406_v44  ;;  %8079 = vmatprep.mubr.bf16.mxu1 %v19713_v21  ;;  %v14284_v44 = vld [vmem:[#allocation6 + $0x790] sm:$0xff]  }
 0x547   : > { %v12387_v3 = vpop.f32.mrb[68].mxu0  ;;  %v14285_v54 = vld [vmem:[#allocation6 + $0x750] sm:$0xff]   ;;  %12881 = vmatprep.subr.bf16.mxu0 %v14284_v44 }
 0x548   : > { %v12481_v61 = vpop.f32.mrb[88].mxu1  ;;  %v12388_v8 = vpop.f32.mrb[69].mxu0  ;;  %12882 = vmatpush3.bf16.msra.mxu0 %v14285_v54 }
 0x549   : > { %v12482_v29 = vpop.f32.mrb[89].mxu1  ;;  %v17809_v33 = vadd.f32 %v12388_v8, %v12387_v3  ;;  %v12390_v30 = vpop.f32.mrb[70].mxu0 }
 0x54a   : > { %v12483_v27 = vadd.f32 %v12482_v29, %v12481_v61  ;;  %v12484_v4 = vpop.f32.mrb[90].mxu1  ;;  %v12391_v25 = vpop.f32.mrb[71].mxu0  ;;  %v14286_v61 = vld [vmem:[#allocation6 + $0x798] sm:$0xff]  }
 0x54b   : > { %v12485_v10 = vpop.f32.mrb[91].mxu1  ;;  %v17815_v23 = vadd.f32 %v12391_v25, %v12390_v30  ;;  %12883 = vmatprep.subr.bf16.mxu0 %v14286_v61 }
 0x54c   : > { %v17817_v19 = vadd.f32 %v12483_v27, %v6411_v57  ;;  %v12486_v34 = vadd.f32 %v12485_v10, %v12484_v4  ;;  %12884 = vmatpush3.bf16.msra.mxu0 %v14287_v39 }
 0x54d   : > { %8080 = vmatmul.mubr.bf16.gmra.mrb[196].mxu1 %v19713_v21  ;;  %12885 = vmatprep.subr.bf16.mxu0 %v14288_v56  ;;  %v6438_v54 = vadd.f32 %v17815_v23, %v17655_v58  ;;  %v14297_v23 = vld [vmem:[#allocation6 + $0x778] sm:$0xff]  }
 0x54e   : > { %v17819_v55 = vadd.f32 %v12486_v34, %v6414_v60  ;;  %8087 = vmatprep.mubr.bf16.mxu1 %v19713_v21 }
 0x54f   : > { %v12393_v49 = vpop.f32.mrb[72].mxu0 }
 0x550   : > { %v12487_v14 = vpop.f32.mrb[92].mxu1  ;;  %v12394_v59 = vpop.f32.mrb[73].mxu0  ;;  %12886 = vmatpush3.bf16.msra.mxu0 %v14289_v7 }
 0x551   : > { %v12488_v42 = vpop.f32.mrb[93].mxu1  ;;  %v17823_v53 = vadd.f32 %v12394_v59, %v12393_v49  ;;  %v12396_v45 = vpop.f32.mrb[74].mxu0  ;;  %v14291_v59 = vld [vmem:[#allocation6 + $0x7d8] sm:$0xff]  }
 0x552   : > { %v12489_v17 = vadd.f32 %v12488_v42, %v12487_v14  ;;  %v12490_v37 = vpop.f32.mrb[94].mxu1  ;;  %v12397_v1 = vpop.f32.mrb[75].mxu0  ;;  %v14290_v14 = vld [vmem:[#allocation6 + $0x818] sm:$0xff]   ;;  %v14292_v42 = vld [vmem:[#allocation6 + $0x7a8] sm:$0xff]  }
 0x553   : > { %v12491_v62 = vpop.f32.mrb[95].mxu1  ;;  %v17829_v2 = vadd.f32 %v12397_v1, %v12396_v45  ;;  %12995 = vmatprep.subr.bf16.mxu1 %v14290_v14  ;;  %12887 = vmatprep.subr.bf16.mxu0 %v14292_v42  ;;  %v6435_v1 = vadd.f32 %v17809_v33, %v17655_v58  ;;  %v14294_v33 = vld [vmem:[#allocation6 + $0x7b0] sm:$0xff]  }
 0x554   : > { %v17831_v38 = vadd.f32 %v12489_v17, %v6419_v51  ;;  %v12492_v5 = vadd.f32 %v12491_v62, %v12490_v37  ;;  %v14293_v51 = vld [vmem:[#allocation6 + $0x768] sm:$0xff]   ;;  %12996 = vmatpush3.bf16.msra.mxu1 %v14291_v59 }
 0x555   : > { %8088 = vmatmul.mubr.bf16.gmra.mrb[200].mxu1 %v19713_v21  ;;  %12888 = vmatpush3.bf16.msra.mxu0 %v14293_v51 }
 0x556   : > { %v17833_v3 = vadd.f32 %v12492_v5, %v6422_v15  ;;  %8095 = vmatprep.mubr.bf16.mxu1 %v19713_v21  ;;  %12889 = vmatprep.subr.bf16.mxu0 %v14294_v33 }
 0x557   : > { %v12399_v8 = vpop.f32.mrb[76].mxu0 }
 0x558   : > { %v12493_v29 = vpop.f32.mrb[96].mxu1  ;;  %v12400_v57 = vpop.f32.mrb[77].mxu0 }
 0x559   : > { %v12494_v30 = vpop.f32.mrb[97].mxu1  ;;  %v17837_v27 = vadd.f32 %v12400_v57, %v12399_v8  ;;  %v12402_v4 = vpop.f32.mrb[78].mxu0 }
 0x55a   : > { %v12495_v25 = vadd.f32 %v12494_v30, %v12493_v29  ;;  %v12496_v10 = vpop.f32.mrb[98].mxu1  ;;  %v12403_v60 = vpop.f32.mrb[79].mxu0 }
 0x55b   : > { %v12497_v34 = vpop.f32.mrb[99].mxu1  ;;  %v17843_v13 = vadd.f32 %v12403_v60, %v12402_v4 }
 0x55c   : > { %v17845_v12 = vadd.f32 %v12495_v25, %v6427_v0  ;;  %v12498_v20 = vadd.f32 %v12497_v34, %v12496_v10  ;;  %v14295_v0 = vld [vmem:[#allocation6 + $0x770] sm:$0xff]   ;;  %v14296_v10 = vld [vmem:[#allocation6 + $0x7b8] sm:$0xff]  }
 0x55d   : > { %8096 = vmatmul.mubr.bf16.gmra.mrb[204].mxu1 %v19713_v21  ;;  %12890 = vmatpush3.bf16.msra.mxu0 %v14295_v0 }
 0x55e   : > { %v17847_v49 = vadd.f32 %v12498_v20, %v6430_v22  ;;  %12891 = vmatprep.subr.bf16.mxu0 %v14296_v10  ;;  %v6443_v20 = vadd.f32 %v17823_v53, %v17655_v58  ;;  %v14298_v53 = vld [vmem:[#allocation6 + $0x820] sm:$0xff]  }
 0x55f   : > { %v12533_v45 = vpop.f32.mrb[80].mxu0  ;;  %12997 = vmatprep.subr.bf16.mxu1 %v14298_v53 }
 0x560   : > { %v12499_v17 = vpop.f32.mrb[100].mxu1  ;;  %v12534_v9 = vpop.f32.mrb[81].mxu0 }
 0x561   : > { %v12500_v37 = vpop.f32.mrb[101].mxu1  ;;  %v12535_v62 = vadd.f32 %v12534_v9, %v12533_v45  ;;  %v12536_v15 = vpop.f32.mrb[82].mxu0  ;;  %12892 = vmatpush3.bf16.msra.mxu0 %v14297_v23 }
 0x562   : > { %v12501_v5 = vadd.f32 %v12500_v37, %v12499_v17  ;;  %v12502_v44 = vpop.f32.mrb[102].mxu1  ;;  %v12537_v61 = vpop.f32.mrb[83].mxu0 }
 0x563   : > { %v12503_v39 = vpop.f32.mrb[103].mxu1  ;;  %v17855_v8 = vadd.f32 %v12535_v62, %v17661_v24  ;;  %v12538_v29 = vadd.f32 %v12537_v61, %v12536_v15  ;;  %v14299_v15 = vld [vmem:[#allocation6 + $0x7e0] sm:$0xff]   ;;  %v6451_v61 = vadd.f32 %v17837_v27, %v17655_v58 }
 0x564   : > { %v17857_v57 = vadd.f32 %v12501_v5, %v6435_v1  ;;  %v12504_v30 = vadd.f32 %v12503_v39, %v12502_v44  ;;  %12998 = vmatpush3.bf16.msra.mxu1 %v14299_v15  ;;  %v14300_v15 = vld [vmem:[#allocation6 + $0x828] sm:$0xff]  }
 0x565   : > { %v17860_v4 = vadd.f32 %v12538_v29, %v17666_v52  ;;  %v6446_v52 = vadd.f32 %v17829_v2, %v17655_v58  ;;  %12999 = vmatprep.subr.bf16.mxu1 %v14300_v15  ;;  %v14304_v15 = vld [vmem:[#allocation6 + $0x830] sm:$0xff]  }
 0x566   : > { %v17862_v25 = vadd.f32 %v12504_v30, %v6438_v54 }
 0x567   : > { %v12539_v60 = vpop.f32.mrb[84].mxu0 }
 0x568   : > { %v12505_v34 = vpop.f32.mrb[104].mxu1  ;;  %v12540_v24 = vpop.f32.mrb[85].mxu0 }
 0x569   : > { %v12506_v22 = vpop.f32.mrb[105].mxu1  ;;  %v12541_v56 = vadd.f32 %v12540_v24, %v12539_v60  ;;  %v12542_v7 = vpop.f32.mrb[86].mxu0 }
 0x56a   : > { %v12507_v14 = vadd.f32 %v12506_v22, %v12505_v34  ;;  %v12508_v59 = vpop.f32.mrb[106].mxu1  ;;  %v12543_v42 = vpop.f32.mrb[87].mxu0 }
 0x56b   : > { %v12509_v51 = vpop.f32.mrb[107].mxu1  ;;  %v6661_v45 = vadd.f32 %v12541_v56, %v17677_v32  ;;  %v12544_v17 = vadd.f32 %v12543_v42, %v12542_v7 }
 0x56c   : > { %v17869_v9 = vadd.f32 %v12507_v14, %v6443_v20  ;;  %v12510_v37 = vadd.f32 %v12509_v51, %v12508_v59 }
 0x56d   : > { %v6664_v1 = vadd.f32 %v12544_v17, %v17682_v47  ;;  %v6454_v47 = vadd.f32 %v17843_v13, %v17655_v58 }
 0x56e   : > { %v17872_v62 = vadd.f32 %v12510_v37, %v6446_v52 }
 0x56f   : > { %v12545_v5 = vpop.f32.mrb[88].mxu0 }
 0x570   : > { %v12511_v44 = vpop.f32.mrb[108].mxu1  ;;  %v12546_v54 = vpop.f32.mrb[89].mxu0 }
 0x571   : > { %v12512_v2 = vpop.f32.mrb[109].mxu1  ;;  %v12547_v32 = vadd.f32 %v12546_v54, %v12545_v5  ;;  %v12548_v39 = vpop.f32.mrb[90].mxu0  ;;  %v14301_v5 = vld [vmem:[#allocation6 + $0x7e8] sm:$0xff]  }
 0x572   : > { %v12513_v29 = vadd.f32 %v12512_v2, %v12511_v44  ;;  %v12514_v30 = vpop.f32.mrb[110].mxu1  ;;  %v12549_v33 = vpop.f32.mrb[91].mxu0  ;;  %13000 = vmatpush3.bf16.msra.mxu1 %v14301_v5  ;;  %v14305_v5 = vld [vmem:[#allocation6 + $0x7f0] sm:$0xff]  }
 0x573   : > { %v12515_v0 = vpop.f32.mrb[111].mxu1  ;;  %v6669_v10 = vadd.f32 %v12547_v32, %v17693_v18  ;;  %v12550_v23 = vadd.f32 %v12549_v33, %v12548_v39  ;;  %13001 = vmatprep.subr.bf16.mxu1 %v14304_v15  ;;  %v14309_v15 = vld [vmem:[#allocation6 + $0x7f8] sm:$0xff]  }
 0x574   : > { %v17879_v60 = vadd.f32 %v12513_v29, %v6451_v61  ;;  %v12516_v34 = vadd.f32 %v12515_v0, %v12514_v30 }
 0x575   : > { %v6672_v24 = vadd.f32 %v12550_v23, %v17698_v28 }
 0x576   : > { %v17882_v22 = vadd.f32 %v12516_v34, %v6454_v47  ;;  %13002 = vmatpush3.bf16.msra.mxu1 %v14305_v5 }
 0x577   : > { %v12551_v27 = vpop.f32.mrb[92].mxu0 }
 0x578   : > { %v12645_v20 = vpop.f32.mrb[112].mxu1  ;;  %v12552_v56 = vpop.f32.mrb[93].mxu0 }
 0x579   : > { %v12646_v7 = vpop.f32.mrb[113].mxu1  ;;  %v12553_v14 = vadd.f32 %v12552_v56, %v12551_v27  ;;  %v12554_v59 = vpop.f32.mrb[94].mxu0 }
 0x57a   : > { %v12647_v52 = vadd.f32 %v12646_v7, %v12645_v20  ;;  %v12648_v58 = vpop.f32.mrb[114].mxu1  ;;  %v12555_v13 = vpop.f32.mrb[95].mxu0 }
 0x57b   : > { %v12649_v42 = vpop.f32.mrb[115].mxu1  ;;  %v6677_v18 = vadd.f32 %v12553_v14, %v17707_v48  ;;  %v12556_v51 = vadd.f32 %v12555_v13, %v12554_v59 }
 0x57c   : > { %v12650_v17 = vadd.f32 %v12649_v42, %v12648_v58  ;;  %v17886_v37 = vadd.f32 %v12647_v52, %v17855_v8  ;;  %v14302_v42 = vld [vmem:[#allocation6 + $0x880] sm:$0xff]  }
 0x57d   : > { %v6680_v28 = vadd.f32 %v12556_v51, %v17712_v50  ;;  %13101 = vmatprep.subr.bf16.mxu0 %v14302_v42 }
 0x57e   : > { %v17890_v53 = vadd.f32 %v12650_v17, %v17860_v4 }
 0x57f   : > { %v12557_v44 = vpop.f32.mrb[96].mxu0 }
 0x580   : > { %v12651_v54 = vpop.f32.mrb[116].mxu1  ;;  %v12558_v2 = vpop.f32.mrb[97].mxu0 }
 0x581   : > { %v12652_v61 = vpop.f32.mrb[117].mxu1  ;;  %v12559_v32 = vadd.f32 %v12558_v2, %v12557_v44  ;;  %v12560_v48 = vpop.f32.mrb[98].mxu0 }
 0x582   : > { %v12653_v39 = vadd.f32 %v12652_v61, %v12651_v54  ;;  %v12654_v29 = vpop.f32.mrb[118].mxu1  ;;  %v12561_v30 = vpop.f32.mrb[99].mxu0 }
 0x583   : > { %v12655_v8 = vpop.f32.mrb[119].mxu1  ;;  %v6685_v47 = vadd.f32 %v12559_v32, %v17723_v6  ;;  %v12562_v50 = vadd.f32 %v12561_v30, %v12560_v48 }
 0x584   : > { %v12656_v33 = vadd.f32 %v12655_v8, %v12654_v29  ;;  %v17893_v4 = vadd.f32 %v12653_v39, %v6661_v45 }
 0x585   : > { %v6688_v0 = vadd.f32 %v12562_v50, %v17728_v35 }
 0x586   : > { %v17896_v23 = vadd.f32 %v12656_v33, %v6664_v1 }
 0x587   : > { %v12563_v34 = vpop.f32.mrb[100].mxu0 }
 0x588   : > { %v12657_v27 = vpop.f32.mrb[120].mxu1  ;;  %v12564_v20 = vpop.f32.mrb[101].mxu0 }
 0x589   : > { %v12658_v56 = vpop.f32.mrb[121].mxu1  ;;  %v12565_v7 = vadd.f32 %v12564_v20, %v12563_v34  ;;  %v12566_v14 = vpop.f32.mrb[102].mxu0 }
 0x58a   : > { %v12659_v59 = vadd.f32 %v12658_v56, %v12657_v27  ;;  %v12660_v52 = vpop.f32.mrb[122].mxu1  ;;  %v12567_v58 = vpop.f32.mrb[103].mxu0 }
 0x58b   : > { %v12661_v13 = vpop.f32.mrb[123].mxu1  ;;  %v6693_v6 = vadd.f32 %v12565_v7, %v17738_v43  ;;  %v12568_v51 = vadd.f32 %v12567_v58, %v12566_v14 }
 0x58c   : > { %v12662_v45 = vadd.f32 %v12661_v13, %v12660_v52  ;;  %v17899_v17 = vadd.f32 %v12659_v59, %v6669_v10 }
 0x58d   : > { %v6696_v35 = vadd.f32 %v12568_v51, %v17742_v26 }
 0x58e   : > { %v17902_v1 = vadd.f32 %v12662_v45, %v6672_v24  ;;  %v14308_v45 = vld [vmem:[#allocation6 + $0x838] sm:$0xff]  }
 0x58f   : > { %v12569_v44 = vpop.f32.mrb[104].mxu0  ;;  %13003 = vmatprep.subr.bf16.mxu1 %v14308_v45 }
 0x590   : > { %v12663_v54 = vpop.f32.mrb[124].mxu1  ;;  %v12570_v2 = vpop.f32.mrb[105].mxu0  ;;  %13004 = vmatpush3.bf16.msra.mxu1 %v14309_v15 }
 0x591   : > { %v12664_v61 = vpop.f32.mrb[125].mxu1  ;;  %v12571_v32 = vadd.f32 %v12570_v2, %v12569_v44  ;;  %v12572_v48 = vpop.f32.mrb[106].mxu0 }
 0x592   : > { %v12665_v43 = vadd.f32 %v12664_v61, %v12663_v54  ;;  %v12666_v39 = vpop.f32.mrb[126].mxu1  ;;  %v12573_v29 = vpop.f32.mrb[107].mxu0 }
 0x593   : > { %v12667_v10 = vpop.f32.mrb[127].mxu1  ;;  %v6701_v30 = vadd.f32 %v12571_v32, %v17754_v46  ;;  %v12574_v8 = vadd.f32 %v12573_v29, %v12572_v48 }
 0x594   : > { %v12668_v26 = vadd.f32 %v12667_v10, %v12666_v39  ;;  %v17905_v24 = vadd.f32 %v12665_v43, %v6677_v18 }
 0x595   : > { %v6704_v50 = vadd.f32 %v12574_v8, %v17758_v63 }
 0x596   : > { %v17908_v33 = vadd.f32 %v12668_v26, %v6680_v28 }
 0x597   : > { %v12575_v34 = vpop.f32.mrb[108].mxu0 }
 0x598   : > { %v12669_v27 = vpop.f32.mrb[128].mxu1  ;;  %v12576_v20 = vpop.f32.mrb[109].mxu0 }
 0x599   : > { %v12670_v56 = vpop.f32.mrb[129].mxu1  ;;  %v12577_v7 = vadd.f32 %v12576_v20, %v12575_v34  ;;  %v12578_v14 = vpop.f32.mrb[110].mxu0 }
 0x59a   : > { %v12671_v59 = vadd.f32 %v12670_v56, %v12669_v27  ;;  %v12672_v52 = vpop.f32.mrb[130].mxu1  ;;  %v12579_v58 = vpop.f32.mrb[111].mxu0 }
 0x59b   : > { %v12673_v13 = vpop.f32.mrb[131].mxu1  ;;  %v6709_v46 = vadd.f32 %v12577_v7, %v17770_v36  ;;  %v12580_v42 = vadd.f32 %v12579_v58, %v12578_v14 }
 0x59c   : > { %v12674_v51 = vadd.f32 %v12673_v13, %v12672_v52  ;;  %v17911_v18 = vadd.f32 %v12671_v59, %v6685_v47  ;;  %v17922_v13 = vld [vmem:[#allocation6 + $0x8c0] sm:$0xff]  }
 0x59d   : > { %v6712_v63 = vadd.f32 %v12580_v42, %v17773_v16  ;;  %13853 = vmatprep.subr.bf16.mxu1 %v17922_v13 }
 0x59e   : > { %v17914_v28 = vadd.f32 %v12674_v51, %v6688_v0 }
 0x59f   : > { %v12581_v5 = vpop.f32.mrb[112].mxu0 }
 0x5a0   : > { %v12675_v44 = vpop.f32.mrb[132].mxu1  ;;  %v12582_v54 = vpop.f32.mrb[113].mxu0 }
 0x5a1   : > { %v12676_v2 = vpop.f32.mrb[133].mxu1  ;;  %v12583_v61 = vadd.f32 %v12582_v54, %v12581_v5  ;;  %v12584_v32 = vpop.f32.mrb[114].mxu0 }
 0x5a2   : > { %v12677_v48 = vadd.f32 %v12676_v2, %v12675_v44  ;;  %v12678_v36 = vpop.f32.mrb[134].mxu1  ;;  %v12585_v43 = vpop.f32.mrb[115].mxu0 }
 0x5a3   : > { %v12679_v39 = vpop.f32.mrb[135].mxu1  ;;  %v6717_v47 = vadd.f32 %v12583_v61, %v17786_v31  ;;  %v12586_v29 = vadd.f32 %v12585_v43, %v12584_v32 }
 0x5a4   : > { %v12680_v16 = vadd.f32 %v12679_v39, %v12678_v36  ;;  %v17917_v0 = vadd.f32 %v12677_v48, %v6693_v6 }
 0x5a5   : > { %v6720_v10 = vadd.f32 %v12586_v29, %v17789_v11 }
 0x5a6   : > { %v17920_v8 = vadd.f32 %v12680_v16, %v6696_v35 }
 0x5a7   : > { %v12587_v26 = vpop.f32.mrb[116].mxu0 }
 0x5a8   : > { %v12681_v34 = vpop.f32.mrb[136].mxu1  ;;  %v12588_v27 = vpop.f32.mrb[117].mxu0 }
 0x5a9   : > { %v12682_v20 = vpop.f32.mrb[137].mxu1  ;;  %v12589_v56 = vadd.f32 %v12588_v27, %v12587_v26  ;;  %v12590_v7 = vpop.f32.mrb[118].mxu0 }
 0x5aa   : > { %v12683_v14 = vadd.f32 %v12682_v20, %v12681_v34  ;;  %v12684_v59 = vpop.f32.mrb[138].mxu1  ;;  %v12591_v52 = vpop.f32.mrb[119].mxu0 }
 0x5ab   : > { %v12685_v58 = vpop.f32.mrb[139].mxu1  ;;  %v6725_v31 = vadd.f32 %v12589_v56, %v17802_v40  ;;  %v12592_v6 = vadd.f32 %v12591_v52, %v12590_v7 }
 0x5ac   : > { %v12686_v42 = vadd.f32 %v12685_v58, %v12684_v59  ;;  %v17925_v51 = vadd.f32 %v12683_v14, %v6701_v30 }
 0x5ad   : > { %v6728_v11 = vadd.f32 %v12592_v6, %v17805_v41 }
 0x5ae   : > { %v17929_v35 = vadd.f32 %v12686_v42, %v6704_v50 }
 0x5af   : > { %v12593_v45 = vpop.f32.mrb[120].mxu0 }
 0x5b0   : > { %v12687_v15 = vpop.f32.mrb[140].mxu1  ;;  %v12594_v5 = vpop.f32.mrb[121].mxu0 }
 0x5b1   : > { %v12688_v44 = vpop.f32.mrb[141].mxu1  ;;  %v12595_v54 = vadd.f32 %v12594_v5, %v12593_v45  ;;  %v12596_v2 = vpop.f32.mrb[122].mxu0 }
 0x5b2   : > { %v12689_v61 = vadd.f32 %v12688_v44, %v12687_v15  ;;  %v12690_v32 = vpop.f32.mrb[142].mxu1  ;;  %v12597_v48 = vpop.f32.mrb[123].mxu0 }
 0x5b3   : > { %v12691_v40 = vpop.f32.mrb[143].mxu1  ;;  %v6733_v36 = vadd.f32 %v12595_v54, %v17817_v19  ;;  %v12598_v30 = vadd.f32 %v12597_v48, %v12596_v2 }
 0x5b4   : > { %v12692_v43 = vadd.f32 %v12691_v40, %v12690_v32  ;;  %v17932_v39 = vadd.f32 %v12689_v61, %v6709_v46 }
 0x5b5   : > { %v6736_v41 = vadd.f32 %v12598_v30, %v17819_v55 }
 0x5b6   : > { %v17935_v50 = vadd.f32 %v12692_v43, %v6712_v63 }
 0x5b7   : > { %v12599_v29 = vpop.f32.mrb[124].mxu0 }
 0x5b8   : > { %v12693_v16 = vpop.f32.mrb[144].mxu1  ;;  %v12600_v26 = vpop.f32.mrb[125].mxu0 }
 0x5b9   : > { %v12694_v34 = vpop.f32.mrb[145].mxu1  ;;  %v12601_v27 = vadd.f32 %v12600_v26, %v12599_v29  ;;  %v12602_v20 = vpop.f32.mrb[126].mxu0 }
 0x5ba   : > { %v12695_v56 = vadd.f32 %v12694_v34, %v12693_v16  ;;  %v12696_v7 = vpop.f32.mrb[146].mxu1  ;;  %v12603_v14 = vpop.f32.mrb[127].mxu0 }
 0x5bb   : > { %v12697_v59 = vpop.f32.mrb[147].mxu1  ;;  %v6741_v19 = vadd.f32 %v12601_v27, %v17831_v38  ;;  %v12604_v52 = vadd.f32 %v12603_v14, %v12602_v20 }
 0x5bc   : > { %v12698_v58 = vadd.f32 %v12697_v59, %v12696_v7  ;;  %v17938_v46 = vadd.f32 %v12695_v56, %v6717_v47 }
 0x5bd   : > { %v6744_v55 = vadd.f32 %v12604_v52, %v17833_v3 }
 0x5be   : > { %v17941_v63 = vadd.f32 %v12698_v58, %v6720_v10 }
 0x5bf   : > { %v12605_v6 = vpop.f32.mrb[128].mxu0 }
 0x5c0   : > { %v12699_v42 = vpop.f32.mrb[148].mxu1  ;;  %v12606_v45 = vpop.f32.mrb[129].mxu0 }
 0x5c1   : > { %v12700_v15 = vpop.f32.mrb[149].mxu1  ;;  %v12607_v5 = vadd.f32 %v12606_v45, %v12605_v6  ;;  %v12608_v44 = vpop.f32.mrb[130].mxu0 }
 0x5c2   : > { %v12701_v54 = vadd.f32 %v12700_v15, %v12699_v42  ;;  %v12702_v2 = vpop.f32.mrb[150].mxu1  ;;  %v12609_v61 = vpop.f32.mrb[131].mxu0 }
 0x5c3   : > { %v12703_v32 = vpop.f32.mrb[151].mxu1  ;;  %v6749_v38 = vadd.f32 %v12607_v5, %v17845_v12  ;;  %v12610_v48 = vadd.f32 %v12609_v61, %v12608_v44 }
 0x5c4   : > { %v12704_v40 = vadd.f32 %v12703_v32, %v12702_v2  ;;  %v17944_v47 = vadd.f32 %v12701_v54, %v6725_v31 }
 0x5c5   : > { %v6752_v3 = vadd.f32 %v12610_v48, %v17847_v49 }
 0x5c6   : > { %v17947_v10 = vadd.f32 %v12704_v40, %v6728_v11 }
 0x5c7   : > { %v12611_v30 = vpop.f32.mrb[132].mxu0 }
 0x5c8   : > { %v12705_v43 = vpop.f32.mrb[152].mxu1  ;;  %v12612_v29 = vpop.f32.mrb[133].mxu0 }
 0x5c9   : > { %v12706_v16 = vpop.f32.mrb[153].mxu1  ;;  %v12613_v26 = vadd.f32 %v12612_v29, %v12611_v30  ;;  %v12614_v34 = vpop.f32.mrb[134].mxu0 }
 0x5ca   : > { %v12707_v27 = vadd.f32 %v12706_v16, %v12705_v43  ;;  %v12708_v20 = vpop.f32.mrb[154].mxu1  ;;  %v12615_v56 = vpop.f32.mrb[135].mxu0 }
 0x5cb   : > { %v12709_v7 = vpop.f32.mrb[155].mxu1  ;;  %v17950_v12 = vadd.f32 %v12613_v26, %v17857_v57  ;;  %v12616_v14 = vadd.f32 %v12615_v56, %v12614_v34 }
 0x5cc   : > { %v12710_v31 = vadd.f32 %v12709_v7, %v12708_v20  ;;  %v17952_v59 = vadd.f32 %v12707_v27, %v6733_v36 }
 0x5cd   : > { %v17955_v49 = vadd.f32 %v12616_v14, %v17862_v25 }
 0x5ce   : > { %v17957_v11 = vadd.f32 %v12710_v31, %v6736_v41 }
 0x5cf   : > { %v12617_v52 = vpop.f32.mrb[136].mxu0 }
 0x5d0   : > { %v12711_v58 = vpop.f32.mrb[156].mxu1  ;;  %v12618_v6 = vpop.f32.mrb[137].mxu0 }
 0x5d1   : > { %v12712_v42 = vpop.f32.mrb[157].mxu1  ;;  %v12619_v45 = vadd.f32 %v12618_v6, %v12617_v52  ;;  %v12620_v15 = vpop.f32.mrb[138].mxu0  ;;  %v14416_v52 = vld [vmem:[%s14810_s6 + $0x10] sm:$0xff] }
 0x5d2   : > { %v12713_v5 = vadd.f32 %v12712_v42, %v12711_v58  ;;  %v12714_v44 = vpop.f32.mrb[158].mxu1  ;;  %v12621_v54 = vpop.f32.mrb[139].mxu0  ;;  %v19923_v58 = vld [vmem:[#allocation28_spill] sm:$0xff] }
 0x5d3   : > { %v12715_v57 = vpop.f32.mrb[159].mxu1  ;;  %v17960_v2 = vadd.f32 %v12619_v45, %v17869_v9  ;;  %v12622_v36 = vadd.f32 %v12621_v54, %v12620_v15  ;;  %v2687_v6 = vadd.f32 %v14416_v52, %v19923_v58  ;;  %v14417_v42 = vld [vmem:[%s14810_s6] sm:$0xff]  ;;  %v19924_v45 = vld [vmem:[#allocation30_spill] sm:$0xff]  ;;  %v14418_v54 = vld [vmem:[%s14810_s6 + $0x18] sm:$0xff] }
 0x5d4   : > { %v12716_v61 = vadd.f32 %v12715_v57, %v12714_v44  ;;  %v17962_v32 = vadd.f32 %v12713_v5, %v6741_v19  ;;  %v2685_v15 = vadd.f32 %v14417_v42, %v19924_v45 }
 0x5d5   : > { %v17965_v25 = vadd.f32 %v12622_v36, %v17872_v62  ;;  %v14419_v36 = vld [vmem:[%s14810_s6 + $0x8] sm:$0xff] }
 0x5d6   : > { %v17967_v41 = vadd.f32 %v12716_v61, %v6744_v55 }
 0x5d7   : > { %v12623_v48 = vpop.f32.mrb[140].mxu0 }
 0x5d8   : > { %v12717_v40 = vpop.f32.mrb[160].mxu1  ;;  %v12624_v30 = vpop.f32.mrb[141].mxu0 }
 0x5d9   : > { %v12718_v43 = vpop.f32.mrb[161].mxu1  ;;  %v12625_v29 = vadd.f32 %v12624_v30, %v12623_v48  ;;  %v12626_v16 = vpop.f32.mrb[142].mxu0 }
 0x5da   : > { %v12719_v26 = vadd.f32 %v12718_v43, %v12717_v40  ;;  %v12720_v9 = vpop.f32.mrb[162].mxu1  ;;  %v12627_v34 = vpop.f32.mrb[143].mxu0  ;;  %v19927_v43 = vld [vmem:[#allocation44_spill] sm:$0xff] }
 0x5db   : > { %v12721_v27 = vpop.f32.mrb[163].mxu1  ;;  %v17970_v19 = vadd.f32 %v12625_v29, %v17879_v60  ;;  %v12628_v62 = vadd.f32 %v12627_v34, %v12626_v16  ;;  %v19928_v29 = vmax.f32 %v19927_v43, 0.0  ;;  %v14420_v43 = vld [vmem:[%s14810_s6 + $0x30] sm:$0xff] }
 0x5dc   : > { %v12722_v55 = vadd.f32 %v12721_v27, %v12720_v9  ;;  %v17972_v20 = vadd.f32 %v12719_v26, %v6749_v38  ;;  %v19925_v38 = vld [vmem:[#allocation18_spill] sm:$0xff]  ;;  %v19929_v26 = vld [vmem:[#allocation45_spill] sm:$0xff] }
 0x5dd   : > { %v17975_v56 = vadd.f32 %v12628_v62, %v17882_v22  ;;  %v2688_v57 = vadd.f32 %v14418_v54, %v19925_v38  ;;  %v19926_v22 = vld [vmem:[#allocation31_spill] sm:$0xff]  ;;  %v4976_v16 = vadd.f32 %v19928_v29, %v2687_v6  ;;  %v19930_v9 = vmax.f32 %v19929_v26, 0.0  ;;  %v19940_v29 = vld [vmem:[#allocation24_spill] sm:$0xff] }
 0x5de   : > { %v17977_v7 = vadd.f32 %v12722_v55, %v6752_v3  ;;  %v2686_v61 = vadd.f32 %v14419_v36, %v19926_v22  ;;  %v14303_v36 = vld [vmem:[#allocation6 + $0x840] sm:$0xff]  }
 0x5df   : > { %v13823_v14 = vpop.f32.mrb[144].mxu0  ;;  %v4974_v34 = vadd.f32 %v19930_v9, %v2685_v15  ;;  %v14421_v26 = vld [vmem:[%s14810_s6 + $0x20] sm:$0xff]  ;;  %v19941_v9 = vld [vmem:[#allocation23_spill] sm:$0xff] }
 0x5e0   : > { %v12723_v31 = vpop.f32.mrb[164].mxu1  ;;  %v6983_v60 = vadd.f32 %v13823_v14, %v17893_v4  ;;  %v6974_v5 = vpop.f32.mrb[145].mxu0 }
 0x5e1   : > { %v12724_v44 = vpop.f32.mrb[165].mxu1  ;;  %v6975_v3 = vadd.f32 %v6974_v5, %v17886_v37  ;;  %v13824_v48 = vpop.f32.mrb[146].mxu0  ;;  %v19933_v5 = vld [vmem:[#allocation48_spill] sm:$0xff] }
 0x5e2   : > { %v12725_v40 = vadd.f32 %v12724_v44, %v12723_v31  ;;  %v12726_v30 = vpop.f32.mrb[166].mxu1  ;;  %v7103_v4 = vmax.f32 %v6983_v60, 0.0  ;;  %v6986_v27 = vadd.f32 %v13824_v48, %v17896_v23  ;;  %v6977_v62 = vpop.f32.mrb[147].mxu0  ;;  %v19931_v31 = vld [vmem:[#allocation47_spill] sm:$0xff]  ;;  %v19934_v6 = vmax.f32 %v19933_v5, 0.0 }
 0x5e3   : > { %v12727_v55 = vpop.f32.mrb[167].mxu1  ;;  %v7101_v14 = vmax.f32 %v6975_v3, 0.0  ;;  %v6978_v52 = vadd.f32 %v6977_v62, %v17890_v53  ;;  %v19932_v42 = vmax.f32 %v19931_v31, 0.0  ;;  %v19936_v60 = vmov 0.0   ;;  %v19942_v62 = vld [vmem:[#allocation16_spill] sm:$0xff]  ;;  %v19943_v31 = vld [vmem:[#allocation14_spill] sm:$0xff] }
 0x5e4   : > { %v12728_v58 = vadd.f32 %v12727_v55, %v12726_v30  ;;  %v17996_v37 = vadd.f32 %v12725_v40, %v17950_v12  ;;  %v4975_v44 = vadd.f32 %v19934_v6, %v2686_v61  ;;  %v18002_v54 = vmax.f32 %v6986_v27, 0.0  ;;  %v14306_v40 = vld [vmem:[#allocation6 + $0x888] sm:$0xff]   ;;  %v14422_v27 = vld [vmem:[%s14810_s6 + $0x38] sm:$0xff] }
 0x5e5   : > { %v4977_v45 = vadd.f32 %v19932_v42, %v2688_v57  ;;  %v18004_v15 = vadd.f32 %v7103_v4, %v4976_v16  ;;  %v18006_v23 = vmax.f32 %v6978_v52, 0.0  ;;  %v7329_v53 = vpack.c.bf16 %v7101_v14, %v19936_v60 }
 0x5e6   : > { %v18010_v38 = vadd.f32 %v12728_v58, %v17955_v49  ;;  %v18012_v12 = vadd.f32 %v7101_v14, %v4974_v34  ;;  %v18015_v57 = vpack.c.bf16 %v18002_v54, %v7103_v4  ;;  %v18024_v48 = vpack.c.bf16 %v7103_v4, %v19936_v60  ;;  %v14423_v58 = vld [vmem:[%s14810_s6 + $0x28] sm:$0xff] }
 0x5e7   : > { %19935 = vst [vmem:[#allocation35_spill] sm:$0xff] %v18004_v15  ;;  %v18018_v22 = vadd.f32 %v18002_v54, %v4977_v45  ;;  %v13827_v61 = vpop.f32.mrb[148].mxu0  ;;  %8200 = vmatprep.mubr.bf16.mxu0 %v7329_v53  ;;  %v18021_v3 = vpack.c.bf16 %v18006_v23, %v7101_v14  ;;  %v18027_v30 = vadd.f32 %v18006_v23, %v4975_v44 }
 0x5e8   : > { %19937 = vst [vmem:[#allocation54_spill] sm:$0xff] %v18012_v12  ;;  %v12729_v49 = vpop.f32.mrb[168].mxu1  ;;  %v2691_v16 = vadd.f32 %v14420_v43, %v19940_v29  ;;  %v2689_v34 = vadd.f32 %v14421_v26, %v19941_v9  ;;  %v2692_v55 = vadd.f32 %v14422_v27, %v19942_v62  ;;  %v6999_v14 = vadd.f32 %v13827_v61, %v17905_v24  ;;  %v6990_v52 = vpop.f32.mrb[149].mxu0  ;;  %v19944_v43 = vld [vmem:[#allocation50_spill] sm:$0xff]  ;;  %v19946_v24 = vld [vmem:[#allocation21_spill] sm:$0xff] }
 0x5e9   : > { %19938 = vst [vmem:[#allocation59_spill] sm:$0xff] %v18018_v22  ;;  %19939 = vst [vmem:[#allocation38_spill] sm:$0xff] %v18027_v30  ;;  %8201 = vmatmul.mubr.bf16.vlgmr.msra.gmra.mrb[176].mxu0 %v19713_v21  ;;  %v12730_v4 = vpop.f32.mrb[169].mxu1  ;;  %v2690_v42 = vadd.f32 %v14423_v58, %v19943_v31  ;;  %v6991_v45 = vadd.f32 %v6990_v52, %v17899_v17  ;;  %v13828_v5 = vpop.f32.mrb[150].mxu0  ;;  %8103 = vmatprep.mubr.bf16.mxu1 %v18021_v3  ;;  %v19945_v29 = vmax.f32 %v19944_v43, 0.0  ;;  %v14307_v52 = vld [vmem:[#allocation6 + $0x848] sm:$0xff]  }
 0x5ea   : > { %8208 = vmatprep.mubr.bf16.mxu0 %v18024_v48  ;;  %v12731_v6 = vadd.f32 %v12730_v4, %v12729_v49  ;;  %v12732_v44 = vpop.f32.mrb[170].mxu1  ;;  %v19947_v61 = vmax.f32 %v19946_v24, 0.0  ;;  %v18046_v27 = vmax.f32 %v6999_v14, 0.0  ;;  %v7002_v62 = vadd.f32 %v13828_v5, %v17908_v33  ;;  %v6993_v58 = vpop.f32.mrb[151].mxu0  ;;  %8104 = vmatmul.mubr.bf16.gmra.mrb[208].mxu1 %v7329_v53  ;;  %v19948_v14 = vld [vmem:[#allocation26_spill] sm:$0xff] }
 0x5eb   : > { %v4980_v26 = vadd.f32 %v19945_v29, %v2691_v16  ;;  %v12733_v17 = vpop.f32.mrb[171].mxu1  ;;  %13102 = vmatpush3.bf16.msra.mxu0 %v14303_v36  ;;  %v7105_v31 = vmax.f32 %v6991_v45, 0.0  ;;  %v6994_v21 = vadd.f32 %v6993_v58, %v17902_v1  ;;  %8111 = vmatprep.mubr.bf16.mxu1 %v18015_v57  ;;  %v19949_v4 = vmax.f32 %v19948_v14, 0.0  ;;  %v19951_v36 = vld [vmem:[#allocation20_spill] sm:$0xff] }
 0x5ec   : > { %v4978_v9 = vadd.f32 %v19947_v61, %v2689_v34  ;;  %v12734_v49 = vadd.f32 %v12733_v17, %v12732_v44  ;;  %13103 = vmatprep.subr.bf16.mxu0 %v14306_v40  ;;  %v18052_v16 = vadd.f32 %v12731_v6, %v17960_v2  ;;  %v14310_v34 = vld [vmem:[#allocation6 + $0x890] sm:$0xff]   ;;  %v18056_v33 = vmax.f32 %v7002_v62, 0.0  ;;  %v14425_v58 = vld [vmem:[%s14810_s6 + $0x40] sm:$0xff] }
 0x5ed   : > { %v4981_v43 = vadd.f32 %v19949_v4, %v2692_v55  ;;  %v18059_v53 = vadd.f32 %v18046_v27, %v4980_v26  ;;  %v19952_v45 = vmax.f32 %v19951_v36, 0.0  ;;  %v18063_v5 = vmax.f32 %v6994_v21, 0.0  ;;  %v14311_v6 = vld [vmem:[#allocation6 + $0x850] sm:$0xff]   ;;  %v14313_v26 = vld [vmem:[#allocation6 + $0x898] sm:$0xff]   ;;  %v19957_v17 = vld [vmem:[#allocation25_spill] sm:$0xff] }
 0x5ee   : > { %v18066_v40 = vadd.f32 %v12734_v49, %v17965_v25  ;;  %v18068_v2 = vadd.f32 %v7105_v31, %v4978_v9  ;;  %v18072_v55 = vpack.c.bf16 %v18056_v33, %v18046_v27  ;;  %v18078_v21 = vpack.c.bf16 %v7105_v31, %v19936_v60  ;;  %v14424_v61 = vld [vmem:[%s14810_s6 + $0x50] sm:$0xff] }
 0x5ef   : > { %19950 = vst [vmem:[#allocation32_spill] sm:$0xff] %v18059_v53  ;;  %v4979_v1 = vadd.f32 %v19952_v45, %v2690_v42  ;;  %13104 = vmatpush3.bf16.msra.mxu0 %v14307_v52  ;;  %v18075_v44 = vadd.f32 %v18056_v33, %v4981_v43  ;;  %v13831_v29 = vpop.f32.mrb[152].mxu0  ;;  %v18081_v25 = vpack.c.bf16 %v18063_v5, %v7105_v31  ;;  %v19956_v9 = vld [vmem:[#allocation27_spill] sm:$0xff]  ;;  %v19958_v4 = vmov 0.0|0.0  }
 0x5f0   : > { %19953 = vst [vmem:[#allocation28_spill] sm:$0xff] %v18068_v2  ;;  %v12735_v42 = vpop.f32.mrb[172].mxu1  ;;  %13105 = vmatprep.subr.bf16.mxu0 %v14310_v34  ;;  %v2695_v62 = vadd.f32 %v14424_v61, %v19956_v9  ;;  %v2693_v52 = vadd.f32 %v14425_v58, %v19957_v17  ;;  %v7015_v49 = vadd.f32 %v13831_v29, %v17917_v0  ;;  %v7006_v14 = vpop.f32.mrb[153].mxu0  ;;  %v14426_v31 = vld [vmem:[%s14810_s6 + $0x58] sm:$0xff]  ;;  %v14427_v34 = vld [vmem:[%s14810_s6 + $0x48] sm:$0xff] }
 0x5f1   : > { %19954 = vst [vmem:[#allocation30_spill] sm:$0xff] %v18075_v44  ;;  %v18084_v24 = vadd.f32 %v18063_v5, %v4979_v1  ;;  %8209 = vmatmul.mubr.bf16.gmra.mrb[180].mxu0 %v19958_v4  ;;  %v12736_v43 = vpop.f32.mrb[173].mxu1  ;;  %v19959_v36 = vld [vmem:[#allocation19_spill] sm:$0xff]  ;;  %v19960_v44 = vld [vmem:[#allocation17_spill] sm:$0xff]  ;;  %v7007_v1 = vadd.f32 %v7006_v14, %v17911_v18  ;;  %v19961_v58 = vld [vmem:[#allocation52_spill] sm:$0xff] }
 0x5f2   : > { %v2696_v45 = vadd.f32 %v14426_v31, %v19959_v36  ;;  %v2694_v2 = vadd.f32 %v14427_v34, %v19960_v44  ;;  %8216 = vmatprep.mubr.bf16.mxu0 %v18078_v21  ;;  %v12737_v61 = vadd.f32 %v12736_v43, %v12735_v42  ;;  %v12738_v9 = vpop.f32.mrb[174].mxu1  ;;  %v19962_v17 = vmax.f32 %v19961_v58, 0.0  ;;  %v19963_v29 = vld [vmem:[#allocation53_spill] sm:$0xff]  ;;  %8112 = vmatmul.mubr.bf16.gmra.mrb[212].mxu1 %v18024_v48  ;;  %v14314_v18 = vld [vmem:[#allocation6 + $0x858] sm:$0xff]  }
 0x5f3   : > { %19955 = vst [vmem:[#allocation18_spill] sm:$0xff] %v18084_v24  ;;  %v13832_v24 = vpop.f32.mrb[154].mxu0  ;;  %v19964_v53 = vmax.f32 %v19963_v29, 0.0  ;;  %v18102_v22 = vmax.f32 %v7015_v49, 0.0  ;;  %v12739_v44 = vpop.f32.mrb[175].mxu1  ;;  %13106 = vmatpush3.bf16.msra.mxu0 %v14311_v6  ;;  %v18106_v14 = vmax.f32 %v7007_v1, 0.0  ;;  %8119 = vmatprep.mubr.bf16.mxu1 %v18081_v25 }
 0x5f4   : > { %v4984_v0 = vadd.f32 %v19962_v17, %v2695_v62  ;;  %v7018_v31 = vadd.f32 %v13832_v24, %v17920_v8  ;;  %v7009_v36 = vpop.f32.mrb[155].mxu0  ;;  %v12740_v62 = vadd.f32 %v12739_v44, %v12738_v9  ;;  %v18111_v43 = vadd.f32 %v12737_v61, %v17970_v19  ;;  %13107 = vmatprep.subr.bf16.mxu0 %v14313_v26  ;;  %v19968_v6 = vld [vmem:[#allocation56_spill] sm:$0xff]  ;;  %v19973_v29 = vld [vmem:[#allocation22_spill] sm:$0xff] }
 0x5f5   : > { %v4982_v30 = vadd.f32 %v19964_v53, %v2693_v52  ;;  %v7010_v42 = vadd.f32 %v7009_v36, %v17914_v28  ;;  %v14316_v53 = vld [vmem:[#allocation6 + $0x8a0] sm:$0xff]   ;;  %v19965_v52 = vld [vmem:[#allocation55_spill] sm:$0xff]  ;;  %v19969_v34 = vmax.f32 %v19968_v6, 0.0 }
 0x5f6   : > { %v19966_v8 = vmax.f32 %v19965_v52, 0.0  ;;  %v18115_v49 = vmax.f32 %v7018_v31, 0.0  ;;  %v18118_v48 = vadd.f32 %v18102_v22, %v4984_v0  ;;  %v18125_v9 = vadd.f32 %v12740_v62, %v17975_v56  ;;  %v14428_v0 = vld [vmem:[%s14810_s6 + $0x70] sm:$0xff]  ;;  %v14430_v6 = vld [vmem:[%s14810_s6 + $0x78] sm:$0xff] }
 0x5f7   : > { %v4983_v28 = vadd.f32 %v19969_v34, %v2694_v2  ;;  %v18122_v1 = vmax.f32 %v7010_v42, 0.0  ;;  %v18128_v19 = vadd.f32 %v18106_v14, %v4982_v30  ;;  %13108 = vmatpush3.bf16.msra.mxu0 %v14314_v18  ;;  %v13835_v58 = vpop.f32.mrb[156].mxu0  ;;  %v18139_v2 = vpack.c.bf16 %v18046_v27, %v19936_v60  ;;  %v14319_v30 = vld [vmem:[#allocation6 + $0x8a8] sm:$0xff]   ;;  %v14429_v27 = vld [vmem:[%s14810_s6 + $0x60] sm:$0xff]  ;;  %v19977_v34 = vld [vmem:[#allocation15_spill] sm:$0xff] }
 0x5f8   : > { %v4985_v24 = vadd.f32 %v19966_v8, %v2696_v45  ;;  %19967 = vst [vmem:[#allocation31_spill] sm:$0xff] %v18118_v48  ;;  %v18132_v26 = vpack.c.bf16 %v18115_v49, %v18102_v22  ;;  %v14317_v45 = vld [vmem:[#allocation6 + $0x860] sm:$0xff]   ;;  %13109 = vmatprep.subr.bf16.mxu0 %v14316_v53  ;;  %v2699_v31 = vadd.f32 %v14428_v0, %v19973_v29  ;;  %v7022_v44 = vpop.f32.mrb[157].mxu0  ;;  %v14320_v29 = vld [vmem:[#allocation6 + $0x868] sm:$0xff]  }
 0x5f9   : > { %19970 = vst [vmem:[#allocation44_spill] sm:$0xff] %v18128_v19  ;;  %v18143_v56 = vpack.c.bf16 %v18122_v1, %v18106_v14  ;;  %v18146_v17 = vadd.f32 %v18122_v1, %v4983_v28  ;;  %v7031_v36 = vadd.f32 %v13835_v58, %v17932_v39  ;;  %8217 = vmatmul.mubr.bf16.gmra.mrb[184].mxu0 %v19958_v4  ;;  %v19974_v18 = vld [vmem:[#allocation29_spill] sm:$0xff]  ;;  %v13836_v52 = vpop.f32.mrb[158].mxu0 }
 0x5fa   : > { %v18135_v61 = vadd.f32 %v18115_v49, %v4985_v24  ;;  %v2697_v42 = vadd.f32 %v14429_v27, %v19974_v18  ;;  %v7023_v62 = vadd.f32 %v7022_v44, %v17925_v51  ;;  %8224 = vmatprep.mubr.bf16.mxu0 %v18139_v2  ;;  %v19975_v53 = vld [vmem:[#allocation57_spill] sm:$0xff]  ;;  %v2700_v28 = vadd.f32 %v14430_v6, %v19977_v34  ;;  %v7025_v58 = vpop.f32.mrb[159].mxu0  ;;  %v19978_v27 = vld [vmem:[#allocation58_spill] sm:$0xff] }
 0x5fb   : > { %19972 = vst [vmem:[#allocation47_spill] sm:$0xff] %v18146_v17  ;;  %v19976_v8 = vmax.f32 %v19975_v53, 0.0  ;;  %v18160_v0 = vmax.f32 %v7031_v36, 0.0  ;;  %v7034_v39 = vadd.f32 %v13836_v52, %v17935_v50  ;;  %8120 = vmatmul.mubr.bf16.gmra.mrb[216].mxu1 %v18078_v21  ;;  %13110 = vmatpush3.bf16.msra.mxu0 %v14317_v45  ;;  %v19979_v51 = vmax.f32 %v19978_v27, 0.0  ;;  %v14431_v18 = vld [vmem:[%s14810_s6 + $0x68] sm:$0xff]  ;;  %v14322_v36 = vld [vmem:[#allocation6 + $0x8b0] sm:$0xff]  }
 0x5fc   : > { %19971 = vst [vmem:[#allocation45_spill] sm:$0xff] %v18135_v61  ;;  %v19980_v17 = vld [vmem:[#allocation13_spill] sm:$0xff]  ;;  %v18168_v53 = vmax.f32 %v7023_v62, 0.0  ;;  %8127 = vmatprep.mubr.bf16.mxu1 %v18072_v55  ;;  %13111 = vmatprep.subr.bf16.mxu0 %v14319_v30  ;;  %v19981_v50 = vld [vmem:[#allocation60_spill] sm:$0xff]  ;;  %v12781_v45 = vpop.f32.mrb[176].mxu1 }
 0x5fd   : > { %v4988_v24 = vadd.f32 %v19976_v8, %v2699_v31  ;;  %v4986_v44 = vadd.f32 %v19979_v51, %v2697_v42  ;;  %v2698_v61 = vadd.f32 %v14431_v18, %v19980_v17  ;;  %v7026_v31 = vadd.f32 %v7025_v58, %v17929_v35  ;;  %v19984_v42 = vld [vmem:[#allocation36_spill] sm:$0xff]  ;;  %v12782_v27 = vpop.f32.mrb[177].mxu1 }
 0x5fe   : > { %v19982_v52 = vmax.f32 %v19981_v50, 0.0  ;;  %v18174_v21 = vmax.f32 %v7034_v39, 0.0  ;;  %v19985_v34 = vmax.f32 %v19984_v42, 0.0  ;;  %v18190_v39 = vadd.f32 %v12782_v27, %v12781_v45  ;;  %v12784_v58 = vpop.f32.mrb[178].mxu1  ;;  %v14324_v18 = vld [vmem:[#allocation6 + $0x8b8] sm:$0xff]  }
 0x5ff   : > { %v18177_v6 = vadd.f32 %v18160_v0, %v4988_v24  ;;  %v18181_v62 = vmax.f32 %v7026_v31, 0.0  ;;  %v18184_v35 = vadd.f32 %v18168_v53, %v4986_v44  ;;  %13112 = vmatpush3.bf16.msra.mxu0 %v14320_v29  ;;  %v7365_v51 = vpack.c.bf16 %v18106_v14, %v19936_v60  ;;  %v12785_v31 = vpop.f32.mrb[179].mxu1  ;;  %v14432_v42 = vld [vmem:[%s14810_s6 + $0x98] sm:$0xff] }
 0x600   : > { %v4989_v8 = vadd.f32 %v19982_v52, %v2700_v28  ;;  %v4987_v17 = vadd.f32 %v19985_v34, %v2698_v61  ;;  %v18188_v30 = vpack.c.bf16 %v18174_v21, %v18160_v0  ;;  %v14323_v28 = vld [vmem:[#allocation6 + $0x870] sm:$0xff]   ;;  %v13839_v61 = vpop.f32.mrb[160].mxu0  ;;  %13113 = vmatprep.subr.bf16.mxu0 %v14322_v36  ;;  %v19989_v34 = vld [vmem:[#allocation37_spill] sm:$0xff] }
 0x601   : > { %19983 = vst [vmem:[#allocation48_spill] sm:$0xff] %v18177_v6  ;;  %19986 = vst [vmem:[#allocation24_spill] sm:$0xff] %v18184_v35  ;;  %v18199_v44 = vpack.c.bf16 %v18181_v62, %v18168_v53  ;;  %v7047_v50 = vadd.f32 %v13839_v61, %v17944_v47  ;;  %v7038_v52 = vpop.f32.mrb[161].mxu0  ;;  %8225 = vmatmul.mubr.bf16.gmra.mrb[188].mxu0 %v19958_v4  ;;  %v2704_v36 = vadd.f32 %v14432_v42, %v19989_v34  ;;  %v14325_v47 = vld [vmem:[#allocation6 + $0x878] sm:$0xff]   ;;  %v14433_v61 = vld [vmem:[%s14810_s6 + $0x88] sm:$0xff] }
 0x602   : > { %v18193_v24 = vadd.f32 %v18174_v21, %v4989_v8  ;;  %v18202_v29 = vadd.f32 %v18181_v62, %v4987_v17  ;;  %v18206_v8 = vadd.f32 %v12785_v31, %v12784_v58  ;;  %v7039_v14 = vadd.f32 %v7038_v52, %v17938_v46  ;;  %v13840_v45 = vpop.f32.mrb[162].mxu0  ;;  %8232 = vmatprep.mubr.bf16.mxu0 %v7365_v51  ;;  %v14328_v52 = vld [vmem:[#allocation6 + $0x940] sm:$0xff]  }
 0x603   : > { %v18211_v27 = vmax.f32 %v7047_v50, 0.0  ;;  %v7050_v17 = vadd.f32 %v13840_v45, %v17947_v10  ;;  %8128 = vmatmul.mubr.bf16.gmra.mrb[220].mxu1 %v18139_v2  ;;  %13114 = vmatpush3.bf16.msra.mxu0 %v14323_v28  ;;  %v19991_v50 = vld [vmem:[#allocation33_spill] sm:$0xff]  ;;  %v12787_v45 = vpop.f32.mrb[180].mxu1  ;;  %v19995_v35 = vld [vmem:[#allocation40_spill] sm:$0xff] }
 0x604   : > { %19987 = vst [vmem:[#allocation23_spill] sm:$0xff] %v18193_v24  ;;  %19988 = vst [vmem:[#allocation16_spill] sm:$0xff] %v18202_v29  ;;  %v7041_v29 = vpop.f32.mrb[163].mxu0  ;;  %v19990_v24 = vld [vmem:[#allocation34_spill] sm:$0xff]  ;;  %v18217_v31 = vmax.f32 %v7039_v14, 0.0  ;;  %8135 = vmatprep.mubr.bf16.mxu1 %v18143_v56  ;;  %13115 = vmatprep.subr.bf16.mxu0 %v14324_v18  ;;  %v19992_v42 = vmax.f32 %v19991_v50, 0.0 }
 0x605   : > { %v2702_v58 = vadd.f32 %v14433_v61, %v19990_v24  ;;  %v7042_v46 = vadd.f32 %v7041_v29, %v17941_v63  ;;  %v18223_v10 = vmax.f32 %v7050_v17, 0.0  ;;  %v19993_v2 = vld [vmem:[#allocation61_spill] sm:$0xff]  ;;  %v19996_v24 = vmax.f32 %v19995_v35, 0.0  ;;  %v12788_v63 = vpop.f32.mrb[181].mxu1  ;;  %v19997_v29 = vld [vmem:[#allocation62_spill] sm:$0xff] }
 0x606   : > { %v4993_v34 = vadd.f32 %v19992_v42, %v2704_v36  ;;  %v18227_v28 = vadd.f32 %v18211_v27, %v19993_v2  ;;  %v18235_v18 = vadd.f32 %v18217_v31, %v19997_v29  ;;  %v18241_v17 = vadd.f32 %v12788_v63, %v12787_v45  ;;  %v12790_v50 = vpop.f32.mrb[182].mxu1  ;;  %v14434_v29 = vld [vmem:[%s14810_s6 + $0xb8] sm:$0xff] }
 0x607   : > { %v4991_v14 = vadd.f32 %v19996_v24, %v2702_v58  ;;  %v18231_v61 = vmax.f32 %v7042_v46, 0.0  ;;  %13116 = vmatpush3.bf16.msra.mxu0 %v14325_v47  ;;  %v18239_v36 = vpack.c.bf16 %v18223_v10, %v18211_v27  ;;  %v13843_v35 = vpop.f32.mrb[164].mxu0  ;;  %v7374_v58 = vpack.c.bf16 %v18102_v22, %v19936_v60  ;;  %v12791_v47 = vpop.f32.mrb[183].mxu1 }
 0x608   : > { %19994 = vst [vmem:[#allocation14_spill] sm:$0xff] %v18227_v28  ;;  %19998 = vst [vmem:[#allocation50_spill] sm:$0xff] %v18235_v18  ;;  %v18244_v42 = vadd.f32 %v18223_v10, %v4993_v34  ;;  %13237 = vmatprep.subr.bf16.mxu0 %v14328_v52  ;;  %v7063_v45 = vadd.f32 %v13843_v35, %v17962_v32  ;;  %v7054_v24 = vpop.f32.mrb[165].mxu0  ;;  %v18257_v34 = vadd.f32 %v12791_v47, %v12790_v50  ;;  %v20002_v32 = vld [vmem:[#allocation41_spill] sm:$0xff] }
 0x609   : > { %v18250_v46 = vpack.c.bf16 %v18231_v61, %v18217_v31  ;;  %v18253_v2 = vadd.f32 %v18231_v61, %v4991_v14  ;;  %8233 = vmatmul.mubr.bf16.gmra.mrb[192].mxu0 %v19958_v4  ;;  %v7055_v63 = vadd.f32 %v7054_v24, %v17952_v59  ;;  %v13844_v22 = vpop.f32.mrb[166].mxu0  ;;  %v20003_v59 = vld [vmem:[#allocation63_spill] sm:$0xff] }
 0x60a   : > { %19999 = vst [vmem:[#allocation21_spill] sm:$0xff] %v18244_v42  ;;  %8240 = vmatprep.mubr.bf16.mxu0 %v7374_v58  ;;  %v20001_v42 = vld [vmem:[#allocation43_spill] sm:$0xff]  ;;  %v18262_v28 = vmax.f32 %v7063_v45, 0.0  ;;  %v7066_v52 = vadd.f32 %v13844_v22, %v17967_v41  ;;  %v7057_v14 = vpop.f32.mrb[167].mxu0  ;;  %v20004_v47 = vmax.f32 %v20003_v59, 0.0  ;;  %v20005_v45 = vld [vmem:[#allocation65_spill] sm:$0xff] }
 0x60b   : > { %20000 = vst [vmem:[#allocation26_spill] sm:$0xff] %v18253_v2  ;;  %v2708_v18 = vadd.f32 %v14434_v29, %v20001_v42  ;;  %8136 = vmatmul.mubr.bf16.gmra.mrb[224].mxu1 %v7365_v51  ;;  %v14435_v2 = vld [vmem:[%s14810_s6 + $0xa8] sm:$0xff]  ;;  %v18267_v6 = vmax.f32 %v7055_v63, 0.0  ;;  %v7058_v50 = vadd.f32 %v7057_v14, %v17957_v11  ;;  %v12793_v42 = vpop.f32.mrb[184].mxu1  ;;  %v20007_v51 = vld [vmem:[#allocation64_spill] sm:$0xff] }
 0x60c   : > { %v2706_v35 = vadd.f32 %v14435_v2, %v20002_v32  ;;  %8143 = vmatprep.mubr.bf16.mxu1 %v18132_v26  ;;  %v18273_v19 = vmax.f32 %v7066_v52, 0.0  ;;  %v18277_v41 = vadd.f32 %v18262_v28, %v20005_v45  ;;  %v20008_v22 = vmax.f32 %v20007_v51, 0.0  ;;  %v12794_v63 = vpop.f32.mrb[185].mxu1  ;;  %v20009_v32 = vld [vmem:[#allocation66_spill] sm:$0xff] }
 0x60d   : > { %v4997_v24 = vadd.f32 %v20004_v47, %v2708_v18  ;;  %v18281_v2 = vmax.f32 %v7058_v50, 0.0  ;;  %v18285_v11 = vadd.f32 %v18267_v6, %v20009_v32  ;;  %v18291_v52 = vadd.f32 %v12794_v63, %v12793_v42  ;;  %v12796_v14 = vpop.f32.mrb[186].mxu1 }
 0x60e   : > { %20006 = vst [vmem:[#allocation20_spill] sm:$0xff] %v18277_v41  ;;  %v4995_v29 = vadd.f32 %v20008_v22, %v2706_v35  ;;  %v18289_v18 = vpack.c.bf16 %v18273_v19, %v18262_v28  ;;  %v7383_v35 = vpack.c.bf16 %v18168_v53, %v19936_v60  ;;  %v12797_v45 = vpop.f32.mrb[187].mxu1  ;;  %v14436_v53 = vld [vmem:[%s14810_s6 + $0xd8] sm:$0xff] }
 0x60f   : > { %20010 = vst [vmem:[#allocation27_spill] sm:$0xff] %v18285_v11  ;;  %v18294_v59 = vadd.f32 %v18273_v19, %v4997_v24  ;;  %v13847_v47 = vpop.f32.mrb[168].mxu0  ;;  %v18300_v50 = vpack.c.bf16 %v18281_v2, %v18267_v6  ;;  %v18307_v24 = vadd.f32 %v12797_v45, %v12796_v14 }
 0x610   : > { %v18303_v51 = vadd.f32 %v18281_v2, %v4995_v29  ;;  %v7079_v42 = vadd.f32 %v13847_v47, %v17996_v37  ;;  %v7070_v22 = vpop.f32.mrb[169].mxu0  ;;  %v20014_v37 = vld [vmem:[#allocation46_spill] sm:$0xff] }
 0x611   : > { %20011 = vst [vmem:[#allocation25_spill] sm:$0xff] %v18294_v59  ;;  %8241 = vmatmul.mubr.bf16.gmra.mrb[196].mxu0 %v19958_v4  ;;  %v7071_v63 = vadd.f32 %v7070_v22, %v17972_v20  ;;  %v13848_v32 = vpop.f32.mrb[170].mxu0  ;;  %v20013_v59 = vld [vmem:[#allocation49_spill] sm:$0xff]  ;;  %v20015_v20 = vld [vmem:[#allocation39_spill] sm:$0xff] }
 0x612   : > { %20012 = vst [vmem:[#allocation19_spill] sm:$0xff] %v18303_v51  ;;  %8248 = vmatprep.mubr.bf16.mxu0 %v7383_v35  ;;  %v2712_v11 = vadd.f32 %v14436_v53, %v20013_v59  ;;  %v18312_v41 = vmax.f32 %v7079_v42, 0.0  ;;  %v7082_v48 = vadd.f32 %v13848_v32, %v18010_v38  ;;  %v7073_v29 = vpop.f32.mrb[171].mxu0  ;;  %v14437_v51 = vld [vmem:[%s14810_s6 + $0xc8] sm:$0xff]  ;;  %v20016_v45 = vmax.f32 %v20015_v20, 0.0  ;;  %v12799_v59 = vpop.f32.mrb[188].mxu1 }
 0x613   : > { %8144 = vmatmul.mubr.bf16.gmra.mrb[228].mxu1 %v7374_v58  ;;  %v2710_v47 = vadd.f32 %v14437_v51, %v20014_v37  ;;  %v18317_v12 = vmax.f32 %v7071_v63, 0.0  ;;  %v7074_v14 = vadd.f32 %v7073_v29, %v17977_v7  ;;  %v20017_v42 = vld [vmem:[#allocation67_spill] sm:$0xff]  ;;  %v20019_v58 = vld [vmem:[#allocation42_spill] sm:$0xff]  ;;  %v12800_v63 = vpop.f32.mrb[189].mxu1  ;;  %v20021_v37 = vld [vmem:[#allocation68_spill] sm:$0xff] }
 0x614   : > { %8151 = vmatprep.mubr.bf16.mxu1 %v18199_v44  ;;  %v5001_v22 = vadd.f32 %v20016_v45, %v2712_v11  ;;  %v18323_v15 = vmax.f32 %v7082_v48, 0.0  ;;  %v18327_v38 = vadd.f32 %v18312_v41, %v20017_v42  ;;  %v20020_v32 = vmax.f32 %v20019_v58, 0.0  ;;  %v12802_v29 = vpop.f32.mrb[190].mxu1 }
 0x615   : > { %v18331_v51 = vmax.f32 %v7074_v14, 0.0  ;;  %v18335_v7 = vadd.f32 %v18317_v12, %v20021_v37  ;;  %v18341_v48 = vadd.f32 %v12800_v63, %v12799_v59  ;;  %v12803_v42 = vpop.f32.mrb[191].mxu1 }
 0x616   : > { %20018 = vst [vmem:[#allocation17_spill] sm:$0xff] %v18327_v38  ;;  %v4999_v53 = vadd.f32 %v20020_v32, %v2710_v47  ;;  %v18339_v11 = vpack.c.bf16 %v18323_v15, %v18312_v41  ;;  %v18344_v20 = vadd.f32 %v18323_v15, %v5001_v22  ;;  %v7392_v47 = vpack.c.bf16 %v18160_v0, %v19936_v60  ;;  %v14438_v38 = vld [vmem:[%s14810_s6 + $0xe8] sm:$0xff] }
 0x617   : > { %20022 = vst [vmem:[#allocation52_spill] sm:$0xff] %v18335_v7  ;;  %20023 = vst [vmem:[#allocation53_spill] sm:$0xff] %v18341_v48  ;;  %v13851_v45 = vpop.f32.mrb[172].mxu0  ;;  %v18350_v14 = vpack.c.bf16 %v18331_v51, %v18317_v12  ;;  %v18357_v22 = vadd.f32 %v12803_v42, %v12802_v29 }
 0x618   : > { %20024 = vst [vmem:[#allocation55_spill] sm:$0xff] %v18344_v20  ;;  %v18353_v58 = vadd.f32 %v18331_v51, %v4999_v53  ;;  %v7095_v59 = vadd.f32 %v13851_v45, %v18111_v43  ;;  %v7086_v32 = vpop.f32.mrb[173].mxu0  ;;  %v20026_v53 = vld [vmem:[#allocation51_spill] sm:$0xff]  ;;  %v20027_v45 = vld [vmem:[#allocation70_spill] sm:$0xff] }
 0x619   : > { %8249 = vmatmul.mubr.bf16.gmra.mrb[200].mxu0 %v19958_v4  ;;  %v7087_v63 = vadd.f32 %v7086_v32, %v18052_v16  ;;  %v13852_v37 = vpop.f32.mrb[174].mxu0  ;;  %v12805_v16 = vpop.f32.mrb[192].mxu1 }
 0x61a   : > { %20025 = vst [vmem:[#allocation56_spill] sm:$0xff] %v18353_v58  ;;  %8256 = vmatprep.mubr.bf16.mxu0 %v7392_v47  ;;  %v18360_v0 = vmax.f32 %v7095_v59, 0.0  ;;  %v7098_v20 = vadd.f32 %v13852_v37, %v18125_v9  ;;  %v7089_v7 = vpop.f32.mrb[175].mxu0  ;;  %v2714_v58 = vadd.f32 %v14438_v38, %v20026_v53  ;;  %v20029_v59 = vld [vmem:[#allocation69_spill] sm:$0xff]  ;;  %v12806_v37 = vpop.f32.mrb[193].mxu1  ;;  %v20031_v38 = vld [vmem:[#allocation71_spill] sm:$0xff] }
 0x61b   : > { %8152 = vmatmul.mubr.bf16.gmra.mrb[232].mxu1 %v7383_v35  ;;  %v18365_v48 = vmax.f32 %v7087_v63, 0.0  ;;  %v7090_v43 = vadd.f32 %v7089_v7, %v18066_v40  ;;  %v20030_v9 = vmax.f32 %v20029_v59, 0.0  ;;  %v18387_v7 = vadd.f32 %v12806_v37, %v12805_v16  ;;  %v20032_v53 = vld [vmem:[#allocation72_spill] sm:$0xff] }
 0x61c   : > { %8159 = vmatprep.mubr.bf16.mxu1 %v18188_v30  ;;  %v18369_v29 = vmax.f32 %v7098_v20, 0.0  ;;  %v18373_v42 = vadd.f32 %v18360_v0, %v20027_v45  ;;  %v12808_v20 = vpop.f32.mrb[194].mxu1  ;;  %v7331_v37 = vpack.c.bf16 %v19936_v60, %v18006_v23  ;;  %v7340_v23 = vpack.c.bf16 %v19936_v60, %v18002_v54  ;;  %v14321_v54 = vld [vmem:[#allocation6 + $0x8d8] sm:$0xff]  }
 0x61d   : > { %v5003_v32 = vadd.f32 %v20030_v9, %v2714_v58  ;;  %v18377_v35 = vmax.f32 %v7090_v43, 0.0  ;;  %v18381_v63 = vadd.f32 %v18365_v48, %v20031_v38  ;;  %v18395_v58 = vpack.c.bf16 %v18217_v31, %v19936_v60  ;;  %v12809_v59 = vpop.f32.mrb[195].mxu1 }
 0x61e   : > { %20028 = vst [vmem:[#allocation22_spill] sm:$0xff] %v18373_v42  ;;  %v18385_v40 = vpack.c.bf16 %v18369_v29, %v18360_v0  ;;  %v18391_v45 = vadd.f32 %v18369_v29, %v20032_v53  ;;  %v18405_v16 = vadd.f32 %v12809_v59, %v12808_v20  ;;  %v14315_v20 = vld [vmem:[#allocation6 + $0x8c8] sm:$0xff]  }
 0x61f   : > { %v18399_v43 = vpack.c.bf16 %v18377_v35, %v18365_v48  ;;  %v18402_v9 = vadd.f32 %v18377_v35, %v5003_v32  ;;  %v18414_v32 = vpack.c.bf16 %v18211_v27, %v19936_v60 }
 0x620   : > { %20033 = vst [vmem:[#allocation29_spill] sm:$0xff] %v18391_v45  ;;  %v12811_v31 = vpop.f32.mrb[196].mxu1 }
 0x621   : > { %20034 = vst [vmem:[#allocation57_spill] sm:$0xff] %v18402_v9  ;;  %8257 = vmatmul.mubr.bf16.gmra.mrb[204].mxu0 %v19958_v4  ;;  %v12812_v38 = vpop.f32.mrb[197].mxu1 }
 0x622   : > { %8264 = vmatprep.mubr.bf16.mxu0 %v18395_v58  ;;  %v18410_v53 = vadd.f32 %v12812_v38, %v12811_v31  ;;  %v12814_v45 = vpop.f32.mrb[198].mxu1 }
 0x623   : > { %8160 = vmatmul.mubr.bf16.gmra.mrb[236].mxu1 %v7392_v47  ;;  %v12815_v9 = vpop.f32.mrb[199].mxu1  ;;  %v14318_v47 = vld [vmem:[#allocation6 + $0x8d0] sm:$0xff]  }
 0x624   : > { %8361 = vmatprep.mubr.bf16.mxu1 %v7331_v37  ;;  %v18416_v59 = vadd.f32 %v12815_v9, %v12814_v45  ;;  %v18427_v45 = vpack.c.bf16 %v18267_v6, %v19936_v60 }
 0x628   : > { %v12817_v31 = vpop.f32.mrb[200].mxu1 }
 0x629   : > { %8265 = vmatmul.mubr.bf16.gmra.mrb[208].mxu0 %v7331_v37  ;;  %v12818_v27 = vpop.f32.mrb[201].mxu1 }
 0x62a   : > { %8272 = vmatprep.mubr.bf16.mxu0 %v18414_v32  ;;  %v18423_v38 = vadd.f32 %v12818_v27, %v12817_v31  ;;  %v12820_v37 = vpop.f32.mrb[202].mxu1  ;;  %v14326_v31 = vld [vmem:[#allocation6 + $0x8e0] sm:$0xff]  }
 0x62b   : > { %8362 = vmatmul.mubr.bf16.vlgmr.msra.gmra.mrb[240].mxu1 %v18021_v3  ;;  %v12821_v9 = vpop.f32.mrb[203].mxu1 }
 0x62c   : > { %8369 = vmatprep.mubr.bf16.mxu1 %v7340_v23  ;;  %13854 = vmatpush3.bf16.msra.mxu1 %v17922_v13  ;;  %v18429_v3 = vadd.f32 %v12821_v9, %v12820_v37  ;;  %v7349_v13 = vpack.c.bf16 %v19936_v60, %v18063_v5  ;;  %v18439_v37 = vpack.c.bf16 %v18262_v28, %v19936_v60  ;;  %v14327_v5 = vld [vmem:[#allocation6 + $0x8e8] sm:$0xff]  }
 0x62d   : > { %13855 = vmatprep.subr.bf16.mxu1 %v14315_v20  ;;  %v18449_v28 = vpack.c.bf16 %v18317_v12, %v19936_v60  ;;  %v7376_v12 = vpack.c.bf16 %v19936_v60, %v18115_v49  ;;  %v7394_v49 = vpack.c.bf16 %v19936_v60, %v18174_v21  ;;  %v18490_v21 = vpack.c.bf16 %v19936_v60, %v18223_v10 }
 0x62e   : > { %v7352_v10 = vpack.c.bf16 %v19936_v60, %v18281_v2  ;;  %v14341_v2 = vld [vmem:[#allocation6 + $0x928] sm:$0xff]  }
 0x630   : > { %13856 = vmatpush3.bf16.msra.mxu1 %v14315_v20  ;;  %v12823_v6 = vpop.f32.mrb[204].mxu1 }
 0x631   : > { %8273 = vmatmul.mubr.bf16.gmra.mrb[212].mxu0 %v7340_v23  ;;  %13857 = vmatprep.subr.bf16.mxu1 %v14318_v47  ;;  %v12824_v27 = vpop.f32.mrb[205].mxu1 }
 0x632   : > { %8280 = vmatprep.mubr.bf16.mxu0 %v18427_v45  ;;  %v18435_v20 = vadd.f32 %v12824_v27, %v12823_v6  ;;  %v12826_v23 = vpop.f32.mrb[206].mxu1  ;;  %v14344_v6 = vld [vmem:[#allocation6 + $0x930] sm:$0xff]   ;;  %v14352_v27 = vld [vmem:[#allocation6 + $0x978] sm:$0xff]  }
 0x633   : > { %8370 = vmatmul.mubr.bf16.gmra.mrb[244].mxu1 %v18015_v57  ;;  %v12827_v9 = vpop.f32.mrb[207].mxu1  ;;  %v7358_v57 = vpack.c.bf16 %v19936_v60, %v18056_v33  ;;  %v18457_v33 = vpack.c.bf16 %v18312_v41, %v19936_v60  ;;  %v14343_v41 = vld [vmem:[#allocation6 + $0x9c0] sm:$0xff]  }
 0x634   : > { %8377 = vmatprep.mubr.bf16.mxu1 %v7349_v13  ;;  %13858 = vmatpush3.bf16.msra.mxu1 %v14318_v47  ;;  %v18441_v42 = vadd.f32 %v12827_v9, %v12826_v23  ;;  %v14330_v47 = vld [vmem:[#allocation6 + $0x8f0] sm:$0xff]   ;;  %v14362_v23 = vld [vmem:[#allocation6 + $0xa40] sm:$0xff]   ;;  %v14356_v9 = vld [vmem:[#allocation6 + $0x9e8] sm:$0xff]  }
 0x635   : > { %13859 = vmatprep.subr.bf16.mxu1 %v14321_v54 }
 0x638   : > { %13860 = vmatpush3.bf16.msra.mxu1 %v14321_v54  ;;  %v14333_v54 = vld [vmem:[#allocation6 + $0x8f8] sm:$0xff]  }
 0x639   : > { %8281 = vmatmul.mubr.bf16.gmra.mrb[216].mxu0 %v7349_v13  ;;  %13861 = vmatprep.subr.bf16.mxu1 %v14326_v31  ;;  %v7367_v13 = vpack.c.bf16 %v19936_v60, %v18122_v1  ;;  %v18473_v1 = vpack.c.bf16 %v18360_v0, %v19936_v60  ;;  %v14337_v0 = vld [vmem:[#allocation6 + $0x918] sm:$0xff]  }
 0x63a   : > { %8288 = vmatprep.mubr.bf16.mxu0 %v18439_v37 }
 0x63b   : > { %8378 = vmatmul.mubr.bf16.gmra.mrb[248].mxu1 %v18081_v25  ;;  %v7385_v25 = vpack.c.bf16 %v19936_v60, %v18181_v62  ;;  %v14331_v62 = vld [vmem:[#allocation6 + $0x948] sm:$0xff]  }
 0x63c   : > { %8385 = vmatprep.mubr.bf16.mxu1 %v7358_v57  ;;  %13862 = vmatpush3.bf16.msra.mxu1 %v14326_v31  ;;  %v14340_v31 = vld [vmem:[#allocation6 + $0x968] sm:$0xff]  }
 0x63d   : > { %13863 = vmatprep.subr.bf16.mxu1 %v14327_v5 }
 0x640   : > { %13864 = vmatpush3.bf16.msra.mxu1 %v14327_v5  ;;  %v18538_v5 = vld [vmem:[#allocation8 + $0x3] ss:$0 sm:$0xff] }
 0x641   : > { %8289 = vmatmul.mubr.bf16.gmra.mrb[220].mxu0 %v7358_v57  ;;  %13865 = vmatprep.subr.bf16.mxu1 %v14330_v47 }
 0x642   : > { %8296 = vmatprep.mubr.bf16.mxu0 %v18449_v28 }
 0x643   : > { %8386 = vmatmul.mubr.bf16.gmra.mrb[252].mxu1 %v18072_v55  ;;  %v18465_v55 = vpack.c.bf16 %v18365_v48, %v19936_v60  ;;  %v14336_v48 = vld [vmem:[#allocation6 + $0x958] sm:$0xff]  }
 0x644   : > { %8393 = vmatprep.mubr.bf16.mxu1 %v7367_v13  ;;  %13866 = vmatpush3.bf16.msra.mxu1 %v14330_v47  ;;  %v14357_v47 = vld [vmem:[#allocation6 + $0x9a8] sm:$0xff]  }
 0x645   : > { %13867 = vmatprep.subr.bf16.mxu1 %v14333_v54 }
 0x648   : > { %13868 = vmatpush3.bf16.msra.mxu1 %v14333_v54  ;;  %v14358_v54 = vld [vmem:[#allocation6 + $0x9f0] sm:$0xff]  }
 0x649   : > { %8297 = vmatmul.mubr.bf16.gmra.mrb[224].mxu0 %v7367_v13  ;;  %13349 = vmatprep.subr.bf16.mxu1 %v14343_v41  ;;  %v8042_v13 = vadd.f32 %v18190_v39, %v18538_v5  ;;  %v14360_v39 = vld [vmem:[#allocation6 + $0x9f8] sm:$0xff]  }
 0x64a   : > { %8304 = vmatprep.mubr.bf16.mxu0 %v18457_v33 }
 0x64b   : > { %8394 = vmatmul.mubr.bf16.gmra.mrb[0].mxu1 %v18143_v56  ;;  %v14329_v56 = vld [vmem:[#allocation6 + $0x900] sm:$0xff]  }
 0x64c   : > { %8401 = vmatprep.mubr.bf16.mxu1 %v7376_v12 }
 0x651   : > { %8305 = vmatmul.mubr.bf16.gmra.mrb[228].mxu0 %v7376_v12 }
 0x652   : > { %8312 = vmatprep.mubr.bf16.mxu0 %v18465_v55 }
 0x653   : > { %8402 = vmatmul.mubr.bf16.gmra.mrb[4].mxu1 %v18132_v26  ;;  %v18482_v26 = vpack.c.bf16 %v19936_v60, %v18231_v61  ;;  %v14334_v61 = vld [vmem:[#allocation6 + $0x950] sm:$0xff]  }
 0x654   : > { %8409 = vmatprep.mubr.bf16.mxu1 %v7385_v25 }
 0x659   : > { %8313 = vmatmul.mubr.bf16.gmra.mrb[232].mxu0 %v7385_v25 }
 0x65a   : > { %8320 = vmatprep.mubr.bf16.mxu0 %v18473_v1 }
 0x65b   : > { %8410 = vmatmul.mubr.bf16.gmra.mrb[8].mxu1 %v18199_v44  ;;  %v14332_v44 = vld [vmem:[#allocation6 + $0x908] sm:$0xff]  }
 0x65c   : > { %8417 = vmatprep.mubr.bf16.mxu1 %v7394_v49 }
 0x661   : > { %8321 = vmatmul.mubr.bf16.gmra.mrb[236].mxu0 %v7394_v49  ;;  %v8045_v49 = vadd.f32 %v18206_v8, %v18538_v5 }
 0x662   : > { %8522 = vmatprep.mubr.bf16.mxu0 %v18250_v46 }
 0x663   : > { %8418 = vmatmul.mubr.bf16.gmra.mrb[12].mxu1 %v18188_v30  ;;  %v14335_v30 = vld [vmem:[#allocation6 + $0x910] sm:$0xff]  }
 0x664   : > { %8425 = vmatprep.mubr.bf16.mxu1 %v18482_v26 }
 0x669   : > { %8523 = vmatmul.mubr.bf16.vlgmr.msra.gmra.mrb[240].mxu0 %v18395_v58  ;;  %v14339_v58 = vld [vmem:[#allocation6 + $0x920] sm:$0xff]  }
 0x66a   : > { %8530 = vmatprep.mubr.bf16.mxu0 %v18239_v36  ;;  %13238 = vmatpush3.bf16.msra.mxu0 %v14329_v56 }
 0x66b   : > { %8426 = vmatmul.mubr.bf16.gmra.mrb[16].mxu1 %v18250_v46  ;;  %13239 = vmatprep.subr.bf16.mxu0 %v14331_v62  ;;  %v14338_v46 = vld [vmem:[#allocation6 + $0x960] sm:$0xff]  }
 0x66c   : > { %8433 = vmatprep.mubr.bf16.mxu1 %v18490_v21 }
 0x66e   : > { %13240 = vmatpush3.bf16.msra.mxu0 %v14332_v44  ;;  %v14359_v44 = vld [vmem:[#allocation6 + $0x9b0] sm:$0xff]  }
 0x66f   : > { %13241 = vmatprep.subr.bf16.mxu0 %v14334_v61 }
 0x671   : > { %8531 = vmatmul.mubr.bf16.gmra.mrb[244].mxu0 %v18414_v32  ;;  %v7361_v32 = vpack.c.bf16 %v19936_v60, %v18273_v19  ;;  %v14354_v19 = vld [vmem:[#allocation6 + $0x938] sm:$0xff]  }
 0x672   : > { %8538 = vmatprep.mubr.bf16.mxu0 %v18300_v50  ;;  %13242 = vmatpush3.bf16.msra.mxu0 %v14335_v30 }
 0x673   : > { %8434 = vmatmul.mubr.bf16.gmra.mrb[20].mxu1 %v18239_v36  ;;  %13243 = vmatprep.subr.bf16.mxu0 %v14336_v48  ;;  %v14342_v36 = vld [vmem:[#allocation6 + $0x970] sm:$0xff]   ;;  %v14361_v48 = vld [vmem:[#allocation6 + $0x9b8] sm:$0xff]  }
 0x674   : > { %8441 = vmatprep.mubr.bf16.mxu1 %v7352_v10 }
 0x676   : > { %13244 = vmatpush3.bf16.msra.mxu0 %v14337_v0  ;;  %v14370_v0 = vld [vmem:[#allocation6 + $0xac0] sm:$0xff]  }
 0x677   : > { %13245 = vmatprep.subr.bf16.mxu0 %v14338_v46  ;;  %v8050_v46 = vadd.f32 %v18241_v17, %v18538_v5 }
 0x679   : > { %8539 = vmatmul.mubr.bf16.gmra.mrb[248].mxu0 %v18427_v45  ;;  %v7370_v45 = vpack.c.bf16 %v19936_v60, %v18331_v51  ;;  %v14345_v51 = vld [vmem:[#allocation6 + $0x980] sm:$0xff]  }
 0x67a   : > { %8546 = vmatprep.mubr.bf16.mxu0 %v18289_v18  ;;  %13246 = vmatpush3.bf16.msra.mxu0 %v14339_v58 }
 0x67b   : > { %8442 = vmatmul.mubr.bf16.gmra.mrb[24].mxu1 %v18300_v50  ;;  %13247 = vmatprep.subr.bf16.mxu0 %v14340_v31  ;;  %v7379_v50 = vpack.c.bf16 %v19936_v60, %v18323_v15  ;;  %v18523_v15 = vpack.c.bf16 %v19936_v60, %v18369_v29  ;;  %v14349_v29 = vld [vmem:[#allocation6 + $0x990] sm:$0xff]  }
 0x67c   : > { %8449 = vmatprep.mubr.bf16.mxu1 %v7361_v32 }
 0x67e   : > { %13248 = vmatpush3.bf16.msra.mxu0 %v14341_v2 }
 0x67f   : > { %13249 = vmatprep.subr.bf16.mxu0 %v14342_v36 }
 0x681   : > { %8547 = vmatmul.mubr.bf16.gmra.mrb[252].mxu0 %v18439_v37  ;;  %v14355_v37 = vld [vmem:[#allocation6 + $0x9a0] sm:$0xff]  }
 0x682   : > { %8554 = vmatprep.mubr.bf16.mxu0 %v18350_v14  ;;  %13250 = vmatpush3.bf16.msra.mxu0 %v14344_v6  ;;  %v8053_v6 = vadd.f32 %v18257_v34, %v18538_v5 }
 0x683   : > { %8450 = vmatmul.mubr.bf16.gmra.mrb[28].mxu1 %v18289_v18  ;;  %13251 = vmatprep.subr.bf16.mxu0 %v14352_v27  ;;  %v7388_v18 = vpack.c.bf16 %v19936_v60, %v18377_v35  ;;  %v14347_v60 = vld [vmem:[#allocation6 + $0x988] sm:$0xff]   ;;  %v14350_v35 = vld [vmem:[#allocation6 + $0x9d8] sm:$0xff]  }
 0x684   : > { %8457 = vmatprep.mubr.bf16.mxu1 %v7370_v45 }
 0x686   : > { %13252 = vmatpush3.bf16.msra.mxu0 %v14354_v19 }
 0x687   : > { %13461 = vmatprep.subr.bf16.mxu0 %v14362_v23 }
 0x689   : > { %8555 = vmatmul.mubr.bf16.gmra.mrb[0].mxu0 %v18449_v28 }
 0x68a   : > { %8562 = vmatprep.mubr.bf16.mxu0 %v18339_v11 }
 0x68b   : > { %8458 = vmatmul.mubr.bf16.gmra.mrb[32].mxu1 %v18350_v14  ;;  %v14348_v14 = vld [vmem:[#allocation6 + $0x9d0] sm:$0xff]  }
 0x68c   : > { %8465 = vmatprep.mubr.bf16.mxu1 %v7379_v50 }
 0x691   : > { %8563 = vmatmul.mubr.bf16.gmra.mrb[4].mxu0 %v18457_v33 }
 0x692   : > { %8570 = vmatprep.mubr.bf16.mxu0 %v18399_v43 }
 0x693   : > { %8466 = vmatmul.mubr.bf16.gmra.mrb[36].mxu1 %v18339_v11  ;;  %v14346_v11 = vld [vmem:[#allocation6 + $0x9c8] sm:$0xff]  }
 0x694   : > { %8473 = vmatprep.mubr.bf16.mxu1 %v7388_v18 }
 0x699   : > { %8571 = vmatmul.mubr.bf16.gmra.mrb[8].mxu0 %v18465_v55 }
 0x69a   : > { %8578 = vmatprep.mubr.bf16.mxu0 %v18385_v40 }
 0x69b   : > { %8474 = vmatmul.mubr.bf16.gmra.mrb[40].mxu1 %v18399_v43  ;;  %v14353_v43 = vld [vmem:[#allocation6 + $0x9e0] sm:$0xff]  }
 0x69c   : > { %8481 = vmatprep.mubr.bf16.mxu1 %v18523_v15 }
 0x6a1   : > { %8579 = vmatmul.mubr.bf16.gmra.mrb[12].mxu0 %v18473_v1 }
 0x6a2   : > { %8586 = vmatprep.mubr.bf16.mxu0 %v19958_v4 }
 0x6a3   : > { %8482 = vmatmul.mubr.bf16.gmra.mrb[44].mxu1 %v18385_v40  ;;  %v14351_v40 = vld [vmem:[#allocation6 + $0x998] sm:$0xff]  }
 0x6a4   : > { %13869 = vmatprep.mubr.bf16.mxu1 %v18482_v26 }
 0x6a9   : > { %8587 = vmatmul.mubr.bf16.gmra.mrb[16].mxu0 %v19958_v4 }
 0x6aa   : > { %8594 = vmatprep.mubr.bf16.mxu0 %v19958_v4 }
 0x6ab   : > { %13870 = vmatmul.mubr.bf16.vlgmr.msra.gmra.mrb[48].mxu1 %v18490_v21 }
 0x6ac   : > { %13873 = vmatprep.mubr.bf16.mxu1 %v7352_v10  ;;  %13350 = vmatpush3.bf16.msra.mxu1 %v14345_v51  ;;  %v8058_v51 = vadd.f32 %v18291_v52, %v18538_v5 }
 0x6ad   : > { %13351 = vmatprep.subr.bf16.mxu1 %v14346_v11 }
 0x6b0   : > { %13352 = vmatpush3.bf16.msra.mxu1 %v14347_v60 }
 0x6b1   : > { %8595 = vmatmul.mubr.bf16.gmra.mrb[20].mxu0 %v19958_v4  ;;  %13353 = vmatprep.subr.bf16.mxu1 %v14348_v14 }
 0x6b2   : > { %8602 = vmatprep.mubr.bf16.mxu0 %v19958_v4 }
 0x6b3   : > { %13874 = vmatmul.mubr.bf16.gmra.mrb[52].mxu1 %v7361_v32 }
 0x6b4   : > { %13877 = vmatprep.mubr.bf16.mxu1 %v7370_v45  ;;  %13354 = vmatpush3.bf16.msra.mxu1 %v14349_v29 }
 0x6b5   : > { %13355 = vmatprep.subr.bf16.mxu1 %v14350_v35 }
 0x6b8   : > { %13356 = vmatpush3.bf16.msra.mxu1 %v14351_v40  ;;  %v8061_v40 = vadd.f32 %v18307_v24, %v18538_v5 }
 0x6b9   : > { %8603 = vmatmul.mubr.bf16.gmra.mrb[24].mxu0 %v19958_v4  ;;  %13357 = vmatprep.subr.bf16.mxu1 %v14353_v43 }
 0x6ba   : > { %8610 = vmatprep.mubr.bf16.mxu0 %v19958_v4 }
 0x6bb   : > { %13878 = vmatmul.mubr.bf16.gmra.mrb[56].mxu1 %v7379_v50 }
 0x6bc   : > { %v12893_v57 = vpop.f32.mrb[176].mxu0  ;;  %13881 = vmatprep.mubr.bf16.mxu1 %v7388_v18  ;;  %13358 = vmatpush3.bf16.msra.mxu1 %v14355_v37 }
 0x6bd   : > { %v12894_v28 = vpop.f32.mrb[177].mxu0  ;;  %13359 = vmatprep.subr.bf16.mxu1 %v14356_v9  ;;  %v12829_v12 = vpop.f32.mrb[208].mxu1 }
 0x6be   : > { %v12895_v33 = vadd.f32 %v12894_v28, %v12893_v57  ;;  %v12896_v55 = vpop.f32.mrb[178].mxu0  ;;  %v12830_v25 = vpop.f32.mrb[209].mxu1 }
 0x6bf   : > { %v12897_v1 = vpop.f32.mrb[179].mxu0  ;;  %v18544_v26 = vadd.f32 %v12830_v25, %v12829_v12  ;;  %v12832_v62 = vpop.f32.mrb[210].mxu1 }
 0x6c0   : > { %v12898_v56 = vadd.f32 %v12897_v1, %v12896_v55  ;;  %13360 = vmatpush3.bf16.msra.mxu1 %v14357_v47  ;;  %v18546_v21 = vadd.f32 %v12895_v33, %v8042_v13  ;;  %v12833_v41 = vpop.f32.mrb[211].mxu1  ;;  %v20035_v13 = vld [vmem:[#allocation53_spill] sm:$0xff] }
 0x6c1   : > { %8611 = vmatmul.mubr.bf16.gmra.mrb[28].mxu0 %v19958_v4  ;;  %13361 = vmatprep.subr.bf16.mxu1 %v14358_v54  ;;  %v18549_v61 = vadd.f32 %v12833_v41, %v12832_v62  ;;  %v8066_v33 = vadd.f32 %v20035_v13, %v18538_v5 }
 0x6c2   : > { %8618 = vmatprep.mubr.bf16.mxu0 %v19958_v4  ;;  %v18552_v30 = vadd.f32 %v12898_v56, %v8045_v49  ;;  %v8069_v56 = vadd.f32 %v18357_v22, %v18538_v5 }
 0x6c3   : > { %13882 = vmatmul.mubr.bf16.gmra.mrb[60].mxu1 %v18523_v15 }
 0x6c4   : > { %v12899_v8 = vpop.f32.mrb[180].mxu0  ;;  %13885 = vmatprep.mubr.bf16.mxu1 %v19958_v4  ;;  %13362 = vmatpush3.bf16.msra.mxu1 %v14359_v44 }
 0x6c5   : > { %v12900_v10 = vpop.f32.mrb[181].mxu0  ;;  %13363 = vmatprep.subr.bf16.mxu1 %v14360_v39  ;;  %v12835_v31 = vpop.f32.mrb[212].mxu1 }
 0x6c6   : > { %v12901_v58 = vadd.f32 %v12900_v10, %v12899_v8  ;;  %v12902_v32 = vpop.f32.mrb[182].mxu0  ;;  %v12836_v2 = vpop.f32.mrb[213].mxu1 }
 0x6c7   : > { %v12903_v36 = vpop.f32.mrb[183].mxu0  ;;  %v18560_v27 = vadd.f32 %v12836_v2, %v12835_v31  ;;  %v12838_v19 = vpop.f32.mrb[214].mxu1 }
 0x6c8   : > { %v12904_v45 = vadd.f32 %v12903_v36, %v12902_v32  ;;  %13364 = vmatpush3.bf16.msra.mxu1 %v14361_v48  ;;  %v18562_v50 = vadd.f32 %v12901_v58, %v8050_v46  ;;  %v12839_v23 = vpop.f32.mrb[215].mxu1  ;;  %v8074_v46 = vadd.f32 %v18387_v7, %v18538_v5 }
 0x6c9   : > { %8619 = vmatmul.mubr.bf16.gmra.mrb[32].mxu0 %v19958_v4  ;;  %13573 = vmatprep.subr.bf16.mxu1 %v14370_v0  ;;  %v18565_v17 = vadd.f32 %v12839_v23, %v12838_v19 }
 0x6ca   : > { %8626 = vmatprep.mubr.bf16.mxu0 %v19958_v4  ;;  %v18568_v18 = vadd.f32 %v12904_v45, %v8053_v6  ;;  %v8077_v6 = vadd.f32 %v18405_v16, %v18538_v5 }
 0x6cb   : > { %13886 = vmatmul.mubr.bf16.gmra.mrb[64].mxu1 %v19958_v4 }
 0x6cc   : > { %v12905_v34 = vpop.f32.mrb[184].mxu0  ;;  %13889 = vmatprep.mubr.bf16.mxu1 %v19958_v4 }
 0x6cd   : > { %v12906_v15 = vpop.f32.mrb[185].mxu0 }
 0x6ce   : > { %v12907_v11 = vadd.f32 %v12906_v15, %v12905_v34  ;;  %v12841_v60 = vpop.f32.mrb[216].mxu1  ;;  %v12908_v14 = vpop.f32.mrb[186].mxu0 }
 0x6cf   : > { %v12842_v29 = vpop.f32.mrb[217].mxu1  ;;  %v12909_v35 = vpop.f32.mrb[187].mxu0 }
 0x6d0   : > { %v18576_v43 = vadd.f32 %v12842_v29, %v12841_v60  ;;  %v12910_v37 = vadd.f32 %v12909_v35, %v12908_v14  ;;  %v12844_v9 = vpop.f32.mrb[218].mxu1  ;;  %v18578_v57 = vadd.f32 %v12907_v11, %v8058_v51  ;;  %v8082_v60 = vadd.f32 %v18410_v53, %v18538_v5  ;;  %v14374_v53 = vld [vmem:[#allocation6 + $0xac8] sm:$0xff]  }
 0x6d1   : > { %v12845_v47 = vpop.f32.mrb[219].mxu1  ;;  %8627 = vmatmul.mubr.bf16.gmra.mrb[36].mxu0 %v19958_v4 }
 0x6d2   : > { %v18581_v28 = vadd.f32 %v12845_v47, %v12844_v9  ;;  %8634 = vmatprep.mubr.bf16.mxu0 %v19958_v4  ;;  %v18584_v52 = vadd.f32 %v12910_v37, %v8061_v40  ;;  %v14363_v40 = vld [vmem:[#allocation6 + $0xa00] sm:$0xff]   ;;  %v14364_v47 = vld [vmem:[#allocation6 + $0xa48] sm:$0xff]  }
 0x6d3   : > { %13890 = vmatmul.mubr.bf16.gmra.mrb[68].mxu1 %v19958_v4 }
 0x6d4   : > { %v12911_v54 = vpop.f32.mrb[188].mxu0  ;;  %13893 = vmatprep.mubr.bf16.mxu1 %v19958_v4 }
 0x6d5   : > { %v12912_v24 = vpop.f32.mrb[189].mxu0 }
 0x6d6   : > { %v12913_v12 = vadd.f32 %v12912_v24, %v12911_v54  ;;  %v12847_v55 = vpop.f32.mrb[220].mxu1  ;;  %v12914_v25 = vpop.f32.mrb[190].mxu0  ;;  %v8085_v54 = vadd.f32 %v18416_v59, %v18538_v5  ;;  %v14366_v59 = vld [vmem:[#allocation6 + $0xa50] sm:$0xff]  }
 0x6d7   : > { %v12848_v1 = vpop.f32.mrb[221].mxu1  ;;  %v12915_v49 = vpop.f32.mrb[191].mxu0 }
 0x6d8   : > { %v18592_v62 = vadd.f32 %v12848_v1, %v12847_v55  ;;  %v12916_v44 = vadd.f32 %v12915_v49, %v12914_v25  ;;  %v12850_v41 = vpop.f32.mrb[222].mxu1  ;;  %v18594_v39 = vadd.f32 %v12913_v12, %v8066_v33  ;;  %v14371_v55 = vld [vmem:[#allocation6 + $0xa80] sm:$0xff]   ;;  %v14365_v49 = vld [vmem:[#allocation6 + $0xa08] sm:$0xff]  }
 0x6d9   : > { %v12851_v8 = vpop.f32.mrb[223].mxu1  ;;  %8635 = vmatmul.mubr.bf16.gmra.mrb[40].mxu0 %v19958_v4 }
 0x6da   : > { %v18597_v48 = vadd.f32 %v12851_v8, %v12850_v41  ;;  %8642 = vmatprep.mubr.bf16.mxu0 %v19958_v4  ;;  %v18600_v10 = vadd.f32 %v12916_v44, %v8069_v56  ;;  %v14375_v41 = vld [vmem:[#allocation6 + $0xa88] sm:$0xff]  }
 0x6db   : > { %13894 = vmatmul.mubr.bf16.gmra.mrb[72].mxu1 %v19958_v4 }
 0x6dc   : > { %v12917_v0 = vpop.f32.mrb[192].mxu0  ;;  %13897 = vmatprep.mubr.bf16.mxu1 %v19958_v4 }
 0x6dd   : > { %v12918_v22 = vpop.f32.mrb[193].mxu0 }
 0x6de   : > { %v12919_v58 = vadd.f32 %v12918_v22, %v12917_v0  ;;  %v12853_v31 = vpop.f32.mrb[224].mxu1  ;;  %v12920_v32 = vpop.f32.mrb[194].mxu0  ;;  %v14378_v0 = vld [vmem:[#allocation6 + $0xad0] sm:$0xff]   ;;  %v8090_v22 = vadd.f32 %v18423_v38, %v18538_v5 }
 0x6df   : > { %v12854_v2 = vpop.f32.mrb[225].mxu1  ;;  %v12921_v36 = vpop.f32.mrb[195].mxu0  ;;  %v14379_v38 = vld [vmem:[#allocation6 + $0xa90] sm:$0xff]  }
 0x6e0   : > { %v18608_v45 = vadd.f32 %v12854_v2, %v12853_v31  ;;  %v12922_v19 = vadd.f32 %v12921_v36, %v12920_v32  ;;  %v12856_v23 = vpop.f32.mrb[226].mxu1  ;;  %v18610_v34 = vadd.f32 %v12919_v58, %v8074_v46  ;;  %v14367_v32 = vld [vmem:[#allocation6 + $0xa10] sm:$0xff]  }
 0x6e1   : > { %v12857_v15 = vpop.f32.mrb[227].mxu1  ;;  %8643 = vmatmul.mubr.bf16.gmra.mrb[44].mxu0 %v19958_v4 }
 0x6e2   : > { %v18613_v51 = vadd.f32 %v12857_v15, %v12856_v23  ;;  %9957 = vmatprep.mubr.bf16.mxu0 %v19958_v4  ;;  %v18616_v7 = vadd.f32 %v12922_v19, %v8077_v6  ;;  %v14368_v6 = vld [vmem:[#allocation6 + $0xa58] sm:$0xff]   ;;  %v8093_v19 = vadd.f32 %v18429_v3, %v18538_v5 }
 0x6e3   : > { %13898 = vmatmul.mubr.bf16.gmra.mrb[76].mxu1 %v19958_v4  ;;  %v14369_v3 = vld [vmem:[#allocation6 + $0xa18] sm:$0xff]  }
 0x6e4   : > { %v12923_v11 = vpop.f32.mrb[196].mxu0  ;;  %10118 = vmatprep.mubr.bf16.mxu1 %v19958_v4 }
 0x6e5   : > { %v12924_v16 = vpop.f32.mrb[197].mxu0 }
 0x6e6   : > { %v12925_v14 = vadd.f32 %v12924_v16, %v12923_v11  ;;  %v12859_v29 = vpop.f32.mrb[228].mxu1  ;;  %v12926_v35 = vpop.f32.mrb[198].mxu0 }
 0x6e7   : > { %v12860_v37 = vpop.f32.mrb[229].mxu1  ;;  %v12927_v9 = vpop.f32.mrb[199].mxu0 }
 0x6e8   : > { %v18624_v24 = vadd.f32 %v12860_v37, %v12859_v29  ;;  %v12928_v13 = vadd.f32 %v12927_v9, %v12926_v35  ;;  %v12862_v33 = vpop.f32.mrb[230].mxu1  ;;  %v18626_v12 = vadd.f32 %v12925_v14, %v8082_v60  ;;  %v14372_v35 = vld [vmem:[#allocation6 + $0xa60] sm:$0xff]   ;;  %v14382_v37 = vld [vmem:[#allocation6 + $0xad8] sm:$0xff]  }
 0x6e9   : > { %v12863_v25 = vpop.f32.mrb[231].mxu1  ;;  %9958 = vmatmul.mubr.bf16.vlgmr.msra.gmra.mrb[48].mxu0 %v19958_v4 }
 0x6ea   : > { %v18629_v1 = vadd.f32 %v12863_v25, %v12862_v33  ;;  %13462 = vmatpush3.bf16.msra.mxu0 %v14363_v40  ;;  %9965 = vmatprep.mubr.bf16.mxu0 %v19958_v4  ;;  %v18632_v56 = vadd.f32 %v12928_v13, %v8085_v54  ;;  %v14383_v25 = vld [vmem:[#allocation6 + $0xa98] sm:$0xff]  }
 0x6eb   : > { %10119 = vmatmul.mubr.bf16.vlgmr.msra.gmra.mrb[80].mxu1 %v19958_v4  ;;  %13463 = vmatprep.subr.bf16.mxu0 %v14364_v47  ;;  %v8098_v47 = vadd.f32 %v18435_v20, %v18538_v5 }
 0x6ec   : > { %v12929_v44 = vpop.f32.mrb[200].mxu0  ;;  %10126 = vmatprep.mubr.bf16.mxu1 %v19958_v4  ;;  %13574 = vmatpush3.bf16.msra.mxu1 %v14371_v55  ;;  %v14373_v55 = vld [vmem:[#allocation6 + $0xa20] sm:$0xff]  }
 0x6ed   : > { %v12930_v8 = vpop.f32.mrb[201].mxu0  ;;  %13575 = vmatprep.subr.bf16.mxu1 %v14374_v53 }
 0x6ee   : > { %v12931_v46 = vadd.f32 %v12930_v8, %v12929_v44  ;;  %v12865_v58 = vpop.f32.mrb[232].mxu1  ;;  %v12932_v31 = vpop.f32.mrb[202].mxu0  ;;  %13464 = vmatpush3.bf16.msra.mxu0 %v14365_v49  ;;  %v8101_v44 = vadd.f32 %v18441_v42, %v18538_v5  ;;  %v14380_v42 = vld [vmem:[#allocation6 + $0xa70] sm:$0xff]  }
 0x6ef   : > { %v12866_v2 = vpop.f32.mrb[233].mxu1  ;;  %v12933_v36 = vpop.f32.mrb[203].mxu0  ;;  %13465 = vmatprep.subr.bf16.mxu0 %v14366_v59  ;;  %v14376_v59 = vld [vmem:[#allocation6 + $0xa68] sm:$0xff]  }
 0x6f0   : > { %v18640_v23 = vadd.f32 %v12866_v2, %v12865_v58  ;;  %v12934_v15 = vadd.f32 %v12933_v36, %v12932_v31  ;;  %v12868_v11 = vpop.f32.mrb[234].mxu1  ;;  %v18642_v16 = vadd.f32 %v12931_v46, %v8090_v22  ;;  %13576 = vmatpush3.bf16.msra.mxu1 %v14375_v41  ;;  %v14377_v31 = vld [vmem:[#allocation6 + $0xa28] sm:$0xff]   ;;  %v14386_v2 = vld [vmem:[#allocation6 + $0xae0] sm:$0xff]  }
 0x6f1   : > { %v12869_v60 = vpop.f32.mrb[235].mxu1  ;;  %9966 = vmatmul.mubr.bf16.gmra.mrb[52].mxu0 %v19958_v4  ;;  %13577 = vmatprep.subr.bf16.mxu1 %v14378_v0  ;;  %v14387_v36 = vld [vmem:[#allocation6 + $0xaa0] sm:$0xff]  }
 0x6f2   : > { %v18645_v14 = vadd.f32 %v12869_v60, %v12868_v11  ;;  %9973 = vmatprep.mubr.bf16.mxu0 %v19958_v4  ;;  %13466 = vmatpush3.bf16.msra.mxu0 %v14367_v32  ;;  %v18648_v29 = vadd.f32 %v12934_v15, %v8093_v19  ;;  %v8106_v19 = vadd.f32 %v18544_v26, %v18538_v5  ;;  %v14381_v60 = vld [vmem:[#allocation6 + $0xa30] sm:$0xff]  }
 0x6f3   : > { %10127 = vmatmul.mubr.bf16.gmra.mrb[84].mxu1 %v19958_v4  ;;  %13467 = vmatprep.subr.bf16.mxu0 %v14368_v6 }
 0x6f4   : > { %v12935_v40 = vpop.f32.mrb[204].mxu0  ;;  %10134 = vmatprep.mubr.bf16.mxu1 %v19958_v4  ;;  %13578 = vmatpush3.bf16.msra.mxu1 %v14379_v38 }
 0x6f5   : > { %v12936_v9 = vpop.f32.mrb[205].mxu0  ;;  %13579 = vmatprep.subr.bf16.mxu1 %v14382_v37  ;;  %v8109_v37 = vadd.f32 %v18549_v61, %v18538_v5  ;;  %v14388_v61 = vld [vmem:[#allocation6 + $0xae8] sm:$0xff]  }
 0x6f6   : > { %v12937_v54 = vadd.f32 %v12936_v9, %v12935_v40  ;;  %v12871_v13 = vpop.f32.mrb[236].mxu1  ;;  %v12938_v33 = vpop.f32.mrb[206].mxu0  ;;  %13468 = vmatpush3.bf16.msra.mxu0 %v14369_v3  ;;  %v14384_v40 = vld [vmem:[#allocation6 + $0xa78] sm:$0xff]  }
 0x6f7   : > { %v12872_v53 = vpop.f32.mrb[237].mxu1  ;;  %v12939_v49 = vpop.f32.mrb[207].mxu0  ;;  %13469 = vmatprep.subr.bf16.mxu0 %v14372_v35 }
 0x6f8   : > { %v18656_v41 = vadd.f32 %v12872_v53, %v12871_v13  ;;  %v12940_v8 = vadd.f32 %v12939_v49, %v12938_v33  ;;  %v12874_v0 = vpop.f32.mrb[238].mxu1  ;;  %v18658_v22 = vadd.f32 %v12937_v54, %v8098_v47  ;;  %13580 = vmatpush3.bf16.msra.mxu1 %v14383_v25  ;;  %v14385_v53 = vld [vmem:[#allocation6 + $0xa38] sm:$0xff]  }
 0x6f9   : > { %v12875_v20 = vpop.f32.mrb[239].mxu1  ;;  %9974 = vmatmul.mubr.bf16.gmra.mrb[56].mxu0 %v19958_v4  ;;  %13581 = vmatprep.subr.bf16.mxu1 %v14386_v2 }
 0x6fa   : > { %v18661_v46 = vadd.f32 %v12875_v20, %v12874_v0  ;;  %9981 = vmatprep.mubr.bf16.mxu0 %v19958_v4  ;;  %v18664_v58 = vadd.f32 %v12940_v8, %v8101_v44  ;;  %13470 = vmatpush3.bf16.msra.mxu0 %v14373_v55  ;;  %v14389_v44 = vld [vmem:[#allocation6 + $0xaa8] sm:$0xff]  }
 0x6fb   : > { %10135 = vmatmul.mubr.bf16.gmra.mrb[88].mxu1 %v19958_v4  ;;  %13471 = vmatprep.subr.bf16.mxu0 %v14376_v59 }
 0x6fc   : > { %v12941_v32 = vpop.f32.mrb[208].mxu0  ;;  %10142 = vmatprep.mubr.bf16.mxu1 %v19958_v4  ;;  %13582 = vmatpush3.bf16.msra.mxu1 %v14387_v36 }
 0x6fd   : > { %v12942_v6 = vpop.f32.mrb[209].mxu0  ;;  %13583 = vmatprep.subr.bf16.mxu1 %v14388_v61 }
 0x6fe   : > { %v12943_v15 = vadd.f32 %v12942_v6, %v12941_v32  ;;  %v12944_v11 = vpop.f32.mrb[210].mxu0  ;;  %v13005_v38 = vpop.f32.mrb[240].mxu1  ;;  %13472 = vmatpush3.bf16.msra.mxu0 %v14377_v31  ;;  %v14391_v32 = vld [vmem:[#allocation6 + $0xab0] sm:$0xff]  }
 0x6ff   : > { %v12945_v3 = vpop.f32.mrb[211].mxu0  ;;  %v13006_v35 = vpop.f32.mrb[241].mxu1  ;;  %13473 = vmatprep.subr.bf16.mxu0 %v14380_v42  ;;  %v14390_v42 = vld [vmem:[#allocation6 + $0xaf0] sm:$0xff]  }
 0x700   : > { %v18672_v9 = vadd.f32 %v12943_v15, %v8106_v19  ;;  %v12946_v47 = vadd.f32 %v12945_v3, %v12944_v11  ;;  %v13007_v54 = vadd.f32 %v13006_v35, %v13005_v38  ;;  %v13008_v13 = vpop.f32.mrb[242].mxu1  ;;  %13584 = vmatpush3.bf16.msra.mxu1 %v14389_v44 }
 0x701   : > { %v13009_v26 = vpop.f32.mrb[243].mxu1  ;;  %9982 = vmatmul.mubr.bf16.gmra.mrb[60].mxu0 %v19958_v4  ;;  %13585 = vmatprep.subr.bf16.mxu1 %v14390_v42 }
 0x702   : > { %v18675_v33 = vadd.f32 %v12946_v47, %v8109_v37  ;;  %v18678_v55 = vadd.f32 %v13007_v54, %v18546_v21  ;;  %v13010_v25 = vadd.f32 %v13009_v26, %v13008_v13  ;;  %9989 = vmatprep.mubr.bf16.mxu0 %v19958_v4  ;;  %13474 = vmatpush3.bf16.msra.mxu0 %v14381_v60  ;;  %v14393_v37 = vld [vmem:[#allocation6 + $0xab8] sm:$0xff]   ;;  %v18704_v54 = vld [vmem:[#allocation6 + $0xb00] sm:$0xff]  }
 0x703   : > { %10143 = vmatmul.mubr.bf16.gmra.mrb[92].mxu1 %v19958_v4  ;;  %13475 = vmatprep.subr.bf16.mxu0 %v14384_v40  ;;  %v8114_v21 = vadd.f32 %v18560_v27, %v18538_v5 }
 0x704   : > { %v18683_v49 = vadd.f32 %v13010_v25, %v18552_v30  ;;  %v12947_v59 = vpop.f32.mrb[212].mxu0  ;;  %10150 = vmatprep.mubr.bf16.mxu1 %v19958_v4  ;;  %v8117_v30 = vadd.f32 %v18565_v17, %v18538_v5  ;;  %13586 = vmatpush3.bf16.msra.mxu1 %v14391_v32  ;;  %v14392_v17 = vld [vmem:[#allocation6 + $0xaf8] sm:$0xff]  }
 0x705   : > { %v12948_v8 = vpop.f32.mrb[213].mxu0  ;;  %13587 = vmatprep.subr.bf16.mxu1 %v14392_v17 }
 0x706   : > { %v12949_v0 = vadd.f32 %v12948_v8, %v12947_v59  ;;  %v12950_v20 = vpop.f32.mrb[214].mxu0  ;;  %v13011_v31 = vpop.f32.mrb[244].mxu1  ;;  %13476 = vmatpush3.bf16.msra.mxu0 %v14385_v53 }
 0x707   : > { %v12951_v2 = vpop.f32.mrb[215].mxu0  ;;  %v13012_v36 = vpop.f32.mrb[245].mxu1  ;;  %13901 = vmatprep.subr.bf16.mxu0 %v18704_v54 }
 0x708   : > { %v18690_v6 = vadd.f32 %v12949_v0, %v8114_v21  ;;  %v12952_v19 = vadd.f32 %v12951_v2, %v12950_v20  ;;  %v13013_v15 = vadd.f32 %v13012_v36, %v13011_v31  ;;  %v13014_v11 = vpop.f32.mrb[246].mxu1  ;;  %13588 = vmatpush3.bf16.msra.mxu1 %v14393_v37  ;;  %v8130_v2 = vadd.f32 %v18592_v62, %v18538_v5 }
 0x709   : > { %v13015_v38 = vpop.f32.mrb[247].mxu1  ;;  %9990 = vmatmul.mubr.bf16.gmra.mrb[64].mxu0 %v19958_v4 }
 0x70a   : > { %v18693_v27 = vadd.f32 %v12952_v19, %v8117_v30  ;;  %v18696_v60 = vadd.f32 %v13013_v15, %v18562_v50  ;;  %v13016_v3 = vadd.f32 %v13015_v38, %v13014_v11  ;;  %9997 = vmatprep.mubr.bf16.mxu0 %v19958_v4  ;;  %v8122_v50 = vadd.f32 %v18576_v43, %v18538_v5 }
 0x70b   : > { %10151 = vmatmul.mubr.bf16.gmra.mrb[96].mxu1 %v19958_v4  ;;  %v8133_v11 = vadd.f32 %v18597_v48, %v18538_v5 }
 0x70c   : > { %v18701_v35 = vadd.f32 %v13016_v3, %v18568_v18  ;;  %v12953_v40 = vpop.f32.mrb[216].mxu0  ;;  %10158 = vmatprep.mubr.bf16.mxu1 %v19958_v4  ;;  %v8125_v18 = vadd.f32 %v18581_v28, %v18538_v5 }
 0x70d   : > { %v12954_v47 = vpop.f32.mrb[217].mxu0 }
 0x70e   : > { %v12955_v13 = vadd.f32 %v12954_v47, %v12953_v40  ;;  %v12956_v26 = vpop.f32.mrb[218].mxu0  ;;  %v13017_v25 = vpop.f32.mrb[248].mxu1 }
 0x70f   : > { %v12957_v53 = vpop.f32.mrb[219].mxu0  ;;  %v13018_v61 = vpop.f32.mrb[249].mxu1 }
 0x710   : > { %v18711_v59 = vadd.f32 %v12955_v13, %v8122_v50  ;;  %v12958_v44 = vadd.f32 %v12957_v53, %v12956_v26  ;;  %v13019_v8 = vadd.f32 %v13018_v61, %v13017_v25  ;;  %v13020_v21 = vpop.f32.mrb[250].mxu1  ;;  %v8138_v26 = vadd.f32 %v18608_v45, %v18538_v5 }
 0x711   : > { %v13021_v0 = vpop.f32.mrb[251].mxu1  ;;  %9998 = vmatmul.mubr.bf16.gmra.mrb[68].mxu0 %v19958_v4 }
 0x712   : > { %v18714_v43 = vadd.f32 %v12958_v44, %v8125_v18  ;;  %v18717_v20 = vadd.f32 %v13019_v8, %v18578_v57  ;;  %v13022_v31 = vadd.f32 %v13021_v0, %v13020_v21  ;;  %10005 = vmatprep.mubr.bf16.mxu0 %v19958_v4  ;;  %v8141_v44 = vadd.f32 %v18613_v51, %v18538_v5 }
 0x713   : > { %10159 = vmatmul.mubr.bf16.gmra.mrb[100].mxu1 %v19958_v4 }
 0x714   : > { %v18722_v28 = vadd.f32 %v13022_v31, %v18584_v52  ;;  %v12959_v42 = vpop.f32.mrb[220].mxu0  ;;  %10166 = vmatprep.mubr.bf16.mxu1 %v19958_v4 }
 0x715   : > { %v12960_v32 = vpop.f32.mrb[221].mxu0 }
 0x716   : > { %v12961_v36 = vadd.f32 %v12960_v32, %v12959_v42  ;;  %v12962_v30 = vpop.f32.mrb[222].mxu0  ;;  %v13023_v19 = vpop.f32.mrb[252].mxu1 }
 0x717   : > { %v12963_v57 = vpop.f32.mrb[223].mxu0  ;;  %v13024_v15 = vpop.f32.mrb[253].mxu1 }
 0x718   : > { %v18729_v38 = vadd.f32 %v12961_v36, %v8130_v2  ;;  %v12964_v3 = vadd.f32 %v12963_v57, %v12962_v30  ;;  %v13025_v52 = vadd.f32 %v13024_v15, %v13023_v19  ;;  %v13026_v17 = vpop.f32.mrb[254].mxu1  ;;  %v8146_v30 = vadd.f32 %v18624_v24, %v18538_v5 }
 0x719   : > { %v13027_v40 = vpop.f32.mrb[255].mxu1  ;;  %10006 = vmatmul.mubr.bf16.gmra.mrb[72].mxu0 %v19958_v4 }
 0x71a   : > { %v18732_v37 = vadd.f32 %v12964_v3, %v8133_v11  ;;  %v18735_v62 = vadd.f32 %v13025_v52, %v18594_v39  ;;  %v13028_v47 = vadd.f32 %v13027_v40, %v13026_v17  ;;  %10013 = vmatprep.mubr.bf16.mxu0 %v19958_v4  ;;  %v8149_v3 = vadd.f32 %v18629_v1, %v18538_v5 }
 0x71b   : > { %10167 = vmatmul.mubr.bf16.gmra.mrb[104].mxu1 %v19958_v4 }
 0x71c   : > { %v18740_v48 = vadd.f32 %v13028_v47, %v18600_v10  ;;  %v12965_v50 = vpop.f32.mrb[224].mxu0  ;;  %10174 = vmatprep.mubr.bf16.mxu1 %v19958_v4 }
 0x71d   : > { %v12966_v13 = vpop.f32.mrb[225].mxu0 }
 0x71e   : > { %v12967_v25 = vadd.f32 %v12966_v13, %v12965_v50  ;;  %v12968_v53 = vpop.f32.mrb[226].mxu0  ;;  %v13029_v61 = vpop.f32.mrb[0].mxu1 }
 0x71f   : > { %v12969_v39 = vpop.f32.mrb[227].mxu0  ;;  %v13030_v18 = vpop.f32.mrb[1].mxu1 }
 0x720   : > { %v18747_v8 = vadd.f32 %v12967_v25, %v8138_v26  ;;  %v12970_v21 = vadd.f32 %v12969_v39, %v12968_v53  ;;  %v13031_v10 = vadd.f32 %v13030_v18, %v13029_v61  ;;  %v13032_v0 = vpop.f32.mrb[2].mxu1  ;;  %v8154_v53 = vadd.f32 %v18640_v23, %v18538_v5 }
 0x721   : > { %v13033_v31 = vpop.f32.mrb[3].mxu1  ;;  %10014 = vmatmul.mubr.bf16.gmra.mrb[76].mxu0 %v19958_v4 }
 0x722   : > { %v18750_v42 = vadd.f32 %v12970_v21, %v8141_v44  ;;  %v18753_v45 = vadd.f32 %v13031_v10, %v18610_v34  ;;  %v13034_v32 = vadd.f32 %v13033_v31, %v13032_v0  ;;  %10021 = vmatprep.mubr.bf16.mxu0 %v19958_v4  ;;  %v8157_v21 = vadd.f32 %v18645_v14, %v18538_v5 }
 0x723   : > { %10175 = vmatmul.mubr.bf16.gmra.mrb[108].mxu1 %v19958_v4 }
 0x724   : > { %v18758_v51 = vadd.f32 %v13034_v32, %v18616_v7  ;;  %v12971_v2 = vpop.f32.mrb[228].mxu0  ;;  %10182 = vmatprep.mubr.bf16.mxu1 %v19958_v4 }
 0x725   : > { %v12972_v36 = vpop.f32.mrb[229].mxu0 }
 0x726   : > { %v12973_v19 = vadd.f32 %v12972_v36, %v12971_v2  ;;  %v12974_v57 = vpop.f32.mrb[230].mxu0  ;;  %v13035_v15 = vpop.f32.mrb[4].mxu1 }
 0x727   : > { %v12975_v34 = vpop.f32.mrb[231].mxu0  ;;  %v13036_v11 = vpop.f32.mrb[5].mxu1 }
 0x728   : > { %v18765_v52 = vadd.f32 %v12973_v19, %v8146_v30  ;;  %v12976_v17 = vadd.f32 %v12975_v34, %v12974_v57  ;;  %v13037_v7 = vadd.f32 %v13036_v11, %v13035_v15  ;;  %v13038_v40 = vpop.f32.mrb[6].mxu1  ;;  %v8162_v57 = vadd.f32 %v18656_v41, %v18538_v5 }
 0x729   : > { %v13039_v47 = vpop.f32.mrb[7].mxu1  ;;  %10022 = vmatmul.mubr.bf16.gmra.mrb[80].mxu0 %v19958_v4 }
 0x72a   : > { %v18768_v50 = vadd.f32 %v12976_v17, %v8149_v3  ;;  %v18771_v24 = vadd.f32 %v13037_v7, %v18626_v12  ;;  %v13040_v13 = vadd.f32 %v13039_v47, %v13038_v40  ;;  %10029 = vmatprep.mubr.bf16.mxu0 %v19958_v4  ;;  %v8165_v17 = vadd.f32 %v18661_v46, %v18538_v5 }
 0x72b   : > { %10183 = vmatmul.mubr.bf16.gmra.mrb[112].mxu1 %v19958_v4 }
 0x72c   : > { %v18776_v1 = vadd.f32 %v13040_v13, %v18632_v56  ;;  %v12977_v26 = vpop.f32.mrb[232].mxu0  ;;  %10190 = vmatprep.mubr.bf16.mxu1 %v19958_v4 }
 0x72d   : > { %v12978_v25 = vpop.f32.mrb[233].mxu0 }
 0x72e   : > { %v12979_v61 = vadd.f32 %v12978_v25, %v12977_v26  ;;  %v12980_v39 = vpop.f32.mrb[234].mxu0  ;;  %v13041_v18 = vpop.f32.mrb[8].mxu1 }
 0x72f   : > { %v12981_v12 = vpop.f32.mrb[235].mxu0  ;;  %v13042_v44 = vpop.f32.mrb[9].mxu1 }
 0x730   : > { %v18783_v10 = vadd.f32 %v12979_v61, %v8154_v53  ;;  %v12982_v0 = vadd.f32 %v12981_v12, %v12980_v39  ;;  %v13043_v56 = vadd.f32 %v13042_v44, %v13041_v18  ;;  %v13044_v31 = vpop.f32.mrb[10].mxu1 }
 0x731   : > { %v13045_v32 = vpop.f32.mrb[11].mxu1  ;;  %10030 = vmatmul.mubr.bf16.gmra.mrb[84].mxu0 %v19958_v4 }
 0x732   : > { %v18786_v2 = vadd.f32 %v12982_v0, %v8157_v21  ;;  %v18789_v23 = vadd.f32 %v13043_v56, %v18642_v16  ;;  %v13046_v36 = vadd.f32 %v13045_v32, %v13044_v31  ;;  %10037 = vmatprep.mubr.bf16.mxu0 %v19958_v4 }
 0x733   : > { %10191 = vmatmul.mubr.bf16.gmra.mrb[116].mxu1 %v19958_v4 }
 0x734   : > { %v18794_v14 = vadd.f32 %v13046_v36, %v18648_v29  ;;  %v12983_v30 = vpop.f32.mrb[236].mxu0  ;;  %10198 = vmatprep.mubr.bf16.mxu1 %v19958_v4 }
 0x735   : > { %v12984_v19 = vpop.f32.mrb[237].mxu0 }
 0x736   : > { %v12985_v15 = vadd.f32 %v12984_v19, %v12983_v30  ;;  %v12986_v34 = vpop.f32.mrb[238].mxu0  ;;  %v13047_v11 = vpop.f32.mrb[12].mxu1 }
 0x737   : > { %v12987_v16 = vpop.f32.mrb[239].mxu0  ;;  %v13048_v3 = vpop.f32.mrb[13].mxu1 }
 0x738   : > { %v18801_v7 = vadd.f32 %v12985_v15, %v8162_v57  ;;  %v12988_v40 = vadd.f32 %v12987_v16, %v12986_v34  ;;  %v13049_v29 = vadd.f32 %v13048_v3, %v13047_v11  ;;  %v13050_v47 = vpop.f32.mrb[14].mxu1 }
 0x739   : > { %v13051_v13 = vpop.f32.mrb[15].mxu1  ;;  %10038 = vmatmul.mubr.bf16.gmra.mrb[88].mxu0 %v19958_v4 }
 0x73a   : > { %v18804_v26 = vadd.f32 %v12988_v40, %v8165_v17  ;;  %v18807_v41 = vadd.f32 %v13049_v29, %v18658_v22  ;;  %v13052_v25 = vadd.f32 %v13051_v13, %v13050_v47  ;;  %10045 = vmatprep.mubr.bf16.mxu0 %v19958_v4 }
 0x73b   : > { %10199 = vmatmul.mubr.bf16.gmra.mrb[120].mxu1 %v19958_v4 }
 0x73c   : > { %v18812_v5 = vadd.f32 %v13052_v25, %v18664_v58  ;;  %v13117_v46 = vpop.f32.mrb[240].mxu0  ;;  %10206 = vmatprep.mubr.bf16.mxu1 %v19958_v4 }
 0x73d   : > { %v13118_v53 = vpop.f32.mrb[241].mxu0 }
 0x73e   : > { %v13119_v61 = vadd.f32 %v13118_v53, %v13117_v46  ;;  %v13053_v39 = vpop.f32.mrb[16].mxu1  ;;  %v13120_v18 = vpop.f32.mrb[242].mxu0 }
 0x73f   : > { %v13054_v12 = vpop.f32.mrb[17].mxu1  ;;  %v13121_v44 = vpop.f32.mrb[243].mxu0 }
 0x740   : > { %v13055_v21 = vadd.f32 %v13054_v12, %v13053_v39  ;;  %v13122_v22 = vadd.f32 %v13121_v44, %v13120_v18  ;;  %v13056_v0 = vpop.f32.mrb[18].mxu1  ;;  %v18816_v56 = vadd.f32 %v13119_v61, %v18678_v55 }
 0x741   : > { %v13057_v31 = vpop.f32.mrb[19].mxu1  ;;  %10046 = vmatmul.mubr.bf16.gmra.mrb[92].mxu0 %v19958_v4 }
 0x742   : > { %v18820_v58 = vadd.f32 %v13055_v21, %v18672_v9  ;;  %v13058_v32 = vadd.f32 %v13057_v31, %v13056_v0  ;;  %10053 = vmatprep.mubr.bf16.mxu0 %v19958_v4  ;;  %v18824_v36 = vadd.f32 %v13122_v22, %v18683_v49 }
 0x743   : > { %10207 = vmatmul.mubr.bf16.gmra.mrb[124].mxu1 %v19958_v4 }
 0x744   : > { %v18828_v30 = vadd.f32 %v13058_v32, %v18675_v33  ;;  %v13123_v19 = vpop.f32.mrb[244].mxu0  ;;  %10214 = vmatprep.mubr.bf16.mxu1 %v19958_v4 }
 0x745   : > { %v13124_v55 = vpop.f32.mrb[245].mxu0 }
 0x746   : > { %v13125_v57 = vadd.f32 %v13124_v55, %v13123_v19  ;;  %v13059_v15 = vpop.f32.mrb[20].mxu1  ;;  %v13126_v34 = vpop.f32.mrb[246].mxu0 }
 0x747   : > { %v13060_v9 = vpop.f32.mrb[21].mxu1  ;;  %v13127_v11 = vpop.f32.mrb[247].mxu0 }
 0x748   : > { %v13061_v16 = vadd.f32 %v13060_v9, %v13059_v15  ;;  %v13128_v3 = vadd.f32 %v13127_v11, %v13126_v34  ;;  %v13062_v17 = vpop.f32.mrb[22].mxu1  ;;  %v18832_v49 = vadd.f32 %v13125_v57, %v18696_v60 }
 0x749   : > { %v13063_v40 = vpop.f32.mrb[23].mxu1  ;;  %10054 = vmatmul.mubr.bf16.gmra.mrb[96].mxu0 %v19958_v4 }
 0x74a   : > { %v18836_v33 = vadd.f32 %v13061_v16, %v18690_v6  ;;  %v13064_v29 = vadd.f32 %v13063_v40, %v13062_v17  ;;  %10061 = vmatprep.mubr.bf16.mxu0 %v19958_v4  ;;  %v18840_v47 = vadd.f32 %v13128_v3, %v18701_v35 }
 0x74b   : > { %10215 = vmatmul.mubr.bf16.gmra.mrb[128].mxu1 %v19958_v4 }
 0x74c   : > { %v18844_v13 = vadd.f32 %v13064_v29, %v18693_v27  ;;  %v13129_v25 = vpop.f32.mrb[248].mxu0  ;;  %10222 = vmatprep.mubr.bf16.mxu1 %v19958_v4 }
 0x74d   : > { %v13130_v60 = vpop.f32.mrb[249].mxu0 }
 0x74e   : > { %v13131_v46 = vadd.f32 %v13130_v60, %v13129_v25  ;;  %v13065_v53 = vpop.f32.mrb[24].mxu1  ;;  %v13132_v61 = vpop.f32.mrb[250].mxu0 }
 0x74f   : > { %v13066_v6 = vpop.f32.mrb[25].mxu1  ;;  %v13133_v39 = vpop.f32.mrb[251].mxu0 }
 0x750   : > { %v13067_v18 = vadd.f32 %v13066_v6, %v13065_v53  ;;  %v13134_v12 = vadd.f32 %v13133_v39, %v13132_v61  ;;  %v13068_v44 = vpop.f32.mrb[26].mxu1  ;;  %v18848_v35 = vadd.f32 %v13131_v46, %v18717_v20 }
 0x751   : > { %v13069_v21 = vpop.f32.mrb[27].mxu1  ;;  %10062 = vmatmul.mubr.bf16.gmra.mrb[100].mxu0 %v19958_v4 }
 0x752   : > { %v18852_v27 = vadd.f32 %v13067_v18, %v18711_v59  ;;  %v13070_v22 = vadd.f32 %v13069_v21, %v13068_v44  ;;  %10069 = vmatprep.mubr.bf16.mxu0 %v19958_v4  ;;  %v18856_v0 = vadd.f32 %v13134_v12, %v18722_v28 }
 0x753   : > { %10223 = vmatmul.mubr.bf16.gmra.mrb[132].mxu1 %v19958_v4 }
 0x754   : > { %v18860_v31 = vadd.f32 %v13070_v22, %v18714_v43  ;;  %v13135_v32 = vpop.f32.mrb[252].mxu0  ;;  %10230 = vmatprep.mubr.bf16.mxu1 %v19958_v4 }
 0x755   : > { %v13136_v20 = vpop.f32.mrb[253].mxu0 }
 0x756   : > { %v13137_v19 = vadd.f32 %v13136_v20, %v13135_v32  ;;  %v13071_v55 = vpop.f32.mrb[28].mxu1  ;;  %v13138_v57 = vpop.f32.mrb[254].mxu0 }
 0x757   : > { %v13072_v59 = vpop.f32.mrb[29].mxu1  ;;  %v13139_v15 = vpop.f32.mrb[255].mxu0 }
 0x758   : > { %v13073_v34 = vadd.f32 %v13072_v59, %v13071_v55  ;;  %v13140_v9 = vadd.f32 %v13139_v15, %v13138_v57  ;;  %v13074_v11 = vpop.f32.mrb[30].mxu1  ;;  %v18864_v28 = vadd.f32 %v13137_v19, %v18735_v62 }
 0x759   : > { %v13075_v16 = vpop.f32.mrb[31].mxu1  ;;  %10070 = vmatmul.mubr.bf16.gmra.mrb[104].mxu0 %v19958_v4 }
 0x75a   : > { %v18868_v43 = vadd.f32 %v13073_v34, %v18729_v38  ;;  %v13076_v3 = vadd.f32 %v13075_v16, %v13074_v11  ;;  %10077 = vmatprep.mubr.bf16.mxu0 %v19958_v4  ;;  %v18872_v17 = vadd.f32 %v13140_v9, %v18740_v48 }
 0x75b   : > { %10231 = vmatmul.mubr.bf16.gmra.mrb[136].mxu1 %v19958_v4 }
 0x75c   : > { %v18876_v40 = vadd.f32 %v13076_v3, %v18732_v37  ;;  %v13141_v29 = vpop.f32.mrb[0].mxu0  ;;  %10238 = vmatprep.mubr.bf16.mxu1 %v19958_v4 }
 0x75d   : > { %v13142_v62 = vpop.f32.mrb[1].mxu0 }
 0x75e   : > { %v13143_v25 = vadd.f32 %v13142_v62, %v13141_v29  ;;  %v13077_v60 = vpop.f32.mrb[32].mxu1  ;;  %v13144_v46 = vpop.f32.mrb[2].mxu0 }
 0x75f   : > { %v13078_v38 = vpop.f32.mrb[33].mxu1  ;;  %v13145_v53 = vpop.f32.mrb[3].mxu0 }
 0x760   : > { %v13079_v61 = vadd.f32 %v13078_v38, %v13077_v60  ;;  %v13146_v6 = vadd.f32 %v13145_v53, %v13144_v46  ;;  %v13080_v39 = vpop.f32.mrb[34].mxu1  ;;  %v18880_v48 = vadd.f32 %v13143_v25, %v18753_v45 }
 0x761   : > { %v13081_v18 = vpop.f32.mrb[35].mxu1  ;;  %10078 = vmatmul.mubr.bf16.gmra.mrb[108].mxu0 %v19958_v4 }
 0x762   : > { %v18884_v37 = vadd.f32 %v13079_v61, %v18747_v8  ;;  %v13082_v12 = vadd.f32 %v13081_v18, %v13080_v39  ;;  %10279 = vmatprep.mubr.bf16.mxu0 %v19958_v4  ;;  %v18888_v44 = vadd.f32 %v13146_v6, %v18758_v51 }
 0x763   : > { %10239 = vmatmul.mubr.bf16.gmra.mrb[140].mxu1 %v19958_v4 }
 0x764   : > { %v18892_v21 = vadd.f32 %v13082_v12, %v18750_v42  ;;  %v13147_v22 = vpop.f32.mrb[4].mxu0  ;;  %10440 = vmatprep.mubr.bf16.mxu1 %v19958_v4 }
 0x765   : > { %v13148_v45 = vpop.f32.mrb[5].mxu0 }
 0x766   : > { %v13149_v32 = vadd.f32 %v13148_v45, %v13147_v22  ;;  %v13083_v20 = vpop.f32.mrb[36].mxu1  ;;  %v13150_v19 = vpop.f32.mrb[6].mxu0 }
 0x767   : > { %v13084_v8 = vpop.f32.mrb[37].mxu1  ;;  %v13151_v55 = vpop.f32.mrb[7].mxu0 }
 0x768   : > { %v13085_v57 = vadd.f32 %v13084_v8, %v13083_v20  ;;  %v13152_v59 = vadd.f32 %v13151_v55, %v13150_v19  ;;  %v13086_v15 = vpop.f32.mrb[38].mxu1  ;;  %v18896_v51 = vadd.f32 %v13149_v32, %v18771_v24 }
 0x769   : > { %v13087_v34 = vpop.f32.mrb[39].mxu1 }
 0x76a   : > { %v18899_v9 = vadd.f32 %v13085_v57, %v18765_v52  ;;  %v13088_v42 = vadd.f32 %v13087_v34, %v13086_v15  ;;  %v18902_v11 = vadd.f32 %v13152_v59, %v18776_v1 }
 0x76b   : > { %10441 = vmatmul.mubr.bf16.vlgmr.msra.gmra.mrb[144].mxu1 %v19958_v4 }
 0x76c   : > { %v18906_v16 = vadd.f32 %v13088_v42, %v18768_v50  ;;  %v13153_v3 = vpop.f32.mrb[8].mxu0  ;;  %10448 = vmatprep.mubr.bf16.mxu1 %v19958_v4 }
 0x76d   : > { %v13154_v29 = vpop.f32.mrb[9].mxu0 }
 0x76e   : > { %v13155_v62 = vadd.f32 %v13154_v29, %v13153_v3  ;;  %v13089_v24 = vpop.f32.mrb[40].mxu1  ;;  %v13156_v25 = vpop.f32.mrb[10].mxu0 }
 0x76f   : > { %v13090_v60 = vpop.f32.mrb[41].mxu1  ;;  %v13157_v46 = vpop.f32.mrb[11].mxu0 }
 0x770   : > { %v13091_v52 = vadd.f32 %v13090_v60, %v13089_v24  ;;  %v13158_v38 = vadd.f32 %v13157_v46, %v13156_v25  ;;  %v13092_v53 = vpop.f32.mrb[42].mxu1  ;;  %v18910_v1 = vadd.f32 %v13155_v62, %v18789_v23 }
 0x771   : > { %v13093_v61 = vpop.f32.mrb[43].mxu1 }
 0x772   : > { %v18913_v6 = vadd.f32 %v13091_v52, %v18783_v10  ;;  %v13094_v50 = vadd.f32 %v13093_v61, %v13092_v53  ;;  %v18916_v39 = vadd.f32 %v13158_v38, %v18794_v14 }
 0x773   : > { %10449 = vmatmul.mubr.bf16.gmra.mrb[148].mxu1 %v19958_v4 }
 0x774   : > { %v18920_v18 = vadd.f32 %v13094_v50, %v18786_v2  ;;  %v13159_v12 = vpop.f32.mrb[12].mxu0  ;;  %10456 = vmatprep.mubr.bf16.mxu1 %v19958_v4 }
 0x775   : > { %v13160_v22 = vpop.f32.mrb[13].mxu0 }
 0x776   : > { %v13161_v45 = vadd.f32 %v13160_v22, %v13159_v12  ;;  %v13095_v23 = vpop.f32.mrb[44].mxu1  ;;  %v13162_v32 = vpop.f32.mrb[14].mxu0 }
 0x777   : > { %v13096_v20 = vpop.f32.mrb[45].mxu1  ;;  %v13163_v19 = vpop.f32.mrb[15].mxu0 }
 0x778   : > { %v13097_v10 = vadd.f32 %v13096_v20, %v13095_v23  ;;  %v13164_v8 = vadd.f32 %v13163_v19, %v13162_v32  ;;  %v13098_v55 = vpop.f32.mrb[46].mxu1  ;;  %v18924_v14 = vadd.f32 %v13161_v45, %v18807_v41 }
 0x779   : > { %v13099_v57 = vpop.f32.mrb[47].mxu1 }
 0x77a   : > { %v18927_v59 = vadd.f32 %v13097_v10, %v18801_v7  ;;  %v13100_v2 = vadd.f32 %v13099_v57, %v13098_v55  ;;  %v18930_v15 = vadd.f32 %v13164_v8, %v18812_v5 }
 0x77b   : > { %10457 = vmatmul.mubr.bf16.gmra.mrb[152].mxu1 %v19958_v4 }
 0x77c   : > { %v18934_v34 = vadd.f32 %v13100_v2, %v18804_v26  ;;  %v13165_v42 = vpop.f32.mrb[16].mxu0  ;;  %10464 = vmatprep.mubr.bf16.mxu1 %v19958_v4 }
 0x77d   : > { %v13166_v3 = vpop.f32.mrb[17].mxu0 }
 0x77e   : > { %v13167_v29 = vadd.f32 %v13166_v3, %v13165_v42  ;;  %v13168_v41 = vpop.f32.mrb[18].mxu0  ;;  %v13871_v62 = vpop.f32.mrb[48].mxu1  ;;  %v14395_v42 = vld [vmem:[#allocation6 + $0xb08] sm:$0xff]  }
 0x77f   : > { %v8694_v24 = vadd.f32 %v13871_v62, %v18832_v49  ;;  %v13169_v7 = vpop.f32.mrb[19].mxu0  ;;  %v8685_v25 = vpop.f32.mrb[49].mxu1  ;;  %v20036_v49 = vld [vmem:[#allocation35_spill] sm:$0xff] }
 0x780   : > { %v13170_v60 = vadd.f32 %v13169_v7, %v13168_v41  ;;  %v8686_v5 = vadd.f32 %v8685_v25, %v18816_v56  ;;  %v13872_v46 = vpop.f32.mrb[50].mxu1  ;;  %v18940_v52 = vadd.f32 %v13167_v29, %v18820_v58  ;;  %v20037_v56 = vld [vmem:[#allocation54_spill] sm:$0xff] }
 0x781   : > { %v8814_v26 = vmax.f32 %v8694_v24, 0.0  ;;  %v8697_v38 = vadd.f32 %v13872_v46, %v18840_v47  ;;  %v8688_v53 = vpop.f32.mrb[51].mxu1  ;;  %v20038_v47 = vld [vmem:[#allocation59_spill] sm:$0xff] }
 0x782   : > { %v8812_v61 = vmax.f32 %v8686_v5, 0.0  ;;  %v8689_v50 = vadd.f32 %v8688_v53, %v18824_v36  ;;  %v18945_v12 = vadd.f32 %v13170_v60, %v18828_v30  ;;  %v20039_v30 = vld [vmem:[#allocation38_spill] sm:$0xff]  ;;  %v20040_v53 = vld [vmem:[#allocation32_spill] sm:$0xff] }
 0x783   : > { %v18948_v22 = vadd.f32 %v8814_v26, %v20036_v49  ;;  %v8815_v45 = vmax.f32 %v8697_v38, 0.0  ;;  %10465 = vmatmul.mubr.bf16.gmra.mrb[156].mxu1 %v19958_v4 }
 0x784   : > { %v18952_v23 = vadd.f32 %v8812_v61, %v20037_v56  ;;  %v8813_v58 = vmax.f32 %v8689_v50, 0.0  ;;  %v13171_v32 = vpop.f32.mrb[20].mxu0  ;;  %10472 = vmatprep.mubr.bf16.mxu1 %v19958_v4 }
 0x785   : > { %v18956_v20 = vadd.f32 %v8815_v45, %v20038_v47  ;;  %v9209_v36 = vpack.c.bf16 %v8815_v45, %v8814_v26  ;;  %v13172_v19 = vpop.f32.mrb[21].mxu0  ;;  %v20043_v45 = vld [vmem:[#allocation30_spill] sm:$0xff] }
 0x786   : > { %v18959_v10 = vadd.f32 %v8813_v58, %v20039_v30  ;;  %v9200_v8 = vpack.c.bf16 %v8813_v58, %v8812_v61  ;;  %v13173_v55 = vadd.f32 %v13172_v19, %v13171_v32  ;;  %v13174_v57 = vpop.f32.mrb[22].mxu0  ;;  %v13875_v2 = vpop.f32.mrb[52].mxu1  ;;  %v20045_v58 = vld [vmem:[#allocation18_spill] sm:$0xff] }
 0x787   : > { %v8710_v3 = vadd.f32 %v13875_v2, %v18864_v28  ;;  %v13175_v29 = vpop.f32.mrb[23].mxu0  ;;  %v8701_v41 = vpop.f32.mrb[53].mxu1 }
 0x788   : > { %v13176_v62 = vadd.f32 %v13175_v29, %v13174_v57  ;;  %v8702_v24 = vadd.f32 %v8701_v41, %v18848_v35  ;;  %v13876_v7 = vpop.f32.mrb[54].mxu1  ;;  %10280 = vmatmul.mubr.bf16.vlgmr.msra.gmra.mrb[112].mxu0 %v9200_v8  ;;  %v18964_v25 = vadd.f32 %v13173_v55, %v18836_v33  ;;  %v14396_v35 = vld [vmem:[#allocation6 + $0xb10] sm:$0xff]   ;;  %v14397_v55 = vld [vmem:[#allocation6 + $0xb18] sm:$0xff]  }
 0x789   : > { %v8818_v60 = vmax.f32 %v8710_v3, 0.0  ;;  %v8713_v5 = vadd.f32 %v13876_v7, %v18872_v17  ;;  %v8704_v46 = vpop.f32.mrb[55].mxu1  ;;  %13902 = vmatpush3.bf16.msra.mxu0 %v18704_v54  ;;  %10287 = vmatprep.mubr.bf16.mxu0 %v19958_v4  ;;  %v20041_v17 = vld [vmem:[#allocation28_spill] sm:$0xff] }
 0x78a   : > { %v8816_v26 = vmax.f32 %v8702_v24, 0.0  ;;  %v8705_v28 = vadd.f32 %v8704_v46, %v18856_v0  ;;  %13903 = vmatprep.subr.bf16.mxu0 %v14395_v42  ;;  %v18971_v38 = vadd.f32 %v13176_v62, %v18844_v13 }
 0x78b   : > { %v18974_v61 = vadd.f32 %v8818_v60, %v20040_v53  ;;  %v8819_v33 = vmax.f32 %v8713_v5, 0.0  ;;  %10473 = vmatmul.mubr.bf16.gmra.mrb[160].mxu1 %v19958_v4 }
 0x78c   : > { %v18978_v50 = vadd.f32 %v8816_v26, %v20041_v17  ;;  %v8817_v54 = vmax.f32 %v8705_v28, 0.0  ;;  %v13177_v49 = vpop.f32.mrb[24].mxu0  ;;  %10480 = vmatprep.mubr.bf16.mxu1 %v19958_v4  ;;  %v20049_v28 = vld [vmem:[#allocation44_spill] sm:$0xff] }
 0x78d   : > { %v18982_v0 = vadd.f32 %v8819_v33, %v20043_v45  ;;  %v18984_v56 = vpack.c.bf16 %v8819_v33, %v8818_v60  ;;  %v13178_v13 = vpop.f32.mrb[25].mxu0  ;;  %13904 = vmatpush3.bf16.msra.mxu0 %v14395_v42 }
 0x78e   : > { %20042 = vst [vmem:[#allocation15_spill] sm:$0xff] %v18978_v50  ;;  %v18987_v32 = vadd.f32 %v8817_v54, %v20045_v58  ;;  %v9218_v47 = vpack.c.bf16 %v8817_v54, %v8816_v26  ;;  %v13179_v19 = vadd.f32 %v13178_v13, %v13177_v49  ;;  %v13180_v30 = vpop.f32.mrb[26].mxu0  ;;  %v13879_v8 = vpop.f32.mrb[56].mxu1  ;;  %13905 = vmatprep.subr.bf16.mxu0 %v14396_v35  ;;  %v20047_v26 = vld [vmem:[#allocation31_spill] sm:$0xff] }
 0x78f   : > { %20044 = vst [vmem:[#allocation58_spill] sm:$0xff] %v18982_v0  ;;  %v8726_v57 = vadd.f32 %v13879_v8, %v18896_v51  ;;  %v13181_v2 = vpop.f32.mrb[27].mxu0  ;;  %v8717_v3 = vpop.f32.mrb[57].mxu1  ;;  %v20053_v54 = vld [vmem:[#allocation47_spill] sm:$0xff] }
 0x790   : > { %20046 = vst [vmem:[#allocation13_spill] sm:$0xff] %v18987_v32  ;;  %v13182_v29 = vadd.f32 %v13181_v2, %v13180_v30  ;;  %v8718_v41 = vadd.f32 %v8717_v3, %v18880_v48  ;;  %v13880_v62 = vpop.f32.mrb[58].mxu1  ;;  %10288 = vmatmul.mubr.bf16.gmra.mrb[116].mxu0 %v9209_v36  ;;  %v18992_v42 = vadd.f32 %v13179_v19, %v18852_v27  ;;  %v14398_v48 = vld [vmem:[#allocation6 + $0xb20] sm:$0xff]   ;;  %v14399_v30 = vld [vmem:[#allocation6 + $0xb28] sm:$0xff]  }
 0x791   : > { %v8822_v24 = vmax.f32 %v8726_v57, 0.0  ;;  %v8729_v7 = vadd.f32 %v13880_v62, %v18902_v11  ;;  %v8720_v60 = vpop.f32.mrb[59].mxu1  ;;  %10295 = vmatprep.mubr.bf16.mxu0 %v19958_v4  ;;  %13906 = vmatpush3.bf16.msra.mxu0 %v14396_v35  ;;  %v20051_v35 = vld [vmem:[#allocation45_spill] sm:$0xff] }
 0x792   : > { %v8820_v5 = vmax.f32 %v8718_v41, 0.0  ;;  %v8721_v51 = vadd.f32 %v8720_v60, %v18888_v44  ;;  %v18998_v46 = vadd.f32 %v13182_v29, %v18860_v31  ;;  %13907 = vmatprep.subr.bf16.mxu0 %v14397_v55 }
 0x793   : > { %v19001_v36 = vadd.f32 %v8822_v24, %v20047_v26  ;;  %v8823_v27 = vmax.f32 %v8729_v7, 0.0  ;;  %10481 = vmatmul.mubr.bf16.gmra.mrb[164].mxu1 %v19958_v4 }
 0x794   : > { %v19005_v11 = vadd.f32 %v8820_v5, %v20049_v28  ;;  %v8821_v53 = vmax.f32 %v8721_v51, 0.0  ;;  %v13183_v33 = vpop.f32.mrb[28].mxu0  ;;  %10488 = vmatprep.mubr.bf16.mxu1 %v19958_v4  ;;  %v14400_v51 = vld [vmem:[#allocation6 + $0xb30] sm:$0xff]  }
 0x795   : > { %20048 = vst [vmem:[#allocation60_spill] sm:$0xff] %v19001_v36  ;;  %v19009_v44 = vadd.f32 %v8823_v27, %v20051_v35  ;;  %v19011_v31 = vpack.c.bf16 %v8823_v27, %v8822_v24  ;;  %v13184_v17 = vpop.f32.mrb[29].mxu0  ;;  %13908 = vmatpush3.bf16.msra.mxu0 %v14397_v55 }
 0x796   : > { %20050 = vst [vmem:[#allocation36_spill] sm:$0xff] %v19005_v11  ;;  %v19014_v49 = vadd.f32 %v8821_v53, %v20053_v54  ;;  %v19016_v45 = vpack.c.bf16 %v8821_v53, %v8820_v5  ;;  %v13185_v13 = vadd.f32 %v13184_v17, %v13183_v33  ;;  %v13186_v58 = vpop.f32.mrb[30].mxu0  ;;  %v13883_v19 = vpop.f32.mrb[60].mxu1  ;;  %13909 = vmatprep.subr.bf16.mxu0 %v14398_v48  ;;  %v20061_v33 = vld [vmem:[#allocation16_spill] sm:$0xff] }
 0x797   : > { %20052 = vst [vmem:[#allocation37_spill] sm:$0xff] %v19009_v44  ;;  %v8742_v8 = vadd.f32 %v13883_v19, %v18924_v14  ;;  %v13187_v57 = vpop.f32.mrb[31].mxu0  ;;  %v8733_v2 = vpop.f32.mrb[61].mxu1  ;;  %v14401_v19 = vld [vmem:[#allocation6 + $0xb38] sm:$0xff]  }
 0x798   : > { %20054 = vst [vmem:[#allocation34_spill] sm:$0xff] %v19014_v49  ;;  %v13188_v3 = vadd.f32 %v13187_v57, %v13186_v58  ;;  %v8734_v29 = vadd.f32 %v8733_v2, %v18910_v1  ;;  %v13884_v41 = vpop.f32.mrb[62].mxu1  ;;  %10296 = vmatmul.mubr.bf16.gmra.mrb[120].mxu0 %v9218_v47  ;;  %v8613_v55 = vadd.f32 %v13185_v13, %v18868_v43  ;;  %v20055_v1 = vld [vmem:[#allocation48_spill] sm:$0xff] }
 0x799   : > { %v8826_v62 = vmax.f32 %v8742_v8, 0.0  ;;  %v8745_v24 = vadd.f32 %v13884_v41, %v18930_v15  ;;  %v8736_v7 = vpop.f32.mrb[63].mxu1  ;;  %10303 = vmatprep.mubr.bf16.mxu0 %v19958_v4  ;;  %13910 = vmatpush3.bf16.msra.mxu0 %v14398_v48  ;;  %v20057_v43 = vld [vmem:[#allocation24_spill] sm:$0xff]  ;;  %v20059_v48 = vld [vmem:[#allocation23_spill] sm:$0xff] }
 0x79a   : > { %v8824_v60 = vmax.f32 %v8734_v29, 0.0  ;;  %v8737_v5 = vadd.f32 %v8736_v7, %v18916_v39  ;;  %v19025_v14 = vadd.f32 %v13188_v3, %v18876_v40  ;;  %13911 = vmatprep.subr.bf16.mxu0 %v14399_v30 }
 0x79b   : > { %v19028_v26 = vadd.f32 %v8826_v62, %v20055_v1  ;;  %v8827_v47 = vmax.f32 %v8745_v24, 0.0  ;;  %10489 = vmatmul.mubr.bf16.gmra.mrb[168].mxu1 %v19958_v4  ;;  %v20063_v1 = vld [vmem:[#allocation14_spill] sm:$0xff] }
 0x79c   : > { %v19032_v15 = vadd.f32 %v8824_v60, %v20057_v43  ;;  %v8825_v27 = vmax.f32 %v8737_v5, 0.0  ;;  %v13189_v28 = vpop.f32.mrb[32].mxu0  ;;  %10496 = vmatprep.mubr.bf16.mxu1 %v19958_v4 }
 0x79d   : > { %20056 = vst [vmem:[#allocation33_spill] sm:$0xff] %v19028_v26  ;;  %v19036_v39 = vadd.f32 %v8827_v47, %v20059_v48  ;;  %v19038_v40 = vpack.c.bf16 %v8827_v47, %v8826_v62  ;;  %v13190_v53 = vpop.f32.mrb[33].mxu0  ;;  %13912 = vmatpush3.bf16.msra.mxu0 %v14399_v30 }
 0x79e   : > { %20058 = vst [vmem:[#allocation61_spill] sm:$0xff] %v19032_v15  ;;  %v19041_v35 = vadd.f32 %v8825_v27, %v20061_v33  ;;  %v19043_v17 = vpack.c.bf16 %v8825_v27, %v8824_v60  ;;  %v13191_v54 = vadd.f32 %v13190_v53, %v13189_v28  ;;  %v13192_v13 = vpop.f32.mrb[34].mxu0  ;;  %v13887_v58 = vpop.f32.mrb[64].mxu1  ;;  %13913 = vmatprep.subr.bf16.mxu0 %v14400_v51  ;;  %v20069_v28 = vld [vmem:[#allocation26_spill] sm:$0xff] }
 0x79f   : > { %20060 = vst [vmem:[#allocation40_spill] sm:$0xff] %v19036_v39  ;;  %v8758_v8 = vadd.f32 %v13887_v58, %v18964_v25  ;;  %v13193_v57 = vpop.f32.mrb[35].mxu0  ;;  %v8749_v2 = vpop.f32.mrb[65].mxu1 }
 0x7a0   : > { %20062 = vst [vmem:[#allocation62_spill] sm:$0xff] %v19041_v35  ;;  %v13194_v3 = vadd.f32 %v13193_v57, %v13192_v13  ;;  %v8750_v29 = vadd.f32 %v8749_v2, %v18940_v52  ;;  %v13888_v41 = vpop.f32.mrb[66].mxu1  ;;  %10304 = vmatmul.mubr.bf16.gmra.mrb[124].mxu0 %v18984_v56  ;;  %v8621_v30 = vadd.f32 %v13191_v54, %v18884_v37  ;;  %v20065_v37 = vld [vmem:[#allocation50_spill] sm:$0xff] }
 0x7a1   : > { %v8830_v62 = vmax.f32 %v8758_v8, 0.0  ;;  %v8761_v24 = vadd.f32 %v13888_v41, %v18971_v38  ;;  %v8752_v7 = vpop.f32.mrb[67].mxu1  ;;  %10311 = vmatprep.mubr.bf16.mxu0 %v19958_v4  ;;  %13914 = vmatpush3.bf16.msra.mxu0 %v14400_v51  ;;  %v20067_v51 = vld [vmem:[#allocation21_spill] sm:$0xff] }
 0x7a2   : > { %v8828_v60 = vmax.f32 %v8750_v29, 0.0  ;;  %v8753_v25 = vadd.f32 %v8752_v7, %v18945_v12  ;;  %v8624_v5 = vadd.f32 %v13194_v3, %v18892_v21  ;;  %13915 = vmatprep.subr.bf16.mxu0 %v14401_v19 }
 0x7a3   : > { %v19054_v52 = vadd.f32 %v8830_v62, %v20063_v1  ;;  %v8831_v47 = vmax.f32 %v8761_v24, 0.0  ;;  %10497 = vmatmul.mubr.bf16.gmra.mrb[172].mxu1 %v19958_v4 }
 0x7a4   : > { %v19058_v56 = vadd.f32 %v8828_v60, %v20065_v37  ;;  %v8829_v38 = vmax.f32 %v8753_v25, 0.0  ;;  %v13195_v43 = vpop.f32.mrb[36].mxu0  ;;  %10504 = vmatprep.mubr.bf16.mxu1 %v19958_v4  ;;  %v20071_v25 = vld [vmem:[#allocation20_spill] sm:$0xff] }
 0x7a5   : > { %20064 = vst [vmem:[#allocation43_spill] sm:$0xff] %v19054_v52  ;;  %v19062_v27 = vadd.f32 %v8831_v47, %v20067_v51  ;;  %v19064_v12 = vpack.c.bf16 %v8831_v47, %v8830_v62  ;;  %v13196_v21 = vpop.f32.mrb[37].mxu0  ;;  %13916 = vmatpush3.bf16.msra.mxu0 %v14401_v19 }
 0x7a6   : > { %20066 = vst [vmem:[#allocation41_spill] sm:$0xff] %v19058_v56  ;;  %v19067_v48 = vadd.f32 %v8829_v38, %v20069_v28  ;;  %v19069_v53 = vpack.c.bf16 %v8829_v38, %v8828_v60  ;;  %v13197_v33 = vadd.f32 %v13196_v21, %v13195_v43  ;;  %v13198_v54 = vpop.f32.mrb[38].mxu0  ;;  %v13891_v13 = vpop.f32.mrb[68].mxu1 }
 0x7a7   : > { %20068 = vst [vmem:[#allocation63_spill] sm:$0xff] %v19062_v27  ;;  %v8774_v58 = vadd.f32 %v13891_v13, %v8613_v55  ;;  %v13199_v8 = vpop.f32.mrb[39].mxu0  ;;  %v8765_v57 = vpop.f32.mrb[69].mxu1 }
 0x7a8   : > { %20070 = vst [vmem:[#allocation65_spill] sm:$0xff] %v19067_v48  ;;  %v13200_v2 = vadd.f32 %v13199_v8, %v13198_v54  ;;  %v8766_v3 = vadd.f32 %v8765_v57, %v18992_v42  ;;  %v13892_v29 = vpop.f32.mrb[70].mxu1  ;;  %10312 = vmatmul.mubr.bf16.gmra.mrb[128].mxu0 %v19016_v45  ;;  %v8629_v41 = vadd.f32 %v13197_v33, %v18899_v9  ;;  %v20073_v45 = vld [vmem:[#allocation27_spill] sm:$0xff] }
 0x7a9   : > { %v8834_v19 = vmax.f32 %v8774_v58, 0.0  ;;  %v8777_v62 = vadd.f32 %v13892_v29, %v19025_v14  ;;  %v8768_v24 = vpop.f32.mrb[71].mxu1  ;;  %10319 = vmatprep.mubr.bf16.mxu0 %v19958_v4  ;;  %v20075_v14 = vld [vmem:[#allocation25_spill] sm:$0xff] }
 0x7aa   : > { %v8832_v7 = vmax.f32 %v8766_v3, 0.0  ;;  %v8769_v60 = vadd.f32 %v8768_v24, %v18998_v46  ;;  %v8632_v55 = vadd.f32 %v13200_v2, %v18906_v16  ;;  %v20077_v16 = vld [vmem:[#allocation19_spill] sm:$0xff] }
 0x7ab   : > { %v19079_v1 = vadd.f32 %v8834_v19, %v20071_v25  ;;  %v8835_v42 = vmax.f32 %v8777_v62, 0.0  ;;  %10505 = vmatmul.mubr.bf16.gmra.mrb[176].mxu1 %v19958_v4 }
 0x7ac   : > { %v19083_v47 = vadd.f32 %v8832_v7, %v20073_v45  ;;  %v8833_v9 = vmax.f32 %v8769_v60, 0.0  ;;  %v13201_v37 = vpop.f32.mrb[40].mxu0  ;;  %10512 = vmatprep.mubr.bf16.mxu1 %v19958_v4 }
 0x7ad   : > { %20072 = vst [vmem:[#allocation64_spill] sm:$0xff] %v19079_v1  ;;  %v19087_v38 = vadd.f32 %v8835_v42, %v20075_v14  ;;  %v19089_v43 = vpack.c.bf16 %v8835_v42, %v8834_v19  ;;  %v13202_v46 = vpop.f32.mrb[41].mxu0  ;;  %v20079_v42 = vld [vmem:[#allocation17_spill] sm:$0xff] }
 0x7ae   : > { %20074 = vst [vmem:[#allocation66_spill] sm:$0xff] %v19083_v47  ;;  %v19092_v51 = vadd.f32 %v8833_v9, %v20077_v16  ;;  %v19094_v21 = vpack.c.bf16 %v8833_v9, %v8832_v7  ;;  %v13203_v28 = vadd.f32 %v13202_v46, %v13201_v37  ;;  %v13204_v33 = vpop.f32.mrb[42].mxu0  ;;  %v13895_v54 = vpop.f32.mrb[72].mxu1 }
 0x7af   : > { %20076 = vst [vmem:[#allocation49_spill] sm:$0xff] %v19087_v38  ;;  %v8790_v13 = vadd.f32 %v13895_v54, %v8629_v41  ;;  %v13205_v58 = vpop.f32.mrb[43].mxu0  ;;  %v8781_v8 = vpop.f32.mrb[73].mxu1 }
 0x7b0   : > { %20078 = vst [vmem:[#allocation46_spill] sm:$0xff] %v19092_v51  ;;  %v13206_v57 = vadd.f32 %v13205_v58, %v13204_v33  ;;  %v8782_v2 = vadd.f32 %v8781_v8, %v8621_v30  ;;  %v13896_v3 = vpop.f32.mrb[74].mxu1  ;;  %10320 = vmatmul.mubr.bf16.gmra.mrb[132].mxu0 %v19011_v31  ;;  %v8637_v29 = vadd.f32 %v13203_v28, %v18913_v6  ;;  %v20081_v30 = vld [vmem:[#allocation52_spill] sm:$0xff] }
 0x7b1   : > { %v8838_v19 = vmax.f32 %v8790_v13, 0.0  ;;  %v8793_v62 = vadd.f32 %v13896_v3, %v8632_v55  ;;  %v8784_v24 = vpop.f32.mrb[75].mxu1  ;;  %10327 = vmatprep.mubr.bf16.mxu0 %v19958_v4  ;;  %v20083_v55 = vld [vmem:[#allocation55_spill] sm:$0xff] }
 0x7b2   : > { %v8836_v7 = vmax.f32 %v8782_v2, 0.0  ;;  %v8785_v60 = vadd.f32 %v8784_v24, %v8624_v5  ;;  %v8640_v25 = vadd.f32 %v13206_v57, %v18920_v18  ;;  %v20085_v18 = vld [vmem:[#allocation56_spill] sm:$0xff] }
 0x7b3   : > { %v19101_v41 = vadd.f32 %v8838_v19, %v20079_v42  ;;  %v8839_v45 = vmax.f32 %v8793_v62, 0.0  ;;  %10513 = vmatmul.mubr.bf16.gmra.mrb[180].mxu1 %v19958_v4 }
 0x7b4   : > { %v19105_v9 = vadd.f32 %v8836_v7, %v20081_v30  ;;  %v8837_v31 = vmax.f32 %v8785_v60, 0.0  ;;  %v13207_v6 = vpop.f32.mrb[44].mxu0  ;;  %10520 = vmatprep.mubr.bf16.mxu1 %v19958_v4 }
 0x7b5   : > { %20080 = vst [vmem:[#allocation39_spill] sm:$0xff] %v19101_v41  ;;  %v19109_v37 = vadd.f32 %v8839_v45, %v20083_v55  ;;  %v19111_v14 = vpack.c.bf16 %v8839_v45, %v8838_v19  ;;  %v13208_v5 = vpop.f32.mrb[45].mxu0 }
 0x7b6   : > { %20082 = vst [vmem:[#allocation67_spill] sm:$0xff] %v19105_v9  ;;  %v19114_v46 = vadd.f32 %v8837_v31, %v20085_v18  ;;  %v19116_v16 = vpack.c.bf16 %v8837_v31, %v8836_v7  ;;  %v13209_v28 = vadd.f32 %v13208_v5, %v13207_v6  ;;  %v13210_v33 = vpop.f32.mrb[46].mxu0  ;;  %v13899_v54 = vpop.f32.mrb[76].mxu1  ;;  %v20088_v31 = vld [vmem:[#allocation22_spill] sm:$0xff]  ;;  %v20090_v5 = vld [vmem:[#allocation57_spill] sm:$0xff] }
 0x7b7   : > { %20084 = vst [vmem:[#allocation42_spill] sm:$0xff] %v19109_v37  ;;  %v13211_v13 = vpop.f32.mrb[47].mxu0  ;;  %v8797_v58 = vpop.f32.mrb[77].mxu1 }
 0x7b8   : > { %20086 = vst [vmem:[#allocation68_spill] sm:$0xff] %v19114_v46  ;;  %v8645_v8 = vadd.f32 %v13209_v28, %v18927_v59  ;;  %v13212_v57 = vadd.f32 %v13211_v13, %v13210_v33  ;;  %v8798_v2 = vadd.f32 %v8797_v58, %v8637_v29  ;;  %v13900_v3 = vpop.f32.mrb[78].mxu1  ;;  %10328 = vmatmul.mubr.bf16.gmra.mrb[136].mxu0 %v19043_v17  ;;  %v20092_v58 = vld [vmem:[#allocation29_spill] sm:$0xff] }
 0x7b9   : > { %v8800_v19 = vpop.f32.mrb[79].mxu1  ;;  %10335 = vmatprep.mubr.bf16.mxu0 %v19958_v4 }
 0x7ba   : > { %v8806_v62 = vadd.f32 %v13899_v54, %v8645_v8  ;;  %v8840_v24 = vmax.f32 %v8798_v2, 0.0  ;;  %v8648_v7 = vadd.f32 %v13212_v57, %v18934_v34  ;;  %v8801_v60 = vadd.f32 %v8800_v19, %v8640_v25  ;;  %v19135_v25 = vld [vmem:[#allocation8 + $0x4] ss:$0 sm:$0xff] }
 0x7bb   : > { %10521 = vmatmul.mubr.bf16.gmra.mrb[184].mxu1 %v19958_v4 }
 0x7bc   : > { %v8842_v42 = vmax.f32 %v8806_v62, 0.0  ;;  %v19124_v45 = vadd.f32 %v8840_v24, %v18381_v63  ;;  %v8809_v59 = vadd.f32 %v13900_v3, %v8648_v7  ;;  %v8841_v30 = vmax.f32 %v8801_v60, 0.0  ;;  %v13253_v29 = vpop.f32.mrb[48].mxu0  ;;  %10528 = vmatprep.mubr.bf16.mxu1 %v19958_v4 }
 0x7bd   : > { %v13254_v17 = vpop.f32.mrb[49].mxu0 }
 0x7be   : > { %20087 = vst [vmem:[#allocation51_spill] sm:$0xff] %v19124_v45  ;;  %v19128_v6 = vadd.f32 %v8842_v42, %v20088_v31  ;;  %v8843_v55 = vmax.f32 %v8809_v59, 0.0  ;;  %v19131_v18 = vadd.f32 %v8841_v30, %v20090_v5  ;;  %v19133_v34 = vpack.c.bf16 %v8841_v30, %v8840_v24  ;;  %v13256_v28 = vpop.f32.mrb[50].mxu0  ;;  %v13365_v63 = vpop.f32.mrb[80].mxu1 }
 0x7bf   : > { %v13255_v33 = vadd.f32 %v13254_v17, %v13253_v29  ;;  %v13257_v54 = vpop.f32.mrb[51].mxu0  ;;  %v13366_v13 = vpop.f32.mrb[81].mxu1 }
 0x7c0   : > { %20089 = vst [vmem:[#allocation70_spill] sm:$0xff] %v19128_v6  ;;  %20091 = vst [vmem:[#allocation69_spill] sm:$0xff] %v19131_v18  ;;  %v19138_v8 = vadd.f32 %v8843_v55, %v20092_v58  ;;  %v19140_v57 = vpack.c.bf16 %v8843_v55, %v8842_v42  ;;  %10336 = vmatmul.mubr.bf16.gmra.mrb[140].mxu0 %v19038_v40  ;;  %v13258_v2 = vadd.f32 %v13257_v54, %v13256_v28  ;;  %v13368_v19 = vpop.f32.mrb[82].mxu1 }
 0x7c1   : > { %v13367_v3 = vadd.f32 %v13366_v13, %v13365_v63  ;;  %10343 = vmatprep.mubr.bf16.mxu0 %v19958_v4  ;;  %v9960_v62 = vadd.f32 %v13255_v33, %v19135_v25  ;;  %v13369_v24 = vpop.f32.mrb[83].mxu1 }
 0x7c2   : > { %20093 = vst [vmem:[#allocation71_spill] sm:$0xff] %v19138_v8  ;;  %v9963_v7 = vadd.f32 %v13258_v2, %v19135_v25  ;;  %v13370_v60 = vadd.f32 %v13369_v24, %v13368_v19 }
 0x7c3   : > { %v19146_v59 = vadd.f32 %v13367_v3, %v9960_v62  ;;  %10529 = vmatmul.mubr.bf16.gmra.mrb[188].mxu1 %v19958_v4 }
 0x7c4   : > { %v19149_v30 = vadd.f32 %v13370_v60, %v9963_v7  ;;  %v13259_v42 = vpop.f32.mrb[52].mxu0  ;;  %10536 = vmatprep.mubr.bf16.mxu1 %v19958_v4 }
 0x7c5   : > { %v13260_v40 = vpop.f32.mrb[53].mxu0 }
 0x7c6   : > { %v13261_v29 = vadd.f32 %v13260_v40, %v13259_v42  ;;  %v13262_v17 = vpop.f32.mrb[54].mxu0  ;;  %v13371_v31 = vpop.f32.mrb[84].mxu1 }
 0x7c7   : > { %v13263_v55 = vpop.f32.mrb[55].mxu0  ;;  %v13372_v5 = vpop.f32.mrb[85].mxu1 }
 0x7c8   : > { %10344 = vmatmul.mubr.bf16.gmra.mrb[144].mxu0 %v19069_v53  ;;  %v9968_v28 = vadd.f32 %v13261_v29, %v19135_v25  ;;  %v13264_v63 = vadd.f32 %v13263_v55, %v13262_v17  ;;  %v13373_v33 = vadd.f32 %v13372_v5, %v13371_v31  ;;  %v13374_v54 = vpop.f32.mrb[86].mxu1 }
 0x7c9   : > { %10351 = vmatprep.mubr.bf16.mxu0 %v19958_v4  ;;  %v13375_v13 = vpop.f32.mrb[87].mxu1 }
 0x7ca   : > { %v9971_v58 = vadd.f32 %v13264_v63, %v19135_v25  ;;  %v19156_v2 = vadd.f32 %v13373_v33, %v9968_v28  ;;  %v13376_v3 = vadd.f32 %v13375_v13, %v13374_v54 }
 0x7cb   : > { %10537 = vmatmul.mubr.bf16.gmra.mrb[192].mxu1 %v19958_v4 }
 0x7cc   : > { %v19159_v19 = vadd.f32 %v13376_v3, %v9971_v58  ;;  %v13265_v62 = vpop.f32.mrb[56].mxu0  ;;  %10544 = vmatprep.mubr.bf16.mxu1 %v19958_v4 }
 0x7cd   : > { %v13266_v53 = vpop.f32.mrb[57].mxu0 }
 0x7ce   : > { %v13267_v24 = vadd.f32 %v13266_v53, %v13265_v62  ;;  %v13268_v7 = vpop.f32.mrb[58].mxu0  ;;  %v13377_v60 = vpop.f32.mrb[88].mxu1 }
 0x7cf   : > { %v13269_v42 = vpop.f32.mrb[59].mxu0  ;;  %v13378_v40 = vpop.f32.mrb[89].mxu1 }
 0x7d0   : > { %10352 = vmatmul.mubr.bf16.gmra.mrb[148].mxu0 %v19064_v12  ;;  %v9976_v29 = vadd.f32 %v13267_v24, %v19135_v25  ;;  %v13270_v17 = vadd.f32 %v13269_v42, %v13268_v7  ;;  %v13379_v31 = vadd.f32 %v13378_v40, %v13377_v60  ;;  %v13380_v55 = vpop.f32.mrb[90].mxu1 }
 0x7d1   : > { %10359 = vmatprep.mubr.bf16.mxu0 %v19958_v4  ;;  %v13381_v5 = vpop.f32.mrb[91].mxu1 }
 0x7d2   : > { %v9979_v28 = vadd.f32 %v13270_v17, %v19135_v25  ;;  %v19166_v63 = vadd.f32 %v13379_v31, %v9976_v29  ;;  %v13382_v33 = vadd.f32 %v13381_v5, %v13380_v55 }
 0x7d3   : > { %10545 = vmatmul.mubr.bf16.gmra.mrb[196].mxu1 %v19958_v4 }
 0x7d4   : > { %v19169_v54 = vadd.f32 %v13382_v33, %v9979_v28  ;;  %v13271_v13 = vpop.f32.mrb[60].mxu0  ;;  %10552 = vmatprep.mubr.bf16.mxu1 %v19958_v4 }
 0x7d5   : > { %v13272_v12 = vpop.f32.mrb[61].mxu0 }
 0x7d6   : > { %v13273_v58 = vadd.f32 %v13272_v12, %v13271_v13  ;;  %v13274_v3 = vpop.f32.mrb[62].mxu0  ;;  %v13383_v62 = vpop.f32.mrb[92].mxu1 }
 0x7d7   : > { %v13275_v53 = vpop.f32.mrb[63].mxu0  ;;  %v13384_v24 = vpop.f32.mrb[93].mxu1 }
 0x7d8   : > { %10360 = vmatmul.mubr.bf16.gmra.mrb[152].mxu0 %v19094_v21  ;;  %v9984_v7 = vadd.f32 %v13273_v58, %v19135_v25  ;;  %v13276_v60 = vadd.f32 %v13275_v53, %v13274_v3  ;;  %v13385_v42 = vadd.f32 %v13384_v24, %v13383_v62  ;;  %v13386_v40 = vpop.f32.mrb[94].mxu1 }
 0x7d9   : > { %10367 = vmatprep.mubr.bf16.mxu0 %v19958_v4  ;;  %v13387_v29 = vpop.f32.mrb[95].mxu1 }
 0x7da   : > { %v9987_v17 = vadd.f32 %v13276_v60, %v19135_v25  ;;  %v19176_v31 = vadd.f32 %v13385_v42, %v9984_v7  ;;  %v13388_v55 = vadd.f32 %v13387_v29, %v13386_v40 }
 0x7db   : > { %10553 = vmatmul.mubr.bf16.gmra.mrb[200].mxu1 %v19958_v4 }
 0x7dc   : > { %v19179_v5 = vadd.f32 %v13388_v55, %v9987_v17  ;;  %v13277_v28 = vpop.f32.mrb[64].mxu0  ;;  %10560 = vmatprep.mubr.bf16.mxu1 %v19958_v4 }
 0x7dd   : > { %v13278_v21 = vpop.f32.mrb[65].mxu0 }
 0x7de   : > { %v13279_v33 = vadd.f32 %v13278_v21, %v13277_v28  ;;  %v13280_v13 = vpop.f32.mrb[66].mxu0  ;;  %v13389_v12 = vpop.f32.mrb[96].mxu1 }
 0x7df   : > { %v13281_v58 = vpop.f32.mrb[67].mxu0  ;;  %v13390_v3 = vpop.f32.mrb[97].mxu1 }
 0x7e0   : > { %10368 = vmatmul.mubr.bf16.gmra.mrb[156].mxu0 %v19089_v43  ;;  %v9992_v62 = vadd.f32 %v13279_v33, %v19135_v25  ;;  %v13282_v53 = vadd.f32 %v13281_v58, %v13280_v13  ;;  %v13391_v24 = vadd.f32 %v13390_v3, %v13389_v12  ;;  %v13392_v7 = vpop.f32.mrb[98].mxu1 }
 0x7e1   : > { %10375 = vmatprep.mubr.bf16.mxu0 %v19958_v4  ;;  %v13393_v60 = vpop.f32.mrb[99].mxu1 }
 0x7e2   : > { %v9995_v42 = vadd.f32 %v13282_v53, %v19135_v25  ;;  %v19186_v40 = vadd.f32 %v13391_v24, %v9992_v62  ;;  %v13394_v29 = vadd.f32 %v13393_v60, %v13392_v7 }
 0x7e3   : > { %10561 = vmatmul.mubr.bf16.gmra.mrb[204].mxu1 %v19958_v4 }
 0x7e4   : > { %v19189_v17 = vadd.f32 %v13394_v29, %v9995_v42  ;;  %v13283_v55 = vpop.f32.mrb[68].mxu0 }
 0x7e5   : > { %v13284_v28 = vpop.f32.mrb[69].mxu0 }
 0x7e6   : > { %v13285_v43 = vadd.f32 %v13284_v28, %v13283_v55  ;;  %v13286_v21 = vpop.f32.mrb[70].mxu0  ;;  %v13395_v33 = vpop.f32.mrb[100].mxu1 }
 0x7e7   : > { %v13287_v13 = vpop.f32.mrb[71].mxu0  ;;  %v13396_v12 = vpop.f32.mrb[101].mxu1 }
 0x7e8   : > { %10376 = vmatmul.mubr.bf16.gmra.mrb[160].mxu0 %v19116_v16  ;;  %v10000_v58 = vadd.f32 %v13285_v43, %v19135_v25  ;;  %v13288_v3 = vadd.f32 %v13287_v13, %v13286_v21  ;;  %v13397_v53 = vadd.f32 %v13396_v12, %v13395_v33  ;;  %v13398_v62 = vpop.f32.mrb[102].mxu1 }
 0x7e9   : > { %10383 = vmatprep.mubr.bf16.mxu0 %v19958_v4  ;;  %v13399_v24 = vpop.f32.mrb[103].mxu1 }
 0x7ea   : > { %v10003_v7 = vadd.f32 %v13288_v3, %v19135_v25  ;;  %v19195_v60 = vadd.f32 %v13397_v53, %v10000_v58  ;;  %v13400_v42 = vadd.f32 %v13399_v24, %v13398_v62 }
 0x7ec   : > { %v19197_v29 = vadd.f32 %v13400_v42, %v10003_v7  ;;  %v13289_v55 = vpop.f32.mrb[72].mxu0 }
 0x7ed   : > { %v13290_v28 = vpop.f32.mrb[73].mxu0 }
 0x7ee   : > { %v13291_v18 = vadd.f32 %v13290_v28, %v13289_v55  ;;  %v13292_v8 = vpop.f32.mrb[74].mxu0  ;;  %v13401_v16 = vpop.f32.mrb[104].mxu1 }
 0x7ef   : > { %v13293_v45 = vpop.f32.mrb[75].mxu0  ;;  %v13402_v43 = vpop.f32.mrb[105].mxu1 }
 0x7f0   : > { %10384 = vmatmul.mubr.bf16.gmra.mrb[164].mxu0 %v19111_v14  ;;  %v10008_v21 = vadd.f32 %v13291_v18, %v19135_v25  ;;  %v13294_v33 = vadd.f32 %v13293_v45, %v13292_v8  ;;  %v13403_v13 = vadd.f32 %v13402_v43, %v13401_v16  ;;  %v13404_v12 = vpop.f32.mrb[106].mxu1 }
 0x7f1   : > { %10391 = vmatprep.mubr.bf16.mxu0 %v19958_v4  ;;  %v13405_v58 = vpop.f32.mrb[107].mxu1 }
 0x7f2   : > { %v10011_v3 = vadd.f32 %v13294_v33, %v19135_v25  ;;  %v19203_v53 = vadd.f32 %v13403_v13, %v10008_v21  ;;  %v13406_v62 = vadd.f32 %v13405_v58, %v13404_v12 }
 0x7f4   : > { %v19205_v24 = vadd.f32 %v13406_v62, %v10011_v3  ;;  %v13295_v7 = vpop.f32.mrb[76].mxu0 }
 0x7f5   : > { %v13296_v42 = vpop.f32.mrb[77].mxu0 }
 0x7f6   : > { %v13297_v55 = vadd.f32 %v13296_v42, %v13295_v7  ;;  %v13298_v28 = vpop.f32.mrb[78].mxu0  ;;  %v13407_v14 = vpop.f32.mrb[108].mxu1 }
 0x7f7   : > { %v13299_v6 = vpop.f32.mrb[79].mxu0  ;;  %v13408_v18 = vpop.f32.mrb[109].mxu1 }
 0x7f8   : > { %10392 = vmatmul.mubr.bf16.gmra.mrb[168].mxu0 %v19133_v34  ;;  %v10016_v45 = vadd.f32 %v13297_v55, %v19135_v25  ;;  %v13300_v8 = vadd.f32 %v13299_v6, %v13298_v28  ;;  %v13409_v16 = vadd.f32 %v13408_v18, %v13407_v14  ;;  %v13410_v43 = vpop.f32.mrb[110].mxu1 }
 0x7f9   : > { %10399 = vmatprep.mubr.bf16.mxu0 %v19958_v4  ;;  %v13411_v21 = vpop.f32.mrb[111].mxu1 }
 0x7fa   : > { %v10019_v33 = vadd.f32 %v13300_v8, %v19135_v25  ;;  %v19211_v13 = vadd.f32 %v13409_v16, %v10016_v45  ;;  %v13412_v12 = vadd.f32 %v13411_v21, %v13410_v43 }
 0x7fc   : > { %v19213_v58 = vadd.f32 %v13412_v12, %v10019_v33  ;;  %v13301_v3 = vpop.f32.mrb[80].mxu0 }
 0x7fd   : > { %v13302_v62 = vpop.f32.mrb[81].mxu0 }
 0x7fe   : > { %v13303_v7 = vadd.f32 %v13302_v62, %v13301_v3  ;;  %v13304_v42 = vpop.f32.mrb[82].mxu0  ;;  %v13413_v34 = vpop.f32.mrb[112].mxu1 }
 0x7ff   : > { %v13305_v46 = vpop.f32.mrb[83].mxu0  ;;  %v13414_v55 = vpop.f32.mrb[113].mxu1 }
 0x800   : > { %10400 = vmatmul.mubr.bf16.gmra.mrb[172].mxu0 %v19140_v57  ;;  %v10024_v6 = vadd.f32 %v13303_v7, %v19135_v25  ;;  %v13306_v28 = vadd.f32 %v13305_v46, %v13304_v42  ;;  %v13415_v14 = vadd.f32 %v13414_v55, %v13413_v34  ;;  %v13416_v18 = vpop.f32.mrb[114].mxu1 }
 0x801   : > { %13917 = vmatprep.mubr.bf16.mxu0 %v19958_v4  ;;  %v13417_v45 = vpop.f32.mrb[115].mxu1 }
 0x802   : > { %v10027_v8 = vadd.f32 %v13306_v28, %v19135_v25  ;;  %v19219_v16 = vadd.f32 %v13415_v14, %v10024_v6  ;;  %v13418_v43 = vadd.f32 %v13417_v45, %v13416_v18 }
 0x804   : > { %v19221_v21 = vadd.f32 %v13418_v43, %v10027_v8  ;;  %v13307_v33 = vpop.f32.mrb[84].mxu0 }
 0x805   : > { %v13308_v12 = vpop.f32.mrb[85].mxu0 }
 0x806   : > { %v13309_v3 = vadd.f32 %v13308_v12, %v13307_v33  ;;  %v13310_v62 = vpop.f32.mrb[86].mxu0  ;;  %v13419_v57 = vpop.f32.mrb[116].mxu1 }
 0x807   : > { %v13311_v37 = vpop.f32.mrb[87].mxu0  ;;  %v13420_v7 = vpop.f32.mrb[117].mxu1 }
 0x808   : > { %13918 = vmatmul.mubr.bf16.vlgmr.msra.gmra.mrb[176].mxu0 %v19958_v4  ;;  %v10032_v46 = vadd.f32 %v13309_v3, %v19135_v25  ;;  %v13312_v42 = vadd.f32 %v13311_v37, %v13310_v62  ;;  %v13421_v34 = vadd.f32 %v13420_v7, %v13419_v57  ;;  %v13422_v55 = vpop.f32.mrb[118].mxu1 }
 0x809   : > { %13921 = vmatprep.mubr.bf16.mxu0 %v19958_v4  ;;  %v13423_v6 = vpop.f32.mrb[119].mxu1 }
 0x80a   : > { %v10035_v28 = vadd.f32 %v13312_v42, %v19135_v25  ;;  %v19227_v14 = vadd.f32 %v13421_v34, %v10032_v46  ;;  %v13424_v18 = vadd.f32 %v13423_v6, %v13422_v55 }
 0x80c   : > { %v19229_v45 = vadd.f32 %v13424_v18, %v10035_v28  ;;  %v13313_v8 = vpop.f32.mrb[88].mxu0 }
 0x80d   : > { %v13314_v43 = vpop.f32.mrb[89].mxu0 }
 0x80e   : > { %v13315_v33 = vadd.f32 %v13314_v43, %v13313_v8  ;;  %v13316_v12 = vpop.f32.mrb[90].mxu0  ;;  %v13425_v9 = vpop.f32.mrb[120].mxu1 }
 0x80f   : > { %v13317_v41 = vpop.f32.mrb[91].mxu0  ;;  %v13426_v3 = vpop.f32.mrb[121].mxu1 }
 0x810   : > { %13922 = vmatmul.mubr.bf16.gmra.mrb[180].mxu0 %v19958_v4  ;;  %v10040_v37 = vadd.f32 %v13315_v33, %v19135_v25  ;;  %v13318_v62 = vadd.f32 %v13317_v41, %v13316_v12  ;;  %v13427_v57 = vadd.f32 %v13426_v3, %v13425_v9  ;;  %v13428_v7 = vpop.f32.mrb[122].mxu1 }
 0x811   : > { %13925 = vmatprep.mubr.bf16.mxu0 %v19958_v4  ;;  %v13429_v46 = vpop.f32.mrb[123].mxu1 }
 0x812   : > { %v10043_v42 = vadd.f32 %v13318_v62, %v19135_v25  ;;  %v19235_v34 = vadd.f32 %v13427_v57, %v10040_v37  ;;  %v13430_v55 = vadd.f32 %v13429_v46, %v13428_v7 }
 0x814   : > { %v19237_v6 = vadd.f32 %v13430_v55, %v10043_v42  ;;  %v13319_v28 = vpop.f32.mrb[92].mxu0 }
 0x815   : > { %v13320_v18 = vpop.f32.mrb[93].mxu0 }
 0x816   : > { %v13321_v8 = vadd.f32 %v13320_v18, %v13319_v28  ;;  %v13322_v43 = vpop.f32.mrb[94].mxu0  ;;  %v13431_v51 = vpop.f32.mrb[124].mxu1 }
 0x817   : > { %v13323_v38 = vpop.f32.mrb[95].mxu0  ;;  %v13432_v33 = vpop.f32.mrb[125].mxu1 }
 0x818   : > { %13926 = vmatmul.mubr.bf16.gmra.mrb[184].mxu0 %v19958_v4  ;;  %v10048_v41 = vadd.f32 %v13321_v8, %v19135_v25  ;;  %v13324_v9 = vadd.f32 %v13323_v38, %v13322_v43  ;;  %v13433_v12 = vadd.f32 %v13432_v33, %v13431_v51  ;;  %v13434_v3 = vpop.f32.mrb[126].mxu1 }
 0x819   : > { %13929 = vmatprep.mubr.bf16.mxu0 %v19958_v4  ;;  %v13435_v37 = vpop.f32.mrb[127].mxu1 }
 0x81a   : > { %v10051_v62 = vadd.f32 %v13324_v9, %v19135_v25  ;;  %v19243_v57 = vadd.f32 %v13433_v12, %v10048_v41  ;;  %v13436_v7 = vadd.f32 %v13435_v37, %v13434_v3 }
 0x81c   : > { %v19245_v46 = vadd.f32 %v13436_v7, %v10051_v62  ;;  %v13325_v42 = vpop.f32.mrb[96].mxu0 }
 0x81d   : > { %v13326_v55 = vpop.f32.mrb[97].mxu0 }
 0x81e   : > { %v13327_v28 = vadd.f32 %v13326_v55, %v13325_v42  ;;  %v13328_v18 = vpop.f32.mrb[98].mxu0  ;;  %v13437_v47 = vpop.f32.mrb[128].mxu1 }
 0x81f   : > { %v13329_v1 = vpop.f32.mrb[99].mxu0  ;;  %v13438_v8 = vpop.f32.mrb[129].mxu1 }
 0x820   : > { %13930 = vmatmul.mubr.bf16.gmra.mrb[188].mxu0 %v19958_v4  ;;  %v10056_v38 = vadd.f32 %v13327_v28, %v19135_v25  ;;  %v13330_v51 = vadd.f32 %v13329_v1, %v13328_v18  ;;  %v13439_v43 = vadd.f32 %v13438_v8, %v13437_v47  ;;  %v13440_v33 = vpop.f32.mrb[130].mxu1 }
 0x821   : > { %13933 = vmatprep.mubr.bf16.mxu0 %v19958_v4  ;;  %v13441_v41 = vpop.f32.mrb[131].mxu1 }
 0x822   : > { %v10059_v9 = vadd.f32 %v13330_v51, %v19135_v25  ;;  %v19251_v12 = vadd.f32 %v13439_v43, %v10056_v38  ;;  %v13442_v3 = vadd.f32 %v13441_v41, %v13440_v33 }
 0x824   : > { %v19253_v37 = vadd.f32 %v13442_v3, %v10059_v9  ;;  %v13331_v62 = vpop.f32.mrb[100].mxu0 }
 0x825   : > { %v13332_v7 = vpop.f32.mrb[101].mxu0 }
 0x826   : > { %v13333_v42 = vadd.f32 %v13332_v7, %v13331_v62  ;;  %v13334_v55 = vpop.f32.mrb[102].mxu0  ;;  %v13443_v48 = vpop.f32.mrb[132].mxu1 }
 0x827   : > { %v13335_v27 = vpop.f32.mrb[103].mxu0  ;;  %v13444_v28 = vpop.f32.mrb[133].mxu1 }
 0x828   : > { %13934 = vmatmul.mubr.bf16.gmra.mrb[192].mxu0 %v19958_v4  ;;  %v10064_v1 = vadd.f32 %v13333_v42, %v19135_v25  ;;  %v13336_v47 = vadd.f32 %v13335_v27, %v13334_v55  ;;  %v13445_v18 = vadd.f32 %v13444_v28, %v13443_v48  ;;  %v13446_v8 = vpop.f32.mrb[134].mxu1 }
 0x829   : > { %13937 = vmatprep.mubr.bf16.mxu0 %v19958_v4  ;;  %v13447_v38 = vpop.f32.mrb[135].mxu1 }
 0x82a   : > { %v10067_v51 = vadd.f32 %v13336_v47, %v19135_v25  ;;  %v19259_v43 = vadd.f32 %v13445_v18, %v10064_v1  ;;  %v13448_v33 = vadd.f32 %v13447_v38, %v13446_v8 }
 0x82c   : > { %v19261_v41 = vadd.f32 %v13448_v33, %v10067_v51  ;;  %v13337_v9 = vpop.f32.mrb[104].mxu0 }
 0x82d   : > { %v13338_v3 = vpop.f32.mrb[105].mxu0 }
 0x82e   : > { %v13339_v62 = vadd.f32 %v13338_v3, %v13337_v9  ;;  %v13340_v7 = vpop.f32.mrb[106].mxu0  ;;  %v13449_v56 = vpop.f32.mrb[136].mxu1 }
 0x82f   : > { %v13341_v52 = vpop.f32.mrb[107].mxu0  ;;  %v13450_v42 = vpop.f32.mrb[137].mxu1 }
 0x830   : > { %13938 = vmatmul.mubr.bf16.gmra.mrb[196].mxu0 %v19958_v4  ;;  %v10072_v27 = vadd.f32 %v13339_v62, %v19135_v25  ;;  %v13342_v48 = vadd.f32 %v13341_v52, %v13340_v7  ;;  %v13451_v55 = vadd.f32 %v13450_v42, %v13449_v56  ;;  %v13452_v28 = vpop.f32.mrb[138].mxu1 }
 0x831   : > { %13941 = vmatprep.mubr.bf16.mxu0 %v19958_v4  ;;  %v13453_v1 = vpop.f32.mrb[139].mxu1 }
 0x832   : > { %v10075_v47 = vadd.f32 %v13342_v48, %v19135_v25  ;;  %v19267_v18 = vadd.f32 %v13451_v55, %v10072_v27  ;;  %v13454_v8 = vadd.f32 %v13453_v1, %v13452_v28 }
 0x834   : > { %v19269_v38 = vadd.f32 %v13454_v8, %v10075_v47  ;;  %v13343_v51 = vpop.f32.mrb[108].mxu0 }
 0x835   : > { %v13344_v33 = vpop.f32.mrb[109].mxu0 }
 0x836   : > { %v13345_v9 = vadd.f32 %v13344_v33, %v13343_v51  ;;  %v13346_v3 = vpop.f32.mrb[110].mxu0  ;;  %v13455_v35 = vpop.f32.mrb[140].mxu1 }
 0x837   : > { %v13347_v39 = vpop.f32.mrb[111].mxu0  ;;  %v13456_v62 = vpop.f32.mrb[141].mxu1 }
 0x838   : > { %13942 = vmatmul.mubr.bf16.gmra.mrb[200].mxu0 %v19958_v4  ;;  %v10080_v52 = vadd.f32 %v13345_v9, %v19135_v25  ;;  %v13348_v56 = vadd.f32 %v13347_v39, %v13346_v3  ;;  %v13457_v7 = vadd.f32 %v13456_v62, %v13455_v35  ;;  %v13458_v42 = vpop.f32.mrb[142].mxu1 }
 0x839   : > { %13945 = vmatprep.mubr.bf16.mxu0 %v19958_v4  ;;  %v13459_v27 = vpop.f32.mrb[143].mxu1 }
 0x83a   : > { %v10083_v48 = vadd.f32 %v13348_v56, %v19135_v25  ;;  %v19275_v55 = vadd.f32 %v13457_v7, %v10080_v52  ;;  %v13460_v28 = vadd.f32 %v13459_v27, %v13458_v42 }
 0x83c   : > { %v19277_v1 = vadd.f32 %v13460_v28, %v10083_v48 }
 0x83e   : > { %v13589_v47 = vpop.f32.mrb[144].mxu1 }
 0x83f   : > { %v13590_v8 = vpop.f32.mrb[145].mxu1 }
 0x840   : > { %13946 = vmatmul.mubr.bf16.gmra.mrb[204].mxu0 %v19958_v4  ;;  %v13591_v51 = vadd.f32 %v13590_v8, %v13589_v47  ;;  %v13592_v33 = vpop.f32.mrb[146].mxu1 }
 0x841   : > { %v13593_v9 = vpop.f32.mrb[147].mxu1 }
 0x842   : > { %v13594_v39 = vadd.f32 %v13593_v9, %v13592_v33 }
 0x846   : > { %v13595_v35 = vpop.f32.mrb[148].mxu1 }
 0x847   : > { %v13596_v3 = vpop.f32.mrb[149].mxu1 }
 0x848   : > { %v13597_v62 = vadd.f32 %v13596_v3, %v13595_v35  ;;  %v13598_v15 = vpop.f32.mrb[150].mxu1 }
 0x849   : > { %v13599_v26 = vpop.f32.mrb[151].mxu1 }
 0x84a   : > { %v13600_v49 = vadd.f32 %v13599_v26, %v13598_v15 }
 0x84e   : > { %v13601_v25 = vpop.f32.mrb[152].mxu1 }
 0x84f   : > { %v13602_v52 = vpop.f32.mrb[153].mxu1 }
 0x850   : > { %v13603_v56 = vadd.f32 %v13602_v52, %v13601_v25  ;;  %v13604_v7 = vpop.f32.mrb[154].mxu1 }
 0x851   : > { %v13605_v42 = vpop.f32.mrb[155].mxu1 }
 0x852   : > { %v13606_v27 = vadd.f32 %v13605_v42, %v13604_v7 }
 0x856   : > { %v13607_v48 = vpop.f32.mrb[156].mxu1 }
 0x857   : > { %v13608_v28 = vpop.f32.mrb[157].mxu1 }
 0x858   : > { %v19280_v44 = vadd.f32 %v13608_v28, %v13607_v48  ;;  %v13610_v4 = vpop.f32.mrb[158].mxu1 }
 0x859   : > { %v13611_v47 = vpop.f32.mrb[159].mxu1 }
 0x85a   : > { %v19282_v8 = vadd.f32 %v13611_v47, %v13610_v4 }
 0x85b   : > { %v13477_v33 = vpop.f32.mrb[112].mxu0 }
 0x85c   : > { %v13478_v9 = vpop.f32.mrb[113].mxu0 }
 0x85d   : > { %v13479_v35 = vadd.f32 %v13478_v9, %v13477_v33  ;;  %v13480_v3 = vpop.f32.mrb[114].mxu0 }
 0x85e   : > { %v13481_v11 = vpop.f32.mrb[115].mxu0  ;;  %v13613_v26 = vpop.f32.mrb[160].mxu1 }
 0x85f   : > { %v10282_v15 = vadd.f32 %v13479_v35, %v19146_v59  ;;  %v13482_v25 = vadd.f32 %v13481_v11, %v13480_v3  ;;  %v13614_v52 = vpop.f32.mrb[161].mxu1 }
 0x860   : > { %v19285_v36 = vadd.f32 %v13614_v52, %v13613_v26  ;;  %v13616_v7 = vpop.f32.mrb[162].mxu1 }
 0x861   : > { %v10285_v42 = vadd.f32 %v13482_v25, %v19149_v30  ;;  %v13617_v48 = vpop.f32.mrb[163].mxu1  ;;  %v19288_v28 = vadd.f32 %v13591_v51, %v10282_v15 }
 0x862   : > { %v19290_v4 = vadd.f32 %v13617_v48, %v13616_v7 }
 0x863   : > { %v13483_v47 = vpop.f32.mrb[116].mxu0  ;;  %v19292_v32 = vadd.f32 %v13594_v39, %v10285_v42 }
 0x864   : > { %v13484_v33 = vpop.f32.mrb[117].mxu0 }
 0x865   : > { %v13485_v9 = vadd.f32 %v13484_v33, %v13483_v47  ;;  %v13486_v0 = vpop.f32.mrb[118].mxu0 }
 0x866   : > { %v13487_v50 = vpop.f32.mrb[119].mxu0  ;;  %v13619_v59 = vpop.f32.mrb[164].mxu1 }
 0x867   : > { %v10290_v11 = vadd.f32 %v13485_v9, %v19156_v2  ;;  %v13488_v35 = vadd.f32 %v13487_v50, %v13486_v0  ;;  %v13620_v3 = vpop.f32.mrb[165].mxu1 }
 0x868   : > { %v19295_v26 = vadd.f32 %v13620_v3, %v13619_v59  ;;  %v13622_v30 = vpop.f32.mrb[166].mxu1 }
 0x869   : > { %v10293_v51 = vadd.f32 %v13488_v35, %v19159_v19  ;;  %v13623_v15 = vpop.f32.mrb[167].mxu1  ;;  %v19298_v25 = vadd.f32 %v13597_v62, %v10290_v11 }
 0x86a   : > { %v19300_v52 = vadd.f32 %v13623_v15, %v13622_v30 }
 0x86b   : > { %v13489_v39 = vpop.f32.mrb[120].mxu0  ;;  %v19302_v7 = vadd.f32 %v13600_v49, %v10293_v51 }
 0x86c   : > { %v13490_v42 = vpop.f32.mrb[121].mxu0 }
 0x86d   : > { %v13491_v48 = vadd.f32 %v13490_v42, %v13489_v39  ;;  %v13492_v47 = vpop.f32.mrb[122].mxu0 }
 0x86e   : > { %v13493_v33 = vpop.f32.mrb[123].mxu0  ;;  %v13625_v2 = vpop.f32.mrb[168].mxu1 }
 0x86f   : > { %v10298_v50 = vadd.f32 %v13491_v48, %v19166_v63  ;;  %v13494_v0 = vadd.f32 %v13493_v33, %v13492_v47  ;;  %v13626_v9 = vpop.f32.mrb[169].mxu1 }
 0x870   : > { %v19305_v59 = vadd.f32 %v13626_v9, %v13625_v2  ;;  %v13628_v19 = vpop.f32.mrb[170].mxu1 }
 0x871   : > { %v10301_v62 = vadd.f32 %v13494_v0, %v19169_v54  ;;  %v13629_v11 = vpop.f32.mrb[171].mxu1  ;;  %v19308_v35 = vadd.f32 %v13603_v56, %v10298_v50 }
 0x872   : > { %v19310_v3 = vadd.f32 %v13629_v11, %v13628_v19 }
 0x873   : > { %v13495_v49 = vpop.f32.mrb[124].mxu0  ;;  %v19312_v30 = vadd.f32 %v13606_v27, %v10301_v62 }
 0x874   : > { %v13496_v51 = vpop.f32.mrb[125].mxu0 }
 0x875   : > { %v13497_v15 = vadd.f32 %v13496_v51, %v13495_v49  ;;  %v13498_v39 = vpop.f32.mrb[126].mxu0 }
 0x876   : > { %v13499_v42 = vpop.f32.mrb[127].mxu0  ;;  %v13631_v63 = vpop.f32.mrb[172].mxu1 }
 0x877   : > { %v10306_v48 = vadd.f32 %v13497_v15, %v19176_v31  ;;  %v13500_v47 = vadd.f32 %v13499_v42, %v13498_v39  ;;  %v13632_v33 = vpop.f32.mrb[173].mxu1 }
 0x878   : > { %v19315_v2 = vadd.f32 %v13632_v33, %v13631_v63  ;;  %v13634_v54 = vpop.f32.mrb[174].mxu1 }
 0x879   : > { %v10309_v56 = vadd.f32 %v13500_v47, %v19179_v5  ;;  %v13635_v50 = vpop.f32.mrb[175].mxu1  ;;  %v19319_v0 = vadd.f32 %v19280_v44, %v10306_v48 }
 0x87a   : > { %v19321_v27 = vadd.f32 %v13635_v50, %v13634_v54 }
 0x87b   : > { %v13501_v9 = vpop.f32.mrb[128].mxu0  ;;  %v19324_v19 = vadd.f32 %v19282_v8, %v10309_v56 }
 0x87c   : > { %v13502_v62 = vpop.f32.mrb[129].mxu0 }
 0x87d   : > { %v13503_v11 = vadd.f32 %v13502_v62, %v13501_v9  ;;  %v13504_v31 = vpop.f32.mrb[130].mxu0 }
 0x87e   : > { %v13505_v49 = vpop.f32.mrb[131].mxu0  ;;  %v13637_v51 = vpop.f32.mrb[176].mxu1 }
 0x87f   : > { %v10314_v15 = vadd.f32 %v13503_v11, %v19186_v40  ;;  %v13506_v39 = vadd.f32 %v13505_v49, %v13504_v31  ;;  %v13638_v42 = vpop.f32.mrb[177].mxu1 }
 0x880   : > { %v19327_v5 = vadd.f32 %v13638_v42, %v13637_v51  ;;  %v13640_v63 = vpop.f32.mrb[178].mxu1 }
 0x881   : > { %v10317_v44 = vadd.f32 %v13506_v39, %v19189_v17  ;;  %v13641_v48 = vpop.f32.mrb[179].mxu1  ;;  %v19331_v47 = vadd.f32 %v19285_v36, %v10314_v15 }
 0x882   : > { %v19333_v8 = vadd.f32 %v13641_v48, %v13640_v63 }
 0x883   : > { %v13507_v33 = vpop.f32.mrb[132].mxu0  ;;  %v19336_v54 = vadd.f32 %v19290_v4, %v10317_v44 }
 0x884   : > { %v13508_v56 = vpop.f32.mrb[133].mxu0 }
 0x885   : > { %v13509_v50 = vadd.f32 %v13508_v56, %v13507_v33  ;;  %v13510_v40 = vpop.f32.mrb[134].mxu0 }
 0x886   : > { %v13511_v9 = vpop.f32.mrb[135].mxu0  ;;  %v13643_v62 = vpop.f32.mrb[180].mxu1 }
 0x887   : > { %v10322_v11 = vadd.f32 %v13509_v50, %v19195_v60  ;;  %v13512_v31 = vadd.f32 %v13511_v9, %v13510_v40  ;;  %v13644_v49 = vpop.f32.mrb[181].mxu1 }
 0x888   : > { %v19339_v17 = vadd.f32 %v13644_v49, %v13643_v62  ;;  %v13646_v51 = vpop.f32.mrb[182].mxu1 }
 0x889   : > { %v10325_v36 = vadd.f32 %v13512_v31, %v19197_v29  ;;  %v13647_v15 = vpop.f32.mrb[183].mxu1  ;;  %v19343_v39 = vadd.f32 %v19295_v26, %v10322_v11 }
 0x88a   : > { %v19345_v4 = vadd.f32 %v13647_v15, %v13646_v51 }
 0x88b   : > { %v13513_v42 = vpop.f32.mrb[136].mxu0  ;;  %v19348_v63 = vadd.f32 %v19300_v52, %v10325_v36 }
 0x88c   : > { %v13514_v44 = vpop.f32.mrb[137].mxu0 }
 0x88d   : > { %v13515_v48 = vadd.f32 %v13514_v44, %v13513_v42  ;;  %v13516_v60 = vpop.f32.mrb[138].mxu0 }
 0x88e   : > { %v13517_v33 = vpop.f32.mrb[139].mxu0  ;;  %v13649_v56 = vpop.f32.mrb[184].mxu1 }
 0x88f   : > { %v10330_v50 = vadd.f32 %v13515_v48, %v19203_v53  ;;  %v13518_v40 = vadd.f32 %v13517_v33, %v13516_v60  ;;  %v13650_v9 = vpop.f32.mrb[185].mxu1 }
 0x890   : > { %v19351_v29 = vadd.f32 %v13650_v9, %v13649_v56  ;;  %v13652_v62 = vpop.f32.mrb[186].mxu1 }
 0x891   : > { %v10333_v26 = vadd.f32 %v13518_v40, %v19205_v24  ;;  %v13653_v11 = vpop.f32.mrb[187].mxu1  ;;  %v19355_v31 = vadd.f32 %v19305_v59, %v10330_v50 }
 0x892   : > { %v19357_v52 = vadd.f32 %v13653_v11, %v13652_v62 }
 0x893   : > { %v13519_v49 = vpop.f32.mrb[140].mxu0  ;;  %v19360_v51 = vadd.f32 %v19310_v3, %v10333_v26 }
 0x894   : > { %v13520_v36 = vpop.f32.mrb[141].mxu0 }
 0x895   : > { %v13521_v15 = vadd.f32 %v13520_v36, %v13519_v49  ;;  %v13522_v53 = vpop.f32.mrb[142].mxu0 }
 0x896   : > { %v13523_v42 = vpop.f32.mrb[143].mxu0  ;;  %v13655_v44 = vpop.f32.mrb[188].mxu1 }
 0x897   : > { %v10338_v48 = vadd.f32 %v13521_v15, %v19211_v13  ;;  %v13524_v60 = vadd.f32 %v13523_v42, %v13522_v53  ;;  %v13656_v33 = vpop.f32.mrb[189].mxu1 }
 0x898   : > { %v19363_v24 = vadd.f32 %v13656_v33, %v13655_v44  ;;  %v13658_v56 = vpop.f32.mrb[190].mxu1 }
 0x899   : > { %v10341_v59 = vadd.f32 %v13524_v60, %v19213_v58  ;;  %v13659_v50 = vpop.f32.mrb[191].mxu1  ;;  %v19367_v40 = vadd.f32 %v19315_v2, %v10338_v48 }
 0x89a   : > { %v19369_v3 = vadd.f32 %v13659_v50, %v13658_v56 }
 0x89b   : > { %v13525_v9 = vpop.f32.mrb[144].mxu0  ;;  %v19372_v62 = vadd.f32 %v19321_v27, %v10341_v59 }
 0x89c   : > { %v13526_v26 = vpop.f32.mrb[145].mxu0 }
 0x89d   : > { %v13527_v11 = vadd.f32 %v13526_v26, %v13525_v9  ;;  %v13528_v13 = vpop.f32.mrb[146].mxu0 }
 0x89e   : > { %v13529_v49 = vpop.f32.mrb[147].mxu0  ;;  %v13661_v36 = vpop.f32.mrb[192].mxu1 }
 0x89f   : > { %v10346_v15 = vadd.f32 %v13527_v11, %v19219_v16  ;;  %v13530_v53 = vadd.f32 %v13529_v49, %v13528_v13  ;;  %v13662_v42 = vpop.f32.mrb[193].mxu1 }
 0x8a0   : > { %v19375_v58 = vadd.f32 %v13662_v42, %v13661_v36  ;;  %v13664_v44 = vpop.f32.mrb[194].mxu1 }
 0x8a1   : > { %v10349_v2 = vadd.f32 %v13530_v53, %v19221_v21  ;;  %v13665_v48 = vpop.f32.mrb[195].mxu1  ;;  %v19379_v60 = vadd.f32 %v19327_v5, %v10346_v15 }
 0x8a2   : > { %v13666_v27 = vadd.f32 %v13665_v48, %v13664_v44 }
 0x8a3   : > { %v13531_v33 = vpop.f32.mrb[148].mxu0  ;;  %v19382_v56 = vadd.f32 %v19333_v8, %v10349_v2 }
 0x8a4   : > { %v13532_v59 = vpop.f32.mrb[149].mxu0 }
 0x8a5   : > { %v13533_v50 = vadd.f32 %v13532_v59, %v13531_v33  ;;  %v13534_v9 = vpop.f32.mrb[150].mxu0 }
 0x8a6   : > { %v13535_v16 = vpop.f32.mrb[151].mxu0  ;;  %v13667_v26 = vpop.f32.mrb[196].mxu1 }
 0x8a7   : > { %v10354_v11 = vadd.f32 %v13533_v50, %v19227_v14  ;;  %v13536_v13 = vadd.f32 %v13535_v16, %v13534_v9  ;;  %v13668_v49 = vpop.f32.mrb[197].mxu1 }
 0x8a8   : > { %v13669_v36 = vadd.f32 %v13668_v49, %v13667_v26  ;;  %v13670_v21 = vpop.f32.mrb[198].mxu1 }
 0x8a9   : > { %v10357_v53 = vadd.f32 %v13536_v13, %v19229_v45  ;;  %v13671_v5 = vpop.f32.mrb[199].mxu1  ;;  %v19387_v15 = vadd.f32 %v19339_v17, %v10354_v11 }
 0x8aa   : > { %v13672_v42 = vadd.f32 %v13671_v5, %v13670_v21 }
 0x8ab   : > { %v13537_v8 = vpop.f32.mrb[152].mxu0  ;;  %v19390_v44 = vadd.f32 %v19345_v4, %v10357_v53 }
 0x8ac   : > { %v13538_v2 = vpop.f32.mrb[153].mxu0 }
 0x8ad   : > { %v13539_v48 = vadd.f32 %v13538_v2, %v13537_v8  ;;  %v13540_v33 = vpop.f32.mrb[154].mxu0 }
 0x8ae   : > { %v13541_v59 = vpop.f32.mrb[155].mxu0  ;;  %v13673_v14 = vpop.f32.mrb[200].mxu1 }
 0x8af   : > { %v10362_v50 = vadd.f32 %v13539_v48, %v19235_v34  ;;  %v13542_v9 = vadd.f32 %v13541_v59, %v13540_v33  ;;  %v13674_v16 = vpop.f32.mrb[201].mxu1 }
 0x8b0   : > { %v13675_v26 = vadd.f32 %v13674_v16, %v13673_v14  ;;  %v13676_v45 = vpop.f32.mrb[202].mxu1 }
 0x8b1   : > { %v10365_v13 = vadd.f32 %v13542_v9, %v19237_v6  ;;  %v13677_v17 = vpop.f32.mrb[203].mxu1  ;;  %v19395_v11 = vadd.f32 %v19351_v29, %v10362_v50 }
 0x8b2   : > { %v13678_v49 = vadd.f32 %v13677_v17, %v13676_v45 }
 0x8b3   : > { %v13543_v4 = vpop.f32.mrb[156].mxu0  ;;  %v19398_v21 = vadd.f32 %v19357_v52, %v10365_v13 }
 0x8b4   : > { %v13544_v53 = vpop.f32.mrb[157].mxu0 }
 0x8b5   : > { %v13545_v5 = vadd.f32 %v13544_v53, %v13543_v4  ;;  %v13546_v8 = vpop.f32.mrb[158].mxu0 }
 0x8b6   : > { %v13547_v2 = vpop.f32.mrb[159].mxu0  ;;  %v13679_v34 = vpop.f32.mrb[204].mxu1 }
 0x8b7   : > { %v10370_v48 = vadd.f32 %v13545_v5, %v19243_v57  ;;  %v13548_v33 = vadd.f32 %v13547_v2, %v13546_v8  ;;  %v13680_v59 = vpop.f32.mrb[205].mxu1 }
 0x8b8   : > { %v13681_v14 = vadd.f32 %v13680_v59, %v13679_v34  ;;  %v13682_v6 = vpop.f32.mrb[206].mxu1 }
 0x8b9   : > { %v10373_v9 = vadd.f32 %v13548_v33, %v19245_v46  ;;  %v13683_v29 = vpop.f32.mrb[207].mxu1  ;;  %v19403_v50 = vadd.f32 %v19363_v24, %v10370_v48 }
 0x8ba   : > { %v13684_v16 = vadd.f32 %v13683_v29, %v13682_v6 }
 0x8bb   : > { %v13549_v52 = vpop.f32.mrb[160].mxu0  ;;  %v19406_v45 = vadd.f32 %v19369_v3, %v10373_v9 }
 0x8bc   : > { %v13550_v13 = vpop.f32.mrb[161].mxu0 }
 0x8bd   : > { %v13551_v17 = vadd.f32 %v13550_v13, %v13549_v52  ;;  %v13552_v4 = vpop.f32.mrb[162].mxu0 }
 0x8be   : > { %v13553_v53 = vpop.f32.mrb[163].mxu0 }
 0x8bf   : > { %v10378_v57 = vadd.f32 %v13551_v17, %v19251_v12  ;;  %v13554_v5 = vadd.f32 %v13553_v53, %v13552_v4 }
 0x8c1   : > { %v10381_v8 = vadd.f32 %v13554_v5, %v19253_v37  ;;  %v19411_v46 = vadd.f32 %v19375_v58, %v10378_v57 }
 0x8c3   : > { %v13555_v2 = vpop.f32.mrb[164].mxu0  ;;  %v19413_v24 = vadd.f32 %v13666_v27, %v10381_v8 }
 0x8c4   : > { %v13556_v34 = vpop.f32.mrb[165].mxu0 }
 0x8c5   : > { %v13557_v48 = vadd.f32 %v13556_v34, %v13555_v2  ;;  %v13558_v33 = vpop.f32.mrb[166].mxu0 }
 0x8c6   : > { %v13559_v3 = vpop.f32.mrb[167].mxu0 }
 0x8c7   : > { %v10386_v59 = vadd.f32 %v13557_v48, %v19259_v43  ;;  %v13560_v6 = vadd.f32 %v13559_v3, %v13558_v33 }
 0x8c9   : > { %v10389_v9 = vadd.f32 %v13560_v6, %v19261_v41  ;;  %v19417_v29 = vadd.f32 %v13669_v36, %v10386_v59 }
 0x8cb   : > { %v13561_v12 = vpop.f32.mrb[168].mxu0  ;;  %v19419_v52 = vadd.f32 %v13672_v42, %v10389_v9 }
 0x8cc   : > { %v13562_v37 = vpop.f32.mrb[169].mxu0 }
 0x8cd   : > { %v13563_v58 = vadd.f32 %v13562_v37, %v13561_v12  ;;  %v13564_v13 = vpop.f32.mrb[170].mxu0 }
 0x8ce   : > { %v13565_v17 = vpop.f32.mrb[171].mxu0 }
 0x8cf   : > { %v10394_v27 = vadd.f32 %v13563_v58, %v19267_v18  ;;  %v13566_v4 = vadd.f32 %v13565_v17, %v13564_v13 }
 0x8d1   : > { %v10397_v53 = vadd.f32 %v13566_v4, %v19269_v38  ;;  %v19423_v57 = vadd.f32 %v13675_v26, %v10394_v27 }
 0x8d3   : > { %v13567_v43 = vpop.f32.mrb[172].mxu0  ;;  %v19425_v5 = vadd.f32 %v13678_v49, %v10397_v53 }
 0x8d4   : > { %v13568_v41 = vpop.f32.mrb[173].mxu0 }
 0x8d5   : > { %v13569_v36 = vadd.f32 %v13568_v41, %v13567_v43  ;;  %v13570_v8 = vpop.f32.mrb[174].mxu0  ;;  %v20094_v41 = vld [vmem:[#allocation15_spill] sm:$0xff] }
 0x8d6   : > { %v13571_v2 = vpop.f32.mrb[175].mxu0 }
 0x8d7   : > { %v10402_v42 = vadd.f32 %v13569_v36, %v19275_v55  ;;  %v13572_v34 = vadd.f32 %v13571_v2, %v13570_v8  ;;  %v20095_v8 = vld [vmem:[#allocation58_spill] sm:$0xff] }
 0x8d9   : > { %v10405_v48 = vadd.f32 %v13572_v34, %v19277_v1  ;;  %v19429_v33 = vadd.f32 %v13681_v14, %v10402_v42 }
 0x8db   : > { %v13919_v18 = vpop.f32.mrb[176].mxu0  ;;  %v19431_v3 = vadd.f32 %v13684_v16, %v10405_v48 }
 0x8dc   : > { %v10612_v38 = vadd.f32 %v13919_v18, %v19298_v25  ;;  %v10603_v26 = vpop.f32.mrb[177].mxu0 }
 0x8dd   : > { %v10604_v49 = vadd.f32 %v10603_v26, %v19288_v28  ;;  %v13920_v59 = vpop.f32.mrb[178].mxu0 }
 0x8de   : > { %v10732_v6 = vmax.f32 %v10612_v38, 0.0  ;;  %v10615_v9 = vadd.f32 %v13920_v59, %v19302_v7  ;;  %v10606_v12 = vpop.f32.mrb[179].mxu0 }
 0x8df   : > { %v10730_v55 = vmax.f32 %v10604_v49, 0.0  ;;  %v10607_v37 = vadd.f32 %v10606_v12, %v19292_v32 }
 0x8e0   : > { %v10764_v1 = vadd.f32 %v10732_v6, %v18948_v22  ;;  %v10733_v14 = vmax.f32 %v10615_v9, 0.0  ;;  %v20097_v6 = vld [vmem:[#allocation60_spill] sm:$0xff] }
 0x8e1   : > { %v10762_v58 = vadd.f32 %v10730_v55, %v18952_v23  ;;  %v10731_v16 = vmax.f32 %v10607_v37, 0.0  ;;  %v20098_v55 = vld [vmem:[#allocation36_spill] sm:$0xff] }
 0x8e2   : > { %10828 = vst [vmem:[%s19441_s18 + $0x10] sm:$0xff] %v10764_v1  ;;  %v10765_v28 = vadd.f32 %v10733_v14, %v18956_v20  ;;  %v20099_v1 = vld [vmem:[#allocation37_spill] sm:$0xff] }
 0x8e3   : > { %10826 = vst [vmem:[%s19441_s18] sm:$0xff] %v10762_v58  ;;  %v10763_v25 = vadd.f32 %v10731_v16, %v18959_v10  ;;  %v13923_v32 = vpop.f32.mrb[180].mxu0 }
 0x8e4   : > { %10829 = vst [vmem:[%s19441_s18 + $0x18] sm:$0xff] %v10765_v28  ;;  %v10628_v22 = vadd.f32 %v13923_v32, %v19319_v0  ;;  %v10619_v23 = vpop.f32.mrb[181].mxu0 }
 0x8e5   : > { %10827 = vst [vmem:[%s19441_s18 + $0x8] sm:$0xff] %v10763_v25  ;;  %v10620_v7 = vadd.f32 %v10619_v23, %v19308_v35  ;;  %v13924_v13 = vpop.f32.mrb[182].mxu0  ;;  %v20096_v35 = vld [vmem:[#allocation13_spill] sm:$0xff] }
 0x8e6   : > { %v10736_v17 = vmax.f32 %v10628_v22, 0.0  ;;  %v10631_v27 = vadd.f32 %v13924_v13, %v19324_v19  ;;  %v10622_v20 = vpop.f32.mrb[183].mxu0 }
 0x8e7   : > { %v10734_v4 = vmax.f32 %v10620_v7, 0.0  ;;  %v10623_v10 = vadd.f32 %v10622_v20, %v19312_v30 }
 0x8e8   : > { %v10768_v53 = vadd.f32 %v10736_v17, %v18974_v61  ;;  %v10737_v43 = vmax.f32 %v10631_v27, 0.0  ;;  %v20101_v17 = vld [vmem:[#allocation33_spill] sm:$0xff] }
 0x8e9   : > { %v10766_v0 = vadd.f32 %v10734_v4, %v20094_v41  ;;  %v10735_v36 = vmax.f32 %v10623_v10, 0.0  ;;  %v20102_v4 = vld [vmem:[#allocation61_spill] sm:$0xff] }
 0x8ea   : > { %10832 = vst [vmem:[%s19441_s18 + $0x30] sm:$0xff] %v10768_v53  ;;  %v10769_v2 = vadd.f32 %v10737_v43, %v20095_v8  ;;  %v20103_v53 = vld [vmem:[#allocation40_spill] sm:$0xff] }
 0x8eb   : > { %10830 = vst [vmem:[%s19441_s18 + $0x20] sm:$0xff] %v10766_v0  ;;  %v10767_v42 = vadd.f32 %v10735_v36, %v20096_v35  ;;  %v13927_v34 = vpop.f32.mrb[184].mxu0 }
 0x8ec   : > { %10833 = vst [vmem:[%s19441_s18 + $0x38] sm:$0xff] %v10769_v2  ;;  %v10644_v19 = vadd.f32 %v13927_v34, %v19343_v39  ;;  %v10635_v48 = vpop.f32.mrb[185].mxu0 }
 0x8ed   : > { %10831 = vst [vmem:[%s19441_s18 + $0x28] sm:$0xff] %v10767_v42  ;;  %v10636_v61 = vadd.f32 %v10635_v48, %v19331_v47  ;;  %v13928_v30 = vpop.f32.mrb[186].mxu0  ;;  %v20100_v47 = vld [vmem:[#allocation34_spill] sm:$0xff]  ;;  %v20105_v48 = vld [vmem:[#allocation43_spill] sm:$0xff] }
 0x8ee   : > { %v10740_v18 = vmax.f32 %v10644_v19, 0.0  ;;  %v10647_v38 = vadd.f32 %v13928_v30, %v19348_v63  ;;  %v10638_v26 = vpop.f32.mrb[187].mxu0 }
 0x8ef   : > { %v10738_v49 = vmax.f32 %v10636_v61, 0.0  ;;  %v10639_v59 = vadd.f32 %v10638_v26, %v19336_v54  ;;  %v20107_v26 = vld [vmem:[#allocation63_spill] sm:$0xff] }
 0x8f0   : > { %v10772_v9 = vadd.f32 %v10740_v18, %v20097_v6  ;;  %v10741_v12 = vmax.f32 %v10647_v38, 0.0  ;;  %v20106_v18 = vld [vmem:[#allocation41_spill] sm:$0xff] }
 0x8f1   : > { %v10770_v39 = vadd.f32 %v10738_v49, %v20098_v55  ;;  %v10739_v37 = vmax.f32 %v10639_v59, 0.0 }
 0x8f2   : > { %10836 = vst [vmem:[%s19441_s18 + $0x50] sm:$0xff] %v10772_v9  ;;  %v10773_v14 = vadd.f32 %v10741_v12, %v20099_v1 }
 0x8f3   : > { %10834 = vst [vmem:[%s19441_s18 + $0x40] sm:$0xff] %v10770_v39  ;;  %v10771_v58 = vadd.f32 %v10739_v37, %v20100_v47  ;;  %v13931_v16 = vpop.f32.mrb[188].mxu0  ;;  %v20109_v47 = vld [vmem:[#allocation64_spill] sm:$0xff] }
 0x8f4   : > { %10837 = vst [vmem:[%s19441_s18 + $0x58] sm:$0xff] %v10773_v14  ;;  %v10660_v63 = vadd.f32 %v13931_v16, %v19367_v40  ;;  %v10651_v28 = vpop.f32.mrb[189].mxu0 }
 0x8f5   : > { %10835 = vst [vmem:[%s19441_s18 + $0x48] sm:$0xff] %v10771_v58  ;;  %v10652_v54 = vadd.f32 %v10651_v28, %v19355_v31  ;;  %v13932_v25 = vpop.f32.mrb[190].mxu0  ;;  %v20104_v31 = vld [vmem:[#allocation62_spill] sm:$0xff] }
 0x8f6   : > { %v10744_v32 = vmax.f32 %v10660_v63, 0.0  ;;  %v10663_v22 = vadd.f32 %v13932_v25, %v19372_v62  ;;  %v10654_v23 = vpop.f32.mrb[191].mxu0  ;;  %v20110_v63 = vld [vmem:[#allocation66_spill] sm:$0xff] }
 0x8f7   : > { %v10742_v7 = vmax.f32 %v10652_v54, 0.0  ;;  %v10655_v13 = vadd.f32 %v10654_v23, %v19360_v51  ;;  %v20111_v54 = vld [vmem:[#allocation49_spill] sm:$0xff] }
 0x8f8   : > { %v10776_v27 = vadd.f32 %v10744_v32, %v20101_v17  ;;  %v10745_v20 = vmax.f32 %v10663_v22, 0.0 }
 0x8f9   : > { %v10774_v40 = vadd.f32 %v10742_v7, %v20102_v4  ;;  %v10743_v10 = vmax.f32 %v10655_v13, 0.0 }
 0x8fa   : > { %10840 = vst [vmem:[%s19441_s18 + $0x70] sm:$0xff] %v10776_v27  ;;  %v10777_v43 = vadd.f32 %v10745_v20, %v20103_v53 }
 0x8fb   : > { %10838 = vst [vmem:[%s19441_s18 + $0x60] sm:$0xff] %v10774_v40  ;;  %v10775_v41 = vadd.f32 %v10743_v10, %v20104_v31  ;;  %v13935_v0 = vpop.f32.mrb[192].mxu0  ;;  %v20113_v40 = vld [vmem:[#allocation39_spill] sm:$0xff] }
 0x8fc   : > { %10841 = vst [vmem:[%s19441_s18 + $0x78] sm:$0xff] %v10777_v43  ;;  %v10676_v62 = vadd.f32 %v13935_v0, %v19387_v15  ;;  %v10667_v36 = vpop.f32.mrb[193].mxu0  ;;  %v20114_v43 = vld [vmem:[#allocation67_spill] sm:$0xff]  ;;  %v20116_v0 = vld [vmem:[#allocation68_spill] sm:$0xff] }
 0x8fd   : > { %10839 = vst [vmem:[%s19441_s18 + $0x68] sm:$0xff] %v10775_v41  ;;  %v10668_v51 = vadd.f32 %v10667_v36, %v19379_v60  ;;  %v13936_v8 = vpop.f32.mrb[194].mxu0  ;;  %v20108_v60 = vld [vmem:[#allocation65_spill] sm:$0xff]  ;;  %v20115_v41 = vld [vmem:[#allocation42_spill] sm:$0xff] }
 0x8fe   : > { %v10748_v2 = vmax.f32 %v10676_v62, 0.0  ;;  %v10679_v35 = vadd.f32 %v13936_v8, %v19390_v44  ;;  %v10670_v42 = vpop.f32.mrb[195].mxu0 }
 0x8ff   : > { %v10746_v34 = vmax.f32 %v10668_v51, 0.0  ;;  %v10671_v19 = vadd.f32 %v10670_v42, %v19382_v56 }
 0x900   : > { %v10780_v61 = vadd.f32 %v10748_v2, %v20105_v48  ;;  %v10749_v30 = vmax.f32 %v10679_v35, 0.0 }
 0x901   : > { %v10778_v15 = vadd.f32 %v10746_v34, %v20106_v18  ;;  %v10747_v38 = vmax.f32 %v10671_v19, 0.0 }
 0x902   : > { %10844 = vst [vmem:[%s19441_s18 + $0x90] sm:$0xff] %v10780_v61  ;;  %v10781_v49 = vadd.f32 %v10749_v30, %v20107_v26  ;;  %v20118_v30 = vld [vmem:[#allocation51_spill] sm:$0xff] }
 0x903   : > { %10842 = vst [vmem:[%s19441_s18 + $0x80] sm:$0xff] %v10778_v15  ;;  %v10779_v59 = vadd.f32 %v10747_v38, %v20108_v60  ;;  %v13939_v6 = vpop.f32.mrb[196].mxu0  ;;  %v20119_v15 = vld [vmem:[#allocation71_spill] sm:$0xff] }
 0x904   : > { %10845 = vst [vmem:[%s19441_s18 + $0x98] sm:$0xff] %v10781_v49  ;;  %v10692_v44 = vadd.f32 %v13939_v6, %v19403_v50  ;;  %v10683_v9 = vpop.f32.mrb[197].mxu0 }
 0x905   : > { %10843 = vst [vmem:[%s19441_s18 + $0x88] sm:$0xff] %v10779_v59  ;;  %v10684_v56 = vadd.f32 %v10683_v9, %v19395_v11  ;;  %v13940_v12 = vpop.f32.mrb[198].mxu0  ;;  %v20112_v11 = vld [vmem:[#allocation46_spill] sm:$0xff] }
 0x906   : > { %v10752_v55 = vmax.f32 %v10692_v44, 0.0  ;;  %v10695_v39 = vadd.f32 %v13940_v12, %v19406_v45  ;;  %v10686_v37 = vpop.f32.mrb[199].mxu0 }
 0x907   : > { %v10750_v1 = vmax.f32 %v10684_v56, 0.0  ;;  %v10687_v14 = vadd.f32 %v10686_v37, %v19398_v21 }
 0x908   : > { %v10784_v58 = vadd.f32 %v10752_v55, %v20109_v47  ;;  %v10753_v16 = vmax.f32 %v10695_v39, 0.0 }
 0x909   : > { %v10782_v50 = vadd.f32 %v10750_v1, %v20110_v63  ;;  %v10751_v28 = vmax.f32 %v10687_v14, 0.0 }
 0x90a   : > { %10848 = vst [vmem:[%s19441_s18 + $0xb0] sm:$0xff] %v10784_v58  ;;  %v10785_v25 = vadd.f32 %v10753_v16, %v20111_v54 }
 0x90b   : > { %10846 = vst [vmem:[%s19441_s18 + $0xa0] sm:$0xff] %v10782_v50  ;;  %v10783_v32 = vadd.f32 %v10751_v28, %v20112_v11  ;;  %v13943_v22 = vpop.f32.mrb[200].mxu0 }
 0x90c   : > { %10849 = vst [vmem:[%s19441_s18 + $0xb8] sm:$0xff] %v10785_v25  ;;  %v10708_v45 = vadd.f32 %v13943_v22, %v19417_v29  ;;  %v10699_v23 = vpop.f32.mrb[201].mxu0 }
 0x90d   : > { %10847 = vst [vmem:[%s19441_s18 + $0xa8] sm:$0xff] %v10783_v32  ;;  %v10700_v21 = vadd.f32 %v10699_v23, %v19411_v46  ;;  %v13944_v7 = vpop.f32.mrb[202].mxu0 }
 0x90e   : > { %v10756_v13 = vmax.f32 %v10708_v45, 0.0  ;;  %v10711_v17 = vadd.f32 %v13944_v7, %v19419_v52  ;;  %v10702_v27 = vpop.f32.mrb[203].mxu0 }
 0x90f   : > { %v10754_v20 = vmax.f32 %v10700_v21, 0.0  ;;  %v10703_v4 = vadd.f32 %v10702_v27, %v19413_v24 }
 0x910   : > { %v10788_v10 = vadd.f32 %v10756_v13, %v20113_v40  ;;  %v10757_v53 = vmax.f32 %v10711_v17, 0.0 }
 0x911   : > { %v10786_v29 = vadd.f32 %v10754_v20, %v20114_v43  ;;  %v10755_v31 = vmax.f32 %v10703_v4, 0.0 }
 0x912   : > { %10852 = vst [vmem:[%s19441_s18 + $0xd0] sm:$0xff] %v10788_v10  ;;  %v10789_v46 = vadd.f32 %v10757_v53, %v20115_v41 }
 0x913   : > { %10850 = vst [vmem:[%s19441_s18 + $0xc0] sm:$0xff] %v10786_v29  ;;  %v10787_v62 = vadd.f32 %v10755_v31, %v20116_v0  ;;  %v13947_v52 = vpop.f32.mrb[204].mxu0 }
 0x914   : > { %10853 = vst [vmem:[%s19441_s18 + $0xd8] sm:$0xff] %v10789_v46  ;;  %v10724_v36 = vadd.f32 %v13947_v52, %v19429_v33  ;;  %v10715_v24 = vpop.f32.mrb[205].mxu0  ;;  %v20117_v33 = vld [vmem:[#allocation70_spill] sm:$0xff] }
 0x915   : > { %10851 = vst [vmem:[%s19441_s18 + $0xc8] sm:$0xff] %v10787_v62  ;;  %v10716_v51 = vadd.f32 %v10715_v24, %v19423_v57  ;;  %v13948_v8 = vpop.f32.mrb[206].mxu0 }
 0x916   : > { %v10760_v2 = vmax.f32 %v10724_v36, 0.0  ;;  %v10727_v35 = vadd.f32 %v13948_v8, %v19431_v3  ;;  %v10718_v42 = vpop.f32.mrb[207].mxu0 }
 0x917   : > { %v10758_v34 = vmax.f32 %v10716_v51, 0.0  ;;  %v10719_v19 = vadd.f32 %v10718_v42, %v19425_v5  ;;  %v20120_v5 = vld [vmem:[#allocation69_spill] sm:$0xff] }
 0x918   : > { %v10792_v48 = vadd.f32 %v10760_v2, %v20117_v33  ;;  %v10761_v61 = vmax.f32 %v10727_v35, 0.0 }
 0x919   : > { %v10790_v57 = vadd.f32 %v10758_v34, %v20118_v30  ;;  %v10759_v18 = vmax.f32 %v10719_v19, 0.0 }
 0x91a   : > { %10856 = vst [vmem:[%s19441_s18 + $0xf0] sm:$0xff] %v10792_v48  ;;  %v10793_v38 = vadd.f32 %v10761_v61, %v20119_v15 }
 0x91b   : > { %10854 = vst [vmem:[%s19441_s18 + $0xe0] sm:$0xff] %v10790_v57  ;;  %v10791_v3 = vadd.f32 %v10759_v18, %v20120_v5 }
 0x91c   : > { %10857 = vst [vmem:[%s19441_s18 + $0xf8] sm:$0xff] %v10793_v38 }
 0x91d   : > { %10855 = vst [vmem:[%s19441_s18 + $0xe8] sm:$0xff] %v10791_v3 }
 0x91e   : > { %14538 = shalt.err (!%p14535_p2)
}
 0x91f   : > { %s14539_s25 = scalar_lea.hbm %s19534_s29, 4096  ;;  %s14543_s27 = scalar_lea.hbm %s19587_s3, 8192 }
 0x920   : > { %p14540_p13 = scmp.ne.s32.totalorder %s19534_s29, %s14539_s25  ;;  %p14544_p4 = scmp.lt.u32.totalorder %s19534_s29, %s19587_s3 }
 0x921   : > { %p14545_p7 = scmp.lt.u32.totalorder %s14543_s27, %s14539_s25  ;;  %p14547_p11 = scmp.lt.u32.totalorder %s14539_s25, %s19534_s29 }
 0x922   : > { %p14541_p6 = pnand %p14540_p13, %p20121_p0 }
 0x923   : > { %p14546_p8 = por %p14545_p7, %p14544_p4 }
 0x924   : > { %p14542_p10 = pneg %p14541_p6 }
 0x925   : > { %p14548_p1 = por %p14547_p11, %p14546_p8 }
 0x927   : > { %p14549_p3 = pnand %p14548_p1, %p14542_p10 }
 0x929   : > { %14552 = shalt.err (!%p14549_p3)
}
 0x92a   : > { %s14609_s6 = smov 128   ;;  %s14610_s18 = smov 8  }
 0x92b   : > { %13975 = dma.vmem_to_hbm [thread:$0]  (%p20121_p0), %s19536_s26, 4096, %s19534_s29, %s10859_s16, %s14609_s6, %s14609_s6, %s14610_s18  }
 0x92c PF: > { %s10887_s20 = sand.u32 1, %s14583_s12   ;;  %p20122_p5 = scmp.ne.s32.totalorder %s19716_s19, 0 }
 0x92d   : > { %p20123_p9 = scmp.ge.s32.totalorder %s14595_s15, 2  ;;  %s10888_s28 = scalar_lea.sflag [#allocation5], %s10887_s20 }
 0x92f   : > { %p13989_p12 = pnand %p20123_p9, %p20122_p5 }
 0x931   : > { %14578 = dma.done.wait (!%p13989_p12), %s10888_s28, 4096  }
 0x932   : > { %14580 = vsyncadd (!%p13989_p12), %s10888_s28, 4294963200  ;;  %p17_p2 = scmp.ge.s32.totalorder %s14742_s7, 4   ;;  %s20124_s12 = smov %s14587_s13 }
 0x933   : > { %s20125_s13 = smov %s14591_s14  ;;  %s20126_s14 = smov %s14751_s10 }
 0x934   : > { %s20127_s15 = smov %s14742_s7  ;;  %19 = sbr.rel (!%p17_p2) target bundleno = 6 (0x6), region = 99 }
 0x93b   :  { %10893 = vsyncpa [#allocation4], 1 }
 0x93c   :  { %10895 = vsyncpa [#allocation4 + $0x1], 1 }
 0x93d   :  { %10896 = vsyncpa [#allocation7], 1 }
 0x93e   :  { %10897 = vsyncpa [#allocation5], 1 }
 0x93f   :  { %10899 = vsyncpa [#allocation5 + $0x1], 1 }

</bundles_post_ra>
